<compile_context>
chip_gen: v6e
topology: v6e:2x2x1
jax: 0.10.0
libtpu: 0.0.40
codegen_flags: <defaults>
</compile_context>

<pallas_src>
import jax
import jax.numpy as jnp
from jax import lax
from jax.experimental import pallas as pl
from jax.experimental.pallas import tpu as pltpu


def _round_up(v, m):
    return (v + m - 1) // m * m


def _fold_bn(gamma, beta, mean, var, eps=1e-5):
    scale = gamma / jnp.sqrt(var + eps)
    bias = beta - mean * scale
    return scale, bias


def _make_kernel(TR, HT, H, W, Cp, Cmid_p, Cout_p):
    """Fused conv1+bn1+relu+conv2+bn2+add+relu for one (sample, row-tile) step.

    TR output rows per step.  xpad holds TR+4 rows of x (2-row halo each side),
    y1pad holds TR+2 rows of y1 (1-row halo each side); both have a 1-col halo
    with the data placed at sublane offset 8 so interior stores are aligned.
    """
    R1 = TR + 2            # rows of y1 needed for TR output rows
    XPR = TR + 4           # rows of x needed for R1 rows of y1
    WP = W + 16            # scratch width: data cols [8, 8+W), halo cols 7 / 8+W

    def kernel(x_ref, w1_ref, b1_ref, w2_ref, b2_ref, o_ref, xpad_ref, y1pad_ref):
        t = pl.program_id(1)
        xdt = xpad_ref.dtype
        ydt = y1pad_ref.dtype

        # ---------- stage x row-slab (+halo) into xpad ----------
        # Column halos: zero the 8-wide aligned slabs covering cols 7 and 8+W.
        xpad_ref[:, 0:8, :] = jnp.zeros((XPR, 8, Cp), xdt)
        xpad_ref[:, 8 + W:, :] = jnp.zeros((XPR, WP - 8 - W, Cp), xdt)
        if HT == 1:
            xpad_ref[0:2, 8:8 + W, :] = jnp.zeros((2, W, Cp), xdt)
            xpad_ref[XPR - 2:XPR, 8:8 + W, :] = jnp.zeros((2, W, Cp), xdt)
            xpad_ref[2:2 + H, 8:8 + W, :] = x_ref[0]
        else:
            @pl.when(t == 0)
            def _():
                xpad_ref[0:2, 8:8 + W, :] = jnp.zeros((2, W, Cp), xdt)
                xpad_ref[2:XPR, 8:8 + W, :] = x_ref[0, 0:TR + 2, :, :]

            @pl.when(t == HT - 1)
            def _():
                xpad_ref[XPR - 2:XPR, 8:8 + W, :] = jnp.zeros((2, W, Cp), xdt)
                xpad_ref[0:TR + 2, 8:8 + W, :] = x_ref[0, H - TR - 2:H, :, :]

            if HT > 2:
                @pl.when(jnp.logical_and(t > 0, t < HT - 1))
                def _():
                    r0 = pl.multiple_of(t * TR, TR)
                    xpad_ref[0:XPR, 8:8 + W, :] = x_ref[0, pl.ds(r0 - 2, XPR), :, :]

        # ---------- conv1 + bn1 + relu : 9 accumulating MXU matmuls ----------
        y1 = None
        for dy in range(3):
            for dx in range(3):
                m = xpad_ref[dy:dy + R1, 7 + dx:7 + dx + W, :].reshape(R1 * W, Cp)
                c = jnp.dot(m, w1_ref[dy, dx], preferred_element_type=jnp.float32)
                y1 = c if y1 is None else y1 + c
        y1 = jnp.maximum(y1 + b1_ref[...].astype(jnp.float32), 0.0)

        # ---------- stage y1 (+1-pixel halo) for conv2 (stays in VMEM) -------
        y1pad_ref[:, 0:8, :] = jnp.zeros((R1, 8, Cmid_p), ydt)
        y1pad_ref[:, 8 + W:, :] = jnp.zeros((R1, WP - 8 - W, Cmid_p), ydt)
        y1pad_ref[0:R1, 8:8 + W, :] = y1.reshape(R1, W, Cmid_p).astype(ydt)
        # conv2 zero-pads y1 at the image border rows (not conv1 of padded x).
        if HT == 1:
            y1pad_ref[0:1, 8:8 + W, :] = jnp.zeros((1, W, Cmid_p), ydt)
            y1pad_ref[R1 - 1:R1, 8:8 + W, :] = jnp.zeros((1, W, Cmid_p), ydt)
        else:
            @pl.when(t == 0)
            def _():
                y1pad_ref[0:1, 8:8 + W, :] = jnp.zeros((1, W, Cmid_p), ydt)

            @pl.when(t == HT - 1)
            def _():
                y1pad_ref[R1 - 1:R1, 8:8 + W, :] = jnp.zeros((1, W, Cmid_p), ydt)

        # ---------- conv2 + bn2 + residual add + relu ----------
        acc = None
        for dy in range(3):
            for dx in range(3):
                m = y1pad_ref[dy:dy + TR, 7 + dx:7 + dx + W, :].reshape(TR * W, Cmid_p)
                c = jnp.dot(m, w2_ref[dy, dx], preferred_element_type=jnp.float32)
                acc = c if acc is None else acc + c
        r0 = pl.multiple_of(t * TR, TR)
        res = x_ref[0, pl.ds(r0, TR), :, :].astype(jnp.float32).reshape(TR * W, Cout_p)
        out = jnp.maximum(acc + b2_ref[...].astype(jnp.float32) + res, 0.0)
        o_ref[...] = out.reshape(1, TR, W, Cout_p).astype(o_ref.dtype)

    return kernel


def basic_block_forward(x_nchw, params, *, compute_dtype=jnp.float32, row_tile=8):
    """x_nchw: (N, C, H, W) float32 -> (N, C, H, W) float32.

    compute_dtype=jnp.bfloat16 is recommended on v6e/v7x (f32 accumulation is
    kept); the f32 default matches PyTorch numerics.
    """
    N, C, H, W = x_nchw.shape
    w1, (g1, b1, m1, v1) = params["conv1"], params["bn1"]
    w2, (g2, b2, m2, v2) = params["conv2"], params["bn2"]
    Cmid = w1.shape[-1]
    Cout = w2.shape[-1]
    assert Cout == C, "identity shortcut requires in_planes == planes"
    # TODO(synk): stride-2 / 1x1-conv downsample shortcut not implemented
    # (identity BasicBlock configuration only).

    # Channel padding to 128 lanes (lane-dense vregs, unmasked output stores).
    Cp = _round_up(C, 128)
    Cmid_p = _round_up(Cmid, 128)
    Cout_p = Cp

    s1, o1 = _fold_bn(g1, b1, m1, v1)
    s2, o2 = _fold_bn(g2, b2, m2, v2)
    w1f = jnp.pad(w1 * s1[None, None, None, :],
                  ((0, 0), (0, 0), (0, Cp - C), (0, Cmid_p - Cmid))).astype(compute_dtype)
    w2f = jnp.pad(w2 * s2[None, None, None, :],
                  ((0, 0), (0, 0), (0, Cmid_p - Cmid), (0, Cout_p - Cout))).astype(compute_dtype)
    b1r = jnp.pad(o1, (0, Cmid_p - Cmid)).reshape(1, Cmid_p).astype(jnp.float32)
    b2r = jnp.pad(o2, (0, Cout_p - Cout)).reshape(1, Cout_p).astype(jnp.float32)

    # NCHW -> NHWC, pad channels.
    # TODO(synk): in a full ResNet stack keep activations NHWC / 128-padded end
    # to end so these per-block transposes / pads are not extra HBM passes.
    x = jnp.transpose(x_nchw, (0, 2, 3, 1)).astype(compute_dtype)
    if Cp != C:
        x = jnp.pad(x, ((0, 0), (0, 0), (0, 0), (0, Cp - C)))

    # Row-tile grid axis (bounds per-step VMEM, >=2 parallel steps at batch 1).
    TR = row_tile
    if TR <= 0 or H % TR != 0:
        TR = H
    if H // TR >= 2 and TR + 2 > H:
        TR = H
    HT = H // TR

    kernel = _make_kernel(TR, HT, H, W, Cp, Cmid_p, Cout_p)

    def build(weight_mode):
        def const_spec(shape):
            if weight_mode is None:
                return pl.BlockSpec(shape, lambda n, t: (0,) * len(shape))
            return pl.BlockSpec(shape, lambda n, t: (0,) * len(shape),
                                pipeline_mode=weight_mode)

        grid_spec = pltpu.PrefetchScalarGridSpec(
            num_scalar_prefetch=0,
            grid=(N, HT),
            in_specs=[
                pl.BlockSpec((1, H, W, Cp), lambda n, t: (n, 0, 0, 0)),
                const_spec((3, 3, Cp, Cmid_p)),
                const_spec((1, Cmid_p)),
                const_spec((3, 3, Cmid_p, Cout_p)),
                const_spec((1, Cout_p)),
            ],
            out_specs=pl.BlockSpec((1, TR, W, Cout_p), lambda n, t: (n, t, 0, 0)),
            scratch_shapes=[
                pltpu.VMEM((TR + 4, W + 16, Cp), compute_dtype),       # x halo slab
                pltpu.VMEM((TR + 2, W + 16, Cmid_p), compute_dtype),   # y1 halo slab
            ],
        )
        return pl.pallas_call(
            kernel,
            out_shape=jax.ShapeDtypeStruct((N, H, W, Cout_p), jnp.float32),
            grid_spec=grid_spec,
            compiler_params=pltpu.CompilerParams(
                dimension_semantics=("parallel", "parallel"),
                vmem_limit_bytes=48 * 1024 * 1024,
            ),
        )(x, w1f, b1r, w2f, b2r)

    try:
        # Grid-invariant weights/biases: single-buffer to halve their VMEM.
        out_nhwc = build(pl.Buffered(1))
    except Exception:
        out_nhwc = build(None)

    out = out_nhwc[..., :C]
    return jnp.transpose(out, (0, 3, 1, 2))   # NHWC -> NCHW


def _reference_forward(x_nchw, params):
    """Pure-JAX reference (eval-mode BN, same folding)."""
    x = jnp.transpose(x_nchw, (0, 2, 3, 1))
    w1, (g1, b1, m1, v1) = params["conv1"], params["bn1"]
    w2, (g2, b2, m2, v2) = params["conv2"], params["bn2"]
    s1, o1 = _fold_bn(g1, b1, m1, v1)
    s2, o2 = _fold_bn(g2, b2, m2, v2)
    dn = ("NHWC", "HWIO", "NHWC")
    y = lax.conv_general_dilated(x, w1, (1, 1), "SAME", dimension_numbers=dn,
                                 precision=lax.Precision.HIGHEST)
    y = jnp.maximum(y * s1 + o1, 0.0)
    z = lax.conv_general_dilated(y, w2, (1, 1), "SAME", dimension_numbers=dn,
                                 precision=lax.Precision.HIGHEST)
    z = jnp.maximum(z * s2 + o2 + x, 0.0)
    return jnp.transpose(z, (0, 3, 1, 2))


def make_params(key, in_planes, planes):
    ks = jax.random.split(key, 10)
    w1 = jax.random.normal(ks[0], (3, 3, in_planes, planes), jnp.float32) * 0.1
    w2 = jax.random.normal(ks[1], (3, 3, planes, planes), jnp.float32) * 0.1
    bn1 = (jax.random.uniform(ks[2], (planes,), jnp.float32, 0.5, 1.5),   # gamma
           jax.random.normal(ks[3], (planes,), jnp.float32) * 0.1,        # beta
           jax.random.normal(ks[4], (planes,), jnp.float32) * 0.1,        # running_mean
           jax.random.uniform(ks[5], (planes,), jnp.float32, 0.5, 1.5))   # running_var
    bn2 = (jax.random.uniform(ks[6], (planes,), jnp.float32, 0.5, 1.5),
           jax.random.normal(ks[7], (planes,), jnp.float32) * 0.1,
           jax.random.normal(ks[8], (planes,), jnp.float32) * 0.1,
           jax.random.uniform(ks[9], (planes,), jnp.float32, 0.5, 1.5))
    return {"conv1": w1, "bn1": bn1, "conv2": w2, "bn2": bn2}


if __name__ == "__main__":
    key = jax.random.PRNGKey(0)
    k_x, k_p = jax.random.split(key)

    N, C, H, W = 2, 4, 16, 16
    x = jax.random.normal(k_x, (N, C, H, W), jnp.float32)
    params = make_params(k_p, in_planes=C, planes=C)

    ref = _reference_forward(x, params)

    # f32 compute path (matches PyTorch numerics).
    out = jax.block_until_ready(basic_block_forward(x, params))
    assert out.shape == (N, C, H, W), out.shape
    max_err = float(jnp.max(jnp.abs(out - ref)))
    assert jnp.allclose(out, ref, atol=2e-2, rtol=2e-2), max_err

    # bf16 compute path (recommended on v6e/v7x): looser tolerance vs f32 ref.
    out_bf16 = jax.block_until_ready(
        basic_block_forward(x, params, compute_dtype=jnp.bfloat16))
    max_err_bf16 = float(jnp.max(jnp.abs(out_bf16 - ref)))
    assert jnp.allclose(out_bf16, ref, atol=1e-1, rtol=1e-1), max_err_bf16

    print("KERNEL_OK")
</pallas_src>

<mosaic_0001>
module attributes {stable_mosaic.version = 11 : i64} {
  func.func @kernel(%arg0: i32, %arg1: i32, %arg2: memref<1x16x16x128xf32, #tpu.memory_space<vmem>>, %arg3: memref<3x3x128x128xf32, #tpu.memory_space<vmem>>, %arg4: memref<1x128xf32, #tpu.memory_space<vmem>>, %arg5: memref<3x3x128x128xf32, #tpu.memory_space<vmem>>, %arg6: memref<1x128xf32, #tpu.memory_space<vmem>>, %arg7: memref<1x8x16x128xf32, #tpu.memory_space<vmem>>, %arg8: memref<12x32x128xf32, #tpu.memory_space<vmem>>, %arg9: memref<10x32x128xf32, #tpu.memory_space<vmem>>) attributes {dimension_semantics = [#tpu.dimension_semantics<parallel>, #tpu.dimension_semantics<parallel>], iteration_bounds = array<i64: 2, 2>, scalar_prefetch = 0 : i64, scratch_operands = 2 : i64, tpu.core_type = #tpu.core_type<tc>, window_params = [{transform_indices = @transform_0, window_bounds = array<i64: 1, 16, 16, 128>}, {pipeline_mode = #tpu.pipeline_mode<synchronous>, transform_indices = @transform_1, window_bounds = array<i64: 3, 3, 128, 128>}, {pipeline_mode = #tpu.pipeline_mode<synchronous>, transform_indices = @transform_2, window_bounds = array<i64: 1, 128>}, {pipeline_mode = #tpu.pipeline_mode<synchronous>, transform_indices = @transform_3, window_bounds = array<i64: 3, 3, 128, 128>}, {pipeline_mode = #tpu.pipeline_mode<synchronous>, transform_indices = @transform_4, window_bounds = array<i64: 1, 128>}, {transform_indices = @transform_5, window_bounds = array<i64: 1, 8, 16, 128>}]} {
    %cst = arith.constant 0.000000e+00 : f32
    %0 = vector.broadcast %cst : f32 to vector<12x8x128xf32>
    %c0 = arith.constant 0 : index
    %c0_0 = arith.constant 0 : index
    %c0_1 = arith.constant 0 : index
    %1 = vector.load %arg8[%c0, %c0_0, %c0_1] : memref<12x32x128xf32, #tpu.memory_space<vmem>>, vector<12x8x128xf32>
    tpu.vector_store %arg8[%c0, %c0_0, %c0_1], %0 {strides = array<i32>} : memref<12x32x128xf32, #tpu.memory_space<vmem>>, vector<12x8x128xf32>,
    %cst_2 = arith.constant 0.000000e+00 : f32
    %2 = vector.broadcast %cst_2 : f32 to vector<12x8x128xf32>
    %c0_3 = arith.constant 0 : index
    %c24 = arith.constant 24 : index
    %c0_4 = arith.constant 0 : index
    %3 = vector.load %arg8[%c0_3, %c24, %c0_4] : memref<12x32x128xf32, #tpu.memory_space<vmem>>, vector<12x8x128xf32>
    tpu.vector_store %arg8[%c0_3, %c24, %c0_4], %2 {strides = array<i32>} : memref<12x32x128xf32, #tpu.memory_space<vmem>>, vector<12x8x128xf32>,
    %c0_i32 = arith.constant 0 : i32
    %4 = arith.cmpi eq, %arg1, %c0_i32 : i32
    %5 = arith.extui %4 : i1 to i32
    %c0_i32_5 = arith.constant 0 : i32
    %6 = arith.cmpi ne, %5, %c0_i32_5 : i32
    scf.if %6 {
      %cst_174 = arith.constant 0.000000e+00 : f32
      %147 = vector.broadcast %cst_174 : f32 to vector<2x16x128xf32>
      %c0_175 = arith.constant 0 : index
      %c8_176 = arith.constant 8 : index
      %c0_177 = arith.constant 0 : index
      %148 = vector.load %arg8[%c0_175, %c8_176, %c0_177] : memref<12x32x128xf32, #tpu.memory_space<vmem>>, vector<2x16x128xf32>
      tpu.vector_store %arg8[%c0_175, %c8_176, %c0_177], %147 {strides = array<i32>} : memref<12x32x128xf32, #tpu.memory_space<vmem>>, vector<2x16x128xf32>,
      %c0_178 = arith.constant 0 : index
      %c0_179 = arith.constant 0 : index
      %c0_180 = arith.constant 0 : index
      %c0_181 = arith.constant 0 : index
      %149 = vector.load %arg2[%c0_178, %c0_179, %c0_180, %c0_181] : memref<1x16x16x128xf32, #tpu.memory_space<vmem>>, vector<1x10x16x128xf32>
      %150 = vector.shape_cast %149 : vector<1x10x16x128xf32> to vector<10x16x128xf32>
      %c2_182 = arith.constant 2 : index
      %c8_183 = arith.constant 8 : index
      %c0_184 = arith.constant 0 : index
      %151 = vector.load %arg8[%c2_182, %c8_183, %c0_184] : memref<12x32x128xf32, #tpu.memory_space<vmem>>, vector<10x16x128xf32>
      tpu.vector_store %arg8[%c2_182, %c8_183, %c0_184], %150 {strides = array<i32>} : memref<12x32x128xf32, #tpu.memory_space<vmem>>, vector<10x16x128xf32>,
    } else {
    }
    %c1_i32 = arith.constant 1 : i32
    %7 = arith.cmpi eq, %arg1, %c1_i32 : i32
    %8 = arith.extui %7 : i1 to i32
    %c0_i32_6 = arith.constant 0 : i32
    %9 = arith.cmpi ne, %8, %c0_i32_6 : i32
    scf.if %9 {
      %cst_174 = arith.constant 0.000000e+00 : f32
      %147 = vector.broadcast %cst_174 : f32 to vector<2x16x128xf32>
      %c10 = arith.constant 10 : index
      %c8_175 = arith.constant 8 : index
      %c0_176 = arith.constant 0 : index
      %148 = vector.load %arg8[%c10, %c8_175, %c0_176] : memref<12x32x128xf32, #tpu.memory_space<vmem>>, vector<2x16x128xf32>
      tpu.vector_store %arg8[%c10, %c8_175, %c0_176], %147 {strides = array<i32>} : memref<12x32x128xf32, #tpu.memory_space<vmem>>, vector<2x16x128xf32>,
      %c0_177 = arith.constant 0 : index
      %c6 = arith.constant 6 : index
      %c0_178 = arith.constant 0 : index
      %c0_179 = arith.constant 0 : index
      %149 = vector.load %arg2[%c0_177, %c6, %c0_178, %c0_179] : memref<1x16x16x128xf32, #tpu.memory_space<vmem>>, vector<1x10x16x128xf32>
      %150 = vector.shape_cast %149 : vector<1x10x16x128xf32> to vector<10x16x128xf32>
      %c0_180 = arith.constant 0 : index
      %c8_181 = arith.constant 8 : index
      %c0_182 = arith.constant 0 : index
      %151 = vector.load %arg8[%c0_180, %c8_181, %c0_182] : memref<12x32x128xf32, #tpu.memory_space<vmem>>, vector<10x16x128xf32>
      tpu.vector_store %arg8[%c0_180, %c8_181, %c0_182], %150 {strides = array<i32>} : memref<12x32x128xf32, #tpu.memory_space<vmem>>, vector<10x16x128xf32>,
    } else {
    }
    %c0_7 = arith.constant 0 : index
    %c7 = arith.constant 7 : index
    %c0_8 = arith.constant 0 : index
    %10 = vector.load %arg8[%c0_7, %c7, %c0_8] : memref<12x32x128xf32, #tpu.memory_space<vmem>>, vector<10x16x128xf32>
    %11 = vector.shape_cast %10 : vector<10x16x128xf32> to vector<160x128xf32>
    %c0_9 = arith.constant 0 : index
    %c0_10 = arith.constant 0 : index
    %c0_11 = arith.constant 0 : index
    %c0_12 = arith.constant 0 : index
    %12 = vector.load %arg3[%c0_9, %c0_10, %c0_11, %c0_12] : memref<3x3x128x128xf32, #tpu.memory_space<vmem>>, vector<1x1x128x128xf32>
    %13 = vector.shape_cast %12 : vector<1x1x128x128xf32> to vector<128x128xf32>
    %cst_13 = arith.constant dense<0.000000e+00> : vector<160x128xf32>
    %14 = tpu.matmul %11, %13, %cst_13 {dimension_numbers = #tpu.dot_dimension_numbers<[1], [0], [0], [1], [0, 0, 1, 1], [], []>} : vector<160x128xf32>, vector<128x128xf32>, vector<160x128xf32> -> vector<160x128xf32>
    %c0_14 = arith.constant 0 : index
    %c8 = arith.constant 8 : index
    %c0_15 = arith.constant 0 : index
    %15 = vector.load %arg8[%c0_14, %c8, %c0_15] : memref<12x32x128xf32, #tpu.memory_space<vmem>>, vector<10x16x128xf32>
    %16 = vector.shape_cast %15 : vector<10x16x128xf32> to vector<160x128xf32>
    %c0_16 = arith.constant 0 : index
    %c1 = arith.constant 1 : index
    %c0_17 = arith.constant 0 : index
    %c0_18 = arith.constant 0 : index
    %17 = vector.load %arg3[%c0_16, %c1, %c0_17, %c0_18] : memref<3x3x128x128xf32, #tpu.memory_space<vmem>>, vector<1x1x128x128xf32>
    %18 = vector.shape_cast %17 : vector<1x1x128x128xf32> to vector<128x128xf32>
    %cst_19 = arith.constant dense<0.000000e+00> : vector<160x128xf32>
    %19 = tpu.matmul %16, %18, %cst_19 {dimension_numbers = #tpu.dot_dimension_numbers<[1], [0], [0], [1], [0, 0, 1, 1], [], []>} : vector<160x128xf32>, vector<128x128xf32>, vector<160x128xf32> -> vector<160x128xf32>
    %20 = arith.addf %14, %19 : vector<160x128xf32>
    %c0_20 = arith.constant 0 : index
    %c9 = arith.constant 9 : index
    %c0_21 = arith.constant 0 : index
    %21 = vector.load %arg8[%c0_20, %c9, %c0_21] : memref<12x32x128xf32, #tpu.memory_space<vmem>>, vector<10x16x128xf32>
    %22 = vector.shape_cast %21 : vector<10x16x128xf32> to vector<160x128xf32>
    %c0_22 = arith.constant 0 : index
    %c2 = arith.constant 2 : index
    %c0_23 = arith.constant 0 : index
    %c0_24 = arith.constant 0 : index
    %23 = vector.load %arg3[%c0_22, %c2, %c0_23, %c0_24] : memref<3x3x128x128xf32, #tpu.memory_space<vmem>>, vector<1x1x128x128xf32>
    %24 = vector.shape_cast %23 : vector<1x1x128x128xf32> to vector<128x128xf32>
    %cst_25 = arith.constant dense<0.000000e+00> : vector<160x128xf32>
    %25 = tpu.matmul %22, %24, %cst_25 {dimension_numbers = #tpu.dot_dimension_numbers<[1], [0], [0], [1], [0, 0, 1, 1], [], []>} : vector<160x128xf32>, vector<128x128xf32>, vector<160x128xf32> -> vector<160x128xf32>
    %26 = arith.addf %20, %25 : vector<160x128xf32>
    %c1_26 = arith.constant 1 : index
    %c7_27 = arith.constant 7 : index
    %c0_28 = arith.constant 0 : index
    %27 = vector.load %arg8[%c1_26, %c7_27, %c0_28] : memref<12x32x128xf32, #tpu.memory_space<vmem>>, vector<10x16x128xf32>
    %28 = vector.shape_cast %27 : vector<10x16x128xf32> to vector<160x128xf32>
    %c1_29 = arith.constant 1 : index
    %c0_30 = arith.constant 0 : index
    %c0_31 = arith.constant 0 : index
    %c0_32 = arith.constant 0 : index
    %29 = vector.load %arg3[%c1_29, %c0_30, %c0_31, %c0_32] : memref<3x3x128x128xf32, #tpu.memory_space<vmem>>, vector<1x1x128x128xf32>
    %30 = vector.shape_cast %29 : vector<1x1x128x128xf32> to vector<128x128xf32>
    %cst_33 = arith.constant dense<0.000000e+00> : vector<160x128xf32>
    %31 = tpu.matmul %28, %30, %cst_33 {dimension_numbers = #tpu.dot_dimension_numbers<[1], [0], [0], [1], [0, 0, 1, 1], [], []>} : vector<160x128xf32>, vector<128x128xf32>, vector<160x128xf32> -> vector<160x128xf32>
    %32 = arith.addf %26, %31 : vector<160x128xf32>
    %c1_34 = arith.constant 1 : index
    %c8_35 = arith.constant 8 : index
    %c0_36 = arith.constant 0 : index
    %33 = vector.load %arg8[%c1_34, %c8_35, %c0_36] : memref<12x32x128xf32, #tpu.memory_space<vmem>>, vector<10x16x128xf32>
    %34 = vector.shape_cast %33 : vector<10x16x128xf32> to vector<160x128xf32>
    %c1_37 = arith.constant 1 : index
    %c1_38 = arith.constant 1 : index
    %c0_39 = arith.constant 0 : index
    %c0_40 = arith.constant 0 : index
    %35 = vector.load %arg3[%c1_37, %c1_38, %c0_39, %c0_40] : memref<3x3x128x128xf32, #tpu.memory_space<vmem>>, vector<1x1x128x128xf32>
    %36 = vector.shape_cast %35 : vector<1x1x128x128xf32> to vector<128x128xf32>
    %cst_41 = arith.constant dense<0.000000e+00> : vector<160x128xf32>
    %37 = tpu.matmul %34, %36, %cst_41 {dimension_numbers = #tpu.dot_dimension_numbers<[1], [0], [0], [1], [0, 0, 1, 1], [], []>} : vector<160x128xf32>, vector<128x128xf32>, vector<160x128xf32> -> vector<160x128xf32>
    %38 = arith.addf %32, %37 : vector<160x128xf32>
    %c1_42 = arith.constant 1 : index
    %c9_43 = arith.constant 9 : index
    %c0_44 = arith.constant 0 : index
    %39 = vector.load %arg8[%c1_42, %c9_43, %c0_44] : memref<12x32x128xf32, #tpu.memory_space<vmem>>, vector<10x16x128xf32>
    %40 = vector.shape_cast %39 : vector<10x16x128xf32> to vector<160x128xf32>
    %c1_45 = arith.constant 1 : index
    %c2_46 = arith.constant 2 : index
    %c0_47 = arith.constant 0 : index
    %c0_48 = arith.constant 0 : index
    %41 = vector.load %arg3[%c1_45, %c2_46, %c0_47, %c0_48] : memref<3x3x128x128xf32, #tpu.memory_space<vmem>>, vector<1x1x128x128xf32>
    %42 = vector.shape_cast %41 : vector<1x1x128x128xf32> to vector<128x128xf32>
    %cst_49 = arith.constant dense<0.000000e+00> : vector<160x128xf32>
    %43 = tpu.matmul %40, %42, %cst_49 {dimension_numbers = #tpu.dot_dimension_numbers<[1], [0], [0], [1], [0, 0, 1, 1], [], []>} : vector<160x128xf32>, vector<128x128xf32>, vector<160x128xf32> -> vector<160x128xf32>
    %44 = arith.addf %38, %43 : vector<160x128xf32>
    %c2_50 = arith.constant 2 : index
    %c7_51 = arith.constant 7 : index
    %c0_52 = arith.constant 0 : index
    %45 = vector.load %arg8[%c2_50, %c7_51, %c0_52] : memref<12x32x128xf32, #tpu.memory_space<vmem>>, vector<10x16x128xf32>
    %46 = vector.shape_cast %45 : vector<10x16x128xf32> to vector<160x128xf32>
    %c2_53 = arith.constant 2 : index
    %c0_54 = arith.constant 0 : index
    %c0_55 = arith.constant 0 : index
    %c0_56 = arith.constant 0 : index
    %47 = vector.load %arg3[%c2_53, %c0_54, %c0_55, %c0_56] : memref<3x3x128x128xf32, #tpu.memory_space<vmem>>, vector<1x1x128x128xf32>
    %48 = vector.shape_cast %47 : vector<1x1x128x128xf32> to vector<128x128xf32>
    %cst_57 = arith.constant dense<0.000000e+00> : vector<160x128xf32>
    %49 = tpu.matmul %46, %48, %cst_57 {dimension_numbers = #tpu.dot_dimension_numbers<[1], [0], [0], [1], [0, 0, 1, 1], [], []>} : vector<160x128xf32>, vector<128x128xf32>, vector<160x128xf32> -> vector<160x128xf32>
    %50 = arith.addf %44, %49 : vector<160x128xf32>
    %c2_58 = arith.constant 2 : index
    %c8_59 = arith.constant 8 : index
    %c0_60 = arith.constant 0 : index
    %51 = vector.load %arg8[%c2_58, %c8_59, %c0_60] : memref<12x32x128xf32, #tpu.memory_space<vmem>>, vector<10x16x128xf32>
    %52 = vector.shape_cast %51 : vector<10x16x128xf32> to vector<160x128xf32>
    %c2_61 = arith.constant 2 : index
    %c1_62 = arith.constant 1 : index
    %c0_63 = arith.constant 0 : index
    %c0_64 = arith.constant 0 : index
    %53 = vector.load %arg3[%c2_61, %c1_62, %c0_63, %c0_64] : memref<3x3x128x128xf32, #tpu.memory_space<vmem>>, vector<1x1x128x128xf32>
    %54 = vector.shape_cast %53 : vector<1x1x128x128xf32> to vector<128x128xf32>
    %cst_65 = arith.constant dense<0.000000e+00> : vector<160x128xf32>
    %55 = tpu.matmul %52, %54, %cst_65 {dimension_numbers = #tpu.dot_dimension_numbers<[1], [0], [0], [1], [0, 0, 1, 1], [], []>} : vector<160x128xf32>, vector<128x128xf32>, vector<160x128xf32> -> vector<160x128xf32>
    %56 = arith.addf %50, %55 : vector<160x128xf32>
    %c2_66 = arith.constant 2 : index
    %c9_67 = arith.constant 9 : index
    %c0_68 = arith.constant 0 : index
    %57 = vector.load %arg8[%c2_66, %c9_67, %c0_68] : memref<12x32x128xf32, #tpu.memory_space<vmem>>, vector<10x16x128xf32>
    %58 = vector.shape_cast %57 : vector<10x16x128xf32> to vector<160x128xf32>
    %c2_69 = arith.constant 2 : index
    %c2_70 = arith.constant 2 : index
    %c0_71 = arith.constant 0 : index
    %c0_72 = arith.constant 0 : index
    %59 = vector.load %arg3[%c2_69, %c2_70, %c0_71, %c0_72] : memref<3x3x128x128xf32, #tpu.memory_space<vmem>>, vector<1x1x128x128xf32>
    %60 = vector.shape_cast %59 : vector<1x1x128x128xf32> to vector<128x128xf32>
    %cst_73 = arith.constant dense<0.000000e+00> : vector<160x128xf32>
    %61 = tpu.matmul %58, %60, %cst_73 {dimension_numbers = #tpu.dot_dimension_numbers<[1], [0], [0], [1], [0, 0, 1, 1], [], []>} : vector<160x128xf32>, vector<128x128xf32>, vector<160x128xf32> -> vector<160x128xf32>
    %62 = arith.addf %56, %61 : vector<160x128xf32>
    %c0_74 = arith.constant 0 : index
    %c0_75 = arith.constant 0 : index
    %63 = vector.load %arg4[%c0_74, %c0_75] : memref<1x128xf32, #tpu.memory_space<vmem>>, vector<1x128xf32>
    %64 = vector.broadcast %63 : vector<1x128xf32> to vector<160x128xf32>
    %65 = arith.addf %62, %64 : vector<160x128xf32>
    %cst_76 = arith.constant 0.000000e+00 : f32
    %66 = vector.broadcast %cst_76 : f32 to vector<160x128xf32>
    %67 = arith.maximumf %65, %66 : vector<160x128xf32>
    %cst_77 = arith.constant 0.000000e+00 : f32
    %68 = vector.broadcast %cst_77 : f32 to vector<10x8x128xf32>
    %c0_78 = arith.constant 0 : index
    %c0_79 = arith.constant 0 : index
    %c0_80 = arith.constant 0 : index
    %69 = vector.load %arg9[%c0_78, %c0_79, %c0_80] : memref<10x32x128xf32, #tpu.memory_space<vmem>>, vector<10x8x128xf32>
    tpu.vector_store %arg9[%c0_78, %c0_79, %c0_80], %68 {strides = array<i32>} : memref<10x32x128xf32, #tpu.memory_space<vmem>>, vector<10x8x128xf32>,
    %cst_81 = arith.constant 0.000000e+00 : f32
    %70 = vector.broadcast %cst_81 : f32 to vector<10x8x128xf32>
    %c0_82 = arith.constant 0 : index
    %c24_83 = arith.constant 24 : index
    %c0_84 = arith.constant 0 : index
    %71 = vector.load %arg9[%c0_82, %c24_83, %c0_84] : memref<10x32x128xf32, #tpu.memory_space<vmem>>, vector<10x8x128xf32>
    tpu.vector_store %arg9[%c0_82, %c24_83, %c0_84], %70 {strides = array<i32>} : memref<10x32x128xf32, #tpu.memory_space<vmem>>, vector<10x8x128xf32>,
    %72 = vector.shape_cast %67 : vector<160x128xf32> to vector<10x16x128xf32>
    %c0_85 = arith.constant 0 : index
    %c8_86 = arith.constant 8 : index
    %c0_87 = arith.constant 0 : index
    %73 = vector.load %arg9[%c0_85, %c8_86, %c0_87] : memref<10x32x128xf32, #tpu.memory_space<vmem>>, vector<10x16x128xf32>
    tpu.vector_store %arg9[%c0_85, %c8_86, %c0_87], %72 {strides = array<i32>} : memref<10x32x128xf32, #tpu.memory_space<vmem>>, vector<10x16x128xf32>,
    %c0_i32_88 = arith.constant 0 : i32
    %74 = arith.cmpi eq, %arg1, %c0_i32_88 : i32
    %75 = arith.extui %74 : i1 to i32
    %c0_i32_89 = arith.constant 0 : i32
    %76 = arith.cmpi ne, %75, %c0_i32_89 : i32
    scf.if %76 {
      %cst_174 = arith.constant 0.000000e+00 : f32
      %147 = vector.broadcast %cst_174 : f32 to vector<1x16x128xf32>
      %c0_175 = arith.constant 0 : index
      %c8_176 = arith.constant 8 : index
      %c0_177 = arith.constant 0 : index
      %148 = vector.load %arg9[%c0_175, %c8_176, %c0_177] : memref<10x32x128xf32, #tpu.memory_space<vmem>>, vector<1x16x128xf32>
      tpu.vector_store %arg9[%c0_175, %c8_176, %c0_177], %147 {strides = array<i32>} : memref<10x32x128xf32, #tpu.memory_space<vmem>>, vector<1x16x128xf32>,
    } else {
    }
    %c1_i32_90 = arith.constant 1 : i32
    %77 = arith.cmpi eq, %arg1, %c1_i32_90 : i32
    %78 = arith.extui %77 : i1 to i32
    %c0_i32_91 = arith.constant 0 : i32
    %79 = arith.cmpi ne, %78, %c0_i32_91 : i32
    scf.if %79 {
      %cst_174 = arith.constant 0.000000e+00 : f32
      %147 = vector.broadcast %cst_174 : f32 to vector<1x16x128xf32>
      %c9_175 = arith.constant 9 : index
      %c8_176 = arith.constant 8 : index
      %c0_177 = arith.constant 0 : index
      %148 = vector.load %arg9[%c9_175, %c8_176, %c0_177] : memref<10x32x128xf32, #tpu.memory_space<vmem>>, vector<1x16x128xf32>
      tpu.vector_store %arg9[%c9_175, %c8_176, %c0_177], %147 {strides = array<i32>} : memref<10x32x128xf32, #tpu.memory_space<vmem>>, vector<1x16x128xf32>,
    } else {
    }
    %c0_92 = arith.constant 0 : index
    %c7_93 = arith.constant 7 : index
    %c0_94 = arith.constant 0 : index
    %80 = vector.load %arg9[%c0_92, %c7_93, %c0_94] : memref<10x32x128xf32, #tpu.memory_space<vmem>>, vector<8x16x128xf32>
    %81 = vector.shape_cast %80 : vector<8x16x128xf32> to vector<128x128xf32>
    %c0_95 = arith.constant 0 : index
    %c0_96 = arith.constant 0 : index
    %c0_97 = arith.constant 0 : index
    %c0_98 = arith.constant 0 : index
    %82 = vector.load %arg5[%c0_95, %c0_96, %c0_97, %c0_98] : memref<3x3x128x128xf32, #tpu.memory_space<vmem>>, vector<1x1x128x128xf32>
    %83 = vector.shape_cast %82 : vector<1x1x128x128xf32> to vector<128x128xf32>
    %cst_99 = arith.constant dense<0.000000e+00> : vector<128x128xf32>
    %84 = tpu.matmul %81, %83, %cst_99 {dimension_numbers = #tpu.dot_dimension_numbers<[1], [0], [0], [1], [0, 0, 1, 1], [], []>} : vector<128x128xf32>, vector<128x128xf32>, vector<128x128xf32> -> vector<128x128xf32>
    %c0_100 = arith.constant 0 : index
    %c8_101 = arith.constant 8 : index
    %c0_102 = arith.constant 0 : index
    %85 = vector.load %arg9[%c0_100, %c8_101, %c0_102] : memref<10x32x128xf32, #tpu.memory_space<vmem>>, vector<8x16x128xf32>
    %86 = vector.shape_cast %85 : vector<8x16x128xf32> to vector<128x128xf32>
    %c0_103 = arith.constant 0 : index
    %c1_104 = arith.constant 1 : index
    %c0_105 = arith.constant 0 : index
    %c0_106 = arith.constant 0 : index
    %87 = vector.load %arg5[%c0_103, %c1_104, %c0_105, %c0_106] : memref<3x3x128x128xf32, #tpu.memory_space<vmem>>, vector<1x1x128x128xf32>
    %88 = vector.shape_cast %87 : vector<1x1x128x128xf32> to vector<128x128xf32>
    %cst_107 = arith.constant dense<0.000000e+00> : vector<128x128xf32>
    %89 = tpu.matmul %86, %88, %cst_107 {dimension_numbers = #tpu.dot_dimension_numbers<[1], [0], [0], [1], [0, 0, 1, 1], [], []>} : vector<128x128xf32>, vector<128x128xf32>, vector<128x128xf32> -> vector<128x128xf32>
    %90 = arith.addf %84, %89 : vector<128x128xf32>
    %c0_108 = arith.constant 0 : index
    %c9_109 = arith.constant 9 : index
    %c0_110 = arith.constant 0 : index
    %91 = vector.load %arg9[%c0_108, %c9_109, %c0_110] : memref<10x32x128xf32, #tpu.memory_space<vmem>>, vector<8x16x128xf32>
    %92 = vector.shape_cast %91 : vector<8x16x128xf32> to vector<128x128xf32>
    %c0_111 = arith.constant 0 : index
    %c2_112 = arith.constant 2 : index
    %c0_113 = arith.constant 0 : index
    %c0_114 = arith.constant 0 : index
    %93 = vector.load %arg5[%c0_111, %c2_112, %c0_113, %c0_114] : memref<3x3x128x128xf32, #tpu.memory_space<vmem>>, vector<1x1x128x128xf32>
    %94 = vector.shape_cast %93 : vector<1x1x128x128xf32> to vector<128x128xf32>
    %cst_115 = arith.constant dense<0.000000e+00> : vector<128x128xf32>
    %95 = tpu.matmul %92, %94, %cst_115 {dimension_numbers = #tpu.dot_dimension_numbers<[1], [0], [0], [1], [0, 0, 1, 1], [], []>} : vector<128x128xf32>, vector<128x128xf32>, vector<128x128xf32> -> vector<128x128xf32>
    %96 = arith.addf %90, %95 : vector<128x128xf32>
    %c1_116 = arith.constant 1 : index
    %c7_117 = arith.constant 7 : index
    %c0_118 = arith.constant 0 : index
    %97 = vector.load %arg9[%c1_116, %c7_117, %c0_118] : memref<10x32x128xf32, #tpu.memory_space<vmem>>, vector<8x16x128xf32>
    %98 = vector.shape_cast %97 : vector<8x16x128xf32> to vector<128x128xf32>
    %c1_119 = arith.constant 1 : index
    %c0_120 = arith.constant 0 : index
    %c0_121 = arith.constant 0 : index
    %c0_122 = arith.constant 0 : index
    %99 = vector.load %arg5[%c1_119, %c0_120, %c0_121, %c0_122] : memref<3x3x128x128xf32, #tpu.memory_space<vmem>>, vector<1x1x128x128xf32>
    %100 = vector.shape_cast %99 : vector<1x1x128x128xf32> to vector<128x128xf32>
    %cst_123 = arith.constant dense<0.000000e+00> : vector<128x128xf32>
    %101 = tpu.matmul %98, %100, %cst_123 {dimension_numbers = #tpu.dot_dimension_numbers<[1], [0], [0], [1], [0, 0, 1, 1], [], []>} : vector<128x128xf32>, vector<128x128xf32>, vector<128x128xf32> -> vector<128x128xf32>
    %102 = arith.addf %96, %101 : vector<128x128xf32>
    %c1_124 = arith.constant 1 : index
    %c8_125 = arith.constant 8 : index
    %c0_126 = arith.constant 0 : index
    %103 = vector.load %arg9[%c1_124, %c8_125, %c0_126] : memref<10x32x128xf32, #tpu.memory_space<vmem>>, vector<8x16x128xf32>
    %104 = vector.shape_cast %103 : vector<8x16x128xf32> to vector<128x128xf32>
    %c1_127 = arith.constant 1 : index
    %c1_128 = arith.constant 1 : index
    %c0_129 = arith.constant 0 : index
    %c0_130 = arith.constant 0 : index
    %105 = vector.load %arg5[%c1_127, %c1_128, %c0_129, %c0_130] : memref<3x3x128x128xf32, #tpu.memory_space<vmem>>, vector<1x1x128x128xf32>
    %106 = vector.shape_cast %105 : vector<1x1x128x128xf32> to vector<128x128xf32>
    %cst_131 = arith.constant dense<0.000000e+00> : vector<128x128xf32>
    %107 = tpu.matmul %104, %106, %cst_131 {dimension_numbers = #tpu.dot_dimension_numbers<[1], [0], [0], [1], [0, 0, 1, 1], [], []>} : vector<128x128xf32>, vector<128x128xf32>, vector<128x128xf32> -> vector<128x128xf32>
    %108 = arith.addf %102, %107 : vector<128x128xf32>
    %c1_132 = arith.constant 1 : index
    %c9_133 = arith.constant 9 : index
    %c0_134 = arith.constant 0 : index
    %109 = vector.load %arg9[%c1_132, %c9_133, %c0_134] : memref<10x32x128xf32, #tpu.memory_space<vmem>>, vector<8x16x128xf32>
    %110 = vector.shape_cast %109 : vector<8x16x128xf32> to vector<128x128xf32>
    %c1_135 = arith.constant 1 : index
    %c2_136 = arith.constant 2 : index
    %c0_137 = arith.constant 0 : index
    %c0_138 = arith.constant 0 : index
    %111 = vector.load %arg5[%c1_135, %c2_136, %c0_137, %c0_138] : memref<3x3x128x128xf32, #tpu.memory_space<vmem>>, vector<1x1x128x128xf32>
    %112 = vector.shape_cast %111 : vector<1x1x128x128xf32> to vector<128x128xf32>
    %cst_139 = arith.constant dense<0.000000e+00> : vector<128x128xf32>
    %113 = tpu.matmul %110, %112, %cst_139 {dimension_numbers = #tpu.dot_dimension_numbers<[1], [0], [0], [1], [0, 0, 1, 1], [], []>} : vector<128x128xf32>, vector<128x128xf32>, vector<128x128xf32> -> vector<128x128xf32>
    %114 = arith.addf %108, %113 : vector<128x128xf32>
    %c2_140 = arith.constant 2 : index
    %c7_141 = arith.constant 7 : index
    %c0_142 = arith.constant 0 : index
    %115 = vector.load %arg9[%c2_140, %c7_141, %c0_142] : memref<10x32x128xf32, #tpu.memory_space<vmem>>, vector<8x16x128xf32>
    %116 = vector.shape_cast %115 : vector<8x16x128xf32> to vector<128x128xf32>
    %c2_143 = arith.constant 2 : index
    %c0_144 = arith.constant 0 : index
    %c0_145 = arith.constant 0 : index
    %c0_146 = arith.constant 0 : index
    %117 = vector.load %arg5[%c2_143, %c0_144, %c0_145, %c0_146] : memref<3x3x128x128xf32, #tpu.memory_space<vmem>>, vector<1x1x128x128xf32>
    %118 = vector.shape_cast %117 : vector<1x1x128x128xf32> to vector<128x128xf32>
    %cst_147 = arith.constant dense<0.000000e+00> : vector<128x128xf32>
    %119 = tpu.matmul %116, %118, %cst_147 {dimension_numbers = #tpu.dot_dimension_numbers<[1], [0], [0], [1], [0, 0, 1, 1], [], []>} : vector<128x128xf32>, vector<128x128xf32>, vector<128x128xf32> -> vector<128x128xf32>
    %120 = arith.addf %114, %119 : vector<128x128xf32>
    %c2_148 = arith.constant 2 : index
    %c8_149 = arith.constant 8 : index
    %c0_150 = arith.constant 0 : index
    %121 = vector.load %arg9[%c2_148, %c8_149, %c0_150] : memref<10x32x128xf32, #tpu.memory_space<vmem>>, vector<8x16x128xf32>
    %122 = vector.shape_cast %121 : vector<8x16x128xf32> to vector<128x128xf32>
    %c2_151 = arith.constant 2 : index
    %c1_152 = arith.constant 1 : index
    %c0_153 = arith.constant 0 : index
    %c0_154 = arith.constant 0 : index
    %123 = vector.load %arg5[%c2_151, %c1_152, %c0_153, %c0_154] : memref<3x3x128x128xf32, #tpu.memory_space<vmem>>, vector<1x1x128x128xf32>
    %124 = vector.shape_cast %123 : vector<1x1x128x128xf32> to vector<128x128xf32>
    %cst_155 = arith.constant dense<0.000000e+00> : vector<128x128xf32>
    %125 = tpu.matmul %122, %124, %cst_155 {dimension_numbers = #tpu.dot_dimension_numbers<[1], [0], [0], [1], [0, 0, 1, 1], [], []>} : vector<128x128xf32>, vector<128x128xf32>, vector<128x128xf32> -> vector<128x128xf32>
    %126 = arith.addf %120, %125 : vector<128x128xf32>
    %c2_156 = arith.constant 2 : index
    %c9_157 = arith.constant 9 : index
    %c0_158 = arith.constant 0 : index
    %127 = vector.load %arg9[%c2_156, %c9_157, %c0_158] : memref<10x32x128xf32, #tpu.memory_space<vmem>>, vector<8x16x128xf32>
    %128 = vector.shape_cast %127 : vector<8x16x128xf32> to vector<128x128xf32>
    %c2_159 = arith.constant 2 : index
    %c2_160 = arith.constant 2 : index
    %c0_161 = arith.constant 0 : index
    %c0_162 = arith.constant 0 : index
    %129 = vector.load %arg5[%c2_159, %c2_160, %c0_161, %c0_162] : memref<3x3x128x128xf32, #tpu.memory_space<vmem>>, vector<1x1x128x128xf32>
    %130 = vector.shape_cast %129 : vector<1x1x128x128xf32> to vector<128x128xf32>
    %cst_163 = arith.constant dense<0.000000e+00> : vector<128x128xf32>
    %131 = tpu.matmul %128, %130, %cst_163 {dimension_numbers = #tpu.dot_dimension_numbers<[1], [0], [0], [1], [0, 0, 1, 1], [], []>} : vector<128x128xf32>, vector<128x128xf32>, vector<128x128xf32> -> vector<128x128xf32>
    %132 = arith.addf %126, %131 : vector<128x128xf32>
    %c8_i32 = arith.constant 8 : i32
    %133 = arith.muli %arg1, %c8_i32 : i32
    %134 = tpu.assume_multiple %133, 8 : i32
    %c0_164 = arith.constant 0 : index
    %135 = arith.index_cast %134 : i32 to index
    %c0_165 = arith.constant 0 : index
    %c0_166 = arith.constant 0 : index
    %136 = vector.load %arg2[%c0_164, %135, %c0_165, %c0_166] : memref<1x16x16x128xf32, #tpu.memory_space<vmem>>, vector<1x8x16x128xf32>
    %137 = vector.shape_cast %136 : vector<1x8x16x128xf32> to vector<8x16x128xf32>
    %138 = vector.shape_cast %137 : vector<8x16x128xf32> to vector<128x128xf32>
    %c0_167 = arith.constant 0 : index
    %c0_168 = arith.constant 0 : index
    %139 = vector.load %arg6[%c0_167, %c0_168] : memref<1x128xf32, #tpu.memory_space<vmem>>, vector<1x128xf32>
    %140 = vector.broadcast %139 : vector<1x128xf32> to vector<128x128xf32>
    %141 = arith.addf %132, %140 : vector<128x128xf32>
    %142 = arith.addf %141, %138 : vector<128x128xf32>
    %cst_169 = arith.constant 0.000000e+00 : f32
    %143 = vector.broadcast %cst_169 : f32 to vector<128x128xf32>
    %144 = arith.maximumf %142, %143 : vector<128x128xf32>
    %145 = vector.shape_cast %144 : vector<128x128xf32> to vector<1x8x16x128xf32>
    %c0_170 = arith.constant 0 : index
    %c0_171 = arith.constant 0 : index
    %c0_172 = arith.constant 0 : index
    %c0_173 = arith.constant 0 : index
    %146 = vector.load %arg7[%c0_170, %c0_171, %c0_172, %c0_173] : memref<1x8x16x128xf32, #tpu.memory_space<vmem>>, vector<1x8x16x128xf32>
    tpu.vector_store %arg7[%c0_170, %c0_171, %c0_172, %c0_173], %145 {strides = array<i32>} : memref<1x8x16x128xf32, #tpu.memory_space<vmem>>, vector<1x8x16x128xf32>,
    return
  }
  func.func @transform_0(%arg0: i32, %arg1: i32) -> (i32, i32, i32, i32) {
    %c0_i32 = arith.constant 0 : i32
    %c0_i32_0 = arith.constant 0 : i32
    %c0_i32_1 = arith.constant 0 : i32
    %c0_i32_2 = arith.constant 0 : i32
    return %arg0, %c0_i32, %c0_i32_0, %c0_i32_1 : i32, i32, i32, i32
  }
  func.func @transform_1(%arg0: i32, %arg1: i32) -> (i32, i32, i32, i32) {
    %c0_i32 = arith.constant 0 : i32
    %c0_i32_0 = arith.constant 0 : i32
    %c0_i32_1 = arith.constant 0 : i32
    %c0_i32_2 = arith.constant 0 : i32
    %c0_i32_3 = arith.constant 0 : i32
    return %c0_i32, %c0_i32_0, %c0_i32_1, %c0_i32_2 : i32, i32, i32, i32
  }
  func.func @transform_2(%arg0: i32, %arg1: i32) -> (i32, i32) {
    %c0_i32 = arith.constant 0 : i32
    %c0_i32_0 = arith.constant 0 : i32
    %c0_i32_1 = arith.constant 0 : i32
    return %c0_i32, %c0_i32_0 : i32, i32
  }
  func.func @transform_3(%arg0: i32, %arg1: i32) -> (i32, i32, i32, i32) {
    %c0_i32 = arith.constant 0 : i32
    %c0_i32_0 = arith.constant 0 : i32
    %c0_i32_1 = arith.constant 0 : i32
    %c0_i32_2 = arith.constant 0 : i32
    %c0_i32_3 = arith.constant 0 : i32
    return %c0_i32, %c0_i32_0, %c0_i32_1, %c0_i32_2 : i32, i32, i32, i32
  }
  func.func @transform_4(%arg0: i32, %arg1: i32) -> (i32, i32) {
    %c0_i32 = arith.constant 0 : i32
    %c0_i32_0 = arith.constant 0 : i32
    %c0_i32_1 = arith.constant 0 : i32
    return %c0_i32, %c0_i32_0 : i32, i32
  }
  func.func @transform_5(%arg0: i32, %arg1: i32) -> (i32, i32, i32, i32) {
    %c0_i32 = arith.constant 0 : i32
    %c0_i32_0 = arith.constant 0 : i32
    %c0_i32_1 = arith.constant 0 : i32
    return %arg0, %arg1, %c0_i32, %c0_i32_0 : i32, i32, i32, i32
  }
}

module attributes {stable_mosaic.version = 11 : i64} {
  func.func @kernel(%arg0: i32, %arg1: i32, %arg2: memref<1x16x16x128xf32, #tpu.memory_space<vmem>>, %arg3: memref<3x3x128x128xf32, #tpu.memory_space<vmem>>, %arg4: memref<1x128xf32, #tpu.memory_space<vmem>>, %arg5: memref<3x3x128x128xf32, #tpu.memory_space<vmem>>, %arg6: memref<1x128xf32, #tpu.memory_space<vmem>>, %arg7: memref<1x8x16x128xf32, #tpu.memory_space<vmem>>, %arg8: memref<12x32x128xf32, #tpu.memory_space<vmem>>, %arg9: memref<10x32x128xf32, #tpu.memory_space<vmem>>) attributes {dimension_semantics = [#tpu.dimension_semantics<parallel>, #tpu.dimension_semantics<parallel>], iteration_bounds = array<i64: 2, 2>, scalar_prefetch = 0 : i64, scratch_operands = 2 : i64, tpu.core_type = #tpu.core_type<tc>, window_params = [{transform_indices = @transform_0, window_bounds = array<i64: 1, 16, 16, 128>}, {pipeline_mode = #tpu.pipeline_mode<synchronous>, transform_indices = @transform_1, window_bounds = array<i64: 3, 3, 128, 128>}, {pipeline_mode = #tpu.pipeline_mode<synchronous>, transform_indices = @transform_2, window_bounds = array<i64: 1, 128>}, {pipeline_mode = #tpu.pipeline_mode<synchronous>, transform_indices = @transform_3, window_bounds = array<i64: 3, 3, 128, 128>}, {pipeline_mode = #tpu.pipeline_mode<synchronous>, transform_indices = @transform_4, window_bounds = array<i64: 1, 128>}, {transform_indices = @transform_5, window_bounds = array<i64: 1, 8, 16, 128>}]} {
    %cst = arith.constant 0.000000e+00 : f32
    %0 = vector.broadcast %cst : f32 to vector<12x8x128xf32>
    %c0 = arith.constant 0 : index
    %c0_0 = arith.constant 0 : index
    %c0_1 = arith.constant 0 : index
    %1 = vector.load %arg8[%c0, %c0_0, %c0_1] : memref<12x32x128xf32, #tpu.memory_space<vmem>>, vector<12x8x128xf32>
    tpu.vector_store %arg8[%c0, %c0_0, %c0_1], %0 {strides = array<i32>} : memref<12x32x128xf32, #tpu.memory_space<vmem>>, vector<12x8x128xf32>,
    %cst_2 = arith.constant 0.000000e+00 : f32
    %2 = vector.broadcast %cst_2 : f32 to vector<12x8x128xf32>
    %c0_3 = arith.constant 0 : index
    %c24 = arith.constant 24 : index
    %c0_4 = arith.constant 0 : index
    %3 = vector.load %arg8[%c0_3, %c24, %c0_4] : memref<12x32x128xf32, #tpu.memory_space<vmem>>, vector<12x8x128xf32>
    tpu.vector_store %arg8[%c0_3, %c24, %c0_4], %2 {strides = array<i32>} : memref<12x32x128xf32, #tpu.memory_space<vmem>>, vector<12x8x128xf32>,
    %c0_i32 = arith.constant 0 : i32
    %4 = arith.cmpi eq, %arg1, %c0_i32 : i32
    %5 = arith.extui %4 : i1 to i32
    %c0_i32_5 = arith.constant 0 : i32
    %6 = arith.cmpi ne, %5, %c0_i32_5 : i32
    scf.if %6 {
      %cst_174 = arith.constant 0.000000e+00 : f32
      %147 = vector.broadcast %cst_174 : f32 to vector<2x16x128xf32>
      %c0_175 = arith.constant 0 : index
      %c8_176 = arith.constant 8 : index
      %c0_177 = arith.constant 0 : index
      %148 = vector.load %arg8[%c0_175, %c8_176, %c0_177] : memref<12x32x128xf32, #tpu.memory_space<vmem>>, vector<2x16x128xf32>
      tpu.vector_store %arg8[%c0_175, %c8_176, %c0_177], %147 {strides = array<i32>} : memref<12x32x128xf32, #tpu.memory_space<vmem>>, vector<2x16x128xf32>,
      %c0_178 = arith.constant 0 : index
      %c0_179 = arith.constant 0 : index
      %c0_180 = arith.constant 0 : index
      %c0_181 = arith.constant 0 : index
      %149 = vector.load %arg2[%c0_178, %c0_179, %c0_180, %c0_181] : memref<1x16x16x128xf32, #tpu.memory_space<vmem>>, vector<1x10x16x128xf32>
      %150 = vector.shape_cast %149 : vector<1x10x16x128xf32> to vector<10x16x128xf32>
      %c2_182 = arith.constant 2 : index
      %c8_183 = arith.constant 8 : index
      %c0_184 = arith.constant 0 : index
      %151 = vector.load %arg8[%c2_182, %c8_183, %c0_184] : memref<12x32x128xf32, #tpu.memory_space<vmem>>, vector<10x16x128xf32>
      tpu.vector_store %arg8[%c2_182, %c8_183, %c0_184], %150 {strides = array<i32>} : memref<12x32x128xf32, #tpu.memory_space<vmem>>, vector<10x16x128xf32>,
    } else {
    }
    %c1_i32 = arith.constant 1 : i32
    %7 = arith.cmpi eq, %arg1, %c1_i32 : i32
    %8 = arith.extui %7 : i1 to i32
    %c0_i32_6 = arith.constant 0 : i32
    %9 = arith.cmpi ne, %8, %c0_i32_6 : i32
    scf.if %9 {
      %cst_174 = arith.constant 0.000000e+00 : f32
      %147 = vector.broadcast %cst_174 : f32 to vector<2x16x128xf32>
      %c10 = arith.constant 10 : index
      %c8_175 = arith.constant 8 : index
      %c0_176 = arith.constant 0 : index
      %148 = vector.load %arg8[%c10, %c8_175, %c0_176] : memref<12x32x128xf32, #tpu.memory_space<vmem>>, vector<2x16x128xf32>
      tpu.vector_store %arg8[%c10, %c8_175, %c0_176], %147 {strides = array<i32>} : memref<12x32x128xf32, #tpu.memory_space<vmem>>, vector<2x16x128xf32>,
      %c0_177 = arith.constant 0 : index
      %c6 = arith.constant 6 : index
      %c0_178 = arith.constant 0 : index
      %c0_179 = arith.constant 0 : index
      %149 = vector.load %arg2[%c0_177, %c6, %c0_178, %c0_179] : memref<1x16x16x128xf32, #tpu.memory_space<vmem>>, vector<1x10x16x128xf32>
      %150 = vector.shape_cast %149 : vector<1x10x16x128xf32> to vector<10x16x128xf32>
      %c0_180 = arith.constant 0 : index
      %c8_181 = arith.constant 8 : index
      %c0_182 = arith.constant 0 : index
      %151 = vector.load %arg8[%c0_180, %c8_181, %c0_182] : memref<12x32x128xf32, #tpu.memory_space<vmem>>, vector<10x16x128xf32>
      tpu.vector_store %arg8[%c0_180, %c8_181, %c0_182], %150 {strides = array<i32>} : memref<12x32x128xf32, #tpu.memory_space<vmem>>, vector<10x16x128xf32>,
    } else {
    }
    %c0_7 = arith.constant 0 : index
    %c7 = arith.constant 7 : index
    %c0_8 = arith.constant 0 : index
    %10 = vector.load %arg8[%c0_7, %c7, %c0_8] : memref<12x32x128xf32, #tpu.memory_space<vmem>>, vector<10x16x128xf32>
    %11 = vector.shape_cast %10 : vector<10x16x128xf32> to vector<160x128xf32>
    %c0_9 = arith.constant 0 : index
    %c0_10 = arith.constant 0 : index
    %c0_11 = arith.constant 0 : index
    %c0_12 = arith.constant 0 : index
    %12 = vector.load %arg3[%c0_9, %c0_10, %c0_11, %c0_12] : memref<3x3x128x128xf32, #tpu.memory_space<vmem>>, vector<1x1x128x128xf32>
    %13 = vector.shape_cast %12 : vector<1x1x128x128xf32> to vector<128x128xf32>
    %cst_13 = arith.constant dense<0.000000e+00> : vector<160x128xf32>
    %14 = tpu.matmul %11, %13, %cst_13 {dimension_numbers = #tpu.dot_dimension_numbers<[1], [0], [0], [1], [0, 0, 1, 1], [], []>} : vector<160x128xf32>, vector<128x128xf32>, vector<160x128xf32> -> vector<160x128xf32>
    %c0_14 = arith.constant 0 : index
    %c8 = arith.constant 8 : index
    %c0_15 = arith.constant 0 : index
    %15 = vector.load %arg8[%c0_14, %c8, %c0_15] : memref<12x32x128xf32, #tpu.memory_space<vmem>>, vector<10x16x128xf32>
    %16 = vector.shape_cast %15 : vector<10x16x128xf32> to vector<160x128xf32>
    %c0_16 = arith.constant 0 : index
    %c1 = arith.constant 1 : index
    %c0_17 = arith.constant 0 : index
    %c0_18 = arith.constant 0 : index
    %17 = vector.load %arg3[%c0_16, %c1, %c0_17, %c0_18] : memref<3x3x128x128xf32, #tpu.memory_space<vmem>>, vector<1x1x128x128xf32>
    %18 = vector.shape_cast %17 : vector<1x1x128x128xf32> to vector<128x128xf32>
    %cst_19 = arith.constant dense<0.000000e+00> : vector<160x128xf32>
    %19 = tpu.matmul %16, %18, %cst_19 {dimension_numbers = #tpu.dot_dimension_numbers<[1], [0], [0], [1], [0, 0, 1, 1], [], []>} : vector<160x128xf32>, vector<128x128xf32>, vector<160x128xf32> -> vector<160x128xf32>
    %20 = arith.addf %14, %19 : vector<160x128xf32>
    %c0_20 = arith.constant 0 : index
    %c9 = arith.constant 9 : index
    %c0_21 = arith.constant 0 : index
    %21 = vector.load %arg8[%c0_20, %c9, %c0_21] : memref<12x32x128xf32, #tpu.memory_space<vmem>>, vector<10x16x128xf32>
    %22 = vector.shape_cast %21 : vector<10x16x128xf32> to vector<160x128xf32>
    %c0_22 = arith.constant 0 : index
    %c2 = arith.constant 2 : index
    %c0_23 = arith.constant 0 : index
    %c0_24 = arith.constant 0 : index
    %23 = vector.load %arg3[%c0_22, %c2, %c0_23, %c0_24] : memref<3x3x128x128xf32, #tpu.memory_space<vmem>>, vector<1x1x128x128xf32>
    %24 = vector.shape_cast %23 : vector<1x1x128x128xf32> to vector<128x128xf32>
    %cst_25 = arith.constant dense<0.000000e+00> : vector<160x128xf32>
    %25 = tpu.matmul %22, %24, %cst_25 {dimension_numbers = #tpu.dot_dimension_numbers<[1], [0], [0], [1], [0, 0, 1, 1], [], []>} : vector<160x128xf32>, vector<128x128xf32>, vector<160x128xf32> -> vector<160x128xf32>
    %26 = arith.addf %20, %25 : vector<160x128xf32>
    %c1_26 = arith.constant 1 : index
    %c7_27 = arith.constant 7 : index
    %c0_28 = arith.constant 0 : index
    %27 = vector.load %arg8[%c1_26, %c7_27, %c0_28] : memref<12x32x128xf32, #tpu.memory_space<vmem>>, vector<10x16x128xf32>
    %28 = vector.shape_cast %27 : vector<10x16x128xf32> to vector<160x128xf32>
    %c1_29 = arith.constant 1 : index
    %c0_30 = arith.constant 0 : index
    %c0_31 = arith.constant 0 : index
    %c0_32 = arith.constant 0 : index
    %29 = vector.load %arg3[%c1_29, %c0_30, %c0_31, %c0_32] : memref<3x3x128x128xf32, #tpu.memory_space<vmem>>, vector<1x1x128x128xf32>
    %30 = vector.shape_cast %29 : vector<1x1x128x128xf32> to vector<128x128xf32>
    %cst_33 = arith.constant dense<0.000000e+00> : vector<160x128xf32>
    %31 = tpu.matmul %28, %30, %cst_33 {dimension_numbers = #tpu.dot_dimension_numbers<[1], [0], [0], [1], [0, 0, 1, 1], [], []>} : vector<160x128xf32>, vector<128x128xf32>, vector<160x128xf32> -> vector<160x128xf32>
    %32 = arith.addf %26, %31 : vector<160x128xf32>
    %c1_34 = arith.constant 1 : index
    %c8_35 = arith.constant 8 : index
    %c0_36 = arith.constant 0 : index
    %33 = vector.load %arg8[%c1_34, %c8_35, %c0_36] : memref<12x32x128xf32, #tpu.memory_space<vmem>>, vector<10x16x128xf32>
    %34 = vector.shape_cast %33 : vector<10x16x128xf32> to vector<160x128xf32>
    %c1_37 = arith.constant 1 : index
    %c1_38 = arith.constant 1 : index
    %c0_39 = arith.constant 0 : index
    %c0_40 = arith.constant 0 : index
    %35 = vector.load %arg3[%c1_37, %c1_38, %c0_39, %c0_40] : memref<3x3x128x128xf32, #tpu.memory_space<vmem>>, vector<1x1x128x128xf32>
    %36 = vector.shape_cast %35 : vector<1x1x128x128xf32> to vector<128x128xf32>
    %cst_41 = arith.constant dense<0.000000e+00> : vector<160x128xf32>
    %37 = tpu.matmul %34, %36, %cst_41 {dimension_numbers = #tpu.dot_dimension_numbers<[1], [0], [0], [1], [0, 0, 1, 1], [], []>} : vector<160x128xf32>, vector<128x128xf32>, vector<160x128xf32> -> vector<160x128xf32>
    %38 = arith.addf %32, %37 : vector<160x128xf32>
    %c1_42 = arith.constant 1 : index
    %c9_43 = arith.constant 9 : index
    %c0_44 = arith.constant 0 : index
    %39 = vector.load %arg8[%c1_42, %c9_43, %c0_44] : memref<12x32x128xf32, #tpu.memory_space<vmem>>, vector<10x16x128xf32>
    %40 = vector.shape_cast %39 : vector<10x16x128xf32> to vector<160x128xf32>
    %c1_45 = arith.constant 1 : index
    %c2_46 = arith.constant 2 : index
    %c0_47 = arith.constant 0 : index
    %c0_48 = arith.constant 0 : index
    %41 = vector.load %arg3[%c1_45, %c2_46, %c0_47, %c0_48] : memref<3x3x128x128xf32, #tpu.memory_space<vmem>>, vector<1x1x128x128xf32>
    %42 = vector.shape_cast %41 : vector<1x1x128x128xf32> to vector<128x128xf32>
    %cst_49 = arith.constant dense<0.000000e+00> : vector<160x128xf32>
    %43 = tpu.matmul %40, %42, %cst_49 {dimension_numbers = #tpu.dot_dimension_numbers<[1], [0], [0], [1], [0, 0, 1, 1], [], []>} : vector<160x128xf32>, vector<128x128xf32>, vector<160x128xf32> -> vector<160x128xf32>
    %44 = arith.addf %38, %43 : vector<160x128xf32>
    %c2_50 = arith.constant 2 : index
    %c7_51 = arith.constant 7 : index
    %c0_52 = arith.constant 0 : index
    %45 = vector.load %arg8[%c2_50, %c7_51, %c0_52] : memref<12x32x128xf32, #tpu.memory_space<vmem>>, vector<10x16x128xf32>
    %46 = vector.shape_cast %45 : vector<10x16x128xf32> to vector<160x128xf32>
    %c2_53 = arith.constant 2 : index
    %c0_54 = arith.constant 0 : index
    %c0_55 = arith.constant 0 : index
    %c0_56 = arith.constant 0 : index
    %47 = vector.load %arg3[%c2_53, %c0_54, %c0_55, %c0_56] : memref<3x3x128x128xf32, #tpu.memory_space<vmem>>, vector<1x1x128x128xf32>
    %48 = vector.shape_cast %47 : vector<1x1x128x128xf32> to vector<128x128xf32>
    %cst_57 = arith.constant dense<0.000000e+00> : vector<160x128xf32>
    %49 = tpu.matmul %46, %48, %cst_57 {dimension_numbers = #tpu.dot_dimension_numbers<[1], [0], [0], [1], [0, 0, 1, 1], [], []>} : vector<160x128xf32>, vector<128x128xf32>, vector<160x128xf32> -> vector<160x128xf32>
    %50 = arith.addf %44, %49 : vector<160x128xf32>
    %c2_58 = arith.constant 2 : index
    %c8_59 = arith.constant 8 : index
    %c0_60 = arith.constant 0 : index
    %51 = vector.load %arg8[%c2_58, %c8_59, %c0_60] : memref<12x32x128xf32, #tpu.memory_space<vmem>>, vector<10x16x128xf32>
    %52 = vector.shape_cast %51 : vector<10x16x128xf32> to vector<160x128xf32>
    %c2_61 = arith.constant 2 : index
    %c1_62 = arith.constant 1 : index
    %c0_63 = arith.constant 0 : index
    %c0_64 = arith.constant 0 : index
    %53 = vector.load %arg3[%c2_61, %c1_62, %c0_63, %c0_64] : memref<3x3x128x128xf32, #tpu.memory_space<vmem>>, vector<1x1x128x128xf32>
    %54 = vector.shape_cast %53 : vector<1x1x128x128xf32> to vector<128x128xf32>
    %cst_65 = arith.constant dense<0.000000e+00> : vector<160x128xf32>
    %55 = tpu.matmul %52, %54, %cst_65 {dimension_numbers = #tpu.dot_dimension_numbers<[1], [0], [0], [1], [0, 0, 1, 1], [], []>} : vector<160x128xf32>, vector<128x128xf32>, vector<160x128xf32> -> vector<160x128xf32>
    %56 = arith.addf %50, %55 : vector<160x128xf32>
    %c2_66 = arith.constant 2 : index
    %c9_67 = arith.constant 9 : index
    %c0_68 = arith.constant 0 : index
    %57 = vector.load %arg8[%c2_66, %c9_67, %c0_68] : memref<12x32x128xf32, #tpu.memory_space<vmem>>, vector<10x16x128xf32>
    %58 = vector.shape_cast %57 : vector<10x16x128xf32> to vector<160x128xf32>
    %c2_69 = arith.constant 2 : index
    %c2_70 = arith.constant 2 : index
    %c0_71 = arith.constant 0 : index
    %c0_72 = arith.constant 0 : index
    %59 = vector.load %arg3[%c2_69, %c2_70, %c0_71, %c0_72] : memref<3x3x128x128xf32, #tpu.memory_space<vmem>>, vector<1x1x128x128xf32>
    %60 = vector.shape_cast %59 : vector<1x1x128x128xf32> to vector<128x128xf32>
    %cst_73 = arith.constant dense<0.000000e+00> : vector<160x128xf32>
    %61 = tpu.matmul %58, %60, %cst_73 {dimension_numbers = #tpu.dot_dimension_numbers<[1], [0], [0], [1], [0, 0, 1, 1], [], []>} : vector<160x128xf32>, vector<128x128xf32>, vector<160x128xf32> -> vector<160x128xf32>
    %62 = arith.addf %56, %61 : vector<160x128xf32>
    %c0_74 = arith.constant 0 : index
    %c0_75 = arith.constant 0 : index
    %63 = vector.load %arg4[%c0_74, %c0_75] : memref<1x128xf32, #tpu.memory_space<vmem>>, vector<1x128xf32>
    %64 = vector.broadcast %63 : vector<1x128xf32> to vector<160x128xf32>
    %65 = arith.addf %62, %64 : vector<160x128xf32>
    %cst_76 = arith.constant 0.000000e+00 : f32
    %66 = vector.broadcast %cst_76 : f32 to vector<160x128xf32>
    %67 = arith.maximumf %65, %66 : vector<160x128xf32>
    %cst_77 = arith.constant 0.000000e+00 : f32
    %68 = vector.broadcast %cst_77 : f32 to vector<10x8x128xf32>
    %c0_78 = arith.constant 0 : index
    %c0_79 = arith.constant 0 : index
    %c0_80 = arith.constant 0 : index
    %69 = vector.load %arg9[%c0_78, %c0_79, %c0_80] : memref<10x32x128xf32, #tpu.memory_space<vmem>>, vector<10x8x128xf32>
    tpu.vector_store %arg9[%c0_78, %c0_79, %c0_80], %68 {strides = array<i32>} : memref<10x32x128xf32, #tpu.memory_space<vmem>>, vector<10x8x128xf32>,
    %cst_81 = arith.constant 0.000000e+00 : f32
    %70 = vector.broadcast %cst_81 : f32 to vector<10x8x128xf32>
    %c0_82 = arith.constant 0 : index
    %c24_83 = arith.constant 24 : index
    %c0_84 = arith.constant 0 : index
    %71 = vector.load %arg9[%c0_82, %c24_83, %c0_84] : memref<10x32x128xf32, #tpu.memory_space<vmem>>, vector<10x8x128xf32>
    tpu.vector_store %arg9[%c0_82, %c24_83, %c0_84], %70 {strides = array<i32>} : memref<10x32x128xf32, #tpu.memory_space<vmem>>, vector<10x8x128xf32>,
    %72 = vector.shape_cast %67 : vector<160x128xf32> to vector<10x16x128xf32>
    %c0_85 = arith.constant 0 : index
    %c8_86 = arith.constant 8 : index
    %c0_87 = arith.constant 0 : index
    %73 = vector.load %arg9[%c0_85, %c8_86, %c0_87] : memref<10x32x128xf32, #tpu.memory_space<vmem>>, vector<10x16x128xf32>
    tpu.vector_store %arg9[%c0_85, %c8_86, %c0_87], %72 {strides = array<i32>} : memref<10x32x128xf32, #tpu.memory_space<vmem>>, vector<10x16x128xf32>,
    %c0_i32_88 = arith.constant 0 : i32
    %74 = arith.cmpi eq, %arg1, %c0_i32_88 : i32
    %75 = arith.extui %74 : i1 to i32
    %c0_i32_89 = arith.constant 0 : i32
    %76 = arith.cmpi ne, %75, %c0_i32_89 : i32
    scf.if %76 {
      %cst_174 = arith.constant 0.000000e+00 : f32
      %147 = vector.broadcast %cst_174 : f32 to vector<1x16x128xf32>
      %c0_175 = arith.constant 0 : index
      %c8_176 = arith.constant 8 : index
      %c0_177 = arith.constant 0 : index
      %148 = vector.load %arg9[%c0_175, %c8_176, %c0_177] : memref<10x32x128xf32, #tpu.memory_space<vmem>>, vector<1x16x128xf32>
      tpu.vector_store %arg9[%c0_175, %c8_176, %c0_177], %147 {strides = array<i32>} : memref<10x32x128xf32, #tpu.memory_space<vmem>>, vector<1x16x128xf32>,
    } else {
    }
    %c1_i32_90 = arith.constant 1 : i32
    %77 = arith.cmpi eq, %arg1, %c1_i32_90 : i32
    %78 = arith.extui %77 : i1 to i32
    %c0_i32_91 = arith.constant 0 : i32
    %79 = arith.cmpi ne, %78, %c0_i32_91 : i32
    scf.if %79 {
      %cst_174 = arith.constant 0.000000e+00 : f32
      %147 = vector.broadcast %cst_174 : f32 to vector<1x16x128xf32>
      %c9_175 = arith.constant 9 : index
      %c8_176 = arith.constant 8 : index
      %c0_177 = arith.constant 0 : index
      %148 = vector.load %arg9[%c9_175, %c8_176, %c0_177] : memref<10x32x128xf32, #tpu.memory_space<vmem>>, vector<1x16x128xf32>
      tpu.vector_store %arg9[%c9_175, %c8_176, %c0_177], %147 {strides = array<i32>} : memref<10x32x128xf32, #tpu.memory_space<vmem>>, vector<1x16x128xf32>,
    } else {
    }
    %c0_92 = arith.constant 0 : index
    %c7_93 = arith.constant 7 : index
    %c0_94 = arith.constant 0 : index
    %80 = vector.load %arg9[%c0_92, %c7_93, %c0_94] : memref<10x32x128xf32, #tpu.memory_space<vmem>>, vector<8x16x128xf32>
    %81 = vector.shape_cast %80 : vector<8x16x128xf32> to vector<128x128xf32>
    %c0_95 = arith.constant 0 : index
    %c0_96 = arith.constant 0 : index
    %c0_97 = arith.constant 0 : index
    %c0_98 = arith.constant 0 : index
    %82 = vector.load %arg5[%c0_95, %c0_96, %c0_97, %c0_98] : memref<3x3x128x128xf32, #tpu.memory_space<vmem>>, vector<1x1x128x128xf32>
    %83 = vector.shape_cast %82 : vector<1x1x128x128xf32> to vector<128x128xf32>
    %cst_99 = arith.constant dense<0.000000e+00> : vector<128x128xf32>
    %84 = tpu.matmul %81, %83, %cst_99 {dimension_numbers = #tpu.dot_dimension_numbers<[1], [0], [0], [1], [0, 0, 1, 1], [], []>} : vector<128x128xf32>, vector<128x128xf32>, vector<128x128xf32> -> vector<128x128xf32>
    %c0_100 = arith.constant 0 : index
    %c8_101 = arith.constant 8 : index
    %c0_102 = arith.constant 0 : index
    %85 = vector.load %arg9[%c0_100, %c8_101, %c0_102] : memref<10x32x128xf32, #tpu.memory_space<vmem>>, vector<8x16x128xf32>
    %86 = vector.shape_cast %85 : vector<8x16x128xf32> to vector<128x128xf32>
    %c0_103 = arith.constant 0 : index
    %c1_104 = arith.constant 1 : index
    %c0_105 = arith.constant 0 : index
    %c0_106 = arith.constant 0 : index
    %87 = vector.load %arg5[%c0_103, %c1_104, %c0_105, %c0_106] : memref<3x3x128x128xf32, #tpu.memory_space<vmem>>, vector<1x1x128x128xf32>
    %88 = vector.shape_cast %87 : vector<1x1x128x128xf32> to vector<128x128xf32>
    %cst_107 = arith.constant dense<0.000000e+00> : vector<128x128xf32>
    %89 = tpu.matmul %86, %88, %cst_107 {dimension_numbers = #tpu.dot_dimension_numbers<[1], [0], [0], [1], [0, 0, 1, 1], [], []>} : vector<128x128xf32>, vector<128x128xf32>, vector<128x128xf32> -> vector<128x128xf32>
    %90 = arith.addf %84, %89 : vector<128x128xf32>
    %c0_108 = arith.constant 0 : index
    %c9_109 = arith.constant 9 : index
    %c0_110 = arith.constant 0 : index
    %91 = vector.load %arg9[%c0_108, %c9_109, %c0_110] : memref<10x32x128xf32, #tpu.memory_space<vmem>>, vector<8x16x128xf32>
    %92 = vector.shape_cast %91 : vector<8x16x128xf32> to vector<128x128xf32>
    %c0_111 = arith.constant 0 : index
    %c2_112 = arith.constant 2 : index
    %c0_113 = arith.constant 0 : index
    %c0_114 = arith.constant 0 : index
    %93 = vector.load %arg5[%c0_111, %c2_112, %c0_113, %c0_114] : memref<3x3x128x128xf32, #tpu.memory_space<vmem>>, vector<1x1x128x128xf32>
    %94 = vector.shape_cast %93 : vector<1x1x128x128xf32> to vector<128x128xf32>
    %cst_115 = arith.constant dense<0.000000e+00> : vector<128x128xf32>
    %95 = tpu.matmul %92, %94, %cst_115 {dimension_numbers = #tpu.dot_dimension_numbers<[1], [0], [0], [1], [0, 0, 1, 1], [], []>} : vector<128x128xf32>, vector<128x128xf32>, vector<128x128xf32> -> vector<128x128xf32>
    %96 = arith.addf %90, %95 : vector<128x128xf32>
    %c1_116 = arith.constant 1 : index
    %c7_117 = arith.constant 7 : index
    %c0_118 = arith.constant 0 : index
    %97 = vector.load %arg9[%c1_116, %c7_117, %c0_118] : memref<10x32x128xf32, #tpu.memory_space<vmem>>, vector<8x16x128xf32>
    %98 = vector.shape_cast %97 : vector<8x16x128xf32> to vector<128x128xf32>
    %c1_119 = arith.constant 1 : index
    %c0_120 = arith.constant 0 : index
    %c0_121 = arith.constant 0 : index
    %c0_122 = arith.constant 0 : index
    %99 = vector.load %arg5[%c1_119, %c0_120, %c0_121, %c0_122] : memref<3x3x128x128xf32, #tpu.memory_space<vmem>>, vector<1x1x128x128xf32>
    %100 = vector.shape_cast %99 : vector<1x1x128x128xf32> to vector<128x128xf32>
    %cst_123 = arith.constant dense<0.000000e+00> : vector<128x128xf32>
    %101 = tpu.matmul %98, %100, %cst_123 {dimension_numbers = #tpu.dot_dimension_numbers<[1], [0], [0], [1], [0, 0, 1, 1], [], []>} : vector<128x128xf32>, vector<128x128xf32>, vector<128x128xf32> -> vector<128x128xf32>
    %102 = arith.addf %96, %101 : vector<128x128xf32>
    %c1_124 = arith.constant 1 : index
    %c8_125 = arith.constant 8 : index
    %c0_126 = arith.constant 0 : index
    %103 = vector.load %arg9[%c1_124, %c8_125, %c0_126] : memref<10x32x128xf32, #tpu.memory_space<vmem>>, vector<8x16x128xf32>
    %104 = vector.shape_cast %103 : vector<8x16x128xf32> to vector<128x128xf32>
    %c1_127 = arith.constant 1 : index
    %c1_128 = arith.constant 1 : index
    %c0_129 = arith.constant 0 : index
    %c0_130 = arith.constant 0 : index
    %105 = vector.load %arg5[%c1_127, %c1_128, %c0_129, %c0_130] : memref<3x3x128x128xf32, #tpu.memory_space<vmem>>, vector<1x1x128x128xf32>
    %106 = vector.shape_cast %105 : vector<1x1x128x128xf32> to vector<128x128xf32>
    %cst_131 = arith.constant dense<0.000000e+00> : vector<128x128xf32>
    %107 = tpu.matmul %104, %106, %cst_131 {dimension_numbers = #tpu.dot_dimension_numbers<[1], [0], [0], [1], [0, 0, 1, 1], [], []>} : vector<128x128xf32>, vector<128x128xf32>, vector<128x128xf32> -> vector<128x128xf32>
    %108 = arith.addf %102, %107 : vector<128x128xf32>
    %c1_132 = arith.constant 1 : index
    %c9_133 = arith.constant 9 : index
    %c0_134 = arith.constant 0 : index
    %109 = vector.load %arg9[%c1_132, %c9_133, %c0_134] : memref<10x32x128xf32, #tpu.memory_space<vmem>>, vector<8x16x128xf32>
    %110 = vector.shape_cast %109 : vector<8x16x128xf32> to vector<128x128xf32>
    %c1_135 = arith.constant 1 : index
    %c2_136 = arith.constant 2 : index
    %c0_137 = arith.constant 0 : index
    %c0_138 = arith.constant 0 : index
    %111 = vector.load %arg5[%c1_135, %c2_136, %c0_137, %c0_138] : memref<3x3x128x128xf32, #tpu.memory_space<vmem>>, vector<1x1x128x128xf32>
    %112 = vector.shape_cast %111 : vector<1x1x128x128xf32> to vector<128x128xf32>
    %cst_139 = arith.constant dense<0.000000e+00> : vector<128x128xf32>
    %113 = tpu.matmul %110, %112, %cst_139 {dimension_numbers = #tpu.dot_dimension_numbers<[1], [0], [0], [1], [0, 0, 1, 1], [], []>} : vector<128x128xf32>, vector<128x128xf32>, vector<128x128xf32> -> vector<128x128xf32>
    %114 = arith.addf %108, %113 : vector<128x128xf32>
    %c2_140 = arith.constant 2 : index
    %c7_141 = arith.constant 7 : index
    %c0_142 = arith.constant 0 : index
    %115 = vector.load %arg9[%c2_140, %c7_141, %c0_142] : memref<10x32x128xf32, #tpu.memory_space<vmem>>, vector<8x16x128xf32>
    %116 = vector.shape_cast %115 : vector<8x16x128xf32> to vector<128x128xf32>
    %c2_143 = arith.constant 2 : index
    %c0_144 = arith.constant 0 : index
    %c0_145 = arith.constant 0 : index
    %c0_146 = arith.constant 0 : index
    %117 = vector.load %arg5[%c2_143, %c0_144, %c0_145, %c0_146] : memref<3x3x128x128xf32, #tpu.memory_space<vmem>>, vector<1x1x128x128xf32>
    %118 = vector.shape_cast %117 : vector<1x1x128x128xf32> to vector<128x128xf32>
    %cst_147 = arith.constant dense<0.000000e+00> : vector<128x128xf32>
    %119 = tpu.matmul %116, %118, %cst_147 {dimension_numbers = #tpu.dot_dimension_numbers<[1], [0], [0], [1], [0, 0, 1, 1], [], []>} : vector<128x128xf32>, vector<128x128xf32>, vector<128x128xf32> -> vector<128x128xf32>
    %120 = arith.addf %114, %119 : vector<128x128xf32>
    %c2_148 = arith.constant 2 : index
    %c8_149 = arith.constant 8 : index
    %c0_150 = arith.constant 0 : index
    %121 = vector.load %arg9[%c2_148, %c8_149, %c0_150] : memref<10x32x128xf32, #tpu.memory_space<vmem>>, vector<8x16x128xf32>
    %122 = vector.shape_cast %121 : vector<8x16x128xf32> to vector<128x128xf32>
    %c2_151 = arith.constant 2 : index
    %c1_152 = arith.constant 1 : index
    %c0_153 = arith.constant 0 : index
    %c0_154 = arith.constant 0 : index
    %123 = vector.load %arg5[%c2_151, %c1_152, %c0_153, %c0_154] : memref<3x3x128x128xf32, #tpu.memory_space<vmem>>, vector<1x1x128x128xf32>
    %124 = vector.shape_cast %123 : vector<1x1x128x128xf32> to vector<128x128xf32>
    %cst_155 = arith.constant dense<0.000000e+00> : vector<128x128xf32>
    %125 = tpu.matmul %122, %124, %cst_155 {dimension_numbers = #tpu.dot_dimension_numbers<[1], [0], [0], [1], [0, 0, 1, 1], [], []>} : vector<128x128xf32>, vector<128x128xf32>, vector<128x128xf32> -> vector<128x128xf32>
    %126 = arith.addf %120, %125 : vector<128x128xf32>
    %c2_156 = arith.constant 2 : index
    %c9_157 = arith.constant 9 : index
    %c0_158 = arith.constant 0 : index
    %127 = vector.load %arg9[%c2_156, %c9_157, %c0_158] : memref<10x32x128xf32, #tpu.memory_space<vmem>>, vector<8x16x128xf32>
    %128 = vector.shape_cast %127 : vector<8x16x128xf32> to vector<128x128xf32>
    %c2_159 = arith.constant 2 : index
    %c2_160 = arith.constant 2 : index
    %c0_161 = arith.constant 0 : index
    %c0_162 = arith.constant 0 : index
    %129 = vector.load %arg5[%c2_159, %c2_160, %c0_161, %c0_162] : memref<3x3x128x128xf32, #tpu.memory_space<vmem>>, vector<1x1x128x128xf32>
    %130 = vector.shape_cast %129 : vector<1x1x128x128xf32> to vector<128x128xf32>
    %cst_163 = arith.constant dense<0.000000e+00> : vector<128x128xf32>
    %131 = tpu.matmul %128, %130, %cst_163 {dimension_numbers = #tpu.dot_dimension_numbers<[1], [0], [0], [1], [0, 0, 1, 1], [], []>} : vector<128x128xf32>, vector<128x128xf32>, vector<128x128xf32> -> vector<128x128xf32>
    %132 = arith.addf %126, %131 : vector<128x128xf32>
    %c8_i32 = arith.constant 8 : i32
    %133 = arith.muli %arg1, %c8_i32 : i32
    %134 = tpu.assume_multiple %133, 8 : i32
    %c0_164 = arith.constant 0 : index
    %135 = arith.index_cast %134 : i32 to index
    %c0_165 = arith.constant 0 : index
    %c0_166 = arith.constant 0 : index
    %136 = vector.load %arg2[%c0_164, %135, %c0_165, %c0_166] : memref<1x16x16x128xf32, #tpu.memory_space<vmem>>, vector<1x8x16x128xf32>
    %137 = vector.shape_cast %136 : vector<1x8x16x128xf32> to vector<8x16x128xf32>
    %138 = vector.shape_cast %137 : vector<8x16x128xf32> to vector<128x128xf32>
    %c0_167 = arith.constant 0 : index
    %c0_168 = arith.constant 0 : index
    %139 = vector.load %arg6[%c0_167, %c0_168] : memref<1x128xf32, #tpu.memory_space<vmem>>, vector<1x128xf32>
    %140 = vector.broadcast %139 : vector<1x128xf32> to vector<128x128xf32>
    %141 = arith.addf %132, %140 : vector<128x128xf32>
    %142 = arith.addf %141, %138 : vector<128x128xf32>
    %cst_169 = arith.constant 0.000000e+00 : f32
    %143 = vector.broadcast %cst_169 : f32 to vector<128x128xf32>
    %144 = arith.maximumf %142, %143 : vector<128x128xf32>
    %145 = vector.shape_cast %144 : vector<128x128xf32> to vector<1x8x16x128xf32>
    %c0_170 = arith.constant 0 : index
    %c0_171 = arith.constant 0 : index
    %c0_172 = arith.constant 0 : index
    %c0_173 = arith.constant 0 : index
    %146 = vector.load %arg7[%c0_170, %c0_171, %c0_172, %c0_173] : memref<1x8x16x128xf32, #tpu.memory_space<vmem>>, vector<1x8x16x128xf32>
    tpu.vector_store %arg7[%c0_170, %c0_171, %c0_172, %c0_173], %145 {strides = array<i32>} : memref<1x8x16x128xf32, #tpu.memory_space<vmem>>, vector<1x8x16x128xf32>,
    return
  }
  func.func @transform_0(%arg0: i32, %arg1: i32) -> (i32, i32, i32, i32) {
    %c0_i32 = arith.constant 0 : i32
    %c0_i32_0 = arith.constant 0 : i32
    %c0_i32_1 = arith.constant 0 : i32
    %c0_i32_2 = arith.constant 0 : i32
    return %arg0, %c0_i32, %c0_i32_0, %c0_i32_1 : i32, i32, i32, i32
  }
  func.func @transform_1(%arg0: i32, %arg1: i32) -> (i32, i32, i32, i32) {
    %c0_i32 = arith.constant 0 : i32
    %c0_i32_0 = arith.constant 0 : i32
    %c0_i32_1 = arith.constant 0 : i32
    %c0_i32_2 = arith.constant 0 : i32
    %c0_i32_3 = arith.constant 0 : i32
    return %c0_i32, %c0_i32_0, %c0_i32_1, %c0_i32_2 : i32, i32, i32, i32
  }
  func.func @transform_2(%arg0: i32, %arg1: i32) -> (i32, i32) {
    %c0_i32 = arith.constant 0 : i32
    %c0_i32_0 = arith.constant 0 : i32
    %c0_i32_1 = arith.constant 0 : i32
    return %c0_i32, %c0_i32_0 : i32, i32
  }
  func.func @transform_3(%arg0: i32, %arg1: i32) -> (i32, i32, i32, i32) {
    %c0_i32 = arith.constant 0 : i32
    %c0_i32_0 = arith.constant 0 : i32
    %c0_i32_1 = arith.constant 0 : i32
    %c0_i32_2 = arith.constant 0 : i32
    %c0_i32_3 = arith.constant 0 : i32
    return %c0_i32, %c0_i32_0, %c0_i32_1, %c0_i32_2 : i32, i32, i32, i32
  }
  func.func @transform_4(%arg0: i32, %arg1: i32) -> (i32, i32) {
    %c0_i32 = arith.constant 0 : i32
    %c0_i32_0 = arith.constant 0 : i32
    %c0_i32_1 = arith.constant 0 : i32
    return %c0_i32, %c0_i32_0 : i32, i32
  }
  func.func @transform_5(%arg0: i32, %arg1: i32) -> (i32, i32, i32, i32) {
    %c0_i32 = arith.constant 0 : i32
    %c0_i32_0 = arith.constant 0 : i32
    %c0_i32_1 = arith.constant 0 : i32
    return %arg0, %arg1, %c0_i32, %c0_i32_0 : i32, i32, i32, i32
  }
}

</mosaic_0001>

<bundles_post_ra>
// kernel: tpu_custom_call.1
= control target key start
LH: loop header
LB: loop body
LE: loop exit
PB: predicated region body
PF: predicated region fallthrough
CT: control target
= control target key end

     0   :  { %s8035_s0 = inlined_call_operand.hbm [shape: f32[2,16,16,128], index: 0, kind: input, shape index: {}]   ;;  %s8036_s1 = inlined_call_operand.hbm [shape: f32[3,3,128,128], index: 1, kind: input, shape index: {}]   ;;  %s8037_s2 = inlined_call_operand.vmem [shape: f32[1,128], index: 2, kind: input, shape index: {}]   ;;  %s8038_s3 = inlined_call_operand.hbm [shape: f32[3,3,128,128], index: 3, kind: input, shape index: {}]   ;;  %s8039_s4 = inlined_call_operand.vmem [shape: f32[1,128], index: 4, kind: input, shape index: {}]   ;;  %s8040_s5 = inlined_call_operand.hbm [shape: f32[2,16,16,128], index: 5, kind: output, shape index: {}]  }
   0x1   :  { %8050 = sst [smem:[#allocation41_spill]] %s8036_s1 }
   0x2   :  { %8051 = sst [smem:[#allocation42_spill]] %s8038_s3 }
   0x3   :  { %8052 = sst [smem:[#allocation43_spill]] %s8040_s5 }
   0x4   :  { %10 = vsyncpa [#allocation5], 0 }
   0x5   :  { %12 = vsyncpa [#allocation5 + $0x1], 0 }
   0x6   :  { %13 = vsyncpa [#allocation8], 0 }
   0x7   :  { %14 = vsyncpa [#allocation6], 0 }
   0x8   :  { %16 = vsyncpa [#allocation6 + $0x1], 0  ;;  %s6536_s18 = smov 0   ;;  %s6538_s19 = smov 0  }
   0x9   :  { %s6540_s20 = smov 0   ;;  %s6542_s21 = smov 0  }
   0xa   :  { %s6544_s22 = smov 0   ;;  %s6546_s23 = smov 0  }
   0xb   :  { %s6548_s24 = smov 0   ;;  %s6550_s25 = smov 0  }
   0xc   :  { %s6552_s26 = smov 0   ;;  %s6554_s27 = smov 0  }
   0xd   :  { %s6556_s28 = smov 0  }
   0xe LB: > { %8053 = sst [smem:[#allocation14_spill]] %s6451_s18  ;;  %s4397_s29 = sadd.s32 4294967295, %s6491_s28   ;;  %s6491_s28 = sphi %s6556_s28, %s22_s28   ;;  %s6487_s27 = sphi %s6554_s27, %s8160_s27   ;;  %s6483_s26 = sphi %s6552_s26, %s8159_s26   ;;  %s6479_s25 = sphi %s6550_s25, %s8158_s25   ;;  %s6475_s24 = sphi %s6548_s24, %s8157_s24   ;;  %s6471_s23 = sphi %s6546_s23, %s8156_s23   ;;  %s6467_s22 = sphi %s6544_s22, %s8155_s22   ;;  %s6463_s21 = sphi %s6542_s21, %s8154_s21   ;;  %s6459_s20 = sphi %s6540_s20, %s8153_s20   ;;  %s6455_s19 = sphi %s6538_s19, %s8152_s19   ;;  %s6451_s18 = sphi %s6536_s18, %s8151_s18  }
   0xf   : > { %8054 = sst [smem:[#allocation15_spill]] %s6479_s25  ;;  %s4398_s30 = sadd.s32 4294967294, %s6491_s28  }
  0x10   : > { %8055 = sst [smem:[#allocation16_spill]] %s6483_s26  ;;  %p54_p0 = scmp.ne.s32.totalorder %s6467_s22, %s6463_s21 }
  0x11   : > { %p6592_p1 = scmp.eq.s32.totalorder %s4397_s29, 0  ;;  %p163_p2 = scmp.ne.s32.totalorder %s6459_s20, %s6455_s19 }
  0x12   : > { %p164_p4 = scmp.eq.s32.totalorder %s4397_s29, 3  ;;  %p169_p5 = scmp.ne.s32.totalorder %s6455_s19, %s6451_s18 }
  0x13   : > { %p6601_p3 = por %p6592_p1, %p54_p0  ;;  %p170_p6 = scmp.eq.s32.totalorder %s4398_s30, 3 }
  0x14   : > { %p6607_p7 = por %p164_p4, %p163_p2  ;;  %p4399_p8 = scmp.ge.s32.totalorder %s6491_s28, 1 }
  0x15   : > { %p6612_p9 = por %p170_p6, %p169_p5  ;;  %p177_p10 = scmp.lt.s32.totalorder %s6491_s28, 5 }
  0x16   : > { %s8058_s9 = scalar_select %p6607_p7, 1, 0 }
  0x17   : > { %s8060_s10 = scalar_select %p6612_p9, 1, 0 }
  0x18   : > { %8059 = sst [smem:[#allocation17_spill]] %s8058_s9  ;;  %p6617_p11 = pnand %p4399_p8, %p177_p10 }
  0x19   : > { %8061 = sst [smem:[#allocation18_spill]] %s8060_s10  ;;  %s6493_s12 = smov [#allocation7]  }
  0x1a   : > { %s189_s13 = sshll.u32 %s6493_s12, 4  ;;  %p6167_p12 = pneg %p6617_p11  ;;  %s190_s13 = int_to_ptr.vmem [resolvable:$true] %s189_s13 }
  0x1b   : > { %s6494_s15 = smov [#allocation9]   ;;  %s6298_s17 = scalar_lea.vmem %s190_s13, 18432 }
  0x1c   : > { %p6625_p13 = pnand %p6167_p12, %p6592_p1  ;;  %s205_s16 = sshll.u32 %s6494_s15, 4  ;;  %s206_s16 = int_to_ptr.vmem [resolvable:$true] %s205_s16 }
  0x1d   : > { %p6299_p2 = scmp.ne.s32.totalorder %s190_s13, %s6298_s17  ;;  %p6306_p6 = scmp.lt.s32.totalorder %s190_s13, %s190_s13 }
  0x1e   : > { %p6289_p0 = pneg %p6625_p13  ;;  %p6307_p8 = scmp.lt.s32.totalorder %s6298_s17, %s6298_s17 }
  0x20   : > { %p6301_p4 = pnand %p6299_p2, %p6289_p0  ;;  %p6308_p10 = por %p6307_p8, %p6306_p6 }
  0x22   : > { %p6302_p5 = pneg %p6301_p4 }
  0x24   : > { %p6309_p12 = pnand %p6308_p10, %p6302_p5 }
  0x26   : > { %6312 = shalt.err (!%p6309_p12)
}
  0x27   : > { %s8041_s21 = smov 128   ;;  %s8042_s29 = smov 8  }
  0x28   : > { %s8064_s1 = sld [smem:[#allocation41_spill]]  ;;  %s6324_s15 = scalar_lea.vmem %s206_s16, 18432 }
  0x29   : > { %p6325_p2 = scmp.ne.s32.totalorder %s206_s16, %s6324_s15  ;;  %p6332_p5 = scmp.lt.s32.totalorder %s206_s16, %s206_s16 }
  0x2a   : > { %p6333_p8 = scmp.lt.s32.totalorder %s6324_s15, %s6324_s15 }
  0x2b   : > { %p6327_p4 = pnand %p6325_p2, %p6289_p0 }
  0x2c   : > { %p6334_p10 = por %p6333_p8, %p6332_p5 }
  0x2d   : > { %p6328_p6 = pneg %p6327_p4 }
  0x2e   : > { %6170 = dma.hbm_to_vmem [thread:$0]  (!%p6625_p13), %s8064_s1, 18432, %s190_s13, [#allocation8], %s8041_s21, %s8041_s21, %s8042_s29  }
  0x2f   : > { %p6335_p12 = pnand %p6334_p10, %p6328_p6 }
  0x31   : > { %6338 = shalt.err (!%p6335_p12)
}
  0x32   : > { %s8065_s3 = sld [smem:[#allocation42_spill]]  ;;  %s31_s13 = sadd.s32 1, %s6483_s26 }
  0x33   : > { %s34_s14 = sadd.s32 1, %s6487_s27  ;;  %p32_p0 = scmp.ge.s32.totalorder %s31_s13, 2 }
  0x34   : > { %s41_s30 = sadd.s32 1, %s6471_s23  ;;  %p48_p2 = scmp.ne.s32.totalorder %s6471_s23, %s6467_s22 }
  0x35   : > { %p49_p4 = scmp.eq.s32.totalorder %s6491_s28, 0  ;;  %s8162_s13 = smov (%p32_p0, %s31_s13), 0 }
  0x36   : > { %8066 = sst [smem:[#allocation19_spill]] %s8162_s13  ;;  %s8164_s14 = smov (!%p32_p0, %s34_s14), %s6487_s27 }
  0x37   : > { %p6662_p6 = por %p49_p4, %p48_p2  ;;  %s149_s12 = ssub.s32 %s6483_s26, %s8162_s13 }
  0x38   : > { %6173 = dma.hbm_to_vmem [thread:$0]  (!%p6625_p13), %s8065_s3, 18432, %s206_s16, [#allocation8], %s8041_s21, %s8041_s21, %s8042_s29  }
  0x39   : > { %p36_p13 = scmp.ge.s32.totalorder %s8164_s14, 2  ;;  %p6184_p5 = scmp.lt.s32.totalorder %s6491_s28, 4 }
  0x3a   : > { %s222_s16 = sand.u32 1, %s6471_s23   ;;  %s4446_s15 = sshll.u32 %s6487_s27, 12 }
  0x3b   : > { %s8166_s14 = smov (%p36_p13, %s8164_s14), 0  ;;  %s4403_s17 = sshll.u32 %s222_s16, 8 }
  0x3c   : > { %s38_s21 = ssub.s32 %s6487_s27, %s8166_s14  ;;  %s232_s10 = scalar_lea.hbm %s8035_s0, %s4446_s15 }
  0x3d   : > { %p39_p8 = scmp.eq.s32.totalorder %s38_s21, 0  ;;  %s150_s29 = sor.u32 %s149_s12, %s38_s21 }
  0x3e   : > { %p151_p10 = scmp.eq.s32.totalorder %s150_s29, 0  ;;  %s8068_s13 = sadd.s32 1, %s6459_s20 }
  0x3f   : > { %s6679_s18 = scalar_select %p39_p8, %s6471_s23, %s41_s30  }
  0x40   : > { %s6684_s26 = scalar_select %p151_p10, %s6459_s20, %s8068_s13  }
  0x41   : > { %s226_s5 = scalar_lea.vmem [#allocation4], %s4403_s17  ;;  %p6690_p12 = pnand %p6184_p5, %p6662_p6 }
  0x42   : > { %s233_s9 = sshll.u32 %s226_s5, 4  ;;  %s223_s21 = scalar_lea.sflag [#allocation5], %s222_s16  ;;  %s234_s9 = int_to_ptr.vmem [resolvable:$true] %s233_s9 }
  0x43   : > { %p6341_p0 = pneg %p6690_p12  ;;  %s6352_s1 = scalar_lea.vmem %s234_s9, 4096 }
  0x44   : > { %p6353_p2 = scmp.ne.s32.totalorder %s234_s9, %s6352_s1  ;;  %s6497_s3 = smov [#allocation4]  }
  0x45   : > { %s6357_s29 = sshll.u32 %s6497_s3, 4  ;;  %s6358_s29 = int_to_ptr.vmem [resolvable:$false] %s6357_s29 }
  0x46   : > { %p6355_p4 = pnand %p6353_p2, %p6341_p0  ;;  %s6359_s13 = scalar_lea.vmem %s6358_s29, 8192 }
  0x47   : > { %p6360_p8 = scmp.lt.s32.totalorder %s234_s9, %s6358_s29  ;;  %p6361_p10 = scmp.lt.s32.totalorder %s6359_s13, %s6352_s1 }
  0x48   : > { %p6356_p13 = pneg %p6355_p4 }
  0x49   : > { %p6362_p9 = por %p6361_p10, %p6360_p8 }
  0x4b   : > { %p6363_p6 = pnand %p6362_p9, %p6356_p13 }
  0x4d   : > { %6366 = shalt.err (!%p6363_p6)
}
  0x4e   : > { %s8070_s5 = smov 8   ;;  %s8071_s30 = smov 128  }
  0x4f   : > { %6177 = dma.hbm_to_vmem [thread:$0]  (!%p6690_p12), %s232_s10, 4096, %s234_s9, %s223_s21, %s8071_s30, %s8071_s30, %s8070_s5  }
  0x50   : > { %245 = sbr.rel (%p6617_p11) target bundleno = 1065 (0x429), region = 40 }
  0x55   : > { %s247_s7 = sand.u32 1, %s6467_s22  }
  0x56   : > { %s4407_s12 = sshll.u32 %s247_s7, 8  ;;  %s248_s16 = scalar_lea.sflag [#allocation5], %s247_s7 }
  0x57   : > { %s6704_s15 = scalar_lea.vmem [#allocation4], %s4407_s12 }
  0x58   : > { %6438 = dma.done.wait (%p6601_p3), %s248_s16, 4096  }
  0x59   : > { %6440 = vsyncadd (%p6601_p3), %s248_s16, 4294963200 }
  0x5a   : > { %6442 = dma.done.wait (%p6592_p1), [#allocation8], 36864  }
  0x5b   : > { %6444 = vsyncadd (%p6592_p1), [#allocation8], 4294930432  ;;  %s283_s25 = sand.u32 1, %s6455_s19   ;;  %v6498_v0 = vmov 0.0   ;;  %p4411_p1 = scmp.ne.s32.totalorder %s6475_s24, 0 }
  0x5c   : > { %s4410_s9 = sshll.u32 %s283_s25, 7  ;;  %287 = vst [vmem:[#allocation2] sm:$0xff] %v6498_v0  ;;  %288 = vst [vmem:[#allocation2 + $0x20] sm:$0xff] %v6498_v0 }
  0x5d   : > { %289 = vst [vmem:[#allocation2 + $0x40] sm:$0xff] %v6498_v0  ;;  %290 = vst [vmem:[#allocation2 + $0x60] sm:$0xff] %v6498_v0  ;;  %s6741_s6 = scalar_lea.vmem [#allocation10], %s4410_s9 }
  0x5e   : > { %291 = vst [vmem:[#allocation2 + $0x80] sm:$0xff] %v6498_v0  ;;  %292 = vst [vmem:[#allocation2 + $0xa0] sm:$0xff] %v6498_v0 }
  0x5f   : > { %293 = vst [vmem:[#allocation2 + $0xc0] sm:$0xff] %v6498_v0  ;;  %294 = vst [vmem:[#allocation2 + $0xe0] sm:$0xff] %v6498_v0 }
  0x60   : > { %295 = vst [vmem:[#allocation2 + $0x100] sm:$0xff] %v6498_v0  ;;  %296 = vst [vmem:[#allocation2 + $0x120] sm:$0xff] %v6498_v0 }
  0x61   : > { %297 = vst [vmem:[#allocation2 + $0x140] sm:$0xff] %v6498_v0  ;;  %298 = vst [vmem:[#allocation2 + $0x160] sm:$0xff] %v6498_v0 }
  0x62   : > { %299 = vst [vmem:[#allocation2 + $0x18] sm:$0xff] %v6498_v0  ;;  %300 = vst [vmem:[#allocation2 + $0x38] sm:$0xff] %v6498_v0 }
  0x63   : > { %301 = vst [vmem:[#allocation2 + $0x58] sm:$0xff] %v6498_v0  ;;  %302 = vst [vmem:[#allocation2 + $0x78] sm:$0xff] %v6498_v0  ;;  %314 = sbr.rel (%p4411_p1) target bundleno = 117 (0x75), region = 56 }
  0x64   : > { %303 = vst [vmem:[#allocation2 + $0x98] sm:$0xff] %v6498_v0  ;;  %304 = vst [vmem:[#allocation2 + $0xb8] sm:$0xff] %v6498_v0 }
  0x65   : > { %305 = vst [vmem:[#allocation2 + $0xd8] sm:$0xff] %v6498_v0  ;;  %306 = vst [vmem:[#allocation2 + $0xf8] sm:$0xff] %v6498_v0 }
  0x66   : > { %307 = vst [vmem:[#allocation2 + $0x118] sm:$0xff] %v6498_v0  ;;  %308 = vst [vmem:[#allocation2 + $0x138] sm:$0xff] %v6498_v0 }
  0x67   : > { %309 = vst [vmem:[#allocation2 + $0x158] sm:$0xff] %v6498_v0  ;;  %310 = vst [vmem:[#allocation2 + $0x178] sm:$0xff] %v6498_v0 }
  0x68   : > { %v319_v1 = vld [vmem:[%s6704_s15] sm:$0xff]  ;;  %v320_v2 = vld [vmem:[%s6704_s15 + $0x8] sm:$0xff]  ;;  %v321_v3 = vld [vmem:[%s6704_s15 + $0x10] sm:$0xff]  ;;  %v6499_v4 = vmov 0.0  }
  0x69   : > { %315 = vst [vmem:[#allocation2 + $0x8] sm:$0xff] %v6499_v4  ;;  %316 = vst [vmem:[#allocation2 + $0x10] sm:$0xff] %v6499_v4  ;;  %v322_v5 = vld [vmem:[%s6704_s15 + $0x18] sm:$0xff]  ;;  %v323_v6 = vld [vmem:[%s6704_s15 + $0x20] sm:$0xff] }
  0x6a   : > { %317 = vst [vmem:[#allocation2 + $0x28] sm:$0xff] %v6499_v4  ;;  %318 = vst [vmem:[#allocation2 + $0x30] sm:$0xff] %v6499_v4  ;;  %v324_v7 = vld [vmem:[%s6704_s15 + $0x28] sm:$0xff]  ;;  %v325_v8 = vld [vmem:[%s6704_s15 + $0x30] sm:$0xff] }
  0x6b   : > { %340 = vst [vmem:[#allocation2 + $0x48] sm:$0xff] %v319_v1  ;;  %341 = vst [vmem:[#allocation2 + $0x50] sm:$0xff] %v320_v2  ;;  %v326_v9 = vld [vmem:[%s6704_s15 + $0x38] sm:$0xff]  ;;  %v327_v10 = vld [vmem:[%s6704_s15 + $0x40] sm:$0xff] }
  0x6c   : > { %342 = vst [vmem:[#allocation2 + $0x68] sm:$0xff] %v321_v3  ;;  %343 = vst [vmem:[#allocation2 + $0x70] sm:$0xff] %v322_v5  ;;  %v328_v11 = vld [vmem:[%s6704_s15 + $0x48] sm:$0xff]  ;;  %v329_v12 = vld [vmem:[%s6704_s15 + $0x50] sm:$0xff] }
  0x6d   : > { %344 = vst [vmem:[#allocation2 + $0x88] sm:$0xff] %v323_v6  ;;  %345 = vst [vmem:[#allocation2 + $0x90] sm:$0xff] %v324_v7  ;;  %v330_v13 = vld [vmem:[%s6704_s15 + $0x58] sm:$0xff]  ;;  %v331_v14 = vld [vmem:[%s6704_s15 + $0x60] sm:$0xff] }
  0x6e   : > { %346 = vst [vmem:[#allocation2 + $0xa8] sm:$0xff] %v325_v8  ;;  %347 = vst [vmem:[#allocation2 + $0xb0] sm:$0xff] %v326_v9  ;;  %v332_v15 = vld [vmem:[%s6704_s15 + $0x68] sm:$0xff]  ;;  %v333_v16 = vld [vmem:[%s6704_s15 + $0x70] sm:$0xff] }
  0x6f   : > { %348 = vst [vmem:[#allocation2 + $0xc8] sm:$0xff] %v327_v10  ;;  %349 = vst [vmem:[#allocation2 + $0xd0] sm:$0xff] %v328_v11  ;;  %v334_v17 = vld [vmem:[%s6704_s15 + $0x78] sm:$0xff]  ;;  %v335_v18 = vld [vmem:[%s6704_s15 + $0x80] sm:$0xff] }
  0x70   : > { %350 = vst [vmem:[#allocation2 + $0xe8] sm:$0xff] %v329_v12  ;;  %351 = vst [vmem:[#allocation2 + $0xf0] sm:$0xff] %v330_v13  ;;  %v336_v19 = vld [vmem:[%s6704_s15 + $0x88] sm:$0xff]  ;;  %v337_v20 = vld [vmem:[%s6704_s15 + $0x90] sm:$0xff] }
  0x71   : > { %352 = vst [vmem:[#allocation2 + $0x108] sm:$0xff] %v331_v14  ;;  %353 = vst [vmem:[#allocation2 + $0x110] sm:$0xff] %v332_v15  ;;  %v338_v21 = vld [vmem:[%s6704_s15 + $0x98] sm:$0xff] }
  0x72   : > { %354 = vst [vmem:[#allocation2 + $0x128] sm:$0xff] %v333_v16  ;;  %355 = vst [vmem:[#allocation2 + $0x130] sm:$0xff] %v334_v17 }
  0x73   : > { %356 = vst [vmem:[#allocation2 + $0x148] sm:$0xff] %v335_v18  ;;  %357 = vst [vmem:[#allocation2 + $0x150] sm:$0xff] %v336_v19 }
  0x74   : > { %358 = vst [vmem:[#allocation2 + $0x168] sm:$0xff] %v337_v20  ;;  %359 = vst [vmem:[#allocation2 + $0x170] sm:$0xff] %v338_v21 }
  0x75 PF: > { %p4412_p3 = scmp.ne.s32.totalorder %s6475_s24, 1 }
  0x77   : > { %363 = sbr.rel (%p4412_p3) target bundleno = 137 (0x89), region = 60 }
  0x7c   : > { %v4413_v22 = vld [vmem:[%s6704_s15 + $0x60] sm:$0xff]  ;;  %v4414_v23 = vld [vmem:[%s6704_s15 + $0x68] sm:$0xff]  ;;  %v4415_v24 = vld [vmem:[%s6704_s15 + $0x70] sm:$0xff]  ;;  %v6500_v25 = vmov 0.0  }
  0x7d   : > { %365 = vst [vmem:[#allocation2 + $0x148] sm:$0xff] %v6500_v25  ;;  %366 = vst [vmem:[#allocation2 + $0x150] sm:$0xff] %v6500_v25  ;;  %v4416_v26 = vld [vmem:[%s6704_s15 + $0x78] sm:$0xff]  ;;  %v4417_v27 = vld [vmem:[%s6704_s15 + $0x80] sm:$0xff] }
  0x7e   : > { %367 = vst [vmem:[#allocation2 + $0x168] sm:$0xff] %v6500_v25  ;;  %368 = vst [vmem:[#allocation2 + $0x170] sm:$0xff] %v6500_v25  ;;  %v4418_v28 = vld [vmem:[%s6704_s15 + $0x88] sm:$0xff]  ;;  %v4419_v29 = vld [vmem:[%s6704_s15 + $0x90] sm:$0xff] }
  0x7f   : > { %390 = vst [vmem:[#allocation2 + $0x8] sm:$0xff] %v4413_v22  ;;  %391 = vst [vmem:[#allocation2 + $0x10] sm:$0xff] %v4414_v23  ;;  %v4420_v30 = vld [vmem:[%s6704_s15 + $0x98] sm:$0xff]  ;;  %v4421_v31 = vld [vmem:[%s6704_s15 + $0xa0] sm:$0xff] }
  0x80   : > { %392 = vst [vmem:[#allocation2 + $0x28] sm:$0xff] %v4415_v24  ;;  %393 = vst [vmem:[#allocation2 + $0x30] sm:$0xff] %v4416_v26  ;;  %v4422_v32 = vld [vmem:[%s6704_s15 + $0xa8] sm:$0xff]  ;;  %v4423_v33 = vld [vmem:[%s6704_s15 + $0xb0] sm:$0xff] }
  0x81   : > { %394 = vst [vmem:[#allocation2 + $0x48] sm:$0xff] %v4417_v27  ;;  %395 = vst [vmem:[#allocation2 + $0x50] sm:$0xff] %v4418_v28  ;;  %v4424_v34 = vld [vmem:[%s6704_s15 + $0xb8] sm:$0xff]  ;;  %v4425_v35 = vld [vmem:[%s6704_s15 + $0xc0] sm:$0xff] }
  0x82   : > { %396 = vst [vmem:[#allocation2 + $0x68] sm:$0xff] %v4419_v29  ;;  %397 = vst [vmem:[#allocation2 + $0x70] sm:$0xff] %v4420_v30  ;;  %v4426_v36 = vld [vmem:[%s6704_s15 + $0xc8] sm:$0xff]  ;;  %v4427_v37 = vld [vmem:[%s6704_s15 + $0xd0] sm:$0xff] }
  0x83   : > { %398 = vst [vmem:[#allocation2 + $0x88] sm:$0xff] %v4421_v31  ;;  %399 = vst [vmem:[#allocation2 + $0x90] sm:$0xff] %v4422_v32  ;;  %v4428_v38 = vld [vmem:[%s6704_s15 + $0xd8] sm:$0xff]  ;;  %v4429_v39 = vld [vmem:[%s6704_s15 + $0xe0] sm:$0xff] }
  0x84   : > { %400 = vst [vmem:[#allocation2 + $0xa8] sm:$0xff] %v4423_v33  ;;  %401 = vst [vmem:[#allocation2 + $0xb0] sm:$0xff] %v4424_v34  ;;  %v4430_v40 = vld [vmem:[%s6704_s15 + $0xe8] sm:$0xff]  ;;  %v4431_v41 = vld [vmem:[%s6704_s15 + $0xf0] sm:$0xff] }
  0x85   : > { %402 = vst [vmem:[#allocation2 + $0xc8] sm:$0xff] %v4425_v35  ;;  %403 = vst [vmem:[#allocation2 + $0xd0] sm:$0xff] %v4426_v36  ;;  %v4432_v42 = vld [vmem:[%s6704_s15 + $0xf8] sm:$0xff] }
  0x86   : > { %404 = vst [vmem:[#allocation2 + $0xe8] sm:$0xff] %v4427_v37  ;;  %405 = vst [vmem:[#allocation2 + $0xf0] sm:$0xff] %v4428_v38 }
  0x87   : > { %406 = vst [vmem:[#allocation2 + $0x108] sm:$0xff] %v4429_v39  ;;  %407 = vst [vmem:[#allocation2 + $0x110] sm:$0xff] %v4430_v40 }
  0x88   : > { %408 = vst [vmem:[#allocation2 + $0x128] sm:$0xff] %v4431_v41  ;;  %409 = vst [vmem:[#allocation2 + $0x130] sm:$0xff] %v4432_v42 }
  0x89 PF: > { %v482_v43 = vld [vmem:[#allocation7 + $0xf8] sm:$0xff]  ;;  %v481_v45 = vld [vmem:[#allocation7 + $0xf0] sm:$0xff]  ;;  %2416 = vst [vmem:[#allocation3] sm:$0xff] %v6498_v0  ;;  %2417 = vst [vmem:[#allocation3 + $0x20] sm:$0xff] %v6498_v0 }
  0x8a   : > { %v445_v44 = vld [vmem:[#allocation7 + $0x78] sm:$0xff]  ;;  %2418 = vst [vmem:[#allocation3 + $0x40] sm:$0xff] %v6498_v0  ;;  %2419 = vst [vmem:[#allocation3 + $0x60] sm:$0xff] %v6498_v0  ;;  %5061 = vmatprep.subr.mxu0 %v482_v43  ;;  %v444_v46 = vld [vmem:[#allocation7 + $0x70] sm:$0xff] }
  0x8b   : > { %2420 = vst [vmem:[#allocation3 + $0x80] sm:$0xff] %v6498_v0  ;;  %2421 = vst [vmem:[#allocation3 + $0xa0] sm:$0xff] %v6498_v0  ;;  %5123 = vmatprep.subr.mxu1 %v445_v44  ;;  %5062 = vmatpush3.msra.mxu0 %v482_v43  ;;  %v480_v47 = vld [vmem:[#allocation7 + $0xe8] sm:$0xff]  ;;  %v479_v49 = vld [vmem:[#allocation7 + $0xe0] sm:$0xff] }
  0x8c   : > { %2422 = vst [vmem:[#allocation3 + $0xc0] sm:$0xff] %v6498_v0  ;;  %2423 = vst [vmem:[#allocation3 + $0xe0] sm:$0xff] %v6498_v0  ;;  %5124 = vmatpush3.msra.mxu1 %v445_v44  ;;  %v443_v48 = vld [vmem:[#allocation7 + $0x68] sm:$0xff]  ;;  %5063 = vmatprep.subr.mxu0 %v481_v45  ;;  %v442_v50 = vld [vmem:[#allocation7 + $0x60] sm:$0xff] }
  0x8d   : > { %2424 = vst [vmem:[#allocation3 + $0x100] sm:$0xff] %v6498_v0  ;;  %2425 = vst [vmem:[#allocation3 + $0x120] sm:$0xff] %v6498_v0  ;;  %5125 = vmatprep.subr.mxu1 %v444_v46  ;;  %5064 = vmatpush3.msra.mxu0 %v481_v45  ;;  %v478_v51 = vld [vmem:[#allocation7 + $0xd8] sm:$0xff]  ;;  %v477_v53 = vld [vmem:[#allocation7 + $0xd0] sm:$0xff] }
  0x8e   : > { %2426 = vst [vmem:[#allocation3 + $0x18] sm:$0xff] %v6498_v0  ;;  %2427 = vst [vmem:[#allocation3 + $0x38] sm:$0xff] %v6498_v0  ;;  %5126 = vmatpush3.msra.mxu1 %v444_v46  ;;  %5065 = vmatprep.subr.mxu0 %v480_v47  ;;  %v441_v52 = vld [vmem:[#allocation7 + $0x58] sm:$0xff]  ;;  %v440_v54 = vld [vmem:[#allocation7 + $0x50] sm:$0xff] }
  0x8f   : > { %2428 = vst [vmem:[#allocation3 + $0x58] sm:$0xff] %v6498_v0  ;;  %2429 = vst [vmem:[#allocation3 + $0x78] sm:$0xff] %v6498_v0  ;;  %5127 = vmatprep.subr.mxu1 %v443_v48  ;;  %5066 = vmatpush3.msra.mxu0 %v480_v47  ;;  %v476_v55 = vld [vmem:[#allocation7 + $0xc8] sm:$0xff]  ;;  %v475_v57 = vld [vmem:[#allocation7 + $0xc0] sm:$0xff] }
  0x90   : > { %2430 = vst [vmem:[#allocation3 + $0x98] sm:$0xff] %v6498_v0  ;;  %2431 = vst [vmem:[#allocation3 + $0xb8] sm:$0xff] %v6498_v0  ;;  %5128 = vmatpush3.msra.mxu1 %v443_v48  ;;  %5067 = vmatprep.subr.mxu0 %v479_v49  ;;  %v439_v56 = vld [vmem:[#allocation7 + $0x48] sm:$0xff]  ;;  %v438_v58 = vld [vmem:[#allocation7 + $0x40] sm:$0xff] }
  0x91   : > { %2432 = vst [vmem:[#allocation3 + $0xd8] sm:$0xff] %v6498_v0  ;;  %2433 = vst [vmem:[#allocation3 + $0xf8] sm:$0xff] %v6498_v0  ;;  %5129 = vmatprep.subr.mxu1 %v442_v50  ;;  %5068 = vmatpush3.msra.mxu0 %v479_v49  ;;  %v474_v59 = vld [vmem:[#allocation7 + $0xb8] sm:$0xff]  ;;  %v473_v61 = vld [vmem:[#allocation7 + $0xb0] sm:$0xff] }
  0x92   : > { %2434 = vst [vmem:[#allocation3 + $0x118] sm:$0xff] %v6498_v0  ;;  %2435 = vst [vmem:[#allocation3 + $0x138] sm:$0xff] %v6498_v0  ;;  %5130 = vmatpush3.msra.mxu1 %v442_v50  ;;  %5069 = vmatprep.subr.mxu0 %v478_v51  ;;  %v437_v60 = vld [vmem:[#allocation7 + $0x38] sm:$0xff]  ;;  %v436_v62 = vld [vmem:[#allocation7 + $0x30] sm:$0xff] }
  0x93   : > { %5131 = vmatprep.subr.mxu1 %v441_v52  ;;  %5070 = vmatpush3.msra.mxu0 %v478_v51  ;;  %v472_v63 = vld [vmem:[#allocation7 + $0xa8] sm:$0xff]  ;;  %v471_v1 = vld [vmem:[#allocation7 + $0xa0] sm:$0xff]  ;;  %v470_v3 = vld [vmem:[#allocation7 + $0x98] sm:$0xff] }
  0x94   : > { %5132 = vmatpush3.msra.mxu1 %v441_v52  ;;  %5071 = vmatprep.subr.mxu0 %v477_v53  ;;  %v435_v0 = vld [vmem:[#allocation7 + $0x28] sm:$0xff]  ;;  %v434_v2 = vld [vmem:[#allocation7 + $0x20] sm:$0xff]  ;;  %v433_v4 = vld [vmem:[#allocation7 + $0x18] sm:$0xff] }
  0x95   : > { %5133 = vmatprep.subr.mxu1 %v440_v54  ;;  %5072 = vmatpush3.msra.mxu0 %v477_v53  ;;  %v469_v5 = vld [vmem:[#allocation7 + $0x90] sm:$0xff]  ;;  %v468_v7 = vld [vmem:[#allocation7 + $0x88] sm:$0xff]  ;;  %v467_v9 = vld [vmem:[#allocation7 + $0x80] sm:$0xff] }
  0x96   : > { %5134 = vmatpush3.msra.mxu1 %v440_v54  ;;  %5073 = vmatprep.subr.mxu0 %v476_v55  ;;  %v432_v6 = vld [vmem:[#allocation7 + $0x10] sm:$0xff]  ;;  %v431_v8 = vld [vmem:[#allocation7 + $0x8] sm:$0xff]  ;;  %v430_v10 = vld [vmem:[#allocation7] sm:$0xff] }
  0x97   : > { %5135 = vmatprep.subr.mxu1 %v439_v56  ;;  %5074 = vmatpush3.msra.mxu0 %v476_v55  ;;  %v446_v11 = vld [vmem:[#allocation2 + $0x8] sm:$0xff]  ;;  %v447_v13 = vld [vmem:[#allocation2 + $0x10] sm:$0xff]  ;;  %v849_v15 = vld [vmem:[#allocation7 + $0x178] sm:$0xff] }
  0x98   : > { %5136 = vmatpush3.msra.mxu1 %v439_v56  ;;  %5075 = vmatprep.subr.mxu0 %v475_v57  ;;  %v410_v12 = vld [vmem:[#allocation2 + $0x7] sm:$0xff]  ;;  %v411_v14 = vld [vmem:[#allocation2 + $0xf] sm:$0xff]  ;;  %v1072_v19 = vld [vmem:[#allocation7 + $0x1f8] sm:$0xff] }
  0x99   : > { %5137 = vmatprep.subr.mxu1 %v438_v58  ;;  %5076 = vmatpush3.msra.mxu0 %v475_v57  ;;  %v6809_v16 = vld [vmem:[#allocation2 + $0x28] sm:$0xff]  ;;  %v848_v18 = vld [vmem:[#allocation7 + $0x170] sm:$0xff]  ;;  %v846_v27 = vld [vmem:[#allocation7 + $0x160] sm:$0xff] }
  0x9a   : > { %5138 = vmatpush3.msra.mxu1 %v438_v58  ;;  %5077 = vmatprep.subr.mxu0 %v474_v59  ;;  %v6811_v17 = vld [vmem:[#allocation2 + $0x27] sm:$0xff]  ;;  %v6814_v20 = vld [vmem:[#allocation2 + $0x30] sm:$0xff]  ;;  %v845_v30 = vld [vmem:[#allocation7 + $0x158] sm:$0xff] }
  0x9b   : > { %5139 = vmatprep.subr.mxu1 %v437_v60  ;;  %5078 = vmatpush3.msra.mxu0 %v474_v59  ;;  %v6816_v21 = vld [vmem:[#allocation2 + $0x2f] sm:$0xff]  ;;  %v6821_v24 = vld [vmem:[#allocation2 + $0x47] sm:$0xff]  ;;  %v1068_v44 = vld [vmem:[#allocation7 + $0x1d8] sm:$0xff] }
  0x9c   : > { %5140 = vmatpush3.msra.mxu1 %v437_v60  ;;  %5079 = vmatprep.subr.mxu0 %v473_v61  ;;  %v6819_v22 = vld [vmem:[#allocation2 + $0x48] sm:$0xff]  ;;  %v6826_v25 = vld [vmem:[#allocation2 + $0x50] sm:$0xff]  ;;  %v1069_v41 = vld [vmem:[#allocation7 + $0x1e0] sm:$0xff] }
  0x9d   : > { %5141 = vmatprep.subr.mxu1 %v436_v62  ;;  %5080 = vmatpush3.msra.mxu0 %v473_v61  ;;  %v847_v23 = vld [vmem:[#allocation7 + $0x168] sm:$0xff]  ;;  %v1071_v31 = vld [vmem:[#allocation7 + $0x1f0] sm:$0xff]  ;;  %v842_v42 = vld [vmem:[#allocation7 + $0x140] sm:$0xff] }
  0x9e   : > { %5142 = vmatpush3.msra.mxu1 %v436_v62  ;;  %5081 = vmatprep.subr.mxu0 %v472_v63  ;;  %v6828_v26 = vld [vmem:[#allocation2 + $0x4f] sm:$0xff]  ;;  %v6833_v29 = vld [vmem:[#allocation2 + $0x67] sm:$0xff]  ;;  %v841_v48 = vld [vmem:[#allocation7 + $0x138] sm:$0xff] }
  0x9f   : > { %5143 = vmatprep.subr.mxu1 %v435_v0  ;;  %5082 = vmatpush3.msra.mxu0 %v472_v63  ;;  %v6831_v28 = vld [vmem:[#allocation2 + $0x68] sm:$0xff]  ;;  %v6841_v33 = vld [vmem:[#allocation2 + $0x70] sm:$0xff]  ;;  %v1065_v56 = vld [vmem:[#allocation7 + $0x1c0] sm:$0xff] }
  0xa0   : > { %5144 = vmatpush3.msra.mxu1 %v435_v0  ;;  %5083 = vmatprep.subr.mxu0 %v471_v1  ;;  %v6838_v32 = vld [vmem:[#allocation2 + $0x6f] sm:$0xff]  ;;  %v6847_v37 = vld [vmem:[#allocation2 + $0x87] sm:$0xff]  ;;  %v1064_v58 = vld [vmem:[#allocation7 + $0x1b8] sm:$0xff] }
  0xa1   : > { %5145 = vmatprep.subr.mxu1 %v434_v2  ;;  %5084 = vmatpush3.msra.mxu0 %v471_v1  ;;  %v844_v34 = vld [vmem:[#allocation7 + $0x150] sm:$0xff]  ;;  %v1070_v35 = vld [vmem:[#allocation7 + $0x1e8] sm:$0xff]  ;;  %v838_v63 = vld [vmem:[#allocation7 + $0x120] sm:$0xff] }
  0xa2   : > { %5146 = vmatpush3.msra.mxu1 %v434_v2  ;;  %5085 = vmatprep.subr.mxu0 %v470_v3  ;;  %v6844_v36 = vld [vmem:[#allocation2 + $0x88] sm:$0xff]  ;;  %v6849_v39 = vld [vmem:[#allocation2 + $0x90] sm:$0xff]  ;;  %v837_v1 = vld [vmem:[#allocation7 + $0x118] sm:$0xff] }
  0xa3   : > { %5147 = vmatprep.subr.mxu1 %v433_v4  ;;  %5086 = vmatpush3.msra.mxu0 %v470_v3  ;;  %v843_v38 = vld [vmem:[#allocation7 + $0x148] sm:$0xff]  ;;  %v6862_v46 = vld [vmem:[#allocation2 + $0xb0] sm:$0xff] }
  0xa4   : > { %5148 = vmatpush3.msra.mxu1 %v433_v4  ;;  %5087 = vmatprep.subr.mxu0 %v469_v5  ;;  %v6852_v40 = vld [vmem:[#allocation2 + $0x8f] sm:$0xff]  ;;  %v6859_v45 = vld [vmem:[#allocation2 + $0xa7] sm:$0xff] }
  0xa5   : > { %5149 = vmatprep.subr.mxu1 %v432_v6  ;;  %5088 = vmatpush3.msra.mxu0 %v469_v5  ;;  %v6856_v43 = vld [vmem:[#allocation2 + $0xa8] sm:$0xff]  ;;  %v1067_v49 = vld [vmem:[#allocation7 + $0x1d0] sm:$0xff] }
  0xa6   : > { %5150 = vmatpush3.msra.mxu1 %v432_v6  ;;  %5089 = vmatprep.subr.mxu0 %v468_v7  ;;  %v6864_v47 = vld [vmem:[#allocation2 + $0xaf] sm:$0xff]  ;;  %v6871_v52 = vld [vmem:[#allocation2 + $0xc7] sm:$0xff] }
  0xa7   : > { %5151 = vmatprep.subr.mxu1 %v431_v8  ;;  %5090 = vmatpush3.msra.mxu0 %v468_v7  ;;  %v1066_v50 = vld [vmem:[#allocation7 + $0x1c8] sm:$0xff]  ;;  %v840_v53 = vld [vmem:[#allocation7 + $0x130] sm:$0xff]  ;;  %v1061_v7 = vld [vmem:[#allocation7 + $0x1a0] sm:$0xff] }
  0xa8   : > { %5152 = vmatpush3.msra.mxu1 %v431_v8  ;;  %5091 = vmatprep.subr.mxu0 %v467_v9  ;;  %v6869_v51 = vld [vmem:[#allocation2 + $0xc8] sm:$0xff]  ;;  %v6873_v54 = vld [vmem:[#allocation2 + $0xd0] sm:$0xff] }
  0xa9   : > { %5153 = vmatprep.subr.mxu1 %v430_v10  ;;  %5092 = vmatpush3.msra.mxu0 %v467_v9  ;;  %v6876_v55 = vld [vmem:[#allocation2 + $0xcf] sm:$0xff]  ;;  %v6883_v60 = vld [vmem:[#allocation2 + $0xe7] sm:$0xff]  ;;  %v1060_v9 = vld [vmem:[#allocation7 + $0x198] sm:$0xff] }
  0xaa   : > { %5093 = vmatprep.mubr.f32.mxu0 %v446_v11  ;;  %5154 = vmatpush3.msra.mxu1 %v430_v10  ;;  %v839_v57 = vld [vmem:[#allocation7 + $0x128] sm:$0xff]  ;;  %v6885_v61 = vld [vmem:[#allocation2 + $0xf0] sm:$0xff] }
  0xab   : > { %5155 = vmatprep.mubr.f32.mxu1 %v410_v12  ;;  %5094 = vmatmul.mubr.f32.vlgmr.msra.gmra.mxu0 %v447_v13  ;;  %v6881_v59 = vld [vmem:[#allocation2 + $0xe8] sm:$0xff]  ;;  %v1063_v0 = vld [vmem:[#allocation7 + $0x1b0] sm:$0xff] }
  0xac   : > { %5156 = vmatmul.mubr.f32.vlgmr.msra.gmra.mxu1 %v411_v14  ;;  %5185 = vmatprep.subr.mxu0 %v849_v15  ;;  %v6887_v62 = vld [vmem:[#allocation2 + $0xef] sm:$0xff]  ;;  %v6895_v4 = vld [vmem:[#allocation2 + $0x107] sm:$0xff] }
  0xad   : > { %5096 = vmatprep.mubr.f32.mxu0 %v6809_v16  ;;  %5186 = vmatpush3.msra.mxu0 %v849_v15  ;;  %v1062_v2 = vld [vmem:[#allocation7 + $0x1a8] sm:$0xff]  ;;  %v6897_v5 = vld [vmem:[#allocation2 + $0x110] sm:$0xff] }
  0xae   : > { %5158 = vmatprep.mubr.f32.mxu1 %v6811_v17  ;;  %5187 = vmatprep.subr.mxu0 %v848_v18  ;;  %v6893_v3 = vld [vmem:[#allocation2 + $0x108] sm:$0xff]  ;;  %v836_v8 = vld [vmem:[#allocation7 + $0x110] sm:$0xff] }
  0xaf   : > { %5247 = vmatprep.subr.mxu1 %v1072_v19  ;;  %5097 = vmatmul.mubr.f32.gmra.mxu0 %v6814_v20  ;;  %v6899_v6 = vld [vmem:[#allocation2 + $0x10f] sm:$0xff]  ;;  %v6907_v11 = vld [vmem:[#allocation2 + $0x127] sm:$0xff] }
  0xb0   : > { %5159 = vmatmul.mubr.f32.gmra.mxu1 %v6816_v21  ;;  %5188 = vmatpush3.msra.mxu0 %v848_v18  ;;  %v6905_v10 = vld [vmem:[#allocation2 + $0x128] sm:$0xff]  ;;  %v6909_v13 = vld [vmem:[#allocation2 + $0x130] sm:$0xff]  ;;  %v834_v18 = vld [vmem:[#allocation7 + $0x100] sm:$0xff] }
  0xb1   : > { %5099 = vmatprep.mubr.f32.mxu0 %v6819_v22  ;;  %5189 = vmatprep.subr.mxu0 %v847_v23  ;;  %v835_v12 = vld [vmem:[#allocation7 + $0x108] sm:$0xff]  ;;  %v1059_v15 = vld [vmem:[#allocation7 + $0x190] sm:$0xff] }
  0xb2   : > { %5161 = vmatprep.mubr.f32.mxu1 %v6821_v24  ;;  %5190 = vmatpush3.msra.mxu0 %v847_v23  ;;  %v6912_v14 = vld [vmem:[#allocation2 + $0x12f] sm:$0xff] }
  0xb3   : > { %5248 = vmatpush3.msra.mxu1 %v1072_v19  ;;  %5100 = vmatmul.mubr.f32.gmra.mxu0 %v6826_v25  ;;  %v1058_v19 = vld [vmem:[#allocation7 + $0x188] sm:$0xff] }
  0xb4   : > { %5162 = vmatmul.mubr.f32.gmra.mxu1 %v6828_v26  ;;  %5191 = vmatprep.subr.mxu0 %v846_v27  ;;  %v813_v23 = vld [vmem:[#allocation2 + $0x9] sm:$0xff] }
  0xb5   : > { %5102 = vmatprep.mubr.f32.mxu0 %v6831_v28  ;;  %5192 = vmatpush3.msra.mxu0 %v846_v27  ;;  %v814_v27 = vld [vmem:[#allocation2 + $0x11] sm:$0xff] }
  0xb6   : > { %5164 = vmatprep.mubr.f32.mxu1 %v6833_v29  ;;  %5193 = vmatprep.subr.mxu0 %v845_v30 }
  0xb7   : > { %5249 = vmatprep.subr.mxu1 %v1071_v31  ;;  %5194 = vmatpush3.msra.mxu0 %v845_v30  ;;  %v1057_v30 = vld [vmem:[#allocation7 + $0x180] sm:$0xff] }
  0xb8   : > { %5165 = vmatmul.mubr.f32.gmra.mxu1 %v6838_v32  ;;  %5103 = vmatmul.mubr.f32.gmra.mxu0 %v6841_v33 }
  0xb9   : > { %5195 = vmatprep.subr.mxu0 %v844_v34  ;;  %5250 = vmatpush3.msra.mxu1 %v1071_v31  ;;  %v1294_v31 = vld [vmem:[#allocation7 + $0x278] sm:$0xff] }
  0xba   : > { %5196 = vmatpush3.msra.mxu0 %v844_v34  ;;  %5251 = vmatprep.subr.mxu1 %v1070_v35  ;;  %v6917_v34 = vld [vmem:[#allocation2 + $0x29] sm:$0xff] }
  0xbb   : > { %5105 = vmatprep.mubr.f32.mxu0 %v6844_v36  ;;  %5167 = vmatprep.mubr.f32.mxu1 %v6847_v37 }
  0xbc   : > { %5197 = vmatprep.subr.mxu0 %v843_v38  ;;  %5252 = vmatpush3.msra.mxu1 %v1070_v35  ;;  %v1293_v35 = vld [vmem:[#allocation7 + $0x270] sm:$0xff] }
  0xbd   : > { %5106 = vmatmul.mubr.f32.gmra.mxu0 %v6849_v39  ;;  %5168 = vmatmul.mubr.f32.gmra.mxu1 %v6852_v40 }
  0xbe   : > { %5198 = vmatpush3.msra.mxu0 %v843_v38  ;;  %5253 = vmatprep.subr.mxu1 %v1069_v41  ;;  %v6920_v38 = vld [vmem:[#allocation2 + $0x31] sm:$0xff] }
  0xbf   : > { %5199 = vmatprep.subr.mxu0 %v842_v42  ;;  %5254 = vmatpush3.msra.mxu1 %v1069_v41  ;;  %v6923_v41 = vld [vmem:[#allocation2 + $0x49] sm:$0xff] }
  0xc0   : > { %5108 = vmatprep.mubr.f32.mxu0 %v6856_v43  ;;  %5255 = vmatprep.subr.mxu1 %v1068_v44 }
  0xc1   : > { %5170 = vmatprep.mubr.f32.mxu1 %v6859_v45  ;;  %5200 = vmatpush3.msra.mxu0 %v842_v42  ;;  %v1292_v42 = vld [vmem:[#allocation7 + $0x268] sm:$0xff] }
  0xc2   : > { %5256 = vmatpush3.msra.mxu1 %v1068_v44  ;;  %5109 = vmatmul.mubr.f32.gmra.mxu0 %v6862_v46  ;;  %v6929_v44 = vld [vmem:[#allocation2 + $0x51] sm:$0xff] }
  0xc3   : > { %5171 = vmatmul.mubr.f32.gmra.mxu1 %v6864_v47  ;;  %5201 = vmatprep.subr.mxu0 %v841_v48 }
  0xc4   : > { %5257 = vmatprep.subr.mxu1 %v1067_v49  ;;  %5202 = vmatpush3.msra.mxu0 %v841_v48  ;;  %v1290_v48 = vld [vmem:[#allocation7 + $0x258] sm:$0xff] }
  0xc5   : > { %5258 = vmatpush3.msra.mxu1 %v1067_v49  ;;  %5111 = vmatprep.mubr.f32.mxu0 %v6869_v51  ;;  %v6934_v49 = vld [vmem:[#allocation2 + $0x69] sm:$0xff] }
  0xc6   : > { %5259 = vmatprep.subr.mxu1 %v1066_v50  ;;  %5173 = vmatprep.mubr.f32.mxu1 %v6871_v52 }
  0xc7   : > { %5203 = vmatprep.subr.mxu0 %v840_v53  ;;  %5260 = vmatpush3.msra.mxu1 %v1066_v50  ;;  %v6936_v50 = vld [vmem:[#allocation2 + $0x71] sm:$0xff] }
  0xc8   : > { %5112 = vmatmul.mubr.f32.gmra.mxu0 %v6873_v54  ;;  %5174 = vmatmul.mubr.f32.gmra.mxu1 %v6876_v55 }
  0xc9   : > { %5204 = vmatpush3.msra.mxu0 %v840_v53  ;;  %5261 = vmatprep.subr.mxu1 %v1065_v56  ;;  %v1515_v53 = vld [vmem:[#allocation7 + $0x2f0] sm:$0xff] }
  0xca   : > { %5205 = vmatprep.subr.mxu0 %v839_v57  ;;  %5262 = vmatpush3.msra.mxu1 %v1065_v56  ;;  %v1289_v56 = vld [vmem:[#allocation7 + $0x250] sm:$0xff] }
  0xcb   : > { %5206 = vmatpush3.msra.mxu0 %v839_v57  ;;  %5263 = vmatprep.subr.mxu1 %v1064_v58  ;;  %v1514_v57 = vld [vmem:[#allocation7 + $0x2e8] sm:$0xff] }
  0xcc   : > { %5114 = vmatprep.mubr.f32.mxu0 %v6881_v59  ;;  %5176 = vmatprep.mubr.f32.mxu1 %v6883_v60 }
  0xcd   : > { %5264 = vmatpush3.msra.mxu1 %v1064_v58  ;;  %5115 = vmatmul.mubr.f32.gmra.mxu0 %v6885_v61  ;;  %v6942_v58 = vld [vmem:[#allocation2 + $0x89] sm:$0xff] }
  0xce   : > { %5177 = vmatmul.mubr.f32.gmra.mxu1 %v6887_v62  ;;  %5207 = vmatprep.subr.mxu0 %v838_v63 }
  0xcf   : > { %5265 = vmatprep.subr.mxu1 %v1063_v0  ;;  %5208 = vmatpush3.msra.mxu0 %v838_v63  ;;  %v1288_v63 = vld [vmem:[#allocation7 + $0x248] sm:$0xff] }
  0xd0   : > { %5266 = vmatpush3.msra.mxu1 %v1063_v0  ;;  %5209 = vmatprep.subr.mxu0 %v837_v1  ;;  %v6945_v0 = vld [vmem:[#allocation2 + $0x91] sm:$0xff] }
  0xd1   : > { %5267 = vmatprep.subr.mxu1 %v1062_v2  ;;  %5117 = vmatprep.mubr.f32.mxu0 %v6893_v3 }
  0xd2   : > { %5179 = vmatprep.mubr.f32.mxu1 %v6895_v4  ;;  %5210 = vmatpush3.msra.mxu0 %v837_v1  ;;  %v1513_v1 = vld [vmem:[#allocation7 + $0x2e0] sm:$0xff] }
  0xd3   : > { %5268 = vmatpush3.msra.mxu1 %v1062_v2  ;;  %5118 = vmatmul.mubr.f32.gmra.mxu0 %v6897_v5  ;;  %v1287_v2 = vld [vmem:[#allocation7 + $0x240] sm:$0xff] }
  0xd4   : > { %5180 = vmatmul.mubr.f32.gmra.mxu1 %v6899_v6  ;;  %5269 = vmatprep.subr.mxu1 %v1061_v7 }
  0xd5   : > { %5211 = vmatprep.subr.mxu0 %v836_v8  ;;  %5270 = vmatpush3.msra.mxu1 %v1061_v7  ;;  %v1512_v7 = vld [vmem:[#allocation7 + $0x2d8] sm:$0xff] }
  0xd6   : > { %5212 = vmatpush3.msra.mxu0 %v836_v8  ;;  %5271 = vmatprep.subr.mxu1 %v1060_v9  ;;  %v6950_v8 = vld [vmem:[#allocation2 + $0xa9] sm:$0xff] }
  0xd7   : > { %5120 = vmatprep.mubr.f32.mxu0 %v6905_v10  ;;  %5182 = vmatprep.mubr.f32.mxu1 %v6907_v11 }
  0xd8   : > { %5213 = vmatprep.subr.mxu0 %v835_v12  ;;  %5272 = vmatpush3.msra.mxu1 %v1060_v9  ;;  %v6952_v9 = vld [vmem:[#allocation2 + $0xb1] sm:$0xff] }
  0xd9   : > { %5121 = vmatmul.mubr.f32.gmra.mxu0 %v6909_v13  ;;  %5183 = vmatmul.mubr.f32.gmra.mxu1 %v6912_v14 }
  0xda   : > { %5214 = vmatpush3.msra.mxu0 %v835_v12  ;;  %5273 = vmatprep.subr.mxu1 %v1059_v15  ;;  %v1286_v12 = vld [vmem:[#allocation7 + $0x238] sm:$0xff] }
  0xdb   : > { %5215 = vmatprep.subr.mxu0 %v834_v18  ;;  %5274 = vmatpush3.msra.mxu1 %v1059_v15  ;;  %v1511_v15 = vld [vmem:[#allocation7 + $0x2d0] sm:$0xff] }
  0xdc   : > { %5216 = vmatpush3.msra.mxu0 %v834_v18  ;;  %5275 = vmatprep.subr.mxu1 %v1058_v19  ;;  %v6957_v18 = vld [vmem:[#allocation2 + $0xc9] sm:$0xff] }
  0xdd   : > { %5217 = vmatprep.mubr.f32.mxu0 %v813_v23  ;;  %5276 = vmatpush3.msra.mxu1 %v1058_v19  ;;  %v1510_v19 = vld [vmem:[#allocation7 + $0x2c8] sm:$0xff]  ;;  %v1285_v23 = vld [vmem:[#allocation7 + $0x230] sm:$0xff] }
  0xde   : > { %5218 = vmatmul.mubr.f32.vlgmr.msra.gmra.mxu0 %v814_v27  ;;  %5277 = vmatprep.subr.mxu1 %v1057_v30  ;;  %v6961_v27 = vld [vmem:[#allocation2 + $0xd1] sm:$0xff] }
  0xdf   : > { %5309 = vmatprep.subr.mxu0 %v1294_v31  ;;  %5278 = vmatpush3.msra.mxu1 %v1057_v30  ;;  %v1509_v30 = vld [vmem:[#allocation7 + $0x2c0] sm:$0xff] }
  0xe0   : > { %5279 = vmatprep.mubr.f32.mxu1 %v6811_v17  ;;  %5310 = vmatpush3.msra.mxu0 %v1294_v31  ;;  %v1291_v17 = vld [vmem:[#allocation7 + $0x260] sm:$0xff]  ;;  %v1284_v31 = vld [vmem:[#allocation7 + $0x228] sm:$0xff] }
  0xe1   : > { %5280 = vmatmul.mubr.f32.vlgmr.msra.gmra.mxu1 %v6816_v21  ;;  %5220 = vmatprep.mubr.f32.mxu0 %v6917_v34  ;;  %v1516_v21 = vld [vmem:[#allocation7 + $0x2f8] sm:$0xff] }
  0xe2   : > { %5311 = vmatprep.subr.mxu0 %v1293_v35  ;;  %5221 = vmatmul.mubr.f32.gmra.mxu0 %v6920_v38 }
  0xe3   : > { %5282 = vmatprep.mubr.f32.mxu1 %v6821_v24  ;;  %5312 = vmatpush3.msra.mxu0 %v1293_v35  ;;  %v1508_v35 = vld [vmem:[#allocation7 + $0x2b8] sm:$0xff] }
  0xe4   : > { %5223 = vmatprep.mubr.f32.mxu0 %v6923_v41  ;;  %5313 = vmatprep.subr.mxu0 %v1292_v42 }
  0xe5   : > { %5283 = vmatmul.mubr.f32.gmra.mxu1 %v6828_v26  ;;  %5314 = vmatpush3.msra.mxu0 %v1292_v42  ;;  %v6966_v42 = vld [vmem:[#allocation2 + $0xe9] sm:$0xff] }
  0xe6   : > { %5285 = vmatprep.mubr.f32.mxu1 %v6833_v29  ;;  %5224 = vmatmul.mubr.f32.gmra.mxu0 %v6929_v44 }
  0xe7   : > { %5315 = vmatprep.subr.mxu0 %v1291_v17  ;;  %5371 = vmatprep.subr.mxu1 %v1516_v21 }
  0xe8   : > { %5316 = vmatpush3.msra.mxu0 %v1291_v17  ;;  %5226 = vmatprep.mubr.f32.mxu0 %v6934_v49  ;;  %v6968_v17 = vld [vmem:[#allocation2 + $0xf1] sm:$0xff] }
  0xe9   : > { %5286 = vmatmul.mubr.f32.gmra.mxu1 %v6838_v32  ;;  %5317 = vmatprep.subr.mxu0 %v1290_v48 }
  0xea   : > { %5318 = vmatpush3.msra.mxu0 %v1290_v48  ;;  %5372 = vmatpush3.msra.mxu1 %v1516_v21  ;;  %v1283_v21 = vld [vmem:[#allocation7 + $0x220] sm:$0xff]  ;;  %v1507_v48 = vld [vmem:[#allocation7 + $0x2b0] sm:$0xff] }
  0xeb   : > { %5227 = vmatmul.mubr.f32.gmra.mxu0 %v6936_v50  ;;  %5373 = vmatprep.subr.mxu1 %v1515_v53 }
  0xec   : > { %5288 = vmatprep.mubr.f32.mxu1 %v6847_v37  ;;  %5319 = vmatprep.subr.mxu0 %v1289_v56 }
  0xed   : > { %5374 = vmatpush3.msra.mxu1 %v1515_v53  ;;  %5320 = vmatpush3.msra.mxu0 %v1289_v56  ;;  %v1282_v53 = vld [vmem:[#allocation7 + $0x218] sm:$0xff]  ;;  %v1506_v56 = vld [vmem:[#allocation7 + $0x2a8] sm:$0xff] }
  0xee   : > { %5289 = vmatmul.mubr.f32.gmra.mxu1 %v6852_v40  ;;  %5375 = vmatprep.subr.mxu1 %v1514_v57 }
  0xef   : > { %5229 = vmatprep.mubr.f32.mxu0 %v6942_v58  ;;  %5321 = vmatprep.subr.mxu0 %v1288_v63 }
  0xf0   : > { %5376 = vmatpush3.msra.mxu1 %v1514_v57  ;;  %5230 = vmatmul.mubr.f32.gmra.mxu0 %v6945_v0  ;;  %v6974_v57 = vld [vmem:[#allocation2 + $0x109] sm:$0xff] }
  0xf1   : > { %5377 = vmatprep.subr.mxu1 %v1513_v1  ;;  %5322 = vmatpush3.msra.mxu0 %v1288_v63  ;;  %v6976_v63 = vld [vmem:[#allocation2 + $0x111] sm:$0xff] }
  0xf2   : > { %5291 = vmatprep.mubr.f32.mxu1 %v6859_v45  ;;  %5378 = vmatpush3.msra.mxu1 %v1513_v1  ;;  %v1505_v1 = vld [vmem:[#allocation7 + $0x2a0] sm:$0xff] }
  0xf3   : > { %5323 = vmatprep.subr.mxu0 %v1287_v2  ;;  %5292 = vmatmul.mubr.f32.gmra.mxu1 %v6864_v47 }
  0xf4   : > { %5379 = vmatprep.subr.mxu1 %v1512_v7  ;;  %5232 = vmatprep.mubr.f32.mxu0 %v6950_v8 }
  0xf5   : > { %5324 = vmatpush3.msra.mxu0 %v1287_v2  ;;  %5380 = vmatpush3.msra.mxu1 %v1512_v7  ;;  %v1281_v2 = vld [vmem:[#allocation7 + $0x210] sm:$0xff]  ;;  %v1504_v7 = vld [vmem:[#allocation7 + $0x298] sm:$0xff] }
  0xf6   : > { %5233 = vmatmul.mubr.f32.gmra.mxu0 %v6952_v9  ;;  %5325 = vmatprep.subr.mxu0 %v1286_v12 }
  0xf7   : > { %5381 = vmatprep.subr.mxu1 %v1511_v15  ;;  %5294 = vmatprep.mubr.f32.mxu1 %v6871_v52 }
  0xf8   : > { %5326 = vmatpush3.msra.mxu0 %v1286_v12  ;;  %5382 = vmatpush3.msra.mxu1 %v1511_v15  ;;  %v6982_v12 = vld [vmem:[#allocation2 + $0x129] sm:$0xff] }
  0xf9   : > { %5235 = vmatprep.mubr.f32.mxu0 %v6957_v18  ;;  %5295 = vmatmul.mubr.f32.gmra.mxu1 %v6876_v55  ;;  %v1280_v15 = vld [vmem:[#allocation7 + $0x208] sm:$0xff] }
  0xfa   : > { %5383 = vmatprep.subr.mxu1 %v1510_v19  ;;  %5327 = vmatprep.subr.mxu0 %v1285_v23 }
  0xfb   : > { %5384 = vmatpush3.msra.mxu1 %v1510_v19  ;;  %5236 = vmatmul.mubr.f32.gmra.mxu0 %v6961_v27  ;;  %v6985_v19 = vld [vmem:[#allocation2 + $0x131] sm:$0xff] }
  0xfc   : > { %5385 = vmatprep.subr.mxu1 %v1509_v30  ;;  %5328 = vmatpush3.msra.mxu0 %v1285_v23  ;;  %v1503_v23 = vld [vmem:[#allocation7 + $0x290] sm:$0xff] }
  0xfd   : > { %5297 = vmatprep.mubr.f32.mxu1 %v6883_v60  ;;  %5329 = vmatprep.subr.mxu0 %v1284_v31 }
  0xfe   : > { %5386 = vmatpush3.msra.mxu1 %v1509_v30  ;;  %5330 = vmatpush3.msra.mxu0 %v1284_v31  ;;  %v6988_v30 = vld [vmem:[#allocation2 + $0x147] sm:$0xff] }
  0xff   : > { %5298 = vmatmul.mubr.f32.gmra.mxu1 %v6887_v62  ;;  %5387 = vmatprep.subr.mxu1 %v1508_v35  ;;  %v1279_v31 = vld [vmem:[#allocation7 + $0x200] sm:$0xff] }
 0x100   : > { %5238 = vmatprep.mubr.f32.mxu0 %v6966_v42  ;;  %5388 = vmatpush3.msra.mxu1 %v1508_v35  ;;  %v6991_v35 = vld [vmem:[#allocation2 + $0x14f] sm:$0xff] }
 0x101   : > { %5239 = vmatmul.mubr.f32.gmra.mxu0 %v6968_v17  ;;  %5331 = vmatprep.subr.mxu0 %v1283_v21 }
 0x102   : > { %5389 = vmatprep.subr.mxu1 %v1507_v48  ;;  %5300 = vmatprep.mubr.f32.mxu1 %v6895_v4 }
 0x103   : > { %5332 = vmatpush3.msra.mxu0 %v1283_v21  ;;  %5390 = vmatpush3.msra.mxu1 %v1507_v48  ;;  %v1502_v21 = vld [vmem:[#allocation7 + $0x288] sm:$0xff]  ;;  %v1501_v48 = vld [vmem:[#allocation7 + $0x280] sm:$0xff] }
 0x104   : > { %5333 = vmatprep.subr.mxu0 %v1282_v53  ;;  %5301 = vmatmul.mubr.f32.gmra.mxu1 %v6899_v6 }
 0x105   : > { %5391 = vmatprep.subr.mxu1 %v1506_v56  ;;  %5241 = vmatprep.mubr.f32.mxu0 %v6974_v57 }
 0x106   : > { %5334 = vmatpush3.msra.mxu0 %v1282_v53  ;;  %5392 = vmatpush3.msra.mxu1 %v1506_v56  ;;  %v1739_v53 = vld [vmem:[#allocation7 + $0x378] sm:$0xff]  ;;  %v1738_v56 = vld [vmem:[#allocation7 + $0x370] sm:$0xff] }
 0x107   : > { %5242 = vmatmul.mubr.f32.gmra.mxu0 %v6976_v63  ;;  %5393 = vmatprep.subr.mxu1 %v1505_v1 }
 0x108   : > { %5303 = vmatprep.mubr.f32.mxu1 %v6907_v11  ;;  %5335 = vmatprep.subr.mxu0 %v1281_v2 }
 0x109   : > { %5394 = vmatpush3.msra.mxu1 %v1505_v1  ;;  %5336 = vmatpush3.msra.mxu0 %v1281_v2  ;;  %v1737_v1 = vld [vmem:[#allocation7 + $0x368] sm:$0xff]  ;;  %v1734_v2 = vld [vmem:[#allocation7 + $0x350] sm:$0xff] }
 0x10a   : > { %5304 = vmatmul.mubr.f32.gmra.mxu1 %v6912_v14  ;;  %5395 = vmatprep.subr.mxu1 %v1504_v7 }
 0x10b   : > { %5244 = vmatprep.mubr.f32.mxu0 %v6982_v12  ;;  %5337 = vmatprep.subr.mxu0 %v1280_v15 }
 0x10c   : > { %5396 = vmatpush3.msra.mxu1 %v1504_v7  ;;  %5245 = vmatmul.mubr.f32.gmra.mxu0 %v6985_v19  ;;  %v1959_v7 = vld [vmem:[#allocation7 + $0x3e8] sm:$0xff] }
 0x10d   : > { %5397 = vmatprep.subr.mxu1 %v1503_v23  ;;  %5338 = vmatpush3.msra.mxu0 %v1280_v15  ;;  %v1733_v15 = vld [vmem:[#allocation7 + $0x348] sm:$0xff] }
 0x10e   : > { %5306 = vmatprep.mubr.f32.mxu1 %v6988_v30  ;;  %5398 = vmatpush3.msra.mxu1 %v1503_v23  ;;  %v1958_v23 = vld [vmem:[#allocation7 + $0x3e0] sm:$0xff] }
 0x10f   : > { %5339 = vmatprep.subr.mxu0 %v1279_v31  ;;  %5307 = vmatmul.mubr.f32.gmra.mxu1 %v6991_v35 }
 0x110   : > { %5399 = vmatprep.subr.mxu1 %v1502_v21  ;;  %5340 = vmatpush3.msra.mxu0 %v1279_v31  ;;  %v1732_v31 = vld [vmem:[#allocation7 + $0x340] sm:$0xff] }
 0x111   : > { %5341 = vmatprep.mubr.f32.mxu0 %v6809_v16  ;;  %5400 = vmatpush3.msra.mxu1 %v1502_v21  ;;  %v1736_v16 = vld [vmem:[#allocation7 + $0x360] sm:$0xff]  ;;  %v1957_v21 = vld [vmem:[#allocation7 + $0x3d8] sm:$0xff] }
 0x112   : > { %5342 = vmatmul.mubr.f32.vlgmr.msra.gmra.mxu0 %v6814_v20  ;;  %5401 = vmatprep.subr.mxu1 %v1501_v48  ;;  %v1961_v20 = vld [vmem:[#allocation7 + $0x3f8] sm:$0xff] }
 0x113   : > { %5433 = vmatprep.subr.mxu0 %v1739_v53  ;;  %5402 = vmatpush3.msra.mxu1 %v1501_v48  ;;  %v1731_v48 = vld [vmem:[#allocation7 + $0x338] sm:$0xff] }
 0x114   : > { %5403 = vmatprep.mubr.f32.mxu1 %v6917_v34  ;;  %5434 = vmatpush3.msra.mxu0 %v1739_v53  ;;  %v1735_v34 = vld [vmem:[#allocation7 + $0x358] sm:$0xff]  ;;  %v1956_v53 = vld [vmem:[#allocation7 + $0x3d0] sm:$0xff] }
 0x115   : > { %5404 = vmatmul.mubr.f32.vlgmr.msra.gmra.mxu1 %v6920_v38  ;;  %5344 = vmatprep.mubr.f32.mxu0 %v6819_v22  ;;  %v1960_v38 = vld [vmem:[#allocation7 + $0x3f0] sm:$0xff] }
 0x116   : > { %5435 = vmatprep.subr.mxu0 %v1738_v56  ;;  %5345 = vmatmul.mubr.f32.gmra.mxu0 %v6826_v25 }
 0x117   : > { %5406 = vmatprep.mubr.f32.mxu1 %v6923_v41  ;;  %5436 = vmatpush3.msra.mxu0 %v1738_v56  ;;  %v1955_v56 = vld [vmem:[#allocation7 + $0x3c8] sm:$0xff] }
 0x118   : > { %5347 = vmatprep.mubr.f32.mxu0 %v6831_v28  ;;  %5437 = vmatprep.subr.mxu0 %v1737_v1 }
 0x119   : > { %5407 = vmatmul.mubr.f32.gmra.mxu1 %v6929_v44  ;;  %5438 = vmatpush3.msra.mxu0 %v1737_v1  ;;  %v1730_v1 = vld [vmem:[#allocation7 + $0x330] sm:$0xff] }
 0x11a   : > { %5409 = vmatprep.mubr.f32.mxu1 %v6934_v49  ;;  %5348 = vmatmul.mubr.f32.gmra.mxu0 %v6841_v33 }
 0x11b   : > { %5439 = vmatprep.subr.mxu0 %v1736_v16  ;;  %5495 = vmatprep.subr.mxu1 %v1961_v20 }
 0x11c   : > { %5440 = vmatpush3.msra.mxu0 %v1736_v16  ;;  %5350 = vmatprep.mubr.f32.mxu0 %v6844_v36  ;;  %v1954_v16 = vld [vmem:[#allocation7 + $0x3c0] sm:$0xff] }
 0x11d   : > { %5410 = vmatmul.mubr.f32.gmra.mxu1 %v6936_v50  ;;  %5441 = vmatprep.subr.mxu0 %v1735_v34 }
 0x11e   : > { %5442 = vmatpush3.msra.mxu0 %v1735_v34  ;;  %5496 = vmatpush3.msra.mxu1 %v1961_v20  ;;  %v1729_v20 = vld [vmem:[#allocation7 + $0x328] sm:$0xff]  ;;  %v1953_v34 = vld [vmem:[#allocation7 + $0x3b8] sm:$0xff] }
 0x11f   : > { %5351 = vmatmul.mubr.f32.gmra.mxu0 %v6849_v39  ;;  %5497 = vmatprep.subr.mxu1 %v1960_v38 }
 0x120   : > { %5412 = vmatprep.mubr.f32.mxu1 %v6942_v58  ;;  %5443 = vmatprep.subr.mxu0 %v1734_v2 }
 0x121   : > { %5498 = vmatpush3.msra.mxu1 %v1960_v38  ;;  %5444 = vmatpush3.msra.mxu0 %v1734_v2  ;;  %v1728_v38 = vld [vmem:[#allocation7 + $0x320] sm:$0xff]  ;;  %v1952_v2 = vld [vmem:[#allocation7 + $0x3b0] sm:$0xff] }
 0x122   : > { %5413 = vmatmul.mubr.f32.gmra.mxu1 %v6945_v0  ;;  %5499 = vmatprep.subr.mxu1 %v1959_v7 }
 0x123   : > { %5353 = vmatprep.mubr.f32.mxu0 %v6856_v43  ;;  %5445 = vmatprep.subr.mxu0 %v1733_v15 }
 0x124   : > { %5500 = vmatpush3.msra.mxu1 %v1959_v7  ;;  %5354 = vmatmul.mubr.f32.gmra.mxu0 %v6862_v46  ;;  %v1727_v7 = vld [vmem:[#allocation7 + $0x318] sm:$0xff] }
 0x125   : > { %5501 = vmatprep.subr.mxu1 %v1958_v23  ;;  %5446 = vmatpush3.msra.mxu0 %v1733_v15  ;;  %v1951_v15 = vld [vmem:[#allocation7 + $0x3a8] sm:$0xff] }
 0x126   : > { %5415 = vmatprep.mubr.f32.mxu1 %v6950_v8  ;;  %5502 = vmatpush3.msra.mxu1 %v1958_v23  ;;  %v1950_v23 = vld [vmem:[#allocation7 + $0x3a0] sm:$0xff] }
 0x127   : > { %5447 = vmatprep.subr.mxu0 %v1732_v31  ;;  %5416 = vmatmul.mubr.f32.gmra.mxu1 %v6952_v9 }
 0x128   : > { %5503 = vmatprep.subr.mxu1 %v1957_v21  ;;  %5356 = vmatprep.mubr.f32.mxu0 %v6869_v51 }
 0x129   : > { %5448 = vmatpush3.msra.mxu0 %v1732_v31  ;;  %5504 = vmatpush3.msra.mxu1 %v1957_v21  ;;  %v1726_v31 = vld [vmem:[#allocation7 + $0x310] sm:$0xff]  ;;  %v1949_v21 = vld [vmem:[#allocation7 + $0x398] sm:$0xff] }
 0x12a   : > { %5357 = vmatmul.mubr.f32.gmra.mxu0 %v6873_v54  ;;  %5449 = vmatprep.subr.mxu0 %v1731_v48 }
 0x12b   : > { %5505 = vmatprep.subr.mxu1 %v1956_v53  ;;  %5418 = vmatprep.mubr.f32.mxu1 %v6957_v18 }
 0x12c   : > { %5450 = vmatpush3.msra.mxu0 %v1731_v48  ;;  %5506 = vmatpush3.msra.mxu1 %v1956_v53  ;;  %v7030_v48 = vld [vmem:[#allocation2 + $0x148] sm:$0xff] }
 0x12d   : > { %5359 = vmatprep.mubr.f32.mxu0 %v6881_v59  ;;  %5419 = vmatmul.mubr.f32.gmra.mxu1 %v6961_v27  ;;  %v1725_v53 = vld [vmem:[#allocation7 + $0x308] sm:$0xff] }
 0x12e   : > { %5507 = vmatprep.subr.mxu1 %v1955_v56  ;;  %5451 = vmatprep.subr.mxu0 %v1730_v1 }
 0x12f   : > { %5508 = vmatpush3.msra.mxu1 %v1955_v56  ;;  %5360 = vmatmul.mubr.f32.gmra.mxu0 %v6885_v61  ;;  %v7033_v56 = vld [vmem:[#allocation2 + $0x150] sm:$0xff] }
 0x130   : > { %5509 = vmatprep.subr.mxu1 %v1954_v16  ;;  %5452 = vmatpush3.msra.mxu0 %v1730_v1  ;;  %v1948_v1 = vld [vmem:[#allocation7 + $0x390] sm:$0xff] }
 0x131   : > { %5421 = vmatprep.mubr.f32.mxu1 %v6966_v42  ;;  %5453 = vmatprep.subr.mxu0 %v1729_v20 }
 0x132   : > { %5510 = vmatpush3.msra.mxu1 %v1954_v16  ;;  %5454 = vmatpush3.msra.mxu0 %v1729_v20  ;;  %v7036_v16 = vld [vmem:[#allocation2 + $0x149] sm:$0xff]  ;;  %v1724_v20 = vld [vmem:[#allocation7 + $0x300] sm:$0xff] }
 0x133   : > { %5422 = vmatmul.mubr.f32.gmra.mxu1 %v6968_v17  ;;  %5511 = vmatprep.subr.mxu1 %v1953_v34 }
 0x134   : > { %5362 = vmatprep.mubr.f32.mxu0 %v6893_v3  ;;  %5512 = vmatpush3.msra.mxu1 %v1953_v34  ;;  %v7039_v34 = vld [vmem:[#allocation2 + $0x151] sm:$0xff] }
 0x135   : > { %5363 = vmatmul.mubr.f32.gmra.mxu0 %v6897_v5  ;;  %5455 = vmatprep.subr.mxu0 %v1728_v38 }
 0x136   : > { %5513 = vmatprep.subr.mxu1 %v1952_v2  ;;  %5424 = vmatprep.mubr.f32.mxu1 %v6974_v57 }
 0x137   : > { %5456 = vmatpush3.msra.mxu0 %v1728_v38  ;;  %5514 = vmatpush3.msra.mxu1 %v1952_v2  ;;  %v1947_v38 = vld [vmem:[#allocation7 + $0x388] sm:$0xff]  ;;  %v1946_v2 = vld [vmem:[#allocation7 + $0x380] sm:$0xff] }
 0x138   : > { %5457 = vmatprep.subr.mxu0 %v1727_v7  ;;  %5425 = vmatmul.mubr.f32.gmra.mxu1 %v6976_v63 }
 0x139   : > { %5515 = vmatprep.subr.mxu1 %v1951_v15  ;;  %5365 = vmatprep.mubr.f32.mxu0 %v6905_v10 }
 0x13a   : > { %5458 = vmatpush3.msra.mxu0 %v1727_v7  ;;  %5516 = vmatpush3.msra.mxu1 %v1951_v15  ;;  %v2183_v7 = vld [vmem:[#allocation7 + $0x478] sm:$0xff]  ;;  %v2182_v15 = vld [vmem:[#allocation7 + $0x470] sm:$0xff] }
 0x13b   : > { %5366 = vmatmul.mubr.f32.gmra.mxu0 %v6909_v13  ;;  %5517 = vmatprep.subr.mxu1 %v1950_v23 }
 0x13c   : > { %5427 = vmatprep.mubr.f32.mxu1 %v6982_v12  ;;  %5459 = vmatprep.subr.mxu0 %v1726_v31 }
 0x13d   : > { %5518 = vmatpush3.msra.mxu1 %v1950_v23  ;;  %5460 = vmatpush3.msra.mxu0 %v1726_v31  ;;  %v2181_v23 = vld [vmem:[#allocation7 + $0x468] sm:$0xff] }
 0x13e   : > { %5428 = vmatmul.mubr.f32.gmra.mxu1 %v6985_v19  ;;  %5519 = vmatprep.subr.mxu1 %v1949_v21 }
 0x13f   : > { %5368 = vmatprep.mubr.f32.mxu0 %v7030_v48  ;;  %5461 = vmatprep.subr.mxu0 %v1725_v53 }
 0x140   : > { %5520 = vmatpush3.msra.mxu1 %v1949_v21  ;;  %5369 = vmatmul.mubr.f32.gmra.mxu0 %v7033_v56 }
 0x141   : > { %5521 = vmatprep.subr.mxu1 %v1948_v1  ;;  %5462 = vmatpush3.msra.mxu0 %v1725_v53 }
 0x142   : > { %5430 = vmatprep.mubr.f32.mxu1 %v7036_v16  ;;  %5522 = vmatpush3.msra.mxu1 %v1948_v1 }
 0x143   : > { %5463 = vmatprep.subr.mxu0 %v1724_v20  ;;  %5431 = vmatmul.mubr.f32.gmra.mxu1 %v7039_v34 }
 0x144   : > { %5523 = vmatprep.subr.mxu1 %v1947_v38  ;;  %5464 = vmatpush3.msra.mxu0 %v1724_v20 }
 0x145   : > { %5465 = vmatprep.mubr.f32.mxu0 %v6821_v24  ;;  %5524 = vmatpush3.msra.mxu1 %v1947_v38  ;;  %v2180_v24 = vld [vmem:[#allocation7 + $0x460] sm:$0xff] }
 0x146   : > { %5466 = vmatmul.mubr.f32.vlgmr.msra.gmra.mxu0 %v6828_v26  ;;  %5525 = vmatprep.subr.mxu1 %v1946_v2  ;;  %v2177_v26 = vld [vmem:[#allocation7 + $0x448] sm:$0xff] }
 0x147   : > { %5557 = vmatprep.subr.mxu0 %v2183_v7  ;;  %5526 = vmatpush3.msra.mxu1 %v1946_v2 }
 0x148   : > { %5527 = vmatprep.mubr.f32.mxu1 %v6819_v22  ;;  %5558 = vmatpush3.msra.mxu0 %v2183_v7  ;;  %v2179_v22 = vld [vmem:[#allocation7 + $0x458] sm:$0xff] }
 0x149   : > { %5528 = vmatmul.mubr.f32.vlgmr.msra.gmra.mxu1 %v6826_v25  ;;  %5468 = vmatprep.mubr.f32.mxu0 %v6833_v29  ;;  %v2178_v25 = vld [vmem:[#allocation7 + $0x450] sm:$0xff]  ;;  %v2175_v29 = vld [vmem:[#allocation7 + $0x438] sm:$0xff] }
 0x14a   : > { %5559 = vmatprep.subr.mxu0 %v2182_v15  ;;  %5469 = vmatmul.mubr.f32.gmra.mxu0 %v6838_v32  ;;  %v2174_v32 = vld [vmem:[#allocation7 + $0x430] sm:$0xff] }
 0x14b   : > { %5530 = vmatprep.mubr.f32.mxu1 %v6831_v28  ;;  %5560 = vmatpush3.msra.mxu0 %v2182_v15  ;;  %v2176_v28 = vld [vmem:[#allocation7 + $0x440] sm:$0xff] }
 0x14c   : > { %5471 = vmatprep.mubr.f32.mxu0 %v6847_v37  ;;  %5561 = vmatprep.subr.mxu0 %v2181_v23  ;;  %v2171_v37 = vld [vmem:[#allocation7 + $0x418] sm:$0xff] }
 0x14d   : > { %5531 = vmatmul.mubr.f32.gmra.mxu1 %v6841_v33  ;;  %5562 = vmatpush3.msra.mxu0 %v2181_v23  ;;  %v2173_v33 = vld [vmem:[#allocation7 + $0x428] sm:$0xff] }
 0x14e   : > { %5533 = vmatprep.mubr.f32.mxu1 %v6844_v36  ;;  %5472 = vmatmul.mubr.f32.gmra.mxu0 %v6852_v40  ;;  %v2172_v36 = vld [vmem:[#allocation7 + $0x420] sm:$0xff]  ;;  %v2169_v40 = vld [vmem:[#allocation7 + $0x408] sm:$0xff] }
 0x14f   : > { %5563 = vmatprep.subr.mxu0 %v2180_v24  ;;  %5474 = vmatprep.mubr.f32.mxu0 %v6859_v45  ;;  %v1721_v45 = vld [vmem:[#allocation2 + $0x167] sm:$0xff] }
 0x150   : > { %5564 = vmatpush3.msra.mxu0 %v2180_v24  ;;  %v2165_v24 = vld [vmem:[#allocation2 + $0x169] sm:$0xff] }
 0x151   : > { %5534 = vmatmul.mubr.f32.gmra.mxu1 %v6849_v39  ;;  %5565 = vmatprep.subr.mxu0 %v2179_v22  ;;  %v2170_v39 = vld [vmem:[#allocation7 + $0x410] sm:$0xff] }
 0x152   : > { %5566 = vmatpush3.msra.mxu0 %v2179_v22  ;;  %5536 = vmatprep.mubr.f32.mxu1 %v6856_v43  ;;  %v2168_v43 = vld [vmem:[#allocation7 + $0x400] sm:$0xff] }
 0x153   : > { %5475 = vmatmul.mubr.f32.gmra.mxu0 %v6864_v47  ;;  %5567 = vmatprep.subr.mxu0 %v2178_v25  ;;  %v1722_v47 = vld [vmem:[#allocation2 + $0x16f] sm:$0xff] }
 0x154   : > { %5568 = vmatpush3.msra.mxu0 %v2178_v25  ;;  %5477 = vmatprep.mubr.f32.mxu0 %v6871_v52 }
 0x155   : > { %5537 = vmatmul.mubr.f32.gmra.mxu1 %v6862_v46  ;;  %5569 = vmatprep.subr.mxu0 %v2177_v26  ;;  %v1943_v46 = vld [vmem:[#allocation2 + $0x168] sm:$0xff] }
 0x156   : > { %5570 = vmatpush3.msra.mxu0 %v2177_v26  ;;  %5539 = vmatprep.mubr.f32.mxu1 %v6869_v51  ;;  %v1944_v51 = vld [vmem:[#allocation2 + $0x170] sm:$0xff] }
 0x157   : > { %5478 = vmatmul.mubr.f32.gmra.mxu0 %v6876_v55  ;;  %5571 = vmatprep.subr.mxu0 %v2176_v28 }
 0x158   : > { %5480 = vmatprep.mubr.f32.mxu0 %v6883_v60  ;;  %5572 = vmatpush3.msra.mxu0 %v2176_v28 }
 0x159   : > { %5540 = vmatmul.mubr.f32.gmra.mxu1 %v6873_v54  ;;  %5573 = vmatprep.subr.mxu0 %v2175_v29 }
 0x15a   : > { %5542 = vmatprep.mubr.f32.mxu1 %v6881_v59  ;;  %5574 = vmatpush3.msra.mxu0 %v2175_v29 }
 0x15b   : > { %5481 = vmatmul.mubr.f32.gmra.mxu0 %v6887_v62  ;;  %5575 = vmatprep.subr.mxu0 %v2174_v32 }
 0x15c   : > { %5483 = vmatprep.mubr.f32.mxu0 %v6895_v4  ;;  %5576 = vmatpush3.msra.mxu0 %v2174_v32 }
 0x15d   : > { %5543 = vmatmul.mubr.f32.gmra.mxu1 %v6885_v61  ;;  %5577 = vmatprep.subr.mxu0 %v2173_v33 }
 0x15e   : > { %5545 = vmatprep.mubr.f32.mxu1 %v6893_v3  ;;  %5578 = vmatpush3.msra.mxu0 %v2173_v33 }
 0x15f   : > { %5484 = vmatmul.mubr.f32.gmra.mxu0 %v6899_v6  ;;  %5579 = vmatprep.subr.mxu0 %v2172_v36 }
 0x160   : > { %5486 = vmatprep.mubr.f32.mxu0 %v6907_v11  ;;  %5580 = vmatpush3.msra.mxu0 %v2172_v36 }
 0x161   : > { %5546 = vmatmul.mubr.f32.gmra.mxu1 %v6897_v5  ;;  %5581 = vmatprep.subr.mxu0 %v2171_v37 }
 0x162   : > { %5548 = vmatprep.mubr.f32.mxu1 %v6905_v10  ;;  %5582 = vmatpush3.msra.mxu0 %v2171_v37 }
 0x163   : > { %5487 = vmatmul.mubr.f32.gmra.mxu0 %v6912_v14  ;;  %5583 = vmatprep.subr.mxu0 %v2170_v39 }
 0x164   : > { %5489 = vmatprep.mubr.f32.mxu0 %v6988_v30  ;;  %5584 = vmatpush3.msra.mxu0 %v2170_v39 }
 0x165   : > { %5549 = vmatmul.mubr.f32.gmra.mxu1 %v6909_v13  ;;  %5585 = vmatprep.subr.mxu0 %v2169_v40 }
 0x166   : > { %5551 = vmatprep.mubr.f32.mxu1 %v7030_v48  ;;  %5586 = vmatpush3.msra.mxu0 %v2169_v40 }
 0x167   : > { %5490 = vmatmul.mubr.f32.gmra.mxu0 %v6991_v35  ;;  %5587 = vmatprep.subr.mxu0 %v2168_v43 }
 0x168   : > { %5492 = vmatprep.mubr.f32.mxu0 %v1721_v45  ;;  %5588 = vmatpush3.msra.mxu0 %v2168_v43 }
 0x169   : > { %5552 = vmatmul.mubr.f32.gmra.mxu1 %v7033_v56 }
 0x16a   : > { %5554 = vmatprep.mubr.f32.mxu1 %v1943_v46 }
 0x16b   : > { %5493 = vmatmul.mubr.f32.gmra.mxu0 %v1722_v47  ;;  %v5095_v52 = vpop.f32.mrf.mxu0 }
 0x16c   : > { %5589 = vmatprep.mubr.f32.mxu0 %v6923_v41  ;;  %v5157_v54 = vpop.f32.mrf.mxu1 }
 0x16d   : > { %5555 = vmatmul.mubr.f32.gmra.mxu1 %v1944_v51  ;;  %v7080_v55 = vadd.f32 %v5157_v54, %v5095_v52  ;;  %v549_v59 = vpop.f32.mrf.mxu0 }
 0x16e   : > { %v714_v60 = vpop.f32.mrf.mxu1 }
 0x16f   : > { %5590 = vmatmul.mubr.f32.vlgmr.msra.gmra.mxu0 %v6929_v44  ;;  %v7083_v61 = vadd.f32 %v714_v60, %v549_v59  ;;  %v5098_v62 = vpop.f32.mrf.mxu0 }
 0x170   : > { %5592 = vmatprep.mubr.f32.mxu0 %v6934_v49  ;;  %v5160_v3 = vpop.f32.mrf.mxu1 }
 0x171   : > { %v7086_v4 = vadd.f32 %v5160_v3, %v5098_v62  ;;  %v559_v5 = vpop.f32.mrf.mxu0 }
 0x172   : > { %v724_v6 = vpop.f32.mrf.mxu1 }
 0x173   : > { %5593 = vmatmul.mubr.f32.gmra.mxu0 %v6936_v50  ;;  %v7089_v10 = vadd.f32 %v724_v6, %v559_v5  ;;  %v5101_v11 = vpop.f32.mrf.mxu0 }
 0x174   : > { %5595 = vmatprep.mubr.f32.mxu0 %v6942_v58  ;;  %v5163_v13 = vpop.f32.mrf.mxu1 }
 0x175   : > { %v7092_v14 = vadd.f32 %v5163_v13, %v5101_v11  ;;  %v569_v41 = vpop.f32.mrf.mxu0 }
 0x176   : > { %v734_v44 = vpop.f32.mrf.mxu1 }
 0x177   : > { %5596 = vmatmul.mubr.f32.gmra.mxu0 %v6945_v0  ;;  %v7095_v49 = vadd.f32 %v734_v44, %v569_v41 }
 0x178   : > { %5598 = vmatprep.mubr.f32.mxu0 %v6950_v8  ;;  %v5166_v30 = vpop.f32.mrf.mxu1  ;;  %v5104_v35 = vpop.f32.mrf.mxu0 }
 0x179   : > { %v7098_v31 = vadd.f32 %v5166_v30, %v5104_v35 }
 0x17a   : > { %v744_v50 = vpop.f32.mrf.mxu1  ;;  %v579_v58 = vpop.f32.mrf.mxu0 }
 0x17b   : > { %5599 = vmatmul.mubr.f32.gmra.mxu0 %v6952_v9  ;;  %v7102_v21 = vadd.f32 %v744_v50, %v579_v58 }
 0x17c   : > { %5601 = vmatprep.mubr.f32.mxu0 %v6957_v18 }
 0x17d   : > { %v5107_v48 = vpop.f32.mrf.mxu0  ;;  %v5169_v53 = vpop.f32.mrf.mxu1 }
 0x17e   : > { %v7105_v0 = vadd.f32 %v5169_v53, %v5107_v48 }
 0x17f   : > { %5602 = vmatmul.mubr.f32.gmra.mxu0 %v6961_v27  ;;  %v589_v56 = vpop.f32.mrf.mxu0  ;;  %v754_v8 = vpop.f32.mrf.mxu1 }
 0x180   : > { %5604 = vmatprep.mubr.f32.mxu0 %v6966_v42  ;;  %v7108_v1 = vadd.f32 %v754_v8, %v589_v56 }
 0x182   : > { %v5110_v9 = vpop.f32.mrf.mxu0 }
 0x183   : > { %5605 = vmatmul.mubr.f32.gmra.mxu0 %v6968_v17  ;;  %v5172_v20 = vpop.f32.mrf.mxu1 }
 0x184   : > { %5607 = vmatprep.mubr.f32.mxu0 %v6974_v57  ;;  %v7112_v18 = vadd.f32 %v5172_v20, %v5110_v9  ;;  %v599_v38 = vpop.f32.mrf.mxu0 }
 0x185   : > { %v764_v2 = vpop.f32.mrf.mxu1 }
 0x186   : > { %v7114_v7 = vadd.f32 %v764_v2, %v599_v38 }
 0x187   : > { %5608 = vmatmul.mubr.f32.gmra.mxu0 %v6976_v63 }
 0x188   : > { %5610 = vmatprep.mubr.f32.mxu0 %v6982_v12  ;;  %v5113_v27 = vpop.f32.mrf.mxu0  ;;  %v5175_v42 = vpop.f32.mrf.mxu1  ;;  %v2166_v12 = vld [vmem:[#allocation2 + $0x171] sm:$0xff] }
 0x189   : > { %v7118_v15 = vadd.f32 %v5175_v42, %v5113_v27 }
 0x18a   : > { %v609_v23 = vpop.f32.mrf.mxu0  ;;  %v774_v17 = vpop.f32.mrf.mxu1 }
 0x18b   : > { %5611 = vmatmul.mubr.f32.gmra.mxu0 %v6985_v19  ;;  %v7122_v57 = vadd.f32 %v774_v17, %v609_v23 }
 0x18c   : > { %5613 = vmatprep.mubr.f32.mxu0 %v7036_v16 }
 0x18d   : > { %v5116_v22 = vpop.f32.mrf.mxu0 }
 0x18e   : > { %v5178_v25 = vpop.f32.mrf.mxu1 }
 0x18f   : > { %5614 = vmatmul.mubr.f32.gmra.mxu0 %v7039_v34  ;;  %v7125_v63 = vadd.f32 %v5178_v25, %v5116_v22  ;;  %v619_v26 = vpop.f32.mrf.mxu0 }
 0x190   : > { %5616 = vmatprep.mubr.f32.mxu0 %v2165_v24  ;;  %v784_v28 = vpop.f32.mrf.mxu1 }
 0x191   : > { %v7127_v29 = vadd.f32 %v784_v28, %v619_v26 }
 0x193   : > { %5617 = vmatmul.mubr.f32.gmra.mxu0 %v2166_v12  ;;  %v5119_v19 = vpop.f32.mrf.mxu0 }
 0x194   : > { %v5181_v32 = vpop.f32.mrf.mxu1 }
 0x195   : > { %v7129_v33 = vadd.f32 %v5181_v32, %v5119_v19  ;;  %v629_v16 = vpop.f32.mrf.mxu0 }
 0x196   : > { %v794_v36 = vpop.f32.mrf.mxu1 }
 0x197   : > { %v7131_v37 = vadd.f32 %v794_v36, %v629_v16 }
 0x199   : > { %v5122_v39 = vpop.f32.mrf.mxu0  ;;  %v5184_v40 = vpop.f32.mrf.mxu1 }
 0x19a   : > { %v7133_v34 = vadd.f32 %v5184_v40, %v5122_v39 }
 0x19b   : > { %v639_v43 = vpop.f32.mrf.mxu0  ;;  %v804_v45 = vpop.f32.mrf.mxu1 }
 0x19c   : > { %v7135_v46 = vadd.f32 %v804_v45, %v639_v43 }
 0x19e   : > { %v5219_v47 = vpop.f32.mrf.mxu0 }
 0x19f   : > { %v1016_v51 = vadd.f32 %v5219_v47, %v7080_v55 }
 0x1a0   : > { %v916_v52 = vpop.f32.mrf.mxu0 }
 0x1a1   : > { %v1015_v54 = vadd.f32 %v916_v52, %v7083_v61  ;;  %v5281_v59 = vpop.f32.mrf.mxu1 }
 0x1a2   : > { %v7139_v60 = vadd.f32 %v5281_v59, %v1016_v51  ;;  %v5222_v62 = vpop.f32.mrf.mxu0 }
 0x1a3   : > { %v1139_v3 = vpop.f32.mrf.mxu1  ;;  %v1018_v5 = vadd.f32 %v5222_v62, %v7086_v4 }
 0x1a4   : > { %v7142_v6 = vadd.f32 %v1139_v3, %v1015_v54  ;;  %v926_v11 = vpop.f32.mrf.mxu0 }
 0x1a5   : > { %v5284_v13 = vpop.f32.mrf.mxu1  ;;  %v1017_v41 = vadd.f32 %v926_v11, %v7089_v10 }
 0x1a6   : > { %v7145_v44 = vadd.f32 %v5284_v13, %v1018_v5  ;;  %v5225_v30 = vpop.f32.mrf.mxu0 }
 0x1a7   : > { %v1149_v55 = vpop.f32.mrf.mxu1  ;;  %v1020_v35 = vadd.f32 %v5225_v30, %v7092_v14 }
 0x1a8   : > { %v7148_v61 = vadd.f32 %v1149_v55, %v1017_v41  ;;  %v936_v50 = vpop.f32.mrf.mxu0 }
 0x1a9   : > { %v5287_v58 = vpop.f32.mrf.mxu1  ;;  %v1019_v48 = vadd.f32 %v936_v50, %v7095_v49 }
 0x1aa   : > { %v7151_v53 = vadd.f32 %v5287_v58, %v1020_v35 }
 0x1ab   : > { %v5228_v4 = vpop.f32.mrf.mxu0  ;;  %v1159_v56 = vpop.f32.mrf.mxu1 }
 0x1ac   : > { %v1022_v8 = vadd.f32 %v5228_v4, %v7098_v31  ;;  %v7154_v9 = vadd.f32 %v1159_v56, %v1019_v48 }
 0x1ad   : > { %v946_v10 = vpop.f32.mrf.mxu0 }
 0x1ae   : > { %v1021_v20 = vadd.f32 %v946_v10, %v7102_v21  ;;  %v5290_v38 = vpop.f32.mrf.mxu1 }
 0x1af   : > { %v7157_v2 = vadd.f32 %v5290_v38, %v1022_v8 }
 0x1b0   : > { %v1169_v14 = vpop.f32.mrf.mxu1  ;;  %v5231_v27 = vpop.f32.mrf.mxu0 }
 0x1b1   : > { %v7159_v42 = vadd.f32 %v1169_v14, %v1021_v20  ;;  %v1024_v49 = vadd.f32 %v5231_v27, %v7105_v0 }
 0x1b2   : > { %v956_v23 = vpop.f32.mrf.mxu0 }
 0x1b3   : > { %v1023_v17 = vadd.f32 %v956_v23, %v7108_v1  ;;  %v5293_v24 = vpop.f32.mrf.mxu1 }
 0x1b4   : > { %v7163_v22 = vadd.f32 %v5293_v24, %v1024_v49 }
 0x1b5   : > { %v1179_v25 = vpop.f32.mrf.mxu1 }
 0x1b6   : > { %v5234_v31 = vpop.f32.mrf.mxu0  ;;  %v7166_v21 = vadd.f32 %v1179_v25, %v1023_v17 }
 0x1b7   : > { %v1026_v12 = vadd.f32 %v5234_v31, %v7112_v18 }
 0x1b8   : > { %v966_v26 = vpop.f32.mrf.mxu0 }
 0x1b9   : > { %v1025_v28 = vadd.f32 %v966_v26, %v7114_v7  ;;  %v5296_v19 = vpop.f32.mrf.mxu1 }
 0x1ba   : > { %v7169_v32 = vadd.f32 %v5296_v19, %v1026_v12 }
 0x1bb   : > { %v5237_v16 = vpop.f32.mrf.mxu0  ;;  %v1189_v0 = vpop.f32.mrf.mxu1 }
 0x1bc   : > { %v1028_v36 = vadd.f32 %v5237_v16, %v7118_v15  ;;  %v7172_v1 = vadd.f32 %v1189_v0, %v1025_v28 }
 0x1bd   : > { %v976_v39 = vpop.f32.mrf.mxu0 }
 0x1be   : > { %v1027_v40 = vadd.f32 %v976_v39, %v7122_v57 }
 0x1bf   : > { %v5299_v43 = vpop.f32.mrf.mxu1 }
 0x1c0   : > { %v7175_v45 = vadd.f32 %v5299_v43, %v1028_v36 }
 0x1c1   : > { %v5240_v18 = vpop.f32.mrf.mxu0  ;;  %v1199_v47 = vpop.f32.mrf.mxu1 }
 0x1c2   : > { %v1030_v51 = vadd.f32 %v5240_v18, %v7125_v63  ;;  %v1250_v7 = vadd.f32 %v1199_v47, %v1027_v40 }
 0x1c3   : > { %v986_v52 = vpop.f32.mrf.mxu0 }
 0x1c4   : > { %v1029_v54 = vadd.f32 %v986_v52, %v7127_v29  ;;  %v5302_v59 = vpop.f32.mrf.mxu1 }
 0x1c5   : > { %v1253_v62 = vadd.f32 %v5302_v59, %v1030_v51 }
 0x1c6   : > { %v1209_v15 = vpop.f32.mrf.mxu1 }
 0x1c7   : > { %v5243_v3 = vpop.f32.mrf.mxu0  ;;  %v1252_v11 = vadd.f32 %v1209_v15, %v1029_v54 }
 0x1c8   : > { %v1032_v5 = vadd.f32 %v5243_v3, %v7129_v33 }
 0x1c9   : > { %v996_v13 = vpop.f32.mrf.mxu0 }
 0x1ca   : > { %v1031_v57 = vadd.f32 %v996_v13, %v7131_v37  ;;  %v5305_v41 = vpop.f32.mrf.mxu1 }
 0x1cb   : > { %v1255_v30 = vadd.f32 %v5305_v41, %v1032_v5 }
 0x1cc   : > { %v1219_v55 = vpop.f32.mrf.mxu1  ;;  %v5246_v35 = vpop.f32.mrf.mxu0 }
 0x1cd   : > { %v1254_v50 = vadd.f32 %v1219_v55, %v1031_v57  ;;  %v1034_v63 = vadd.f32 %v5246_v35, %v7133_v34 }
 0x1ce   : > { %v1006_v58 = vpop.f32.mrf.mxu0 }
 0x1cf   : > { %v1033_v29 = vadd.f32 %v1006_v58, %v7135_v46  ;;  %v5308_v48 = vpop.f32.mrf.mxu1 }
 0x1d0   : > { %v1257_v4 = vadd.f32 %v5308_v48, %v1034_v63 }
 0x1d1   : > { %v1229_v56 = vpop.f32.mrf.mxu1 }
 0x1d2   : > { %v5343_v8 = vpop.f32.mrf.mxu0  ;;  %v1256_v10 = vadd.f32 %v1229_v56, %v1033_v29 }
 0x1d3   : > { %v7184_v33 = vadd.f32 %v5343_v8, %v7139_v60 }
 0x1d4   : > { %v1361_v20 = vpop.f32.mrf.mxu0 }
 0x1d5   : > { %v7187_v37 = vadd.f32 %v1361_v20, %v7142_v6  ;;  %v7189_v38 = vpop.f32.mrf.mxu1 }
 0x1d6   : > { %v5346_v14 = vpop.f32.mrf.mxu0 }
 0x1d7   : > { %v7191_v27 = vpop.f32.mrf.mxu1  ;;  %v7194_v34 = vadd.f32 %v5346_v14, %v7145_v44 }
 0x1d8   : > { %v1371_v46 = vpop.f32.mrf.mxu0 }
 0x1d9   : > { %v7196_v49 = vpop.f32.mrf.mxu1  ;;  %v7199_v23 = vadd.f32 %v1371_v46, %v7148_v61 }
 0x1da   : > { %v5349_v60 = vpop.f32.mrf.mxu0 }
 0x1db   : > { %v7201_v17 = vpop.f32.mrf.mxu1  ;;  %v7204_v6 = vadd.f32 %v5349_v60, %v7151_v53 }
 0x1dc   : > { %v1381_v24 = vpop.f32.mrf.mxu0 }
 0x1dd   : > { %v7206_v31 = vpop.f32.mrf.mxu1  ;;  %v7209_v25 = vadd.f32 %v1381_v24, %v7154_v9 }
 0x1df   : > { %v5352_v44 = vpop.f32.mrf.mxu0  ;;  %v7211_v12 = vpop.f32.mrf.mxu1 }
 0x1e0   : > { %v7214_v26 = vadd.f32 %v5352_v44, %v7157_v2 }
 0x1e1   : > { %v1391_v61 = vpop.f32.mrf.mxu0 }
 0x1e2   : > { %v7217_v28 = vadd.f32 %v1391_v61, %v7159_v42  ;;  %v7219_v19 = vpop.f32.mrf.mxu1 }
 0x1e4   : > { %v7221_v53 = vpop.f32.mrf.mxu1  ;;  %v5355_v16 = vpop.f32.mrf.mxu0 }
 0x1e5   : > { %v7224_v0 = vadd.f32 %v5355_v16, %v7163_v22 }
 0x1e6   : > { %v1401_v9 = vpop.f32.mrf.mxu0 }
 0x1e7   : > { %v7227_v36 = vadd.f32 %v1401_v9, %v7166_v21  ;;  %v7229_v39 = vpop.f32.mrf.mxu1 }
 0x1e9   : > { %v7231_v40 = vpop.f32.mrf.mxu1 }
 0x1ea   : > { %v5358_v2 = vpop.f32.mrf.mxu0 }
 0x1eb   : > { %v7234_v42 = vadd.f32 %v5358_v2, %v7169_v32 }
 0x1ec   : > { %v1411_v43 = vpop.f32.mrf.mxu0 }
 0x1ed   : > { %v7237_v18 = vadd.f32 %v1411_v43, %v7172_v1  ;;  %v7239_v47 = vpop.f32.mrf.mxu1 }
 0x1ef   : > { %v5361_v22 = vpop.f32.mrf.mxu0  ;;  %v7241_v51 = vpop.f32.mrf.mxu1 }
 0x1f0   : > { %v7244_v21 = vadd.f32 %v5361_v22, %v7175_v45 }
 0x1f1   : > { %v1421_v52 = vpop.f32.mrf.mxu0 }
 0x1f2   : > { %v7246_v54 = vadd.f32 %v1421_v52, %v1250_v7 }
 0x1f3   : > { %v7248_v59 = vpop.f32.mrf.mxu1 }
 0x1f5   : > { %v5364_v3 = vpop.f32.mrf.mxu0  ;;  %v7250_v32 = vpop.f32.mrf.mxu1 }
 0x1f6   : > { %v7252_v15 = vadd.f32 %v5364_v3, %v1253_v62 }
 0x1f7   : > { %v1431_v1 = vpop.f32.mrf.mxu0 }
 0x1f8   : > { %v7254_v5 = vadd.f32 %v1431_v1, %v1252_v11  ;;  %v7256_v13 = vpop.f32.mrf.mxu1 }
 0x1fa   : > { %8072 = vst [vmem:[#allocation20_spill] sm:$0xff] %v7254_v5  ;;  %v7258_v41 = vpop.f32.mrf.mxu1 }
 0x1fb   : > { %v5367_v57 = vpop.f32.mrf.mxu0  ;;  %8073 = vst [vmem:[#allocation21_spill] sm:$0xff] %v7258_v41 }
 0x1fc   : > { %v7260_v45 = vadd.f32 %v5367_v57, %v1255_v30 }
 0x1fd   : > { %v1441_v55 = vpop.f32.mrf.mxu0 }
 0x1fe   : > { %8074 = vst [vmem:[#allocation22_spill] sm:$0xff] %v7260_v45  ;;  %v7262_v7 = vadd.f32 %v1441_v55, %v1254_v50  ;;  %v7264_v35 = vpop.f32.mrf.mxu1 }
 0x1ff   : > { %8076 = vst [vmem:[#allocation24_spill] sm:$0xff] %v7264_v35 }
 0x200   : > { %8075 = vst [vmem:[#allocation23_spill] sm:$0xff] %v7262_v7  ;;  %v7266_v63 = vpop.f32.mrf.mxu1  ;;  %v5370_v58 = vpop.f32.mrf.mxu0  ;;  %v1682_v7 = vadd.f32 %v7191_v27, %v7187_v37  ;;  %v7323_v27 = vld [vmem:[%s8037_s2] ss:$0 sm:$0xff] }
 0x201   : > { %8077 = vst [vmem:[#allocation25_spill] sm:$0xff] %v7266_v63  ;;  %v7268_v62 = vadd.f32 %v5370_v58, %v1257_v4 }
 0x202   : > { %v1451_v29 = vpop.f32.mrf.mxu0 }
 0x203   : > { %8078 = vst [vmem:[#allocation26_spill] sm:$0xff] %v7268_v62  ;;  %v7270_v11 = vadd.f32 %v1451_v29, %v1256_v10  ;;  %v7272_v48 = vpop.f32.mrf.mxu1 }
 0x204   : > { %8080 = vst [vmem:[#allocation28_spill] sm:$0xff] %v7272_v48  ;;  %v1683_v48 = vadd.f32 %v7189_v38, %v7184_v33  ;;  %v1684_v33 = vadd.f32 %v7201_v17, %v7199_v23 }
 0x205   : > { %8079 = vst [vmem:[#allocation27_spill] sm:$0xff] %v7270_v11  ;;  %v7274_v56 = vpop.f32.mrf.mxu1 }
 0x206   : > { %8081 = vst [vmem:[#allocation29_spill] sm:$0xff] %v7274_v56  ;;  %v5467_v8 = vpop.f32.mrf.mxu0 }
 0x207   : > { %v1906_v35 = vadd.f32 %v5467_v8, %v1683_v48  ;;  %v1686_v48 = vadd.f32 %v7211_v12, %v7209_v25  ;;  %v1688_v25 = vadd.f32 %v7221_v53, %v7217_v28 }
 0x208   : > { %v1806_v30 = vpop.f32.mrf.mxu0 }
 0x209   : > { %v5529_v20 = vpop.f32.mrf.mxu1  ;;  %v1905_v41 = vadd.f32 %v1806_v30, %v1682_v7 }
 0x20a   : > { %v5470_v14 = vpop.f32.mrf.mxu0  ;;  %v2128_v38 = vadd.f32 %v5529_v20, %v1906_v35 }
 0x20b   : > { %v2028_v50 = vpop.f32.mrf.mxu1 }
 0x20c   : > { %v1816_v46 = vpop.f32.mrf.mxu0 }
 0x20d   : > { %v5532_v60 = vpop.f32.mrf.mxu1 }
 0x20e   : > { %v5473_v24 = vpop.f32.mrf.mxu0 }
 0x20f   : > { %v2038_v44 = vpop.f32.mrf.mxu1 }
 0x210   : > { %v1826_v61 = vpop.f32.mrf.mxu0 }
 0x211   : > { %v5535_v4 = vpop.f32.mrf.mxu1  ;;  %v1909_v20 = vadd.f32 %v1826_v61, %v1686_v48 }
 0x213   : > { %v5476_v16 = vpop.f32.mrf.mxu0  ;;  %v2048_v10 = vpop.f32.mrf.mxu1 }
 0x215   : > { %v1836_v9 = vpop.f32.mrf.mxu0  ;;  %v7282_v52 = vpop.f32.mrf.mxu1 }
 0x217   : > { %v7276_v2 = vpop.f32.mrf.mxu0  ;;  %v7288_v57 = vpop.f32.mrf.mxu1 }
 0x219   : > { %v7278_v43 = vpop.f32.mrf.mxu0  ;;  %v7294_v29 = vpop.f32.mrf.mxu1 }
 0x21b   : > { %v7280_v22 = vpop.f32.mrf.mxu0  ;;  %v7302_v62 = vpop.f32.mrf.mxu1 }
 0x21d   : > { %v7284_v3 = vpop.f32.mrf.mxu0 }
 0x21f   : > { %v7286_v1 = vpop.f32.mrf.mxu0 }
 0x221   : > { %v7290_v55 = vpop.f32.mrf.mxu0 }
 0x223   : > { %v7292_v58 = vpop.f32.mrf.mxu0 }
 0x224   : > { %8082 = vst [vmem:[#allocation30_spill] sm:$0xff] %v7292_v58  ;;  %v1685_v58 = vadd.f32 %v7196_v49, %v7194_v34  ;;  %v2127_v34 = vadd.f32 %v2028_v50, %v1905_v41  ;;  %v1907_v49 = vadd.f32 %v1816_v46, %v1684_v33 }
 0x225   : > { %v7296_v56 = vpop.f32.mrf.mxu0 }
 0x226   : > { %8083 = vst [vmem:[#allocation31_spill] sm:$0xff] %v7296_v56  ;;  %v7312_v56 = vpop.f32.mrf.mxu1  ;;  %v1908_v5 = vadd.f32 %v5470_v14, %v1685_v58  ;;  %v2129_v58 = vadd.f32 %v2038_v44, %v1907_v49  ;;  %v2131_v44 = vadd.f32 %v2048_v10, %v1909_v20 }
 0x227   : > { %v7298_v11 = vpop.f32.mrf.mxu0 }
 0x228   : > { %8084 = vst [vmem:[#allocation32_spill] sm:$0xff] %v7298_v11  ;;  %v7327_v30 = vpop.f32.mrf.mxu1  ;;  %v2130_v17 = vadd.f32 %v5532_v60, %v1908_v5 }
 0x229   : > { %v7304_v63 = vpop.f32.mrf.mxu0 }
 0x22a   : > { %8085 = vst [vmem:[#allocation33_spill] sm:$0xff] %v7304_v63  ;;  %v1687_v63 = vadd.f32 %v7206_v31, %v7204_v6  ;;  %v1689_v31 = vadd.f32 %v7219_v19, %v7214_v26  ;;  %v1691_v19 = vadd.f32 %v7229_v39, %v7224_v0 }
 0x22b   : > { %v7308_v45 = vpop.f32.mrf.mxu0 }
 0x22c   : > { %v1910_v8 = vadd.f32 %v5473_v24, %v1687_v63  ;;  %v7335_v63 = vpop.f32.mrf.mxu1  ;;  %v1912_v60 = vadd.f32 %v5476_v16, %v1689_v31  ;;  %v1914_v16 = vadd.f32 %v7276_v2, %v1691_v19 }
 0x22d   : > { %v7314_v11 = vpop.f32.mrf.mxu0 }
 0x22e   : > { %v2132_v12 = vadd.f32 %v5535_v4, %v1910_v8  ;;  %v1690_v4 = vadd.f32 %v7231_v40, %v7227_v36 }
 0x22f   : > { %v5591_v37 = vpop.f32.mrf.mxu0 }
 0x230   : > { %v2350_v7 = vadd.f32 %v5591_v37, %v2128_v38  ;;  %v1911_v38 = vadd.f32 %v1836_v9, %v1688_v25  ;;  %v1693_v9 = vadd.f32 %v7239_v47, %v7234_v42  ;;  %v1913_v10 = vadd.f32 %v7278_v43, %v1690_v4 }
 0x231   : > { %v2250_v23 = vpop.f32.mrf.mxu0 }
 0x232   : > { %v2377_v35 = vadd.f32 %v7323_v27, %v2350_v7  ;;  %v2349_v6 = vadd.f32 %v2250_v23, %v2127_v34  ;;  %v2088_v34 = vpop.f32.mrf.mxu1  ;;  %v2134_v7 = vadd.f32 %v7282_v52, %v1912_v60  ;;  %v2133_v23 = vadd.f32 %v7288_v57, %v1911_v38 }
 0x233   : > { %v5594_v14 = vpop.f32.mrf.mxu0  ;;  %v1692_v52 = vadd.f32 %v7241_v51, %v7237_v18  ;;  %v1916_v31 = vadd.f32 %v7280_v22, %v1693_v9  ;;  %v1695_v57 = vadd.f32 %v7248_v59, %v7244_v21  ;;  %v2135_v20 = vadd.f32 %v7302_v62, %v1913_v10  ;;  %v8094_v10 = vld [vmem:[#allocation32_spill] sm:$0xff] }
 0x234   : > { %v2397_v41 = vmax.f32 %v2377_v35, 0.0  ;;  %v2376_v50 = vadd.f32 %v7323_v27, %v2349_v6  ;;  %v2352_v46 = vadd.f32 %v5594_v14, %v2130_v17  ;;  %v2136_v17 = vadd.f32 %v7294_v29, %v1914_v16  ;;  %v5550_v35 = vpop.f32.mrf.mxu1  ;;  %v8091_v16 = vld [vmem:[#allocation31_spill] sm:$0xff] }
 0x235   : > { %v2260_v5 = vpop.f32.mrf.mxu0  ;;  %v1694_v22 = vadd.f32 %v7250_v32, %v7246_v54  ;;  %v2138_v25 = vadd.f32 %v7312_v56, %v1916_v31  ;;  %v8087_v56 = vld [vmem:[#allocation21_spill] sm:$0xff] }
 0x236   : > { %2437 = vst [vmem:[#allocation3 + $0x10] sm:$0xff] %v2397_v41  ;;  %v2396_v24 = vmax.f32 %v2376_v50, 0.0  ;;  %v2379_v33 = vadd.f32 %v7323_v27, %v2352_v46  ;;  %v2351_v26 = vadd.f32 %v2260_v5, %v2129_v58  ;;  %v1915_v58 = vadd.f32 %v7284_v3, %v1692_v52  ;;  %v2098_v50 = vpop.f32.mrf.mxu1 }
 0x237   : > { %v5597_v61 = vpop.f32.mrf.mxu0  ;;  %v1918_v41 = vadd.f32 %v7286_v1, %v1695_v57  ;;  %v1697_v3 = vadd.f32 %v7256_v13, %v7252_v15 }
 0x238   : > { %2436 = vst [vmem:[#allocation3 + $0x8] sm:$0xff] %v2396_v24  ;;  %v2399_v37 = vmax.f32 %v2379_v33, 0.0  ;;  %v2378_v28 = vadd.f32 %v7323_v27, %v2351_v26  ;;  %v2354_v53 = vadd.f32 %v5597_v61, %v2132_v12  ;;  %v1917_v12 = vadd.f32 %v7290_v55, %v1694_v22  ;;  %v8086_v24 = vld [vmem:[#allocation20_spill] sm:$0xff]  ;;  %v5553_v19 = vpop.f32.mrf.mxu1  ;;  %v8088_v61 = vld [vmem:[#allocation30_spill] sm:$0xff] }
 0x239   : > { %v2270_v49 = vpop.f32.mrf.mxu0  ;;  %v2137_v60 = vadd.f32 %v7327_v30, %v1915_v58  ;;  %v1696_v33 = vadd.f32 %v8087_v56, %v8086_v24  ;;  %v2140_v26 = vadd.f32 %v7335_v63, %v1918_v41  ;;  %v1920_v38 = vadd.f32 %v8088_v61, %v1697_v3  ;;  %v8089_v30 = vld [vmem:[#allocation22_spill] sm:$0xff] }
 0x23a   : > { %2439 = vst [vmem:[#allocation3 + $0x30] sm:$0xff] %v2399_v37  ;;  %v2398_v48 = vmax.f32 %v2378_v28, 0.0  ;;  %v2381_v0 = vadd.f32 %v7323_v27, %v2354_v53  ;;  %v2353_v39 = vadd.f32 %v2270_v49, %v2131_v44  ;;  %v8090_v37 = vld [vmem:[#allocation24_spill] sm:$0xff]  ;;  %v2139_v53 = vadd.f32 %v2088_v34, %v1917_v12 }
 0x23b   : > { %v5600_v8 = vpop.f32.mrf.mxu0  ;;  %v1699_v28 = vadd.f32 %v8090_v37, %v8089_v30  ;;  %v1919_v49 = vadd.f32 %v8091_v16, %v1696_v33 }
 0x23c   : > { %2438 = vst [vmem:[#allocation3 + $0x28] sm:$0xff] %v2398_v48  ;;  %v2401_v36 = vmax.f32 %v2381_v0, 0.0  ;;  %v2380_v40 = vadd.f32 %v7323_v27, %v2353_v39  ;;  %v2356_v2 = vadd.f32 %v5600_v8, %v2134_v7  ;;  %v8092_v0 = vld [vmem:[#allocation23_spill] sm:$0xff]  ;;  %v8093_v39 = vld [vmem:[#allocation25_spill] sm:$0xff] }
 0x23d   : > { %v2280_v6 = vpop.f32.mrf.mxu0  ;;  %v1698_v9 = vadd.f32 %v8093_v39, %v8092_v0  ;;  %v1922_v8 = vadd.f32 %v8094_v10, %v1699_v28  ;;  %v2141_v57 = vadd.f32 %v2098_v50, %v1919_v49 }
 0x23e   : > { %2441 = vst [vmem:[#allocation3 + $0x50] sm:$0xff] %v2401_v36  ;;  %v2400_v42 = vmax.f32 %v2380_v40, 0.0  ;;  %v2383_v47 = vadd.f32 %v7323_v27, %v2356_v2  ;;  %v2355_v43 = vadd.f32 %v2280_v6, %v2133_v23  ;;  %v2108_v23 = vpop.f32.mrf.mxu1  ;;  %v2142_v40 = vadd.f32 %v5550_v35, %v1920_v38  ;;  %v8096_v6 = vld [vmem:[#allocation28_spill] sm:$0xff] }
 0x23f   : > { %v5603_v14 = vpop.f32.mrf.mxu0 }
 0x240   : > { %2440 = vst [vmem:[#allocation3 + $0x48] sm:$0xff] %v2400_v42  ;;  %v2403_v18 = vmax.f32 %v2383_v47, 0.0  ;;  %v2382_v51 = vadd.f32 %v7323_v27, %v2355_v43  ;;  %v2358_v29 = vadd.f32 %v5603_v14, %v2136_v17  ;;  %v8095_v17 = vld [vmem:[#allocation26_spill] sm:$0xff]  ;;  %v8097_v42 = vld [vmem:[#allocation33_spill] sm:$0xff]  ;;  %v5556_v22 = vpop.f32.mrf.mxu1 }
 0x241   : > { %v2290_v46 = vpop.f32.mrf.mxu0  ;;  %v1701_v31 = vadd.f32 %v8096_v6, %v8095_v17  ;;  %v1921_v47 = vadd.f32 %v8097_v42, %v1698_v9 }
 0x242   : > { %2443 = vst [vmem:[#allocation3 + $0x70] sm:$0xff] %v2403_v18  ;;  %v2402_v21 = vmax.f32 %v2382_v51, 0.0  ;;  %v2385_v59 = vadd.f32 %v7323_v27, %v2358_v29  ;;  %v2357_v62 = vadd.f32 %v2290_v46, %v2135_v20  ;;  %v8098_v18 = vld [vmem:[#allocation27_spill] sm:$0xff]  ;;  %v8099_v51 = vld [vmem:[#allocation29_spill] sm:$0xff]  ;;  %v2144_v29 = vadd.f32 %v5553_v19, %v1922_v8 }
 0x243   : > { %v5606_v5 = vpop.f32.mrf.mxu0  ;;  %v1700_v35 = vadd.f32 %v8099_v51, %v8098_v18  ;;  %v1924_v46 = vadd.f32 %v7308_v45, %v1701_v31 }
 0x244   : > { %2442 = vst [vmem:[#allocation3 + $0x68] sm:$0xff] %v2402_v21  ;;  %v2405_v54 = vmax.f32 %v2385_v59, 0.0  ;;  %v2384_v32 = vadd.f32 %v7323_v27, %v2357_v62  ;;  %v2360_v1 = vadd.f32 %v5606_v5, %v2138_v25  ;;  %v2143_v62 = vadd.f32 %v2108_v23, %v1921_v47 }
 0x245   : > { %v2300_v44 = vpop.f32.mrf.mxu0  ;;  %v1923_v3 = vadd.f32 %v7314_v11, %v1700_v35 }
 0x246   : > { %2445 = vst [vmem:[#allocation3 + $0x90] sm:$0xff] %v2405_v54  ;;  %v2404_v15 = vmax.f32 %v2384_v32, 0.0  ;;  %v2387_v13 = vadd.f32 %v7323_v27, %v2360_v1  ;;  %v2359_v55 = vadd.f32 %v2300_v44, %v2137_v60  ;;  %v2118_v54 = vpop.f32.mrf.mxu1  ;;  %v2146_v1 = vadd.f32 %v5556_v22, %v1924_v46 }
 0x247   : > { %v5609_v4 = vpop.f32.mrf.mxu0 }
 0x248   : > { %2444 = vst [vmem:[#allocation3 + $0x88] sm:$0xff] %v2404_v15  ;;  %v2407_v7 = vmax.f32 %v2387_v13, 0.0  ;;  %v2386_v63 = vadd.f32 %v7323_v27, %v2359_v55  ;;  %v2362_v48 = vadd.f32 %v5609_v4, %v2140_v26  ;;  %v2145_v26 = vadd.f32 %v2118_v54, %v1923_v3 }
 0x249   : > { %v2310_v36 = vpop.f32.mrf.mxu0 }
 0x24a   : > { %2447 = vst [vmem:[#allocation3 + $0xb0] sm:$0xff] %v2407_v7  ;;  %v2406_v2 = vmax.f32 %v2386_v63, 0.0  ;;  %v2389_v34 = vadd.f32 %v7323_v27, %v2362_v48  ;;  %v2361_v52 = vadd.f32 %v2310_v36, %v2139_v53 }
 0x24b   : > { %v5612_v43 = vpop.f32.mrf.mxu0 }
 0x24c   : > { %2446 = vst [vmem:[#allocation3 + $0xa8] sm:$0xff] %v2406_v2  ;;  %v2409_v20 = vmax.f32 %v2389_v34, 0.0  ;;  %v2388_v14 = vadd.f32 %v7323_v27, %v2361_v52  ;;  %v2364_v58 = vadd.f32 %v5612_v43, %v2142_v40 }
 0x24d   : > { %v2320_v41 = vpop.f32.mrf.mxu0 }
 0x24e   : > { %2449 = vst [vmem:[#allocation3 + $0xd0] sm:$0xff] %v2409_v20  ;;  %v2408_v25 = vmax.f32 %v2388_v14, 0.0  ;;  %v2391_v21 = vadd.f32 %v7323_v27, %v2364_v58  ;;  %v2363_v59 = vadd.f32 %v2320_v41, %v2141_v57 }
 0x24f   : > { %v5615_v50 = vpop.f32.mrf.mxu0 }
 0x250   : > { %2448 = vst [vmem:[#allocation3 + $0xc8] sm:$0xff] %v2408_v25  ;;  %v2411_v12 = vmax.f32 %v2391_v21, 0.0  ;;  %v2390_v5 = vadd.f32 %v7323_v27, %v2363_v59  ;;  %v2366_v60 = vadd.f32 %v5615_v50, %v2144_v29 }
 0x251   : > { %v2330_v32 = vpop.f32.mrf.mxu0 }
 0x252   : > { %2451 = vst [vmem:[#allocation3 + $0xf0] sm:$0xff] %v2411_v12  ;;  %v2410_v24 = vmax.f32 %v2390_v5, 0.0  ;;  %v2393_v45 = vadd.f32 %v7323_v27, %v2366_v60  ;;  %v2365_v56 = vadd.f32 %v2330_v32, %v2143_v62 }
 0x253   : > { %v5618_v33 = vpop.f32.mrf.mxu0 }
 0x254   : > { %2450 = vst [vmem:[#allocation3 + $0xe8] sm:$0xff] %v2410_v24  ;;  %v2413_v19 = vmax.f32 %v2393_v45, 0.0  ;;  %v2392_v44 = vadd.f32 %v7323_v27, %v2365_v56  ;;  %v2368_v11 = vadd.f32 %v5618_v33, %v2146_v1 }
 0x255   : > { %v2340_v61 = vpop.f32.mrf.mxu0 }
 0x256   : > { %2453 = vst [vmem:[#allocation3 + $0x110] sm:$0xff] %v2413_v19  ;;  %v2412_v38 = vmax.f32 %v2392_v44, 0.0  ;;  %v2395_v15 = vadd.f32 %v7323_v27, %v2368_v11  ;;  %v2367_v13 = vadd.f32 %v2340_v61, %v2145_v26 }
 0x258   : > { %2452 = vst [vmem:[#allocation3 + $0x108] sm:$0xff] %v2412_v38  ;;  %v2415_v55 = vmax.f32 %v2395_v15, 0.0  ;;  %v2394_v30 = vadd.f32 %v7323_v27, %v2367_v13  ;;  %2458 = sbr.rel (%p4411_p1) target bundleno = 607 (0x25f), region = 64 }
 0x25a   : > { %2455 = vst [vmem:[#allocation3 + $0x130] sm:$0xff] %v2415_v55  ;;  %v2414_v37 = vmax.f32 %v2394_v30, 0.0 }
 0x25c   : > { %2454 = vst [vmem:[#allocation3 + $0x128] sm:$0xff] %v2414_v37 }
 0x25d   : > { %v6501_v28 = vmov 0.0  }
 0x25e   : > { %2459 = vst [vmem:[#allocation3 + $0x8] sm:$0xff] %v6501_v28  ;;  %2460 = vst [vmem:[#allocation3 + $0x10] sm:$0xff] %v6501_v28 }
 0x25f PF: > { %2463 = sbr.rel (%p4412_p3) target bundleno = 614 (0x266), region = 68 }
 0x264   : > { %v6502_v53 = vmov 0.0  }
 0x265   : > { %2465 = vst [vmem:[#allocation3 + $0x128] sm:$0xff] %v6502_v53  ;;  %2466 = vst [vmem:[#allocation3 + $0x130] sm:$0xff] %v6502_v53 }
 0x266 PF: > { %v2531_v4 = vld [vmem:[#allocation9 + $0xf8] sm:$0xff]  ;;  %v2530_v16 = vld [vmem:[#allocation9 + $0xf0] sm:$0xff]  ;;  %v2529_v27 = vld [vmem:[#allocation9 + $0xe8] sm:$0xff]  ;;  %s4447_s11 = sshll.u32 %s6475_s24, 7  ;;  %s8142_s3 = sld [smem:[#allocation15_spill]] }
 0x267   : > { %5619 = vmatprep.subr.mxu1 %v2531_v4  ;;  %v2528_v49 = vld [vmem:[#allocation9 + $0xe0] sm:$0xff]  ;;  %v2499_v7 = vld [vmem:[#allocation3 + $0x8] sm:$0xff]  ;;  %v2527_v63 = vld [vmem:[#allocation9 + $0xd8] sm:$0xff]  ;;  %s7859_s17 = scalar_lea.vmem %s6704_s15, %s4447_s11 [#allocation4]  ;;  %s4448_s29 = sshll.u32 %s6475_s24, 4 }
 0x268   : > { %5620 = vmatpush3.msra.mxu1 %v2531_v4  ;;  %5651 = vmatprep.mubr.f32.mxu1 %v2499_v7  ;;  %v2854_v48 = vld [vmem:[#allocation9 + $0x178] sm:$0xff]  ;;  %v2526_v0 = vld [vmem:[#allocation9 + $0xd0] sm:$0xff]  ;;  %v2852_v9 = vld [vmem:[#allocation9 + $0x168] sm:$0xff]  ;;  %s4289_s7 = sshll.u32 %s6741_s6, 4  ;;  %s8144_s15 = sld [smem:[#allocation43_spill]]  ;;  %s7969_s7 = int_to_ptr.vmem [resolvable:$true] %s4289_s7 }
 0x269   : > { %5621 = vmatprep.subr.mxu1 %v2530_v16  ;;  %5731 = vmatprep.subr.mxu0 %v2854_v48  ;;  %v2853_v39 = vld [vmem:[#allocation9 + $0x170] sm:$0xff]  ;;  %v2525_v10 = vld [vmem:[#allocation9 + $0xc8] sm:$0xff]  ;;  %v2851_v8 = vld [vmem:[#allocation9 + $0x160] sm:$0xff]  ;;  %s7975_s8 = scalar_lea.sflag [#allocation6], %s283_s25  ;;  %s6367_s10 = scalar_lea.vmem %s7969_s7, 2048 }
 0x26a   : > { %5622 = vmatpush3.msra.mxu1 %v2530_v16  ;;  %5732 = vmatpush3.msra.mxu0 %v2854_v48  ;;  %v2524_v23 = vld [vmem:[#allocation9 + $0xc0] sm:$0xff]  ;;  %v2850_v36 = vld [vmem:[#allocation9 + $0x158] sm:$0xff]  ;;  %v2849_v2 = vld [vmem:[#allocation9 + $0x150] sm:$0xff]  ;;  %p6368_p9 = scmp.ne.s32.totalorder %s7969_s7, %s6367_s10  ;;  %s6503_s11 = smov [#allocation10]  }
 0x26b   : > { %5623 = vmatprep.subr.mxu1 %v2529_v27  ;;  %5733 = vmatprep.subr.mxu0 %v2853_v39  ;;  %v2523_v40 = vld [vmem:[#allocation9 + $0xb8] sm:$0xff]  ;;  %v2522_v34 = vld [vmem:[#allocation9 + $0xb0] sm:$0xff]  ;;  %v2848_v52 = vld [vmem:[#allocation9 + $0x148] sm:$0xff] }
 0x26c   : > { %5624 = vmatpush3.msra.mxu1 %v2529_v27  ;;  %5734 = vmatpush3.msra.mxu0 %v2853_v39  ;;  %v2521_v17 = vld [vmem:[#allocation9 + $0xa8] sm:$0xff]  ;;  %v2847_v6 = vld [vmem:[#allocation9 + $0x140] sm:$0xff]  ;;  %v2846_v42 = vld [vmem:[#allocation9 + $0x138] sm:$0xff]  ;;  %s4442_s13 = sshll.u32 %s8142_s3, 5  ;;  %p6369_p11 = pnand %p6368_p9, %p6607_p7 }
 0x26d   : > { %5625 = vmatprep.subr.mxu1 %v2528_v49  ;;  %5735 = vmatprep.subr.mxu0 %v2852_v9  ;;  %v2520_v31 = vld [vmem:[#allocation9 + $0xa0] sm:$0xff]  ;;  %v2519_v47 = vld [vmem:[#allocation9 + $0x98] sm:$0xff]  ;;  %v2845_v43 = vld [vmem:[#allocation9 + $0x130] sm:$0xff]  ;;  %s4286_s5 = sadd.s32 %s4448_s29, %s4442_s13 }
 0x26e   : > { %5626 = vmatpush3.msra.mxu1 %v2528_v49  ;;  %5736 = vmatpush3.msra.mxu0 %v2852_v9  ;;  %v2518_v57 = vld [vmem:[#allocation9 + $0x90] sm:$0xff]  ;;  %v2844_v20 = vld [vmem:[#allocation9 + $0x128] sm:$0xff]  ;;  %v2843_v58 = vld [vmem:[#allocation9 + $0x120] sm:$0xff]  ;;  %s4443_s30 = sshll.u32 %s4286_s5, 7  ;;  %p6370_p5 = pneg %p6369_p11 }
 0x26f   : > { %5627 = vmatprep.subr.mxu1 %v2527_v63  ;;  %5737 = vmatprep.subr.mxu0 %v2851_v8  ;;  %v2517_v14 = vld [vmem:[#allocation9 + $0x88] sm:$0xff]  ;;  %v2516_v18 = vld [vmem:[#allocation9 + $0x80] sm:$0xff]  ;;  %v2842_v51 = vld [vmem:[#allocation9 + $0x118] sm:$0xff]  ;;  %s7967_s9 = scalar_lea.hbm %s8144_s15, %s4443_s30 }
 0x270   : > { %5628 = vmatpush3.msra.mxu1 %v2527_v63  ;;  %5738 = vmatpush3.msra.mxu0 %v2851_v8  ;;  %v2500_v35 = vld [vmem:[#allocation3 + $0x10] sm:$0xff]  ;;  %v2498_v29 = vld [vmem:[#allocation9 + $0x78] sm:$0xff]  ;;  %v7402_v22 = vld [vmem:[#allocation3 + $0x28] sm:$0xff] }
 0x271   : > { %5629 = vmatprep.subr.mxu1 %v2526_v0  ;;  %5739 = vmatprep.subr.mxu0 %v2850_v36  ;;  %v2497_v41 = vld [vmem:[#allocation9 + $0x70] sm:$0xff]  ;;  %v2496_v21 = vld [vmem:[#allocation9 + $0x68] sm:$0xff]  ;;  %v2495_v62 = vld [vmem:[#allocation9 + $0x60] sm:$0xff] }
 0x272   : > { %5630 = vmatpush3.msra.mxu1 %v2526_v0  ;;  %5740 = vmatpush3.msra.mxu0 %v2850_v36  ;;  %v2841_v46 = vld [vmem:[#allocation9 + $0x110] sm:$0xff]  ;;  %v7407_v59 = vld [vmem:[#allocation3 + $0x48] sm:$0xff]  ;;  %v2494_v12 = vld [vmem:[#allocation9 + $0x58] sm:$0xff] }
 0x273   : > { %5631 = vmatprep.subr.mxu1 %v2525_v10  ;;  %5741 = vmatprep.subr.mxu0 %v2849_v2  ;;  %v7405_v25 = vld [vmem:[#allocation3 + $0x30] sm:$0xff]  ;;  %v2840_v50 = vld [vmem:[#allocation9 + $0x108] sm:$0xff]  ;;  %v2839_v54 = vld [vmem:[#allocation9 + $0x100] sm:$0xff] }
 0x274   : > { %5632 = vmatpush3.msra.mxu1 %v2525_v10  ;;  %5742 = vmatpush3.msra.mxu0 %v2849_v2  ;;  %v7411_v3 = vld [vmem:[#allocation3 + $0x50] sm:$0xff]  ;;  %v7413_v5 = vld [vmem:[#allocation3 + $0x68] sm:$0xff]  ;;  %v2491_v45 = vld [vmem:[#allocation9 + $0x40] sm:$0xff] }
 0x275   : > { %5633 = vmatprep.subr.mxu1 %v2524_v23  ;;  %5743 = vmatprep.subr.mxu0 %v2848_v52  ;;  %v2493_v60 = vld [vmem:[#allocation9 + $0x50] sm:$0xff]  ;;  %v2492_v1 = vld [vmem:[#allocation9 + $0x48] sm:$0xff]  ;;  %v2490_v19 = vld [vmem:[#allocation9 + $0x38] sm:$0xff] }
 0x276   : > { %5634 = vmatpush3.msra.mxu1 %v2524_v23  ;;  %5744 = vmatpush3.msra.mxu0 %v2848_v52  ;;  %v7417_v32 = vld [vmem:[#allocation3 + $0x70] sm:$0xff]  ;;  %v7419_v24 = vld [vmem:[#allocation3 + $0x88] sm:$0xff]  ;;  %v3243_v61 = vld [vmem:[#allocation9 + $0x278] sm:$0xff] }
 0x277   : > { %5635 = vmatprep.subr.mxu1 %v2523_v40  ;;  %5745 = vmatprep.subr.mxu0 %v2847_v6  ;;  %v2822_v56 = vld [vmem:[#allocation3 + $0x9] sm:$0xff]  ;;  %v2823_v33 = vld [vmem:[#allocation3 + $0x11] sm:$0xff]  ;;  %v2487_v55 = vld [vmem:[#allocation9 + $0x20] sm:$0xff] }
 0x278   : > { %5636 = vmatpush3.msra.mxu1 %v2523_v40  ;;  %5746 = vmatpush3.msra.mxu0 %v2847_v6  ;;  %v7423_v26 = vld [vmem:[#allocation3 + $0x90] sm:$0xff]  ;;  %v7425_v44 = vld [vmem:[#allocation3 + $0xa8] sm:$0xff]  ;;  %v2486_v53 = vld [vmem:[#allocation9 + $0x18] sm:$0xff] }
 0x279   : > { %5637 = vmatprep.subr.mxu1 %v2522_v34  ;;  %5747 = vmatprep.subr.mxu0 %v2846_v42  ;;  %v2489_v11 = vld [vmem:[#allocation9 + $0x30] sm:$0xff]  ;;  %v2488_v15 = vld [vmem:[#allocation9 + $0x28] sm:$0xff]  ;;  %v2483_v48 = vld [vmem:[#allocation9] sm:$0xff] }
 0x27a   : > { %5638 = vmatpush3.msra.mxu1 %v2522_v34  ;;  %5748 = vmatpush3.msra.mxu0 %v2846_v42  ;;  %v7429_v38 = vld [vmem:[#allocation3 + $0xb0] sm:$0xff]  ;;  %v7431_v13 = vld [vmem:[#allocation3 + $0xc8] sm:$0xff]  ;;  %v3049_v9 = vld [vmem:[#allocation9 + $0x1f8] sm:$0xff] }
 0x27b   : > { %5639 = vmatprep.subr.mxu1 %v2521_v17  ;;  %5749 = vmatprep.subr.mxu0 %v2845_v43  ;;  %v3242_v30 = vld [vmem:[#allocation9 + $0x270] sm:$0xff]  ;;  %v7439_v4 = vld [vmem:[#allocation3 + $0xe8] sm:$0xff]  ;;  %v3240_v23 = vld [vmem:[#allocation9 + $0x260] sm:$0xff] }
 0x27c   : > { %5640 = vmatpush3.msra.mxu1 %v2521_v17  ;;  %5750 = vmatpush3.msra.mxu0 %v2845_v43  ;;  %v7434_v37 = vld [vmem:[#allocation3 + $0x29] sm:$0xff]  ;;  %v7443_v27 = vld [vmem:[#allocation3 + $0x31] sm:$0xff]  ;;  %v3046_v52 = vld [vmem:[#allocation9 + $0x1e0] sm:$0xff] }
 0x27d   : > { %5641 = vmatprep.subr.mxu1 %v2520_v31  ;;  %5751 = vmatprep.subr.mxu0 %v2844_v20  ;;  %v7437_v28 = vld [vmem:[#allocation3 + $0xd0] sm:$0xff]  ;;  %v2484_v7 = vld [vmem:[#allocation9 + $0x8] sm:$0xff]  ;;  %v3239_v42 = vld [vmem:[#allocation9 + $0x258] sm:$0xff] }
 0x27e   : > { %5642 = vmatpush3.msra.mxu1 %v2520_v31  ;;  %5752 = vmatpush3.msra.mxu0 %v2844_v20  ;;  %v2485_v16 = vld [vmem:[#allocation9 + $0x10] sm:$0xff]  ;;  %v2467_v63 = vld [vmem:[#allocation3 + $0x7] sm:$0xff]  ;;  %v3045_v31 = vld [vmem:[#allocation9 + $0x1d8] sm:$0xff] }
 0x27f   : > { %5643 = vmatprep.subr.mxu1 %v2519_v47  ;;  %5753 = vmatprep.subr.mxu0 %v2843_v58  ;;  %v7446_v49 = vld [vmem:[#allocation3 + $0xf0] sm:$0xff]  ;;  %v3241_v0 = vld [vmem:[#allocation9 + $0x268] sm:$0xff] }
 0x280   : > { %5644 = vmatpush3.msra.mxu1 %v2519_v47  ;;  %5754 = vmatpush3.msra.mxu0 %v2843_v58  ;;  %v2468_v39 = vld [vmem:[#allocation3 + $0xf] sm:$0xff]  ;;  %v7450_v10 = vld [vmem:[#allocation3 + $0x27] sm:$0xff] }
 0x281   : > { %5645 = vmatprep.subr.mxu1 %v2518_v57  ;;  %5755 = vmatprep.subr.mxu0 %v2842_v51  ;;  %v3048_v8 = vld [vmem:[#allocation9 + $0x1f0] sm:$0xff]  ;;  %v3047_v2 = vld [vmem:[#allocation9 + $0x1e8] sm:$0xff] }
 0x282   : > { %5646 = vmatpush3.msra.mxu1 %v2518_v57  ;;  %5756 = vmatpush3.msra.mxu0 %v2842_v51  ;;  %v7452_v36 = vld [vmem:[#allocation3 + $0x49] sm:$0xff]  ;;  %v7461_v17 = vld [vmem:[#allocation3 + $0x51] sm:$0xff]  ;;  %v3042_v51 = vld [vmem:[#allocation9 + $0x1c0] sm:$0xff] }
 0x283   : > { %5647 = vmatprep.subr.mxu1 %v2517_v14  ;;  %5757 = vmatprep.subr.mxu0 %v2841_v46  ;;  %v7455_v40 = vld [vmem:[#allocation3 + $0x2f] sm:$0xff]  ;;  %v7457_v34 = vld [vmem:[#allocation3 + $0x47] sm:$0xff] }
 0x284   : > { %5648 = vmatpush3.msra.mxu1 %v2517_v14  ;;  %5758 = vmatpush3.msra.mxu0 %v2841_v46  ;;  %v7464_v6 = vld [vmem:[#allocation3 + $0x4f] sm:$0xff]  ;;  %v7467_v43 = vld [vmem:[#allocation3 + $0x67] sm:$0xff]  ;;  %v3041_v46 = vld [vmem:[#allocation9 + $0x1b8] sm:$0xff] }
 0x285   : > { %5649 = vmatprep.subr.mxu1 %v2516_v18  ;;  %5759 = vmatprep.subr.mxu0 %v2840_v50  ;;  %v3044_v47 = vld [vmem:[#allocation9 + $0x1d0] sm:$0xff]  ;;  %v3043_v20 = vld [vmem:[#allocation9 + $0x1c8] sm:$0xff] }
 0x286   : > { %5650 = vmatpush3.msra.mxu1 %v2516_v18  ;;  %5760 = vmatpush3.msra.mxu0 %v2840_v50  ;;  %v7470_v57 = vld [vmem:[#allocation3 + $0x6f] sm:$0xff] }
 0x287   : > { %5652 = vmatmul.mubr.f32.vlgmr.msra.gmra.mxu1 %v2500_v35  ;;  %5675 = vmatprep.subr.mxu1 %v2498_v29  ;;  %v3238_v14 = vld [vmem:[#allocation9 + $0x250] sm:$0xff]  ;;  %v3237_v35 = vld [vmem:[#allocation9 + $0x248] sm:$0xff] }
 0x288   : > { %5676 = vmatpush3.msra.mxu1 %v2498_v29  ;;  %5654 = vmatprep.mubr.f32.mxu1 %v7402_v22  ;;  %v7473_v58 = vld [vmem:[#allocation3 + $0x69] sm:$0xff]  ;;  %v7476_v18 = vld [vmem:[#allocation3 + $0x71] sm:$0xff] }
 0x289   : > { %5677 = vmatprep.subr.mxu1 %v2497_v41  ;;  %5761 = vmatprep.subr.mxu0 %v2839_v54  ;;  %v7479_v29 = vld [vmem:[#allocation3 + $0x87] sm:$0xff]  ;;  %v7488_v50 = vld [vmem:[#allocation3 + $0x91] sm:$0xff] }
 0x28a   : > { %5678 = vmatpush3.msra.mxu1 %v2497_v41  ;;  %5762 = vmatpush3.msra.mxu0 %v2839_v54  ;;  %v7482_v41 = vld [vmem:[#allocation3 + $0x8f] sm:$0xff]  ;;  %v7491_v54 = vld [vmem:[#allocation3 + $0xa7] sm:$0xff] }
 0x28b   : > { %5655 = vmatmul.mubr.f32.gmra.mxu1 %v7405_v25  ;;  %5679 = vmatprep.subr.mxu1 %v2496_v21 }
 0x28c   : > { %5680 = vmatpush3.msra.mxu1 %v2496_v21  ;;  %5657 = vmatprep.mubr.f32.mxu1 %v7407_v59  ;;  %v3236_v21 = vld [vmem:[#allocation9 + $0x240] sm:$0xff] }
 0x28d   : > { %5681 = vmatprep.subr.mxu1 %v2495_v62  ;;  %5763 = vmatprep.mubr.f32.mxu0 %v2822_v56  ;;  %v3234_v56 = vld [vmem:[#allocation9 + $0x230] sm:$0xff] }
 0x28e   : > { %5682 = vmatpush3.msra.mxu1 %v2495_v62  ;;  %5764 = vmatmul.mubr.f32.vlgmr.msra.gmra.mxu0 %v2823_v33  ;;  %v7485_v62 = vld [vmem:[#allocation3 + $0x89] sm:$0xff] }
 0x28f   : > { %5658 = vmatmul.mubr.f32.gmra.mxu1 %v7411_v3  ;;  %5683 = vmatprep.subr.mxu1 %v2494_v12  ;;  %v7497_v33 = vld [vmem:[#allocation3 + $0xa9] sm:$0xff] }
 0x290   : > { %5684 = vmatpush3.msra.mxu1 %v2494_v12  ;;  %5660 = vmatprep.mubr.f32.mxu1 %v7413_v5  ;;  %v3040_v12 = vld [vmem:[#allocation9 + $0x1b0] sm:$0xff] }
 0x291   : > { %5685 = vmatprep.subr.mxu1 %v2493_v60  ;;  %5843 = vmatprep.subr.mxu0 %v3243_v61 }
 0x292   : > { %5686 = vmatpush3.msra.mxu1 %v2493_v60  ;;  %5844 = vmatpush3.msra.mxu0 %v3243_v61  ;;  %v3235_v60 = vld [vmem:[#allocation9 + $0x238] sm:$0xff]  ;;  %v3233_v61 = vld [vmem:[#allocation9 + $0x228] sm:$0xff] }
 0x293   : > { %5661 = vmatmul.mubr.f32.gmra.mxu1 %v7417_v32  ;;  %5687 = vmatprep.subr.mxu1 %v2492_v1 }
 0x294   : > { %5688 = vmatpush3.msra.mxu1 %v2492_v1  ;;  %5663 = vmatprep.mubr.f32.mxu1 %v7419_v24  ;;  %v7494_v1 = vld [vmem:[#allocation3 + $0xaf] sm:$0xff] }
 0x295   : > { %5689 = vmatprep.subr.mxu1 %v2491_v45  ;;  %5845 = vmatprep.subr.mxu0 %v3242_v30 }
 0x296   : > { %5690 = vmatpush3.msra.mxu1 %v2491_v45  ;;  %5766 = vmatprep.mubr.f32.mxu0 %v7434_v37  ;;  %v3039_v45 = vld [vmem:[#allocation9 + $0x1a8] sm:$0xff] }
 0x297   : > { %5664 = vmatmul.mubr.f32.gmra.mxu1 %v7423_v26  ;;  %5691 = vmatprep.subr.mxu1 %v2490_v19 }
 0x298   : > { %5692 = vmatpush3.msra.mxu1 %v2490_v19  ;;  %5666 = vmatprep.mubr.f32.mxu1 %v7425_v44  ;;  %v7500_v19 = vld [vmem:[#allocation3 + $0xb1] sm:$0xff] }
 0x299   : > { %5693 = vmatprep.subr.mxu1 %v2489_v11  ;;  %5846 = vmatpush3.msra.mxu0 %v3242_v30  ;;  %v3037_v30 = vld [vmem:[#allocation9 + $0x198] sm:$0xff] }
 0x29a   : > { %5694 = vmatpush3.msra.mxu1 %v2489_v11  ;;  %5767 = vmatmul.mubr.f32.gmra.mxu0 %v7443_v27  ;;  %v3038_v11 = vld [vmem:[#allocation9 + $0x1a0] sm:$0xff] }
 0x29b   : > { %5667 = vmatmul.mubr.f32.gmra.mxu1 %v7429_v38  ;;  %5695 = vmatprep.subr.mxu1 %v2488_v15 }
 0x29c   : > { %5696 = vmatpush3.msra.mxu1 %v2488_v15  ;;  %5669 = vmatprep.mubr.f32.mxu1 %v7431_v13  ;;  %v7503_v15 = vld [vmem:[#allocation3 + $0xc7] sm:$0xff] }
 0x29d   : > { %5697 = vmatprep.subr.mxu1 %v2487_v55  ;;  %5847 = vmatprep.subr.mxu0 %v3241_v0 }
 0x29e   : > { %5698 = vmatpush3.msra.mxu1 %v2487_v55  ;;  %5848 = vmatpush3.msra.mxu0 %v3241_v0  ;;  %v7506_v55 = vld [vmem:[#allocation3 + $0xcf] sm:$0xff]  ;;  %v7515_v0 = vld [vmem:[#allocation3 + $0xe7] sm:$0xff] }
 0x29f   : > { %5670 = vmatmul.mubr.f32.gmra.mxu1 %v7437_v28  ;;  %5699 = vmatprep.subr.mxu1 %v2486_v53 }
 0x2a0   : > { %5700 = vmatpush3.msra.mxu1 %v2486_v53  ;;  %5672 = vmatprep.mubr.f32.mxu1 %v7439_v4  ;;  %v3232_v53 = vld [vmem:[#allocation9 + $0x220] sm:$0xff] }
 0x2a1   : > { %5701 = vmatprep.subr.mxu1 %v2485_v16  ;;  %5849 = vmatprep.subr.mxu0 %v3240_v23 }
 0x2a2   : > { %5702 = vmatpush3.msra.mxu1 %v2485_v16  ;;  %5769 = vmatprep.mubr.f32.mxu0 %v7452_v36  ;;  %v7509_v16 = vld [vmem:[#allocation3 + $0xc9] sm:$0xff] }
 0x2a3   : > { %5673 = vmatmul.mubr.f32.gmra.mxu1 %v7446_v49  ;;  %5703 = vmatprep.subr.mxu1 %v2484_v7 }
 0x2a4   : > { %5704 = vmatpush3.msra.mxu1 %v2484_v7  ;;  %5707 = vmatprep.mubr.f32.mxu1 %v2467_v63  ;;  %v7512_v7 = vld [vmem:[#allocation3 + $0xd1] sm:$0xff] }
 0x2a5   : > { %5705 = vmatprep.subr.mxu1 %v2483_v48  ;;  %5850 = vmatpush3.msra.mxu0 %v3240_v23  ;;  %v3036_v63 = vld [vmem:[#allocation9 + $0x190] sm:$0xff] }
 0x2a6   : > { %5706 = vmatpush3.msra.mxu1 %v2483_v48  ;;  %5770 = vmatmul.mubr.f32.gmra.mxu0 %v7461_v17  ;;  %v3231_v48 = vld [vmem:[#allocation9 + $0x218] sm:$0xff]  ;;  %v7521_v23 = vld [vmem:[#allocation3 + $0xe9] sm:$0xff] }
 0x2a7   : > { %5708 = vmatmul.mubr.f32.vlgmr.msra.gmra.mxu1 %v2468_v39  ;;  %5787 = vmatprep.subr.mxu1 %v3049_v9  ;;  %v7518_v39 = vld [vmem:[#allocation3 + $0xef] sm:$0xff] }
 0x2a8   : > { %5788 = vmatpush3.msra.mxu1 %v3049_v9  ;;  %5710 = vmatprep.mubr.f32.mxu1 %v7450_v10  ;;  %v3035_v9 = vld [vmem:[#allocation9 + $0x188] sm:$0xff] }
 0x2a9   : > { %5789 = vmatprep.subr.mxu1 %v3048_v8  ;;  %5851 = vmatprep.subr.mxu0 %v3239_v42 }
 0x2aa   : > { %5790 = vmatpush3.msra.mxu1 %v3048_v8  ;;  %5852 = vmatpush3.msra.mxu0 %v3239_v42  ;;  %v3230_v8 = vld [vmem:[#allocation9 + $0x210] sm:$0xff]  ;;  %v3228_v42 = vld [vmem:[#allocation9 + $0x200] sm:$0xff] }
 0x2ab   : > { %5711 = vmatmul.mubr.f32.gmra.mxu1 %v7455_v40  ;;  %5791 = vmatprep.subr.mxu1 %v3047_v2 }
 0x2ac   : > { %5792 = vmatpush3.msra.mxu1 %v3047_v2  ;;  %5713 = vmatprep.mubr.f32.mxu1 %v7457_v34  ;;  %v7524_v2 = vld [vmem:[#allocation3 + $0xf1] sm:$0xff] }
 0x2ad   : > { %5793 = vmatprep.subr.mxu1 %v3046_v52  ;;  %5853 = vmatprep.subr.mxu0 %v3238_v14 }
 0x2ae   : > { %5794 = vmatpush3.msra.mxu1 %v3046_v52  ;;  %5772 = vmatprep.mubr.f32.mxu0 %v7473_v58  ;;  %v3034_v52 = vld [vmem:[#allocation9 + $0x180] sm:$0xff] }
 0x2af   : > { %5714 = vmatmul.mubr.f32.gmra.mxu1 %v7464_v6  ;;  %5795 = vmatprep.subr.mxu1 %v3045_v31 }
 0x2b0   : > { %5796 = vmatpush3.msra.mxu1 %v3045_v31  ;;  %5716 = vmatprep.mubr.f32.mxu1 %v7467_v43  ;;  %v3229_v31 = vld [vmem:[#allocation9 + $0x208] sm:$0xff] }
 0x2b1   : > { %5797 = vmatprep.subr.mxu1 %v3044_v47  ;;  %5854 = vmatpush3.msra.mxu0 %v3238_v14  ;;  %v3632_v14 = vld [vmem:[#allocation9 + $0x378] sm:$0xff] }
 0x2b2   : > { %5798 = vmatpush3.msra.mxu1 %v3044_v47  ;;  %5773 = vmatmul.mubr.f32.gmra.mxu0 %v7476_v18  ;;  %v3437_v47 = vld [vmem:[#allocation9 + $0x2f8] sm:$0xff] }
 0x2b3   : > { %5717 = vmatmul.mubr.f32.gmra.mxu1 %v7470_v57  ;;  %5799 = vmatprep.subr.mxu1 %v3043_v20 }
 0x2b4   : > { %5800 = vmatpush3.msra.mxu1 %v3043_v20  ;;  %5855 = vmatprep.subr.mxu0 %v3237_v35  ;;  %v3436_v20 = vld [vmem:[#allocation9 + $0x2f0] sm:$0xff] }
 0x2b5   : > { %5801 = vmatprep.subr.mxu1 %v3042_v51  ;;  %5719 = vmatprep.mubr.f32.mxu1 %v7479_v29 }
 0x2b6   : > { %5802 = vmatpush3.msra.mxu1 %v3042_v51  ;;  %5856 = vmatpush3.msra.mxu0 %v3237_v35  ;;  %v3435_v51 = vld [vmem:[#allocation9 + $0x2e8] sm:$0xff]  ;;  %v3631_v35 = vld [vmem:[#allocation9 + $0x370] sm:$0xff] }
 0x2b7   : > { %5720 = vmatmul.mubr.f32.gmra.mxu1 %v7482_v41  ;;  %5803 = vmatprep.subr.mxu1 %v3041_v46 }
 0x2b8   : > { %5857 = vmatprep.subr.mxu0 %v3236_v21  ;;  %5775 = vmatprep.mubr.f32.mxu0 %v7485_v62 }
 0x2b9   : > { %5804 = vmatpush3.msra.mxu1 %v3041_v46  ;;  %5858 = vmatpush3.msra.mxu0 %v3236_v21  ;;  %v3432_v46 = vld [vmem:[#allocation9 + $0x2d0] sm:$0xff] }
 0x2ba   : > { %5776 = vmatmul.mubr.f32.gmra.mxu0 %v7488_v50  ;;  %5805 = vmatprep.subr.mxu1 %v3040_v12  ;;  %v3627_v21 = vld [vmem:[#allocation9 + $0x350] sm:$0xff] }
 0x2bb   : > { %5859 = vmatprep.subr.mxu0 %v3235_v60  ;;  %5722 = vmatprep.mubr.f32.mxu1 %v7491_v54 }
 0x2bc   : > { %5806 = vmatpush3.msra.mxu1 %v3040_v12  ;;  %5860 = vmatpush3.msra.mxu0 %v3235_v60  ;;  %v3430_v12 = vld [vmem:[#allocation9 + $0x2c0] sm:$0xff] }
 0x2bd   : > { %5723 = vmatmul.mubr.f32.gmra.mxu1 %v7494_v1  ;;  %5807 = vmatprep.subr.mxu1 %v3039_v45  ;;  %v3625_v60 = vld [vmem:[#allocation9 + $0x340] sm:$0xff] }
 0x2be   : > { %5861 = vmatprep.subr.mxu0 %v3234_v56  ;;  %5778 = vmatprep.mubr.f32.mxu0 %v7497_v33 }
 0x2bf   : > { %5808 = vmatpush3.msra.mxu1 %v3039_v45  ;;  %5862 = vmatpush3.msra.mxu0 %v3234_v56  ;;  %v3428_v45 = vld [vmem:[#allocation9 + $0x2b0] sm:$0xff] }
 0x2c0   : > { %5779 = vmatmul.mubr.f32.gmra.mxu0 %v7500_v19  ;;  %5809 = vmatprep.subr.mxu1 %v3038_v11  ;;  %v3623_v56 = vld [vmem:[#allocation9 + $0x330] sm:$0xff] }
 0x2c1   : > { %5863 = vmatprep.subr.mxu0 %v3233_v61  ;;  %5725 = vmatprep.mubr.f32.mxu1 %v7503_v15 }
 0x2c2   : > { %5810 = vmatpush3.msra.mxu1 %v3038_v11  ;;  %5864 = vmatpush3.msra.mxu0 %v3233_v61  ;;  %v3426_v11 = vld [vmem:[#allocation9 + $0x2a0] sm:$0xff] }
 0x2c3   : > { %5726 = vmatmul.mubr.f32.gmra.mxu1 %v7506_v55  ;;  %5811 = vmatprep.subr.mxu1 %v3037_v30  ;;  %v3621_v61 = vld [vmem:[#allocation9 + $0x320] sm:$0xff] }
 0x2c4   : > { %5865 = vmatprep.subr.mxu0 %v3232_v53  ;;  %5781 = vmatprep.mubr.f32.mxu0 %v7509_v16 }
 0x2c5   : > { %5812 = vmatpush3.msra.mxu1 %v3037_v30  ;;  %5866 = vmatpush3.msra.mxu0 %v3232_v53  ;;  %v3424_v30 = vld [vmem:[#allocation9 + $0x290] sm:$0xff]  ;;  %v7555_v53 = vld [vmem:[#allocation3 + $0x107] sm:$0xff] }
 0x2c6   : > { %5782 = vmatmul.mubr.f32.gmra.mxu0 %v7512_v7  ;;  %5813 = vmatprep.subr.mxu1 %v3036_v63 }
 0x2c7   : > { %5867 = vmatprep.subr.mxu0 %v3231_v48  ;;  %5728 = vmatprep.mubr.f32.mxu1 %v7515_v0 }
 0x2c8   : > { %5814 = vmatpush3.msra.mxu1 %v3036_v63  ;;  %5868 = vmatpush3.msra.mxu0 %v3231_v48  ;;  %v3423_v63 = vld [vmem:[#allocation9 + $0x288] sm:$0xff]  ;;  %v3619_v48 = vld [vmem:[#allocation9 + $0x310] sm:$0xff] }
 0x2c9   : > { %5729 = vmatmul.mubr.f32.gmra.mxu1 %v7518_v39  ;;  %5815 = vmatprep.subr.mxu1 %v3035_v9 }
 0x2ca   : > { %5869 = vmatprep.subr.mxu0 %v3230_v8  ;;  %5784 = vmatprep.mubr.f32.mxu0 %v7521_v23 }
 0x2cb   : > { %5816 = vmatpush3.msra.mxu1 %v3035_v9  ;;  %5870 = vmatpush3.msra.mxu0 %v3230_v8  ;;  %v7561_v9 = vld [vmem:[#allocation3 + $0x108] sm:$0xff]  ;;  %v3422_v8 = vld [vmem:[#allocation9 + $0x280] sm:$0xff] }
 0x2cc   : > { %5785 = vmatmul.mubr.f32.gmra.mxu0 %v7524_v2  ;;  %5817 = vmatprep.subr.mxu1 %v3034_v52 }
 0x2cd   : > { %5871 = vmatprep.subr.mxu0 %v3229_v31  ;;  %5818 = vmatpush3.msra.mxu1 %v3034_v52  ;;  %v3617_v52 = vld [vmem:[#allocation9 + $0x300] sm:$0xff] }
 0x2ce   : > { %5819 = vmatprep.mubr.f32.mxu1 %v7450_v10  ;;  %5872 = vmatpush3.msra.mxu0 %v3229_v31  ;;  %v3434_v10 = vld [vmem:[#allocation9 + $0x2e0] sm:$0xff]  ;;  %v3826_v31 = vld [vmem:[#allocation9 + $0x3f8] sm:$0xff] }
 0x2cf   : > { %5820 = vmatmul.mubr.f32.vlgmr.msra.gmra.mxu1 %v7455_v40  ;;  %5873 = vmatprep.subr.mxu0 %v3228_v42  ;;  %v3630_v40 = vld [vmem:[#allocation9 + $0x368] sm:$0xff] }
 0x2d0   : > { %5899 = vmatprep.subr.mxu1 %v3437_v47  ;;  %5874 = vmatpush3.msra.mxu0 %v3228_v42  ;;  %v3825_v42 = vld [vmem:[#allocation9 + $0x3f0] sm:$0xff] }
 0x2d1   : > { %5875 = vmatprep.mubr.f32.mxu0 %v7402_v22  ;;  %5900 = vmatpush3.msra.mxu1 %v3437_v47  ;;  %v3433_v22 = vld [vmem:[#allocation9 + $0x2d8] sm:$0xff] }
 0x2d2   : > { %5876 = vmatmul.mubr.f32.vlgmr.msra.gmra.mxu0 %v7405_v25  ;;  %5901 = vmatprep.subr.mxu1 %v3436_v20  ;;  %v3629_v25 = vld [vmem:[#allocation9 + $0x360] sm:$0xff]  ;;  %v7570_v47 = vld [vmem:[#allocation9 + $0x478] sm:$0xff] }
 0x2d3   : > { %5955 = vmatprep.subr.mxu0 %v3632_v14  ;;  %5822 = vmatprep.mubr.f32.mxu1 %v7457_v34 }
 0x2d4   : > { %5902 = vmatpush3.msra.mxu1 %v3436_v20  ;;  %5956 = vmatpush3.msra.mxu0 %v3632_v14  ;;  %v3824_v20 = vld [vmem:[#allocation9 + $0x3e8] sm:$0xff]  ;;  %v7588_v14 = vld [vmem:[#allocation9 + $0x460] sm:$0xff] }
 0x2d5   : > { %5823 = vmatmul.mubr.f32.gmra.mxu1 %v7464_v6  ;;  %5903 = vmatprep.subr.mxu1 %v3435_v51 }
 0x2d6   : > { %5957 = vmatprep.subr.mxu0 %v3631_v35  ;;  %5878 = vmatprep.mubr.f32.mxu0 %v7407_v59  ;;  %v3628_v59 = vld [vmem:[#allocation9 + $0x358] sm:$0xff] }
 0x2d7   : > { %5904 = vmatpush3.msra.mxu1 %v3435_v51  ;;  %5958 = vmatpush3.msra.mxu0 %v3631_v35  ;;  %v3820_v51 = vld [vmem:[#allocation9 + $0x3c8] sm:$0xff]  ;;  %v7600_v35 = vld [vmem:[#allocation9 + $0x450] sm:$0xff] }
 0x2d8   : > { %5879 = vmatmul.mubr.f32.gmra.mxu0 %v7411_v3  ;;  %5905 = vmatprep.subr.mxu1 %v3434_v10  ;;  %v3431_v3 = vld [vmem:[#allocation9 + $0x2c8] sm:$0xff] }
 0x2d9   : > { %5959 = vmatprep.subr.mxu0 %v3630_v40  ;;  %5825 = vmatprep.mubr.f32.mxu1 %v7467_v43 }
 0x2da   : > { %5906 = vmatpush3.msra.mxu1 %v3434_v10  ;;  %5960 = vmatpush3.msra.mxu0 %v3630_v40  ;;  %v3818_v10 = vld [vmem:[#allocation9 + $0x3b8] sm:$0xff]  ;;  %v7612_v40 = vld [vmem:[#allocation9 + $0x440] sm:$0xff] }
 0x2db   : > { %5826 = vmatmul.mubr.f32.gmra.mxu1 %v7470_v57  ;;  %5907 = vmatprep.subr.mxu1 %v3433_v22 }
 0x2dc   : > { %5961 = vmatprep.subr.mxu0 %v3629_v25  ;;  %5881 = vmatprep.mubr.f32.mxu0 %v7413_v5  ;;  %v3626_v5 = vld [vmem:[#allocation9 + $0x348] sm:$0xff] }
 0x2dd   : > { %5908 = vmatpush3.msra.mxu1 %v3433_v22  ;;  %5962 = vmatpush3.msra.mxu0 %v3629_v25  ;;  %v3816_v22 = vld [vmem:[#allocation9 + $0x3a8] sm:$0xff]  ;;  %v7624_v25 = vld [vmem:[#allocation9 + $0x430] sm:$0xff] }
 0x2de   : > { %5882 = vmatmul.mubr.f32.gmra.mxu0 %v7417_v32  ;;  %5909 = vmatprep.subr.mxu1 %v3432_v46  ;;  %v3429_v32 = vld [vmem:[#allocation9 + $0x2b8] sm:$0xff] }
 0x2df   : > { %5963 = vmatprep.subr.mxu0 %v3628_v59  ;;  %5828 = vmatprep.mubr.f32.mxu1 %v7479_v29 }
 0x2e0   : > { %5910 = vmatpush3.msra.mxu1 %v3432_v46  ;;  %5964 = vmatpush3.msra.mxu0 %v3628_v59  ;;  %v3814_v46 = vld [vmem:[#allocation9 + $0x398] sm:$0xff]  ;;  %v7636_v59 = vld [vmem:[#allocation9 + $0x420] sm:$0xff] }
 0x2e1   : > { %5829 = vmatmul.mubr.f32.gmra.mxu1 %v7482_v41  ;;  %5911 = vmatprep.subr.mxu1 %v3431_v3 }
 0x2e2   : > { %5965 = vmatprep.subr.mxu0 %v3627_v21  ;;  %5884 = vmatprep.mubr.f32.mxu0 %v7419_v24  ;;  %v3624_v24 = vld [vmem:[#allocation9 + $0x338] sm:$0xff] }
 0x2e3   : > { %5912 = vmatpush3.msra.mxu1 %v3431_v3  ;;  %5966 = vmatpush3.msra.mxu0 %v3627_v21  ;;  %v7644_v3 = vld [vmem:[#allocation3 + $0x109] sm:$0xff]  ;;  %v7648_v21 = vld [vmem:[#allocation3 + $0x111] sm:$0xff] }
 0x2e4   : > { %5885 = vmatmul.mubr.f32.gmra.mxu0 %v7423_v26  ;;  %5913 = vmatprep.subr.mxu1 %v3430_v12  ;;  %v3427_v26 = vld [vmem:[#allocation9 + $0x2a8] sm:$0xff] }
 0x2e5   : > { %5967 = vmatprep.subr.mxu0 %v3626_v5  ;;  %5831 = vmatprep.mubr.f32.mxu1 %v7491_v54 }
 0x2e6   : > { %5914 = vmatpush3.msra.mxu1 %v3430_v12  ;;  %5968 = vmatpush3.msra.mxu0 %v3626_v5  ;;  %v3812_v12 = vld [vmem:[#allocation9 + $0x388] sm:$0xff]  ;;  %v7652_v5 = vld [vmem:[#allocation9 + $0x410] sm:$0xff] }
 0x2e7   : > { %5832 = vmatmul.mubr.f32.gmra.mxu1 %v7494_v1  ;;  %5915 = vmatprep.subr.mxu1 %v3429_v32 }
 0x2e8   : > { %5969 = vmatprep.subr.mxu0 %v3625_v60  ;;  %5887 = vmatprep.mubr.f32.mxu0 %v7425_v44  ;;  %v3622_v44 = vld [vmem:[#allocation9 + $0x328] sm:$0xff] }
 0x2e9   : > { %5916 = vmatpush3.msra.mxu1 %v3429_v32  ;;  %5970 = vmatpush3.msra.mxu0 %v3625_v60  ;;  %v3614_v32 = vld [vmem:[#allocation3 + $0x127] sm:$0xff]  ;;  %v3615_v60 = vld [vmem:[#allocation3 + $0x12f] sm:$0xff] }
 0x2ea   : > { %5888 = vmatmul.mubr.f32.gmra.mxu0 %v7429_v38  ;;  %5917 = vmatprep.subr.mxu1 %v3428_v45  ;;  %v3425_v38 = vld [vmem:[#allocation9 + $0x298] sm:$0xff] }
 0x2eb   : > { %5971 = vmatprep.subr.mxu0 %v3624_v24  ;;  %5834 = vmatprep.mubr.f32.mxu1 %v7503_v15 }
 0x2ec   : > { %5918 = vmatpush3.msra.mxu1 %v3428_v45  ;;  %5972 = vmatpush3.msra.mxu0 %v3624_v24  ;;  %v3811_v45 = vld [vmem:[#allocation9 + $0x380] sm:$0xff]  ;;  %v7657_v24 = vld [vmem:[#allocation9 + $0x408] sm:$0xff] }
 0x2ed   : > { %5835 = vmatmul.mubr.f32.gmra.mxu1 %v7506_v55  ;;  %5919 = vmatprep.subr.mxu1 %v3427_v26 }
 0x2ee   : > { %5973 = vmatprep.subr.mxu0 %v3623_v56  ;;  %5890 = vmatprep.mubr.f32.mxu0 %v7431_v13  ;;  %v3620_v13 = vld [vmem:[#allocation9 + $0x318] sm:$0xff] }
 0x2ef   : > { %5920 = vmatpush3.msra.mxu1 %v3427_v26  ;;  %5974 = vmatpush3.msra.mxu0 %v3623_v56  ;;  %v3794_v26 = vld [vmem:[#allocation3 + $0x48] sm:$0xff]  ;;  %v3795_v56 = vld [vmem:[#allocation3 + $0x50] sm:$0xff] }
 0x2f0   : > { %5891 = vmatmul.mubr.f32.gmra.mxu0 %v7437_v28  ;;  %5921 = vmatprep.subr.mxu1 %v3426_v11  ;;  %v7558_v28 = vld [vmem:[#allocation3 + $0x10f] sm:$0xff] }
 0x2f1   : > { %5975 = vmatprep.subr.mxu0 %v3622_v44  ;;  %5837 = vmatprep.mubr.f32.mxu1 %v7515_v0 }
 0x2f2   : > { %5922 = vmatpush3.msra.mxu1 %v3426_v11  ;;  %5976 = vmatpush3.msra.mxu0 %v3622_v44  ;;  %v7661_v11 = vld [vmem:[#allocation9 + $0x400] sm:$0xff]  ;;  %v3796_v44 = vld [vmem:[#allocation3 + $0x68] sm:$0xff] }
 0x2f3   : > { %5838 = vmatmul.mubr.f32.gmra.mxu1 %v7518_v39  ;;  %5923 = vmatprep.subr.mxu1 %v3425_v38 }
 0x2f4   : > { %5977 = vmatprep.subr.mxu0 %v3621_v61  ;;  %5893 = vmatprep.mubr.f32.mxu0 %v7439_v4  ;;  %v7564_v4 = vld [vmem:[#allocation3 + $0x110] sm:$0xff] }
 0x2f5   : > { %5924 = vmatpush3.msra.mxu1 %v3425_v38  ;;  %5978 = vmatpush3.msra.mxu0 %v3621_v61  ;;  %v3797_v38 = vld [vmem:[#allocation3 + $0x70] sm:$0xff]  ;;  %v3798_v61 = vld [vmem:[#allocation3 + $0x88] sm:$0xff] }
 0x2f6   : > { %5894 = vmatmul.mubr.f32.gmra.mxu0 %v7446_v49  ;;  %5925 = vmatprep.subr.mxu1 %v3424_v30  ;;  %v3618_v49 = vld [vmem:[#allocation9 + $0x308] sm:$0xff] }
 0x2f7   : > { %5979 = vmatprep.subr.mxu0 %v3620_v13  ;;  %5840 = vmatprep.mubr.f32.mxu1 %v7555_v53 }
 0x2f8   : > { %5926 = vmatpush3.msra.mxu1 %v3424_v30  ;;  %5980 = vmatpush3.msra.mxu0 %v3620_v13  ;;  %v3799_v30 = vld [vmem:[#allocation3 + $0x90] sm:$0xff] }
 0x2f9   : > { %5841 = vmatmul.mubr.f32.gmra.mxu1 %v7558_v28  ;;  %5927 = vmatprep.subr.mxu1 %v3423_v63 }
 0x2fa   : > { %5981 = vmatprep.subr.mxu0 %v3619_v48  ;;  %5896 = vmatprep.mubr.f32.mxu0 %v7561_v9 }
 0x2fb   : > { %5928 = vmatpush3.msra.mxu1 %v3423_v63  ;;  %5982 = vmatpush3.msra.mxu0 %v3619_v48 }
 0x2fc   : > { %5897 = vmatmul.mubr.f32.gmra.mxu0 %v7564_v4  ;;  %5929 = vmatprep.subr.mxu1 %v3422_v8 }
 0x2fd   : > { %5983 = vmatprep.subr.mxu0 %v3618_v49  ;;  %5930 = vmatpush3.msra.mxu1 %v3422_v8 }
 0x2fe   : > { %5931 = vmatprep.mubr.f32.mxu1 %v7434_v37  ;;  %5984 = vmatpush3.msra.mxu0 %v3618_v49  ;;  %v7576_v37 = vld [vmem:[#allocation9 + $0x470] sm:$0xff] }
 0x2ff   : > { %5932 = vmatmul.mubr.f32.vlgmr.msra.gmra.mxu1 %v7443_v27  ;;  %5985 = vmatprep.subr.mxu0 %v3617_v52  ;;  %v3823_v27 = vld [vmem:[#allocation9 + $0x3e0] sm:$0xff] }
 0x300   : > { %6011 = vmatprep.subr.mxu1 %v3826_v31  ;;  %5986 = vmatpush3.msra.mxu0 %v3617_v52 }
 0x301   : > { %5987 = vmatprep.mubr.f32.mxu0 %v7457_v34  ;;  %6012 = vmatpush3.msra.mxu1 %v3826_v31  ;;  %v7582_v34 = vld [vmem:[#allocation9 + $0x468] sm:$0xff] }
 0x302   : > { %5988 = vmatmul.mubr.f32.vlgmr.msra.gmra.mxu0 %v7464_v6  ;;  %6013 = vmatprep.subr.mxu1 %v3825_v42  ;;  %v3822_v6 = vld [vmem:[#allocation9 + $0x3d8] sm:$0xff] }
 0x303   : > { %6067 = vmatprep.subr.mxu0 %v7570_v47  ;;  %5934 = vmatprep.mubr.f32.mxu1 %v7452_v36 }
 0x304   : > { %6014 = vmatpush3.msra.mxu1 %v3825_v42  ;;  %6068 = vmatpush3.msra.mxu0 %v7570_v47 }
 0x305   : > { %5935 = vmatmul.mubr.f32.gmra.mxu1 %v7461_v17  ;;  %6015 = vmatprep.subr.mxu1 %v3824_v20 }
 0x306   : > { %6069 = vmatprep.subr.mxu0 %v7576_v37  ;;  %5990 = vmatprep.mubr.f32.mxu0 %v7467_v43  ;;  %v3821_v43 = vld [vmem:[#allocation9 + $0x3d0] sm:$0xff] }
 0x307   : > { %6016 = vmatpush3.msra.mxu1 %v3824_v20  ;;  %6070 = vmatpush3.msra.mxu0 %v7576_v37 }
 0x308   : > { %5991 = vmatmul.mubr.f32.gmra.mxu0 %v7470_v57  ;;  %6017 = vmatprep.subr.mxu1 %v3823_v27  ;;  %v7594_v57 = vld [vmem:[#allocation9 + $0x458] sm:$0xff] }
 0x309   : > { %6071 = vmatprep.subr.mxu0 %v7582_v34  ;;  %5937 = vmatprep.mubr.f32.mxu1 %v7473_v58 }
 0x30a   : > { %6018 = vmatpush3.msra.mxu1 %v3823_v27  ;;  %6072 = vmatpush3.msra.mxu0 %v7582_v34 }
 0x30b   : > { %5938 = vmatmul.mubr.f32.gmra.mxu1 %v7476_v18  ;;  %6019 = vmatprep.subr.mxu1 %v3822_v6 }
 0x30c   : > { %6073 = vmatprep.subr.mxu0 %v7588_v14  ;;  %5993 = vmatprep.mubr.f32.mxu0 %v7479_v29  ;;  %v3819_v29 = vld [vmem:[#allocation9 + $0x3c0] sm:$0xff] }
 0x30d   : > { %6020 = vmatpush3.msra.mxu1 %v3822_v6  ;;  %6074 = vmatpush3.msra.mxu0 %v7588_v14 }
 0x30e   : > { %5994 = vmatmul.mubr.f32.gmra.mxu0 %v7482_v41  ;;  %6021 = vmatprep.subr.mxu1 %v3821_v43  ;;  %v7606_v41 = vld [vmem:[#allocation9 + $0x448] sm:$0xff] }
 0x30f   : > { %6075 = vmatprep.subr.mxu0 %v7594_v57  ;;  %5940 = vmatprep.mubr.f32.mxu1 %v7485_v62 }
 0x310   : > { %6022 = vmatpush3.msra.mxu1 %v3821_v43  ;;  %6076 = vmatpush3.msra.mxu0 %v7594_v57 }
 0x311   : > { %5941 = vmatmul.mubr.f32.gmra.mxu1 %v7488_v50  ;;  %6023 = vmatprep.subr.mxu1 %v3820_v51 }
 0x312   : > { %6077 = vmatprep.subr.mxu0 %v7600_v35  ;;  %5996 = vmatprep.mubr.f32.mxu0 %v7491_v54  ;;  %v3817_v54 = vld [vmem:[#allocation9 + $0x3b0] sm:$0xff] }
 0x313   : > { %6024 = vmatpush3.msra.mxu1 %v3820_v51  ;;  %6078 = vmatpush3.msra.mxu0 %v7600_v35 }
 0x314   : > { %5997 = vmatmul.mubr.f32.gmra.mxu0 %v7494_v1  ;;  %6025 = vmatprep.subr.mxu1 %v3819_v29  ;;  %v7618_v1 = vld [vmem:[#allocation9 + $0x438] sm:$0xff] }
 0x315   : > { %6079 = vmatprep.subr.mxu0 %v7606_v41  ;;  %5943 = vmatprep.mubr.f32.mxu1 %v7497_v33 }
 0x316   : > { %6026 = vmatpush3.msra.mxu1 %v3819_v29  ;;  %6080 = vmatpush3.msra.mxu0 %v7606_v41 }
 0x317   : > { %5944 = vmatmul.mubr.f32.gmra.mxu1 %v7500_v19  ;;  %6027 = vmatprep.subr.mxu1 %v3818_v10 }
 0x318   : > { %6081 = vmatprep.subr.mxu0 %v7612_v40  ;;  %5999 = vmatprep.mubr.f32.mxu0 %v7503_v15  ;;  %v3815_v15 = vld [vmem:[#allocation9 + $0x3a0] sm:$0xff] }
 0x319   : > { %6028 = vmatpush3.msra.mxu1 %v3818_v10  ;;  %6082 = vmatpush3.msra.mxu0 %v7612_v40 }
 0x31a   : > { %6000 = vmatmul.mubr.f32.gmra.mxu0 %v7506_v55  ;;  %6029 = vmatprep.subr.mxu1 %v3817_v54  ;;  %v7630_v55 = vld [vmem:[#allocation9 + $0x428] sm:$0xff] }
 0x31b   : > { %6083 = vmatprep.subr.mxu0 %v7618_v1  ;;  %5946 = vmatprep.mubr.f32.mxu1 %v7509_v16 }
 0x31c   : > { %6030 = vmatpush3.msra.mxu1 %v3817_v54  ;;  %6084 = vmatpush3.msra.mxu0 %v7618_v1 }
 0x31d   : > { %5947 = vmatmul.mubr.f32.gmra.mxu1 %v7512_v7  ;;  %6031 = vmatprep.subr.mxu1 %v3816_v22 }
 0x31e   : > { %6085 = vmatprep.subr.mxu0 %v7624_v25  ;;  %6002 = vmatprep.mubr.f32.mxu0 %v7515_v0  ;;  %v3813_v0 = vld [vmem:[#allocation9 + $0x390] sm:$0xff] }
 0x31f   : > { %6032 = vmatpush3.msra.mxu1 %v3816_v22  ;;  %6086 = vmatpush3.msra.mxu0 %v7624_v25 }
 0x320   : > { %6003 = vmatmul.mubr.f32.gmra.mxu0 %v7518_v39  ;;  %6033 = vmatprep.subr.mxu1 %v3815_v15  ;;  %v7642_v39 = vld [vmem:[#allocation9 + $0x418] sm:$0xff] }
 0x321   : > { %6087 = vmatprep.subr.mxu0 %v7630_v55  ;;  %5949 = vmatprep.mubr.f32.mxu1 %v7521_v23 }
 0x322   : > { %6034 = vmatpush3.msra.mxu1 %v3815_v15  ;;  %6088 = vmatpush3.msra.mxu0 %v7630_v55 }
 0x323   : > { %5950 = vmatmul.mubr.f32.gmra.mxu1 %v7524_v2  ;;  %6035 = vmatprep.subr.mxu1 %v3814_v46 }
 0x324   : > { %6089 = vmatprep.subr.mxu0 %v7636_v59  ;;  %6005 = vmatprep.mubr.f32.mxu0 %v7555_v53  ;;  %v4003_v53 = vld [vmem:[#allocation3 + $0x131] sm:$0xff] }
 0x325   : > { %6036 = vmatpush3.msra.mxu1 %v3814_v46  ;;  %6090 = vmatpush3.msra.mxu0 %v7636_v59 }
 0x326   : > { %6006 = vmatmul.mubr.f32.gmra.mxu0 %v7558_v28  ;;  %6037 = vmatprep.subr.mxu1 %v3813_v0 }
 0x327   : > { %6091 = vmatprep.subr.mxu0 %v7642_v39  ;;  %5952 = vmatprep.mubr.f32.mxu1 %v7644_v3 }
 0x328   : > { %6038 = vmatpush3.msra.mxu1 %v3813_v0  ;;  %6092 = vmatpush3.msra.mxu0 %v7642_v39 }
 0x329   : > { %5953 = vmatmul.mubr.f32.gmra.mxu1 %v7648_v21  ;;  %6039 = vmatprep.subr.mxu1 %v3812_v12 }
 0x32a   : > { %6093 = vmatprep.subr.mxu0 %v7652_v5  ;;  %6008 = vmatprep.mubr.f32.mxu0 %v3614_v32 }
 0x32b   : > { %6040 = vmatpush3.msra.mxu1 %v3812_v12  ;;  %6094 = vmatpush3.msra.mxu0 %v7652_v5 }
 0x32c   : > { %6009 = vmatmul.mubr.f32.gmra.mxu0 %v3615_v60  ;;  %6041 = vmatprep.subr.mxu1 %v3811_v45 }
 0x32d   : > { %6095 = vmatprep.subr.mxu0 %v7657_v24  ;;  %6042 = vmatpush3.msra.mxu1 %v3811_v45 }
 0x32e   : > { %6043 = vmatprep.mubr.f32.mxu1 %v3794_v26  ;;  %6096 = vmatpush3.msra.mxu0 %v7657_v24 }
 0x32f   : > { %6044 = vmatmul.mubr.f32.vlgmr.msra.gmra.mxu1 %v3795_v56  ;;  %6123 = vmatprep.subr.mxu1 %v7570_v47 }
 0x330   : > { %6097 = vmatprep.subr.mxu0 %v7661_v11  ;;  %6139 = vmatpush3.msra.mxu1 %v7570_v47 }
 0x331   : > { %6098 = vmatpush3.msra.mxu0 %v7661_v11  ;;  %6099 = vmatprep.mubr.f32.mxu0 %v7452_v36  ;;  %v3800_v36 = vld [vmem:[#allocation3 + $0xa8] sm:$0xff] }
 0x332   : > { %6124 = vmatprep.subr.mxu1 %v7576_v37  ;;  %6100 = vmatmul.mubr.f32.vlgmr.msra.gmra.mxu0 %v7461_v17  ;;  %v3801_v17 = vld [vmem:[#allocation3 + $0xb0] sm:$0xff] }
 0x333   : > { %6046 = vmatprep.mubr.f32.mxu1 %v3796_v44  ;;  %6140 = vmatpush3.msra.mxu1 %v7576_v37 }
 0x334   : > { %6047 = vmatmul.mubr.f32.gmra.mxu1 %v3797_v38  ;;  %6125 = vmatprep.subr.mxu1 %v7582_v34 }
 0x335   : > { %6141 = vmatpush3.msra.mxu1 %v7582_v34  ;;  %6102 = vmatprep.mubr.f32.mxu0 %v7473_v58  ;;  %v3802_v58 = vld [vmem:[#allocation3 + $0xc8] sm:$0xff] }
 0x336   : > { %6126 = vmatprep.subr.mxu1 %v7588_v14  ;;  %6103 = vmatmul.mubr.f32.gmra.mxu0 %v7476_v18  ;;  %v3803_v18 = vld [vmem:[#allocation3 + $0xd0] sm:$0xff] }
 0x337   : > { %6049 = vmatprep.mubr.f32.mxu1 %v3798_v61  ;;  %6142 = vmatpush3.msra.mxu1 %v7588_v14 }
 0x338   : > { %6050 = vmatmul.mubr.f32.gmra.mxu1 %v3799_v30  ;;  %6127 = vmatprep.subr.mxu1 %v7594_v57 }
 0x339   : > { %6143 = vmatpush3.msra.mxu1 %v7594_v57  ;;  %6105 = vmatprep.mubr.f32.mxu0 %v7485_v62  ;;  %v3804_v62 = vld [vmem:[#allocation3 + $0xe8] sm:$0xff] }
 0x33a   : > { %6128 = vmatprep.subr.mxu1 %v7600_v35  ;;  %6106 = vmatmul.mubr.f32.gmra.mxu0 %v7488_v50  ;;  %v3805_v50 = vld [vmem:[#allocation3 + $0xf0] sm:$0xff] }
 0x33b   : > { %6052 = vmatprep.mubr.f32.mxu1 %v3800_v36  ;;  %6144 = vmatpush3.msra.mxu1 %v7600_v35 }
 0x33c   : > { %6053 = vmatmul.mubr.f32.gmra.mxu1 %v3801_v17  ;;  %6129 = vmatprep.subr.mxu1 %v7606_v41 }
 0x33d   : > { %6145 = vmatpush3.msra.mxu1 %v7606_v41  ;;  %6108 = vmatprep.mubr.f32.mxu0 %v7497_v33 }
 0x33e   : > { %6130 = vmatprep.subr.mxu1 %v7612_v40  ;;  %6109 = vmatmul.mubr.f32.gmra.mxu0 %v7500_v19 }
 0x33f   : > { %6055 = vmatprep.mubr.f32.mxu1 %v3802_v58  ;;  %6146 = vmatpush3.msra.mxu1 %v7612_v40 }
 0x340   : > { %6056 = vmatmul.mubr.f32.gmra.mxu1 %v3803_v18  ;;  %6131 = vmatprep.subr.mxu1 %v7618_v1 }
 0x341   : > { %6147 = vmatpush3.msra.mxu1 %v7618_v1  ;;  %6111 = vmatprep.mubr.f32.mxu0 %v7509_v16  ;;  %v3808_v16 = vld [vmem:[#allocation3 + $0x128] sm:$0xff] }
 0x342   : > { %6132 = vmatprep.subr.mxu1 %v7624_v25  ;;  %6112 = vmatmul.mubr.f32.gmra.mxu0 %v7512_v7  ;;  %v3809_v7 = vld [vmem:[#allocation3 + $0x130] sm:$0xff] }
 0x343   : > { %6058 = vmatprep.mubr.f32.mxu1 %v3804_v62  ;;  %6148 = vmatpush3.msra.mxu1 %v7624_v25 }
 0x344   : > { %6059 = vmatmul.mubr.f32.gmra.mxu1 %v3805_v50  ;;  %6133 = vmatprep.subr.mxu1 %v7630_v55 }
 0x345   : > { %6149 = vmatpush3.msra.mxu1 %v7630_v55  ;;  %6114 = vmatprep.mubr.f32.mxu0 %v7521_v23 }
 0x346   : > { %6134 = vmatprep.subr.mxu1 %v7636_v59  ;;  %6115 = vmatmul.mubr.f32.gmra.mxu0 %v7524_v2  ;;  %v4002_v2 = vld [vmem:[#allocation3 + $0x129] sm:$0xff] }
 0x347   : > { %v5653_v33 = vpop.f32.mrf.mxu1  ;;  %6061 = vmatprep.mubr.f32.mxu1 %v7561_v9  ;;  %6150 = vmatpush3.msra.mxu1 %v7636_v59 }
 0x348   : > { %6062 = vmatmul.mubr.f32.gmra.mxu1 %v7564_v4  ;;  %6135 = vmatprep.subr.mxu1 %v7642_v39 }
 0x349   : > { %v2598_v19 = vpop.f32.mrf.mxu1  ;;  %6151 = vmatpush3.msra.mxu1 %v7642_v39  ;;  %6117 = vmatprep.mubr.f32.mxu0 %v7644_v3 }
 0x34a   : > { %6136 = vmatprep.subr.mxu1 %v7652_v5  ;;  %6118 = vmatmul.mubr.f32.gmra.mxu0 %v7648_v21 }
 0x34b   : > { %v5656_v23 = vpop.f32.mrf.mxu1  ;;  %6064 = vmatprep.mubr.f32.mxu1 %v3808_v16  ;;  %6152 = vmatpush3.msra.mxu1 %v7652_v5 }
 0x34c   : > { %6065 = vmatmul.mubr.f32.gmra.mxu1 %v3809_v7  ;;  %6137 = vmatprep.subr.mxu1 %v7657_v24 }
 0x34d   : > { %v2608_v13 = vpop.f32.mrf.mxu1  ;;  %6153 = vmatpush3.msra.mxu1 %v7657_v24  ;;  %6120 = vmatprep.mubr.f32.mxu1 %v4002_v2 }
 0x34e   : > { %6138 = vmatprep.subr.mxu1 %v7661_v11  ;;  %v5765_v31 = vpop.f32.mrf.mxu0 }
 0x34f   : > { %v5659_v28 = vpop.f32.mrf.mxu1  ;;  %6154 = vmatpush3.msra.mxu1 %v7661_v11 }
 0x350   : > { %6121 = vmatmul.mubr.f32.vlgmr.msra.gmra.mxu1 %v4003_v53  ;;  %v2921_v20 = vpop.f32.mrf.mxu0 }
 0x351   : > { %v2618_v63 = vpop.f32.mrf.mxu1 }
 0x353   : > { %v5662_v48 = vpop.f32.mrf.mxu1 }
 0x355   : > { %v2628_v9 = vpop.f32.mrf.mxu1 }
 0x357   : > { %v5665_v4 = vpop.f32.mrf.mxu1 }
 0x359   : > { %v2638_v8 = vpop.f32.mrf.mxu1 }
 0x35a   : > { %v5768_v34 = vpop.f32.mrf.mxu0 }
 0x35b   : > { %v5668_v49 = vpop.f32.mrf.mxu1 }
 0x35c   : > { %v2931_v35 = vpop.f32.mrf.mxu0 }
 0x35d   : > { %v2648_v52 = vpop.f32.mrf.mxu1 }
 0x35f   : > { %v5671_v42 = vpop.f32.mrf.mxu1 }
 0x361   : > { %v2658_v47 = vpop.f32.mrf.mxu1 }
 0x363   : > { %v5674_v37 = vpop.f32.mrf.mxu1 }
 0x365   : > { %v2668_v27 = vpop.f32.mrf.mxu1 }
 0x366   : > { %v5771_v22 = vpop.f32.mrf.mxu0 }
 0x367   : > { %v5709_v6 = vpop.f32.mrf.mxu1 }
 0x368   : > { %v2749_v14 = vadd.f32 %v5709_v6, %v5653_v33  ;;  %v2941_v59 = vpop.f32.mrf.mxu0 }
 0x369   : > { %v2743_v43 = vpop.f32.mrf.mxu1 }
 0x36a   : > { %v2744_v57 = vadd.f32 %v2743_v43, %v2598_v19  ;;  %v7714_v51 = vadd.f32 %v5765_v31, %v2749_v14 }
 0x36b   : > { %v5712_v29 = vpop.f32.mrf.mxu1 }
 0x36c   : > { %v2759_v41 = vadd.f32 %v5712_v29, %v5656_v23  ;;  %v7716_v10 = vadd.f32 %v2921_v20, %v2744_v57 }
 0x36d   : > { %v2753_v40 = vpop.f32.mrf.mxu1 }
 0x36e   : > { %v2754_v54 = vadd.f32 %v2753_v40, %v2608_v13  ;;  %v7718_v1 = vadd.f32 %v5768_v34, %v2759_v41 }
 0x36f   : > { %v5715_v25 = vpop.f32.mrf.mxu1 }
 0x370   : > { %v2769_v15 = vadd.f32 %v5715_v25, %v5659_v28  ;;  %v7720_v55 = vadd.f32 %v2931_v35, %v2754_v54 }
 0x371   : > { %v2763_v46 = vpop.f32.mrf.mxu1 }
 0x372   : > { %v2764_v0 = vadd.f32 %v2763_v46, %v2618_v63  ;;  %v7722_v39 = vadd.f32 %v5771_v22, %v2769_v15  ;;  %v5774_v60 = vpop.f32.mrf.mxu0 }
 0x373   : > { %v5718_v3 = vpop.f32.mrf.mxu1 }
 0x374   : > { %v2779_v21 = vadd.f32 %v5718_v3, %v5662_v48  ;;  %v7724_v12 = vadd.f32 %v2941_v59, %v2764_v0  ;;  %v2951_v24 = vpop.f32.mrf.mxu0 }
 0x375   : > { %v2773_v5 = vpop.f32.mrf.mxu1 }
 0x376   : > { %v2774_v32 = vadd.f32 %v2773_v5, %v2628_v9  ;;  %v7726_v45 = vadd.f32 %v5774_v60, %v2779_v21 }
 0x377   : > { %v5721_v26 = vpop.f32.mrf.mxu1 }
 0x378   : > { %v7728_v56 = vadd.f32 %v2951_v24, %v2774_v32  ;;  %v2789_v11 = vadd.f32 %v5721_v26, %v5665_v4 }
 0x379   : > { %v2783_v44 = vpop.f32.mrf.mxu1 }
 0x37a   : > { %v2784_v38 = vadd.f32 %v2783_v44, %v2638_v8  ;;  %v5777_v61 = vpop.f32.mrf.mxu0 }
 0x37b   : > { %v7730_v30 = vadd.f32 %v5777_v61, %v2789_v11 }
 0x37c   : > { %v2961_v36 = vpop.f32.mrf.mxu0 }
 0x37d   : > { %v5724_v17 = vpop.f32.mrf.mxu1  ;;  %v7732_v58 = vadd.f32 %v2961_v36, %v2784_v38 }
 0x37e   : > { %v2799_v18 = vadd.f32 %v5724_v17, %v5668_v49 }
 0x37f   : > { %v2793_v62 = vpop.f32.mrf.mxu1 }
 0x380   : > { %v2794_v50 = vadd.f32 %v2793_v62, %v2648_v52  ;;  %v5780_v33 = vpop.f32.mrf.mxu0 }
 0x381   : > { %v7734_v19 = vadd.f32 %v5780_v33, %v2799_v18 }
 0x382   : > { %v2971_v16 = vpop.f32.mrf.mxu0 }
 0x383   : > { %v5727_v7 = vpop.f32.mrf.mxu1  ;;  %v7736_v23 = vadd.f32 %v2971_v16, %v2794_v50 }
 0x384   : > { %v2809_v2 = vadd.f32 %v5727_v7, %v5671_v42 }
 0x385   : > { %v2803_v13 = vpop.f32.mrf.mxu1 }
 0x386   : > { %v2804_v53 = vadd.f32 %v2803_v13, %v2658_v47  ;;  %v5783_v28 = vpop.f32.mrf.mxu0 }
 0x387   : > { %v7738_v63 = vadd.f32 %v5783_v28, %v2809_v2 }
 0x388   : > { %v2981_v48 = vpop.f32.mrf.mxu0 }
 0x389   : > { %v5730_v9 = vpop.f32.mrf.mxu1  ;;  %v7740_v4 = vadd.f32 %v2981_v48, %v2804_v53 }
 0x38a   : > { %v2819_v8 = vadd.f32 %v5730_v9, %v5674_v37 }
 0x38b   : > { %8100 = vst [vmem:[#allocation20_spill] sm:$0xff] %v7740_v4  ;;  %v2813_v49 = vpop.f32.mrf.mxu1 }
 0x38c   : > { %v2814_v52 = vadd.f32 %v2813_v49, %v2668_v27  ;;  %v5786_v31 = vpop.f32.mrf.mxu0 }
 0x38d   : > { %v7742_v20 = vadd.f32 %v5786_v31, %v2819_v8 }
 0x38e   : > { %v2991_v34 = vpop.f32.mrf.mxu0 }
 0x38f   : > { %8101 = vst [vmem:[#allocation21_spill] sm:$0xff] %v7742_v20  ;;  %v7744_v6 = vadd.f32 %v2991_v34, %v2814_v52  ;;  %v5821_v14 = vpop.f32.mrf.mxu1 }
 0x391   : > { %8102 = vst [vmem:[#allocation30_spill] sm:$0xff] %v7744_v6  ;;  %v3116_v42 = vpop.f32.mrf.mxu1 }
 0x392   : > { %v5877_v43 = vpop.f32.mrf.mxu0 }
 0x394   : > { %v3310_v47 = vpop.f32.mrf.mxu0 }
 0x395   : > { %v5824_v57 = vpop.f32.mrf.mxu1 }
 0x397   : > { %v3126_v35 = vpop.f32.mrf.mxu1 }
 0x398   : > { %v7746_v29 = vpop.f32.mrf.mxu0 }
 0x39a   : > { %v7748_v41 = vpop.f32.mrf.mxu0 }
 0x39b   : > { %v5827_v40 = vpop.f32.mrf.mxu1 }
 0x39d   : > { %v7750_v37 = vpop.f32.mrf.mxu1 }
 0x39e   : > { %v7752_v27 = vpop.f32.mrf.mxu0 }
 0x3a0   : > { %v7754_v54 = vpop.f32.mrf.mxu0 }
 0x3a1   : > { %v7756_v22 = vpop.f32.mrf.mxu1 }
 0x3a3   : > { %v7758_v25 = vpop.f32.mrf.mxu1 }
 0x3a4   : > { %v7760_v15 = vpop.f32.mrf.mxu0 }
 0x3a6   : > { %v7762_v46 = vpop.f32.mrf.mxu0 }
 0x3a7   : > { %v7764_v59 = vpop.f32.mrf.mxu1 }
 0x3a9   : > { %v7766_v0 = vpop.f32.mrf.mxu1 }
 0x3aa   : > { %v7768_v3 = vpop.f32.mrf.mxu0 }
 0x3ac   : > { %v7770_v21 = vpop.f32.mrf.mxu0 }
 0x3ad   : > { %v7772_v5 = vpop.f32.mrf.mxu1 }
 0x3af   : > { %v7774_v32 = vpop.f32.mrf.mxu1 }
 0x3b0   : > { %v7776_v60 = vpop.f32.mrf.mxu0 }
 0x3b2   : > { %v7778_v24 = vpop.f32.mrf.mxu0 }
 0x3b3   : > { %v7780_v26 = vpop.f32.mrf.mxu1 }
 0x3b5   : > { %v7782_v11 = vpop.f32.mrf.mxu1 }
 0x3b6   : > { %8103 = vst [vmem:[#allocation22_spill] sm:$0xff] %v7782_v11  ;;  %v7784_v44 = vpop.f32.mrf.mxu0 }
 0x3b7   : > { %8104 = vst [vmem:[#allocation24_spill] sm:$0xff] %v7784_v44 }
 0x3b8   : > { %v7786_v38 = vpop.f32.mrf.mxu0 }
 0x3b9   : > { %8105 = vst [vmem:[#allocation31_spill] sm:$0xff] %v7786_v38  ;;  %v7788_v61 = vpop.f32.mrf.mxu1 }
 0x3ba   : > { %8106 = vst [vmem:[#allocation23_spill] sm:$0xff] %v7788_v61 }
 0x3bb   : > { %v7790_v36 = vpop.f32.mrf.mxu1 }
 0x3bc   : > { %8107 = vst [vmem:[#allocation25_spill] sm:$0xff] %v7790_v36  ;;  %v7792_v17 = vpop.f32.mrf.mxu0 }
 0x3bd   : > { %8108 = vst [vmem:[#allocation32_spill] sm:$0xff] %v7792_v17 }
 0x3be   : > { %v7794_v18 = vpop.f32.mrf.mxu0 }
 0x3bf   : > { %8109 = vst [vmem:[#allocation26_spill] sm:$0xff] %v7794_v18  ;;  %v5933_v62 = vpop.f32.mrf.mxu1 }
 0x3c1   : > { %v3504_v50 = vpop.f32.mrf.mxu1 }
 0x3c2   : > { %v5989_v33 = vpop.f32.mrf.mxu0 }
 0x3c4   : > { %v3699_v16 = vpop.f32.mrf.mxu0 }
 0x3c5   : > { %v5936_v7 = vpop.f32.mrf.mxu1 }
 0x3c7   : > { %v3514_v2 = vpop.f32.mrf.mxu1 }
 0x3c8   : > { %v5992_v13 = vpop.f32.mrf.mxu0 }
 0x3ca   : > { %v7796_v53 = vpop.f32.mrf.mxu0 }
 0x3cb   : > { %v5939_v28 = vpop.f32.mrf.mxu1 }
 0x3cd   : > { %v3524_v48 = vpop.f32.mrf.mxu1 }
 0x3ce   : > { %v7798_v9 = vpop.f32.mrf.mxu0 }
 0x3d0   : > { %v7800_v8 = vpop.f32.mrf.mxu0 }
 0x3d1   : > { %v7802_v49 = vpop.f32.mrf.mxu1 }
 0x3d3   : > { %v7804_v52 = vpop.f32.mrf.mxu1 }
 0x3d4   : > { %v7806_v31 = vpop.f32.mrf.mxu0 }
 0x3d5   : > { %8110 = vst [vmem:[#allocation28_spill] sm:$0xff] %v7806_v31 }
 0x3d6   : > { %v7808_v34 = vpop.f32.mrf.mxu0 }
 0x3d7   : > { %8111 = vst [vmem:[#allocation33_spill] sm:$0xff] %v7808_v34  ;;  %v7810_v18 = vpop.f32.mrf.mxu1  ;;  %v3196_v34 = vadd.f32 %v5821_v14, %v7714_v51  ;;  %v3200_v51 = vadd.f32 %v5827_v40, %v7722_v39 }
 0x3d8   : > { %8112 = vst [vmem:[#allocation27_spill] sm:$0xff] %v7810_v18 }
 0x3d9   : > { %v7812_v17 = vpop.f32.mrf.mxu1 }
 0x3da   : > { %8113 = vst [vmem:[#allocation29_spill] sm:$0xff] %v7812_v17  ;;  %v7814_v36 = vpop.f32.mrf.mxu0  ;;  %v3195_v17 = vadd.f32 %v3116_v42, %v7716_v10 }
 0x3db   : > { %8114 = vst [vmem:[#allocation34_spill] sm:$0xff] %v7814_v36 }
 0x3dc   : > { %v7816_v6 = vpop.f32.mrf.mxu0 }
 0x3dd   : > { %8115 = vst [vmem:[#allocation35_spill] sm:$0xff] %v7816_v6  ;;  %v7818_v61 = vpop.f32.mrf.mxu1  ;;  %v3390_v6 = vadd.f32 %v5877_v43, %v3196_v34  ;;  %v3199_v43 = vadd.f32 %v7750_v37, %v7724_v12 }
 0x3de   : > { %8116 = vst [vmem:[#allocation36_spill] sm:$0xff] %v7818_v61 }
 0x3df   : > { %v7820_v20 = vpop.f32.mrf.mxu1  ;;  %v3393_v12 = vadd.f32 %v7754_v54, %v3199_v43 }
 0x3e0   : > { %8117 = vst [vmem:[#allocation37_spill] sm:$0xff] %v7820_v20  ;;  %v7822_v38 = vpop.f32.mrf.mxu0  ;;  %v3198_v20 = vadd.f32 %v5824_v57, %v7718_v1 }
 0x3e1   : > { %8118 = vst [vmem:[#allocation38_spill] sm:$0xff] %v7822_v38  ;;  %v3389_v38 = vadd.f32 %v3310_v47, %v3195_v17 }
 0x3e2   : > { %v7824_v44 = vpop.f32.mrf.mxu0  ;;  %v3392_v42 = vadd.f32 %v7746_v29, %v3198_v20  ;;  %v3201_v20 = vadd.f32 %v7758_v25, %v7728_v56  ;;  %v7868_v56 = vld [vmem:[%s8039_s4] ss:$0 sm:$0xff] }
 0x3e3   : > { %8119 = vst [vmem:[#allocation39_spill] sm:$0xff] %v7824_v44  ;;  %v7826_v11 = vpop.f32.mrf.mxu1  ;;  %v3584_v44 = vadd.f32 %v5933_v62, %v3390_v6  ;;  %v3583_v14 = vadd.f32 %v3504_v50, %v3389_v38 }
 0x3e4   : > { %8120 = vst [vmem:[#allocation40_spill] sm:$0xff] %v7826_v11  ;;  %v3197_v11 = vadd.f32 %v3126_v35, %v7720_v55  ;;  %v3202_v55 = vadd.f32 %v7756_v22, %v7726_v45  ;;  %v3586_v47 = vadd.f32 %v5936_v7, %v3392_v42  ;;  %v3394_v35 = vadd.f32 %v7752_v27, %v3200_v51 }
 0x3e5   : > { %v7829_v4 = vpop.f32.mrf.mxu1  ;;  %v3779_v1 = vadd.f32 %v5989_v33, %v3584_v44  ;;  %v3778_v29 = vadd.f32 %v3699_v16, %v3583_v14  ;;  %v3203_v45 = vadd.f32 %v7766_v0, %v7732_v58  ;;  %v3395_v17 = vadd.f32 %v7762_v46, %v3201_v20  ;;  %v4186_v0 = vld [vmem:[%s7859_s17 + $0x8] sm:$0xff] }
 0x3e6   : > { %v7832_v18 = vpop.f32.mrf.mxu0  ;;  %v3391_v6 = vadd.f32 %v7748_v41, %v3197_v11  ;;  %v3204_v41 = vadd.f32 %v7764_v59, %v7730_v30  ;;  %v3588_v22 = vadd.f32 %v5939_v28, %v3394_v35  ;;  %v3396_v54 = vadd.f32 %v7760_v15, %v3202_v55 }
 0x3e7   : > { %v3781_v25 = vadd.f32 %v5992_v13, %v3586_v47  ;;  %v3206_v30 = vadd.f32 %v7772_v5, %v7734_v19  ;;  %v3205_v58 = vadd.f32 %v7774_v32, %v7736_v23  ;;  %v3587_v59 = vadd.f32 %v3524_v48, %v3393_v12  ;;  %v4185_v23 = vld [vmem:[%s7859_s17] sm:$0xff]  ;;  %v4187_v12 = vld [vmem:[%s7859_s17 + $0x10] sm:$0xff] }
 0x3e8   : > { %v7834_v36 = vpop.f32.mrf.mxu0  ;;  %v3585_v37 = vadd.f32 %v3514_v2, %v3391_v6  ;;  %v3398_v2 = vadd.f32 %v7768_v3, %v3204_v41  ;;  %v3397_v46 = vadd.f32 %v7770_v21, %v3203_v45  ;;  %v3783_v19 = vadd.f32 %v7798_v9, %v3588_v22  ;;  %v4188_v9 = vld [vmem:[%s7859_s17 + $0x18] sm:$0xff]  ;;  %v8123_v41 = vld [vmem:[#allocation20_spill] sm:$0xff]  ;;  %v8124_v45 = vld [vmem:[#allocation22_spill] sm:$0xff] }
 0x3e9   : > { %v7837_v61 = vpop.f32.mrf.mxu1  ;;  %v3590_v5 = vadd.f32 %v7802_v49, %v3396_v54  ;;  %v3400_v51 = vadd.f32 %v7776_v60, %v3206_v30  ;;  %v3399_v14 = vadd.f32 %v7778_v24, %v3205_v58  ;;  %v3782_v3 = vadd.f32 %v7800_v8, %v3587_v59  ;;  %v8121_v60 = vld [vmem:[#allocation28_spill] sm:$0xff] }
 0x3ea   : > { %v3780_v33 = vadd.f32 %v7796_v53, %v3585_v37  ;;  %v3589_v21 = vadd.f32 %v7804_v52, %v3395_v17  ;;  %v3208_v47 = vadd.f32 %v7780_v26, %v7738_v63  ;;  %v3207_v22 = vadd.f32 %v8124_v45, %v8123_v41  ;;  %v8126_v26 = vld [vmem:[#allocation29_spill] sm:$0xff] }
 0x3eb   : > { %v7840_v31 = vpop.f32.mrf.mxu1  ;;  %v3785_v24 = vadd.f32 %v8121_v60, %v3590_v5  ;;  %v8133_v60 = vld [vmem:[#allocation21_spill] sm:$0xff] }
 0x3ec   : > { %v7843_v10 = vpop.f32.mrf.mxu0 }
 0x3ee   : > { %v7848_v57 = vpop.f32.mrf.mxu0 }
 0x3ef   : > { %v6045_v39 = vpop.f32.mrf.mxu1 }
 0x3f0   : > { %v3973_v40 = vadd.f32 %v6045_v39, %v3779_v1  ;;  %v8122_v39 = vld [vmem:[#allocation27_spill] sm:$0xff] }
 0x3f1   : > { %v3893_v44 = vpop.f32.mrf.mxu1  ;;  %v3592_v35 = vadd.f32 %v8122_v39, %v3398_v2 }
 0x3f2   : > { %v3972_v27 = vadd.f32 %v3893_v44, %v3778_v29  ;;  %v6101_v11 = vpop.f32.mrf.mxu0 }
 0x3f3   : > { %v4167_v38 = vadd.f32 %v6101_v11, %v3973_v40  ;;  %v3591_v11 = vadd.f32 %v8126_v26, %v3397_v46  ;;  %v4189_v46 = vld [vmem:[%s7859_s17 + $0x20] sm:$0xff]  ;;  %v8139_v26 = vld [vmem:[#allocation39_spill] sm:$0xff] }
 0x3f4   : > { %v6048_v62 = vpop.f32.mrf.mxu1  ;;  %v4087_v50 = vpop.f32.mrf.mxu0 }
 0x3f5   : > { %v4209_v16 = vadd.f32 %v7868_v56, %v4167_v38  ;;  %v3975_v15 = vadd.f32 %v6048_v62, %v3781_v25  ;;  %v4166_v7 = vadd.f32 %v4087_v50, %v3972_v27  ;;  %v8125_v27 = vld [vmem:[#allocation33_spill] sm:$0xff]  ;;  %v8127_v62 = vld [vmem:[#allocation24_spill] sm:$0xff] }
 0x3f6   : > { %v3903_v32 = vpop.f32.mrf.mxu1  ;;  %v6104_v13 = vpop.f32.mrf.mxu0  ;;  %v3784_v63 = vadd.f32 %v8125_v27, %v3589_v21  ;;  %v4190_v25 = vld [vmem:[%s7859_s17 + $0x28] sm:$0xff]  ;;  %v3402_v50 = vadd.f32 %v8127_v62, %v3208_v47 }
 0x3f7   : > { %v4225_v28 = vadd.f32 %v4209_v16, %v4186_v0  ;;  %v4208_v48 = vadd.f32 %v7868_v56, %v4166_v7  ;;  %v3974_v53 = vadd.f32 %v3903_v32, %v3780_v33  ;;  %v4169_v34 = vadd.f32 %v6104_v13, %v3975_v15  ;;  %v8128_v33 = vld [vmem:[#allocation34_spill] sm:$0xff]  ;;  %v8129_v15 = vld [vmem:[#allocation36_spill] sm:$0xff]  ;;  %v8132_v21 = vld [vmem:[#allocation37_spill] sm:$0xff] }
 0x3f8   : > { %v6051_v49 = vpop.f32.mrf.mxu1  ;;  %v4097_v42 = vpop.f32.mrf.mxu0  ;;  %v3787_v16 = vadd.f32 %v8128_v33, %v3592_v35  ;;  %v3594_v7 = vadd.f32 %v8129_v15, %v3400_v51  ;;  %v4192_v51 = vld [vmem:[%s7859_s17 + $0x38] sm:$0xff]  ;;  %v8135_v35 = vld [vmem:[#allocation38_spill] sm:$0xff]  ;;  %v8138_v27 = vld [vmem:[#allocation25_spill] sm:$0xff] }
 0x3f9   : > { %v4241_v43 = vmax.f32 %v4225_v28, 0.0  ;;  %v4224_v1 = vadd.f32 %v4208_v48, %v4185_v23  ;;  %v4211_v6 = vadd.f32 %v7868_v56, %v4169_v34  ;;  %v3977_v55 = vadd.f32 %v6051_v49, %v3783_v19  ;;  %v8130_v48 = vld [vmem:[#allocation31_spill] sm:$0xff] }
 0x3fa   : > { %v4168_v8 = vadd.f32 %v4097_v42, %v3974_v53  ;;  %v3913_v52 = vpop.f32.mrf.mxu1  ;;  %v6107_v20 = vpop.f32.mrf.mxu0  ;;  %v3401_v53 = vadd.f32 %v8130_v48, %v3207_v22  ;;  %v8131_v34 = vld [vmem:[#allocation35_spill] sm:$0xff]  ;;  %v8137_v22 = vld [vmem:[#allocation30_spill] sm:$0xff] }
 0x3fb   : > { %4257 = vst [vmem:[%s6741_s6 + $0x8] sm:$0xff] %v4241_v43  ;;  %v4240_v29 = vmax.f32 %v4224_v1, 0.0  ;;  %v4227_v40 = vadd.f32 %v4211_v6, %v4188_v9  ;;  %v3976_v37 = vadd.f32 %v3913_v52, %v3782_v3  ;;  %v4171_v44 = vadd.f32 %v6107_v20, %v3977_v55  ;;  %v8136_v52 = vld [vmem:[#allocation40_spill] sm:$0xff] }
 0x3fc   : > { %v4210_v54 = vadd.f32 %v7868_v56, %v4168_v8  ;;  %v6054_v38 = vpop.f32.mrf.mxu1  ;;  %v4107_v17 = vpop.f32.mrf.mxu0  ;;  %v3786_v3 = vadd.f32 %v8131_v34, %v3591_v11  ;;  %v3593_v9 = vadd.f32 %v8132_v21, %v3399_v14  ;;  %v3789_v8 = vadd.f32 %v8135_v35, %v3594_v7  ;;  %v4193_v7 = vld [vmem:[%s7859_s17 + $0x40] sm:$0xff] }
 0x3fd   : > { %4256 = vst [vmem:[%s6741_s6] sm:$0xff] %v4240_v29  ;;  %v4243_v30 = vmax.f32 %v4227_v40, 0.0  ;;  %v4213_v58 = vadd.f32 %v7868_v56, %v4171_v44  ;;  %v3979_v59 = vadd.f32 %v6054_v38, %v3785_v24  ;;  %v4170_v0 = vadd.f32 %v4107_v17, %v3976_v37  ;;  %v8134_v24 = vld [vmem:[#allocation23_spill] sm:$0xff]  ;;  %v4191_v44 = vld [vmem:[%s7859_s17 + $0x30] sm:$0xff]  ;;  %v4194_v38 = vld [vmem:[%s7859_s17 + $0x48] sm:$0xff] }
 0x3fe   : > { %v4226_v2 = vadd.f32 %v4210_v54, %v4187_v12  ;;  %v3923_v19 = vpop.f32.mrf.mxu1  ;;  %v6110_v5 = vpop.f32.mrf.mxu0  ;;  %v3210_v39 = vadd.f32 %v8134_v24, %v8133_v60  ;;  %v3596_v20 = vadd.f32 %v8136_v52, %v3402_v50  ;;  %v3788_v11 = vadd.f32 %v8139_v26, %v3593_v9  ;;  %v8140_v50 = vld [vmem:[#allocation32_spill] sm:$0xff] }
 0x3ff   : > { %4259 = vst [vmem:[%s6741_s6 + $0x18] sm:$0xff] %v4243_v30  ;;  %v4229_v23 = vadd.f32 %v4213_v58, %v4190_v25  ;;  %v4212_v32 = vadd.f32 %v7868_v56, %v4170_v0  ;;  %v3978_v13 = vadd.f32 %v3923_v19, %v3784_v63  ;;  %v4173_v28 = vadd.f32 %v6110_v5, %v3979_v59 }
 0x400   : > { %v4242_v49 = vmax.f32 %v4226_v2, 0.0  ;;  %v6057_v42 = vpop.f32.mrf.mxu1  ;;  %v4117_v43 = vpop.f32.mrf.mxu0  ;;  %v3209_v63 = vadd.f32 %v8138_v27, %v8137_v22  ;;  %v3595_v54 = vadd.f32 %v7829_v4, %v3401_v53  ;;  %v3404_v33 = vadd.f32 %v8140_v50, %v3210_v39  ;;  %v4198_v39 = vld [vmem:[%s7859_s17 + $0x68] sm:$0xff] }
 0x401   : > { %v4245_v1 = vmax.f32 %v4229_v23, 0.0  ;;  %v4228_v6 = vadd.f32 %v4212_v32, %v4189_v46  ;;  %v4215_v55 = vadd.f32 %v7868_v56, %v4173_v28  ;;  %v3981_v47 = vadd.f32 %v6057_v42, %v3787_v16  ;;  %v8141_v32 = vld [vmem:[#allocation26_spill] sm:$0xff] }
 0x402   : > { %4258 = vst [vmem:[%s6741_s6 + $0x10] sm:$0xff] %v4242_v49  ;;  %v4172_v14 = vadd.f32 %v4117_v43, %v3978_v13  ;;  %v3933_v29 = vpop.f32.mrf.mxu1  ;;  %v6113_v40 = vpop.f32.mrf.mxu0  ;;  %v3791_v16 = vadd.f32 %v7832_v18, %v3596_v20  ;;  %v3403_v13 = vadd.f32 %v8141_v32, %v3209_v63  ;;  %v3598_v28 = vadd.f32 %v7837_v61, %v3404_v33  ;;  %v4196_v18 = vld [vmem:[%s7859_s17 + $0x58] sm:$0xff] }
 0x403   : > { %4261 = vst [vmem:[%s6741_s6 + $0x28] sm:$0xff] %v4245_v1  ;;  %v4244_v12 = vmax.f32 %v4228_v6, 0.0  ;;  %v4231_v37 = vadd.f32 %v4215_v55, %v4192_v51  ;;  %v3980_v41 = vadd.f32 %v3933_v29, %v3786_v3  ;;  %v4175_v45 = vadd.f32 %v6113_v40, %v3981_v47  ;;  %v4195_v55 = vld [vmem:[%s7859_s17 + $0x50] sm:$0xff]  ;;  %v4197_v40 = vld [vmem:[%s7859_s17 + $0x60] sm:$0xff] }
 0x404   : > { %v4214_v25 = vadd.f32 %v7868_v56, %v4172_v14  ;;  %v6060_v17 = vpop.f32.mrf.mxu1  ;;  %v4127_v30 = vpop.f32.mrf.mxu0  ;;  %v3790_v48 = vadd.f32 %v7834_v36, %v3595_v54  ;;  %v3597_v42 = vadd.f32 %v7840_v31, %v3403_v13  ;;  %v4200_v54 = vld [vmem:[%s7859_s17 + $0x78] sm:$0xff] }
 0x405   : > { %4260 = vst [vmem:[%s6741_s6 + $0x20] sm:$0xff] %v4244_v12  ;;  %v4247_v58 = vmax.f32 %v4231_v37, 0.0  ;;  %v4217_v59 = vadd.f32 %v7868_v56, %v4175_v45  ;;  %v3983_v0 = vadd.f32 %v6060_v17, %v3789_v8  ;;  %v4174_v62 = vadd.f32 %v4127_v30, %v3980_v41  ;;  %v4199_v30 = vld [vmem:[%s7859_s17 + $0x70] sm:$0xff]  ;;  %s6371_s17 = sshll.u32 %s6503_s11, 4  ;;  %s6372_s17 = int_to_ptr.vmem [resolvable:$false] %s6371_s17 }
 0x406   : > { %v4230_v15 = vadd.f32 %v4214_v25, %v4191_v44  ;;  %v3943_v4 = vpop.f32.mrf.mxu1  ;;  %v6116_v2 = vpop.f32.mrf.mxu0  ;;  %v3793_v8 = vadd.f32 %v7843_v10, %v3598_v28  ;;  %v3792_v37 = vadd.f32 %v7848_v57, %v3597_v42  ;;  %s6373_s21 = scalar_lea.vmem %s6372_s17, 4096  ;;  %p6374_p12 = scmp.lt.s32.totalorder %s7969_s7, %s6372_s17 }
 0x407   : > { %4263 = vst [vmem:[%s6741_s6 + $0x38] sm:$0xff] %v4247_v58  ;;  %v4233_v46 = vadd.f32 %v4217_v59, %v4194_v38  ;;  %v4216_v19 = vadd.f32 %v7868_v56, %v4174_v62  ;;  %v3982_v5 = vadd.f32 %v3943_v4, %v3788_v11  ;;  %v4177_v23 = vadd.f32 %v6116_v2, %v3983_v0  ;;  %p6375_p0 = scmp.lt.s32.totalorder %s6373_s21, %s6367_s10 }
 0x408   : > { %v4246_v53 = vmax.f32 %v4230_v15, 0.0  ;;  %v6063_v34 = vpop.f32.mrf.mxu1  ;;  %v4137_v3 = vpop.f32.mrf.mxu0 }
 0x409   : > { %v4249_v21 = vmax.f32 %v4233_v46, 0.0  ;;  %v4232_v9 = vadd.f32 %v4216_v19, %v4193_v7  ;;  %v4219_v49 = vadd.f32 %v7868_v56, %v4177_v23  ;;  %v3985_v51 = vadd.f32 %v6063_v34, %v3791_v16  ;;  %p6376_p2 = por %p6375_p0, %p6374_p12 }
 0x40a   : > { %4262 = vst [vmem:[%s6741_s6 + $0x30] sm:$0xff] %v4246_v53  ;;  %v4176_v43 = vadd.f32 %v4137_v3, %v3982_v5  ;;  %v3953_v1 = vpop.f32.mrf.mxu1  ;;  %v6119_v61 = vpop.f32.mrf.mxu0 }
 0x40b   : > { %4265 = vst [vmem:[%s6741_s6 + $0x48] sm:$0xff] %v4249_v21  ;;  %v4248_v36 = vmax.f32 %v4232_v9, 0.0  ;;  %v4235_v6 = vadd.f32 %v4219_v49, %v4196_v18  ;;  %v3984_v47 = vadd.f32 %v3953_v1, %v3790_v48  ;;  %v4179_v60 = vadd.f32 %v6119_v61, %v3985_v51  ;;  %p6377_p4 = pnand %p6376_p2, %p6370_p5 }
 0x40c   : > { %v4218_v24 = vadd.f32 %v7868_v56, %v4176_v43  ;;  %v6066_v35 = vpop.f32.mrf.mxu1  ;;  %v4147_v31 = vpop.f32.mrf.mxu0 }
 0x40d   : > { %4264 = vst [vmem:[%s6741_s6 + $0x40] sm:$0xff] %v4248_v36  ;;  %v4251_v52 = vmax.f32 %v4235_v6, 0.0  ;;  %v4221_v20 = vadd.f32 %v7868_v56, %v4179_v60  ;;  %v4178_v14 = vadd.f32 %v4147_v31, %v3984_v47  ;;  %v3987_v41 = vadd.f32 %v6066_v35, %v3793_v8 }
 0x40e   : > { %v4234_v29 = vadd.f32 %v4218_v24, %v4195_v55  ;;  %v3963_v12 = vpop.f32.mrf.mxu1 }
 0x40f   : > { %4267 = vst [vmem:[%s6741_s6 + $0x58] sm:$0xff] %v4251_v52  ;;  %v4237_v44 = vadd.f32 %v4221_v20, %v4198_v39  ;;  %v4220_v45 = vadd.f32 %v7868_v56, %v4178_v14  ;;  %v3986_v26 = vadd.f32 %v3963_v12, %v3792_v37 }
 0x410   : > { %v4250_v10 = vmax.f32 %v4234_v29, 0.0  ;;  %v6122_v22 = vpop.f32.mrf.mxu1 }
 0x411   : > { %v4253_v27 = vmax.f32 %v4237_v44, 0.0  ;;  %v4236_v63 = vadd.f32 %v4220_v45, %v4197_v40  ;;  %v4181_v11 = vadd.f32 %v6122_v22, %v3987_v41 }
 0x412   : > { %4266 = vst [vmem:[%s6741_s6 + $0x50] sm:$0xff] %v4250_v10  ;;  %v4157_v57 = vpop.f32.mrf.mxu1 }
 0x413   : > { %4269 = vst [vmem:[%s6741_s6 + $0x68] sm:$0xff] %v4253_v27  ;;  %v4252_v25 = vmax.f32 %v4236_v63, 0.0  ;;  %v4223_v38 = vadd.f32 %v7868_v56, %v4181_v11  ;;  %v4180_v17 = vadd.f32 %v4157_v57, %v3986_v26 }
 0x415   : > { %4268 = vst [vmem:[%s6741_s6 + $0x60] sm:$0xff] %v4252_v25  ;;  %v4239_v58 = vadd.f32 %v4223_v38, %v4200_v54  ;;  %v4222_v59 = vadd.f32 %v7868_v56, %v4180_v17 }
 0x417   : > { %v4255_v0 = vmax.f32 %v4239_v58, 0.0  ;;  %v4238_v62 = vadd.f32 %v4222_v59, %v4199_v30 }
 0x419   : > { %4271 = vst [vmem:[%s6741_s6 + $0x78] sm:$0xff] %v4255_v0  ;;  %v4254_v50 = vmax.f32 %v4238_v62, 0.0 }
 0x41b   : > { %4270 = vst [vmem:[%s6741_s6 + $0x70] sm:$0xff] %v4254_v50 }
 0x41c   : > { %6380 = shalt.err (!%p6377_p4)
}
 0x41d   : > { %s6381_s25 = scalar_lea.hbm %s7967_s9, 2048  ;;  %s6385_s3 = scalar_lea.hbm %s8144_s15, 8192 }
 0x41e   : > { %p6382_p13 = scmp.ne.s32.totalorder %s7967_s9, %s6381_s25  ;;  %p6386_p6 = scmp.lt.s32.totalorder %s7967_s9, %s8144_s15 }
 0x41f   : > { %p6387_p1 = scmp.lt.s32.totalorder %s6385_s3, %s6381_s25 }
 0x420   : > { %p6383_p8 = pnand %p6382_p13, %p6607_p7 }
 0x421   : > { %p6388_p3 = por %p6387_p1, %p6386_p6 }
 0x422   : > { %p6384_p10 = pneg %p6383_p8 }
 0x424   : > { %p6389_p9 = pnand %p6388_p3, %p6384_p10 }
 0x426   : > { %6392 = shalt.err (!%p6389_p9)
}
 0x427   : > { %s6504_s5 = smov 128   ;;  %s6505_s30 = smov 8  }
 0x428   : > { %6165 = dma.vmem_to_hbm [thread:$0]  (%p6607_p7), %s7969_s7, 2048, %s7967_s9, %s7975_s8, %s6504_s5, %s6504_s5, %s6505_s30  }
 0x429 PF: > { %s8145_s12 = sld [smem:[#allocation14_spill]]  ;;  %p6187_p11 = scmp.ge.s32.totalorder %s6491_s28, 2 }
 0x42a   : > { %s8146_s16 = sld [smem:[#allocation18_spill]] }
 0x42f   : > { %s4304_s10 = sand.u32 1, %s8145_s12  }
 0x430   : > { %p8147_p5 = scmp.ne.s32.totalorder %s8146_s16, 0  ;;  %s4305_s11 = scalar_lea.sflag [#allocation6], %s4304_s10 }
 0x432   : > { %p6179_p12 = pnand %p6187_p11, %p8147_p5 }
 0x434   : > { %p6180_p0 = pneg %p6179_p12 }
 0x436   : > { %6446 = dma.done.wait (%p6180_p0), %s4305_s11, 2048  }
 0x437   : > { %6448 = vsyncadd (%p6180_p0), %s4305_s11, 4294965248  ;;  %s22_s28 = sadd.s32 1, %s6491_s28   ;;  %s8148_s24 = smov %s6679_s18 }
 0x438   : > { %p19_p2 = scmp.ge.s32.totalorder %s22_s28, 6   ;;  %s8149_s7 = sld [smem:[#allocation16_spill]] }
 0x439   : > { %s8150_s9 = sld [smem:[#allocation19_spill]]  ;;  %s8151_s18 = smov %s6455_s19 }
 0x43a   : > { %s8152_s19 = smov %s6459_s20  ;;  %s8153_s20 = smov %s6684_s26 }
 0x43b   : > { %s8154_s21 = smov %s6467_s22  ;;  %s8155_s22 = smov %s6471_s23 }
 0x43c   : > { %s8156_s23 = smov %s8148_s24  ;;  %s8158_s25 = smov %s6487_s27 }
 0x43d   : > { %s8160_s27 = smov %s8166_s14  ;;  %21 = sbr.rel (!%p19_p2) target bundleno = 14 (0xe), region = 134 }
 0x43e   : > { %s8157_s24 = smov %s8149_s7 }
 0x43f   : > { %s8159_s26 = smov %s8150_s9 }
 0x442   :  { %4310 = vsyncpa [#allocation5], 1 }
 0x443   :  { %4312 = vsyncpa [#allocation5 + $0x1], 1 }
 0x444   :  { %4313 = vsyncpa [#allocation8], 1 }
 0x445   :  { %4314 = vsyncpa [#allocation6], 1 }
 0x446   :  { %4316 = vsyncpa [#allocation6 + $0x1], 1 }

// kernel: tpu_custom_call.1
= control target key start
LH: loop header
LB: loop body
LE: loop exit
PB: predicated region body
PF: predicated region fallthrough
CT: control target
= control target key end

     0   :  { %s8035_s0 = inlined_call_operand.hbm [shape: f32[2,16,16,128], index: 0, kind: input, shape index: {}]   ;;  %s8036_s1 = inlined_call_operand.hbm [shape: f32[3,3,128,128], index: 1, kind: input, shape index: {}]   ;;  %s8037_s2 = inlined_call_operand.vmem [shape: f32[1,128], index: 2, kind: input, shape index: {}]   ;;  %s8038_s3 = inlined_call_operand.hbm [shape: f32[3,3,128,128], index: 3, kind: input, shape index: {}]   ;;  %s8039_s4 = inlined_call_operand.vmem [shape: f32[1,128], index: 4, kind: input, shape index: {}]   ;;  %s8040_s5 = inlined_call_operand.hbm [shape: f32[2,16,16,128], index: 5, kind: output, shape index: {}]  }
   0x1   :  { %8050 = sst [smem:[#allocation41_spill]] %s8036_s1 }
   0x2   :  { %8051 = sst [smem:[#allocation42_spill]] %s8038_s3 }
   0x3   :  { %8052 = sst [smem:[#allocation43_spill]] %s8040_s5 }
   0x4   :  { %10 = vsyncpa [#allocation5], 0 }
   0x5   :  { %12 = vsyncpa [#allocation5 + $0x1], 0 }
   0x6   :  { %13 = vsyncpa [#allocation8], 0 }
   0x7   :  { %14 = vsyncpa [#allocation6], 0 }
   0x8   :  { %16 = vsyncpa [#allocation6 + $0x1], 0  ;;  %s6536_s18 = smov 0   ;;  %s6538_s19 = smov 0  }
   0x9   :  { %s6540_s20 = smov 0   ;;  %s6542_s21 = smov 0  }
   0xa   :  { %s6544_s22 = smov 0   ;;  %s6546_s23 = smov 0  }
   0xb   :  { %s6548_s24 = smov 0   ;;  %s6550_s25 = smov 0  }
   0xc   :  { %s6552_s26 = smov 0   ;;  %s6554_s27 = smov 0  }
   0xd   :  { %s6556_s28 = smov 0  }
   0xe LB: > { %8053 = sst [smem:[#allocation14_spill]] %s6451_s18  ;;  %s4397_s29 = sadd.s32 4294967295, %s6491_s28   ;;  %s6491_s28 = sphi %s6556_s28, %s22_s28   ;;  %s6487_s27 = sphi %s6554_s27, %s8160_s27   ;;  %s6483_s26 = sphi %s6552_s26, %s8159_s26   ;;  %s6479_s25 = sphi %s6550_s25, %s8158_s25   ;;  %s6475_s24 = sphi %s6548_s24, %s8157_s24   ;;  %s6471_s23 = sphi %s6546_s23, %s8156_s23   ;;  %s6467_s22 = sphi %s6544_s22, %s8155_s22   ;;  %s6463_s21 = sphi %s6542_s21, %s8154_s21   ;;  %s6459_s20 = sphi %s6540_s20, %s8153_s20   ;;  %s6455_s19 = sphi %s6538_s19, %s8152_s19   ;;  %s6451_s18 = sphi %s6536_s18, %s8151_s18  }
   0xf   : > { %8054 = sst [smem:[#allocation15_spill]] %s6479_s25  ;;  %s4398_s30 = sadd.s32 4294967294, %s6491_s28  }
  0x10   : > { %8055 = sst [smem:[#allocation16_spill]] %s6483_s26  ;;  %p54_p0 = scmp.ne.s32.totalorder %s6467_s22, %s6463_s21 }
  0x11   : > { %p6592_p1 = scmp.eq.s32.totalorder %s4397_s29, 0  ;;  %p163_p2 = scmp.ne.s32.totalorder %s6459_s20, %s6455_s19 }
  0x12   : > { %p164_p4 = scmp.eq.s32.totalorder %s4397_s29, 3  ;;  %p169_p5 = scmp.ne.s32.totalorder %s6455_s19, %s6451_s18 }
  0x13   : > { %p6601_p3 = por %p6592_p1, %p54_p0  ;;  %p170_p6 = scmp.eq.s32.totalorder %s4398_s30, 3 }
  0x14   : > { %p6607_p7 = por %p164_p4, %p163_p2  ;;  %p4399_p8 = scmp.ge.s32.totalorder %s6491_s28, 1 }
  0x15   : > { %p6612_p9 = por %p170_p6, %p169_p5  ;;  %p177_p10 = scmp.lt.s32.totalorder %s6491_s28, 5 }
  0x16   : > { %s8058_s9 = scalar_select %p6607_p7, 1, 0 }
  0x17   : > { %s8060_s10 = scalar_select %p6612_p9, 1, 0 }
  0x18   : > { %8059 = sst [smem:[#allocation17_spill]] %s8058_s9  ;;  %p6617_p11 = pnand %p4399_p8, %p177_p10 }
  0x19   : > { %8061 = sst [smem:[#allocation18_spill]] %s8060_s10  ;;  %s6493_s12 = smov [#allocation7]  }
  0x1a   : > { %s189_s13 = sshll.u32 %s6493_s12, 4  ;;  %p6167_p12 = pneg %p6617_p11  ;;  %s190_s13 = int_to_ptr.vmem [resolvable:$true] %s189_s13 }
  0x1b   : > { %s6494_s15 = smov [#allocation9]   ;;  %s6298_s17 = scalar_lea.vmem %s190_s13, 18432 }
  0x1c   : > { %p6625_p13 = pnand %p6167_p12, %p6592_p1  ;;  %s205_s16 = sshll.u32 %s6494_s15, 4  ;;  %s206_s16 = int_to_ptr.vmem [resolvable:$true] %s205_s16 }
  0x1d   : > { %p6299_p2 = scmp.ne.s32.totalorder %s190_s13, %s6298_s17  ;;  %p6306_p6 = scmp.lt.s32.totalorder %s190_s13, %s190_s13 }
  0x1e   : > { %p6289_p0 = pneg %p6625_p13  ;;  %p6307_p8 = scmp.lt.s32.totalorder %s6298_s17, %s6298_s17 }
  0x20   : > { %p6301_p4 = pnand %p6299_p2, %p6289_p0  ;;  %p6308_p10 = por %p6307_p8, %p6306_p6 }
  0x22   : > { %p6302_p5 = pneg %p6301_p4 }
  0x24   : > { %p6309_p12 = pnand %p6308_p10, %p6302_p5 }
  0x26   : > { %6312 = shalt.err (!%p6309_p12)
}
  0x27   : > { %s8041_s21 = smov 128   ;;  %s8042_s29 = smov 8  }
  0x28   : > { %s8064_s1 = sld [smem:[#allocation41_spill]]  ;;  %s6324_s15 = scalar_lea.vmem %s206_s16, 18432 }
  0x29   : > { %p6325_p2 = scmp.ne.s32.totalorder %s206_s16, %s6324_s15  ;;  %p6332_p5 = scmp.lt.s32.totalorder %s206_s16, %s206_s16 }
  0x2a   : > { %p6333_p8 = scmp.lt.s32.totalorder %s6324_s15, %s6324_s15 }
  0x2b   : > { %p6327_p4 = pnand %p6325_p2, %p6289_p0 }
  0x2c   : > { %p6334_p10 = por %p6333_p8, %p6332_p5 }
  0x2d   : > { %p6328_p6 = pneg %p6327_p4 }
  0x2e   : > { %6170 = dma.hbm_to_vmem [thread:$0]  (!%p6625_p13), %s8064_s1, 18432, %s190_s13, [#allocation8], %s8041_s21, %s8041_s21, %s8042_s29  }
  0x2f   : > { %p6335_p12 = pnand %p6334_p10, %p6328_p6 }
  0x31   : > { %6338 = shalt.err (!%p6335_p12)
}
  0x32   : > { %s8065_s3 = sld [smem:[#allocation42_spill]]  ;;  %s31_s13 = sadd.s32 1, %s6483_s26 }
  0x33   : > { %s34_s14 = sadd.s32 1, %s6487_s27  ;;  %p32_p0 = scmp.ge.s32.totalorder %s31_s13, 2 }
  0x34   : > { %s41_s30 = sadd.s32 1, %s6471_s23  ;;  %p48_p2 = scmp.ne.s32.totalorder %s6471_s23, %s6467_s22 }
  0x35   : > { %p49_p4 = scmp.eq.s32.totalorder %s6491_s28, 0  ;;  %s8162_s13 = smov (%p32_p0, %s31_s13), 0 }
  0x36   : > { %8066 = sst [smem:[#allocation19_spill]] %s8162_s13  ;;  %s8164_s14 = smov (!%p32_p0, %s34_s14), %s6487_s27 }
  0x37   : > { %p6662_p6 = por %p49_p4, %p48_p2  ;;  %s149_s12 = ssub.s32 %s6483_s26, %s8162_s13 }
  0x38   : > { %6173 = dma.hbm_to_vmem [thread:$0]  (!%p6625_p13), %s8065_s3, 18432, %s206_s16, [#allocation8], %s8041_s21, %s8041_s21, %s8042_s29  }
  0x39   : > { %p36_p13 = scmp.ge.s32.totalorder %s8164_s14, 2  ;;  %p6184_p5 = scmp.lt.s32.totalorder %s6491_s28, 4 }
  0x3a   : > { %s222_s16 = sand.u32 1, %s6471_s23   ;;  %s4446_s15 = sshll.u32 %s6487_s27, 12 }
  0x3b   : > { %s8166_s14 = smov (%p36_p13, %s8164_s14), 0  ;;  %s4403_s17 = sshll.u32 %s222_s16, 8 }
  0x3c   : > { %s38_s21 = ssub.s32 %s6487_s27, %s8166_s14  ;;  %s232_s10 = scalar_lea.hbm %s8035_s0, %s4446_s15 }
  0x3d   : > { %p39_p8 = scmp.eq.s32.totalorder %s38_s21, 0  ;;  %s150_s29 = sor.u32 %s149_s12, %s38_s21 }
  0x3e   : > { %p151_p10 = scmp.eq.s32.totalorder %s150_s29, 0  ;;  %s8068_s13 = sadd.s32 1, %s6459_s20 }
  0x3f   : > { %s6679_s18 = scalar_select %p39_p8, %s6471_s23, %s41_s30  }
  0x40   : > { %s6684_s26 = scalar_select %p151_p10, %s6459_s20, %s8068_s13  }
  0x41   : > { %s226_s5 = scalar_lea.vmem [#allocation4], %s4403_s17  ;;  %p6690_p12 = pnand %p6184_p5, %p6662_p6 }
  0x42   : > { %s233_s9 = sshll.u32 %s226_s5, 4  ;;  %s223_s21 = scalar_lea.sflag [#allocation5], %s222_s16  ;;  %s234_s9 = int_to_ptr.vmem [resolvable:$true] %s233_s9 }
  0x43   : > { %p6341_p0 = pneg %p6690_p12  ;;  %s6352_s1 = scalar_lea.vmem %s234_s9, 4096 }
  0x44   : > { %p6353_p2 = scmp.ne.s32.totalorder %s234_s9, %s6352_s1  ;;  %s6497_s3 = smov [#allocation4]  }
  0x45   : > { %s6357_s29 = sshll.u32 %s6497_s3, 4  ;;  %s6358_s29 = int_to_ptr.vmem [resolvable:$false] %s6357_s29 }
  0x46   : > { %p6355_p4 = pnand %p6353_p2, %p6341_p0  ;;  %s6359_s13 = scalar_lea.vmem %s6358_s29, 8192 }
  0x47   : > { %p6360_p8 = scmp.lt.s32.totalorder %s234_s9, %s6358_s29  ;;  %p6361_p10 = scmp.lt.s32.totalorder %s6359_s13, %s6352_s1 }
  0x48   : > { %p6356_p13 = pneg %p6355_p4 }
  0x49   : > { %p6362_p9 = por %p6361_p10, %p6360_p8 }
  0x4b   : > { %p6363_p6 = pnand %p6362_p9, %p6356_p13 }
  0x4d   : > { %6366 = shalt.err (!%p6363_p6)
}
  0x4e   : > { %s8070_s5 = smov 8   ;;  %s8071_s30 = smov 128  }
  0x4f   : > { %6177 = dma.hbm_to_vmem [thread:$0]  (!%p6690_p12), %s232_s10, 4096, %s234_s9, %s223_s21, %s8071_s30, %s8071_s30, %s8070_s5  }
  0x50   : > { %245 = sbr.rel (%p6617_p11) target bundleno = 1065 (0x429), region = 40 }
  0x55   : > { %s247_s7 = sand.u32 1, %s6467_s22  }
  0x56   : > { %s4407_s12 = sshll.u32 %s247_s7, 8  ;;  %s248_s16 = scalar_lea.sflag [#allocation5], %s247_s7 }
  0x57   : > { %s6704_s15 = scalar_lea.vmem [#allocation4], %s4407_s12 }
  0x58   : > { %6438 = dma.done.wait (%p6601_p3), %s248_s16, 4096  }
  0x59   : > { %6440 = vsyncadd (%p6601_p3), %s248_s16, 4294963200 }
  0x5a   : > { %6442 = dma.done.wait (%p6592_p1), [#allocation8], 36864  }
  0x5b   : > { %6444 = vsyncadd (%p6592_p1), [#allocation8], 4294930432  ;;  %s283_s25 = sand.u32 1, %s6455_s19   ;;  %v6498_v0 = vmov 0.0   ;;  %p4411_p1 = scmp.ne.s32.totalorder %s6475_s24, 0 }
  0x5c   : > { %s4410_s9 = sshll.u32 %s283_s25, 7  ;;  %287 = vst [vmem:[#allocation2] sm:$0xff] %v6498_v0  ;;  %288 = vst [vmem:[#allocation2 + $0x20] sm:$0xff] %v6498_v0 }
  0x5d   : > { %289 = vst [vmem:[#allocation2 + $0x40] sm:$0xff] %v6498_v0  ;;  %290 = vst [vmem:[#allocation2 + $0x60] sm:$0xff] %v6498_v0  ;;  %s6741_s6 = scalar_lea.vmem [#allocation10], %s4410_s9 }
  0x5e   : > { %291 = vst [vmem:[#allocation2 + $0x80] sm:$0xff] %v6498_v0  ;;  %292 = vst [vmem:[#allocation2 + $0xa0] sm:$0xff] %v6498_v0 }
  0x5f   : > { %293 = vst [vmem:[#allocation2 + $0xc0] sm:$0xff] %v6498_v0  ;;  %294 = vst [vmem:[#allocation2 + $0xe0] sm:$0xff] %v6498_v0 }
  0x60   : > { %295 = vst [vmem:[#allocation2 + $0x100] sm:$0xff] %v6498_v0  ;;  %296 = vst [vmem:[#allocation2 + $0x120] sm:$0xff] %v6498_v0 }
  0x61   : > { %297 = vst [vmem:[#allocation2 + $0x140] sm:$0xff] %v6498_v0  ;;  %298 = vst [vmem:[#allocation2 + $0x160] sm:$0xff] %v6498_v0 }
  0x62   : > { %299 = vst [vmem:[#allocation2 + $0x18] sm:$0xff] %v6498_v0  ;;  %300 = vst [vmem:[#allocation2 + $0x38] sm:$0xff] %v6498_v0 }
  0x63   : > { %301 = vst [vmem:[#allocation2 + $0x58] sm:$0xff] %v6498_v0  ;;  %302 = vst [vmem:[#allocation2 + $0x78] sm:$0xff] %v6498_v0  ;;  %314 = sbr.rel (%p4411_p1) target bundleno = 117 (0x75), region = 56 }
  0x64   : > { %303 = vst [vmem:[#allocation2 + $0x98] sm:$0xff] %v6498_v0  ;;  %304 = vst [vmem:[#allocation2 + $0xb8] sm:$0xff] %v6498_v0 }
  0x65   : > { %305 = vst [vmem:[#allocation2 + $0xd8] sm:$0xff] %v6498_v0  ;;  %306 = vst [vmem:[#allocation2 + $0xf8] sm:$0xff] %v6498_v0 }
  0x66   : > { %307 = vst [vmem:[#allocation2 + $0x118] sm:$0xff] %v6498_v0  ;;  %308 = vst [vmem:[#allocation2 + $0x138] sm:$0xff] %v6498_v0 }
  0x67   : > { %309 = vst [vmem:[#allocation2 + $0x158] sm:$0xff] %v6498_v0  ;;  %310 = vst [vmem:[#allocation2 + $0x178] sm:$0xff] %v6498_v0 }
  0x68   : > { %v319_v1 = vld [vmem:[%s6704_s15] sm:$0xff]  ;;  %v320_v2 = vld [vmem:[%s6704_s15 + $0x8] sm:$0xff]  ;;  %v321_v3 = vld [vmem:[%s6704_s15 + $0x10] sm:$0xff]  ;;  %v6499_v4 = vmov 0.0  }
  0x69   : > { %315 = vst [vmem:[#allocation2 + $0x8] sm:$0xff] %v6499_v4  ;;  %316 = vst [vmem:[#allocation2 + $0x10] sm:$0xff] %v6499_v4  ;;  %v322_v5 = vld [vmem:[%s6704_s15 + $0x18] sm:$0xff]  ;;  %v323_v6 = vld [vmem:[%s6704_s15 + $0x20] sm:$0xff] }
  0x6a   : > { %317 = vst [vmem:[#allocation2 + $0x28] sm:$0xff] %v6499_v4  ;;  %318 = vst [vmem:[#allocation2 + $0x30] sm:$0xff] %v6499_v4  ;;  %v324_v7 = vld [vmem:[%s6704_s15 + $0x28] sm:$0xff]  ;;  %v325_v8 = vld [vmem:[%s6704_s15 + $0x30] sm:$0xff] }
  0x6b   : > { %340 = vst [vmem:[#allocation2 + $0x48] sm:$0xff] %v319_v1  ;;  %341 = vst [vmem:[#allocation2 + $0x50] sm:$0xff] %v320_v2  ;;  %v326_v9 = vld [vmem:[%s6704_s15 + $0x38] sm:$0xff]  ;;  %v327_v10 = vld [vmem:[%s6704_s15 + $0x40] sm:$0xff] }
  0x6c   : > { %342 = vst [vmem:[#allocation2 + $0x68] sm:$0xff] %v321_v3  ;;  %343 = vst [vmem:[#allocation2 + $0x70] sm:$0xff] %v322_v5  ;;  %v328_v11 = vld [vmem:[%s6704_s15 + $0x48] sm:$0xff]  ;;  %v329_v12 = vld [vmem:[%s6704_s15 + $0x50] sm:$0xff] }
  0x6d   : > { %344 = vst [vmem:[#allocation2 + $0x88] sm:$0xff] %v323_v6  ;;  %345 = vst [vmem:[#allocation2 + $0x90] sm:$0xff] %v324_v7  ;;  %v330_v13 = vld [vmem:[%s6704_s15 + $0x58] sm:$0xff]  ;;  %v331_v14 = vld [vmem:[%s6704_s15 + $0x60] sm:$0xff] }
  0x6e   : > { %346 = vst [vmem:[#allocation2 + $0xa8] sm:$0xff] %v325_v8  ;;  %347 = vst [vmem:[#allocation2 + $0xb0] sm:$0xff] %v326_v9  ;;  %v332_v15 = vld [vmem:[%s6704_s15 + $0x68] sm:$0xff]  ;;  %v333_v16 = vld [vmem:[%s6704_s15 + $0x70] sm:$0xff] }
  0x6f   : > { %348 = vst [vmem:[#allocation2 + $0xc8] sm:$0xff] %v327_v10  ;;  %349 = vst [vmem:[#allocation2 + $0xd0] sm:$0xff] %v328_v11  ;;  %v334_v17 = vld [vmem:[%s6704_s15 + $0x78] sm:$0xff]  ;;  %v335_v18 = vld [vmem:[%s6704_s15 + $0x80] sm:$0xff] }
  0x70   : > { %350 = vst [vmem:[#allocation2 + $0xe8] sm:$0xff] %v329_v12  ;;  %351 = vst [vmem:[#allocation2 + $0xf0] sm:$0xff] %v330_v13  ;;  %v336_v19 = vld [vmem:[%s6704_s15 + $0x88] sm:$0xff]  ;;  %v337_v20 = vld [vmem:[%s6704_s15 + $0x90] sm:$0xff] }
  0x71   : > { %352 = vst [vmem:[#allocation2 + $0x108] sm:$0xff] %v331_v14  ;;  %353 = vst [vmem:[#allocation2 + $0x110] sm:$0xff] %v332_v15  ;;  %v338_v21 = vld [vmem:[%s6704_s15 + $0x98] sm:$0xff] }
  0x72   : > { %354 = vst [vmem:[#allocation2 + $0x128] sm:$0xff] %v333_v16  ;;  %355 = vst [vmem:[#allocation2 + $0x130] sm:$0xff] %v334_v17 }
  0x73   : > { %356 = vst [vmem:[#allocation2 + $0x148] sm:$0xff] %v335_v18  ;;  %357 = vst [vmem:[#allocation2 + $0x150] sm:$0xff] %v336_v19 }
  0x74   : > { %358 = vst [vmem:[#allocation2 + $0x168] sm:$0xff] %v337_v20  ;;  %359 = vst [vmem:[#allocation2 + $0x170] sm:$0xff] %v338_v21 }
  0x75 PF: > { %p4412_p3 = scmp.ne.s32.totalorder %s6475_s24, 1 }
  0x77   : > { %363 = sbr.rel (%p4412_p3) target bundleno = 137 (0x89), region = 60 }
  0x7c   : > { %v4413_v22 = vld [vmem:[%s6704_s15 + $0x60] sm:$0xff]  ;;  %v4414_v23 = vld [vmem:[%s6704_s15 + $0x68] sm:$0xff]  ;;  %v4415_v24 = vld [vmem:[%s6704_s15 + $0x70] sm:$0xff]  ;;  %v6500_v25 = vmov 0.0  }
  0x7d   : > { %365 = vst [vmem:[#allocation2 + $0x148] sm:$0xff] %v6500_v25  ;;  %366 = vst [vmem:[#allocation2 + $0x150] sm:$0xff] %v6500_v25  ;;  %v4416_v26 = vld [vmem:[%s6704_s15 + $0x78] sm:$0xff]  ;;  %v4417_v27 = vld [vmem:[%s6704_s15 + $0x80] sm:$0xff] }
  0x7e   : > { %367 = vst [vmem:[#allocation2 + $0x168] sm:$0xff] %v6500_v25  ;;  %368 = vst [vmem:[#allocation2 + $0x170] sm:$0xff] %v6500_v25  ;;  %v4418_v28 = vld [vmem:[%s6704_s15 + $0x88] sm:$0xff]  ;;  %v4419_v29 = vld [vmem:[%s6704_s15 + $0x90] sm:$0xff] }
  0x7f   : > { %390 = vst [vmem:[#allocation2 + $0x8] sm:$0xff] %v4413_v22  ;;  %391 = vst [vmem:[#allocation2 + $0x10] sm:$0xff] %v4414_v23  ;;  %v4420_v30 = vld [vmem:[%s6704_s15 + $0x98] sm:$0xff]  ;;  %v4421_v31 = vld [vmem:[%s6704_s15 + $0xa0] sm:$0xff] }
  0x80   : > { %392 = vst [vmem:[#allocation2 + $0x28] sm:$0xff] %v4415_v24  ;;  %393 = vst [vmem:[#allocation2 + $0x30] sm:$0xff] %v4416_v26  ;;  %v4422_v32 = vld [vmem:[%s6704_s15 + $0xa8] sm:$0xff]  ;;  %v4423_v33 = vld [vmem:[%s6704_s15 + $0xb0] sm:$0xff] }
  0x81   : > { %394 = vst [vmem:[#allocation2 + $0x48] sm:$0xff] %v4417_v27  ;;  %395 = vst [vmem:[#allocation2 + $0x50] sm:$0xff] %v4418_v28  ;;  %v4424_v34 = vld [vmem:[%s6704_s15 + $0xb8] sm:$0xff]  ;;  %v4425_v35 = vld [vmem:[%s6704_s15 + $0xc0] sm:$0xff] }
  0x82   : > { %396 = vst [vmem:[#allocation2 + $0x68] sm:$0xff] %v4419_v29  ;;  %397 = vst [vmem:[#allocation2 + $0x70] sm:$0xff] %v4420_v30  ;;  %v4426_v36 = vld [vmem:[%s6704_s15 + $0xc8] sm:$0xff]  ;;  %v4427_v37 = vld [vmem:[%s6704_s15 + $0xd0] sm:$0xff] }
  0x83   : > { %398 = vst [vmem:[#allocation2 + $0x88] sm:$0xff] %v4421_v31  ;;  %399 = vst [vmem:[#allocation2 + $0x90] sm:$0xff] %v4422_v32  ;;  %v4428_v38 = vld [vmem:[%s6704_s15 + $0xd8] sm:$0xff]  ;;  %v4429_v39 = vld [vmem:[%s6704_s15 + $0xe0] sm:$0xff] }
  0x84   : > { %400 = vst [vmem:[#allocation2 + $0xa8] sm:$0xff] %v4423_v33  ;;  %401 = vst [vmem:[#allocation2 + $0xb0] sm:$0xff] %v4424_v34  ;;  %v4430_v40 = vld [vmem:[%s6704_s15 + $0xe8] sm:$0xff]  ;;  %v4431_v41 = vld [vmem:[%s6704_s15 + $0xf0] sm:$0xff] }
  0x85   : > { %402 = vst [vmem:[#allocation2 + $0xc8] sm:$0xff] %v4425_v35  ;;  %403 = vst [vmem:[#allocation2 + $0xd0] sm:$0xff] %v4426_v36  ;;  %v4432_v42 = vld [vmem:[%s6704_s15 + $0xf8] sm:$0xff] }
  0x86   : > { %404 = vst [vmem:[#allocation2 + $0xe8] sm:$0xff] %v4427_v37  ;;  %405 = vst [vmem:[#allocation2 + $0xf0] sm:$0xff] %v4428_v38 }
  0x87   : > { %406 = vst [vmem:[#allocation2 + $0x108] sm:$0xff] %v4429_v39  ;;  %407 = vst [vmem:[#allocation2 + $0x110] sm:$0xff] %v4430_v40 }
  0x88   : > { %408 = vst [vmem:[#allocation2 + $0x128] sm:$0xff] %v4431_v41  ;;  %409 = vst [vmem:[#allocation2 + $0x130] sm:$0xff] %v4432_v42 }
  0x89 PF: > { %v482_v43 = vld [vmem:[#allocation7 + $0xf8] sm:$0xff]  ;;  %v481_v45 = vld [vmem:[#allocation7 + $0xf0] sm:$0xff]  ;;  %2416 = vst [vmem:[#allocation3] sm:$0xff] %v6498_v0  ;;  %2417 = vst [vmem:[#allocation3 + $0x20] sm:$0xff] %v6498_v0 }
  0x8a   : > { %v445_v44 = vld [vmem:[#allocation7 + $0x78] sm:$0xff]  ;;  %2418 = vst [vmem:[#allocation3 + $0x40] sm:$0xff] %v6498_v0  ;;  %2419 = vst [vmem:[#allocation3 + $0x60] sm:$0xff] %v6498_v0  ;;  %5061 = vmatprep.subr.mxu0 %v482_v43  ;;  %v444_v46 = vld [vmem:[#allocation7 + $0x70] sm:$0xff] }
  0x8b   : > { %2420 = vst [vmem:[#allocation3 + $0x80] sm:$0xff] %v6498_v0  ;;  %2421 = vst [vmem:[#allocation3 + $0xa0] sm:$0xff] %v6498_v0  ;;  %5123 = vmatprep.subr.mxu1 %v445_v44  ;;  %5062 = vmatpush3.msra.mxu0 %v482_v43  ;;  %v480_v47 = vld [vmem:[#allocation7 + $0xe8] sm:$0xff]  ;;  %v479_v49 = vld [vmem:[#allocation7 + $0xe0] sm:$0xff] }
  0x8c   : > { %2422 = vst [vmem:[#allocation3 + $0xc0] sm:$0xff] %v6498_v0  ;;  %2423 = vst [vmem:[#allocation3 + $0xe0] sm:$0xff] %v6498_v0  ;;  %5124 = vmatpush3.msra.mxu1 %v445_v44  ;;  %v443_v48 = vld [vmem:[#allocation7 + $0x68] sm:$0xff]  ;;  %5063 = vmatprep.subr.mxu0 %v481_v45  ;;  %v442_v50 = vld [vmem:[#allocation7 + $0x60] sm:$0xff] }
  0x8d   : > { %2424 = vst [vmem:[#allocation3 + $0x100] sm:$0xff] %v6498_v0  ;;  %2425 = vst [vmem:[#allocation3 + $0x120] sm:$0xff] %v6498_v0  ;;  %5125 = vmatprep.subr.mxu1 %v444_v46  ;;  %5064 = vmatpush3.msra.mxu0 %v481_v45  ;;  %v478_v51 = vld [vmem:[#allocation7 + $0xd8] sm:$0xff]  ;;  %v477_v53 = vld [vmem:[#allocation7 + $0xd0] sm:$0xff] }
  0x8e   : > { %2426 = vst [vmem:[#allocation3 + $0x18] sm:$0xff] %v6498_v0  ;;  %2427 = vst [vmem:[#allocation3 + $0x38] sm:$0xff] %v6498_v0  ;;  %5126 = vmatpush3.msra.mxu1 %v444_v46  ;;  %5065 = vmatprep.subr.mxu0 %v480_v47  ;;  %v441_v52 = vld [vmem:[#allocation7 + $0x58] sm:$0xff]  ;;  %v440_v54 = vld [vmem:[#allocation7 + $0x50] sm:$0xff] }
  0x8f   : > { %2428 = vst [vmem:[#allocation3 + $0x58] sm:$0xff] %v6498_v0  ;;  %2429 = vst [vmem:[#allocation3 + $0x78] sm:$0xff] %v6498_v0  ;;  %5127 = vmatprep.subr.mxu1 %v443_v48  ;;  %5066 = vmatpush3.msra.mxu0 %v480_v47  ;;  %v476_v55 = vld [vmem:[#allocation7 + $0xc8] sm:$0xff]  ;;  %v475_v57 = vld [vmem:[#allocation7 + $0xc0] sm:$0xff] }
  0x90   : > { %2430 = vst [vmem:[#allocation3 + $0x98] sm:$0xff] %v6498_v0  ;;  %2431 = vst [vmem:[#allocation3 + $0xb8] sm:$0xff] %v6498_v0  ;;  %5128 = vmatpush3.msra.mxu1 %v443_v48  ;;  %5067 = vmatprep.subr.mxu0 %v479_v49  ;;  %v439_v56 = vld [vmem:[#allocation7 + $0x48] sm:$0xff]  ;;  %v438_v58 = vld [vmem:[#allocation7 + $0x40] sm:$0xff] }
  0x91   : > { %2432 = vst [vmem:[#allocation3 + $0xd8] sm:$0xff] %v6498_v0  ;;  %2433 = vst [vmem:[#allocation3 + $0xf8] sm:$0xff] %v6498_v0  ;;  %5129 = vmatprep.subr.mxu1 %v442_v50  ;;  %5068 = vmatpush3.msra.mxu0 %v479_v49  ;;  %v474_v59 = vld [vmem:[#allocation7 + $0xb8] sm:$0xff]  ;;  %v473_v61 = vld [vmem:[#allocation7 + $0xb0] sm:$0xff] }
  0x92   : > { %2434 = vst [vmem:[#allocation3 + $0x118] sm:$0xff] %v6498_v0  ;;  %2435 = vst [vmem:[#allocation3 + $0x138] sm:$0xff] %v6498_v0  ;;  %5130 = vmatpush3.msra.mxu1 %v442_v50  ;;  %5069 = vmatprep.subr.mxu0 %v478_v51  ;;  %v437_v60 = vld [vmem:[#allocation7 + $0x38] sm:$0xff]  ;;  %v436_v62 = vld [vmem:[#allocation7 + $0x30] sm:$0xff] }
  0x93   : > { %5131 = vmatprep.subr.mxu1 %v441_v52  ;;  %5070 = vmatpush3.msra.mxu0 %v478_v51  ;;  %v472_v63 = vld [vmem:[#allocation7 + $0xa8] sm:$0xff]  ;;  %v471_v1 = vld [vmem:[#allocation7 + $0xa0] sm:$0xff]  ;;  %v470_v3 = vld [vmem:[#allocation7 + $0x98] sm:$0xff] }
  0x94   : > { %5132 = vmatpush3.msra.mxu1 %v441_v52  ;;  %5071 = vmatprep.subr.mxu0 %v477_v53  ;;  %v435_v0 = vld [vmem:[#allocation7 + $0x28] sm:$0xff]  ;;  %v434_v2 = vld [vmem:[#allocation7 + $0x20] sm:$0xff]  ;;  %v433_v4 = vld [vmem:[#allocation7 + $0x18] sm:$0xff] }
  0x95   : > { %5133 = vmatprep.subr.mxu1 %v440_v54  ;;  %5072 = vmatpush3.msra.mxu0 %v477_v53  ;;  %v469_v5 = vld [vmem:[#allocation7 + $0x90] sm:$0xff]  ;;  %v468_v7 = vld [vmem:[#allocation7 + $0x88] sm:$0xff]  ;;  %v467_v9 = vld [vmem:[#allocation7 + $0x80] sm:$0xff] }
  0x96   : > { %5134 = vmatpush3.msra.mxu1 %v440_v54  ;;  %5073 = vmatprep.subr.mxu0 %v476_v55  ;;  %v432_v6 = vld [vmem:[#allocation7 + $0x10] sm:$0xff]  ;;  %v431_v8 = vld [vmem:[#allocation7 + $0x8] sm:$0xff]  ;;  %v430_v10 = vld [vmem:[#allocation7] sm:$0xff] }
  0x97   : > { %5135 = vmatprep.subr.mxu1 %v439_v56  ;;  %5074 = vmatpush3.msra.mxu0 %v476_v55  ;;  %v446_v11 = vld [vmem:[#allocation2 + $0x8] sm:$0xff]  ;;  %v447_v13 = vld [vmem:[#allocation2 + $0x10] sm:$0xff]  ;;  %v849_v15 = vld [vmem:[#allocation7 + $0x178] sm:$0xff] }
  0x98   : > { %5136 = vmatpush3.msra.mxu1 %v439_v56  ;;  %5075 = vmatprep.subr.mxu0 %v475_v57  ;;  %v410_v12 = vld [vmem:[#allocation2 + $0x7] sm:$0xff]  ;;  %v411_v14 = vld [vmem:[#allocation2 + $0xf] sm:$0xff]  ;;  %v1072_v19 = vld [vmem:[#allocation7 + $0x1f8] sm:$0xff] }
  0x99   : > { %5137 = vmatprep.subr.mxu1 %v438_v58  ;;  %5076 = vmatpush3.msra.mxu0 %v475_v57  ;;  %v6809_v16 = vld [vmem:[#allocation2 + $0x28] sm:$0xff]  ;;  %v848_v18 = vld [vmem:[#allocation7 + $0x170] sm:$0xff]  ;;  %v846_v27 = vld [vmem:[#allocation7 + $0x160] sm:$0xff] }
  0x9a   : > { %5138 = vmatpush3.msra.mxu1 %v438_v58  ;;  %5077 = vmatprep.subr.mxu0 %v474_v59  ;;  %v6811_v17 = vld [vmem:[#allocation2 + $0x27] sm:$0xff]  ;;  %v6814_v20 = vld [vmem:[#allocation2 + $0x30] sm:$0xff]  ;;  %v845_v30 = vld [vmem:[#allocation7 + $0x158] sm:$0xff] }
  0x9b   : > { %5139 = vmatprep.subr.mxu1 %v437_v60  ;;  %5078 = vmatpush3.msra.mxu0 %v474_v59  ;;  %v6816_v21 = vld [vmem:[#allocation2 + $0x2f] sm:$0xff]  ;;  %v6821_v24 = vld [vmem:[#allocation2 + $0x47] sm:$0xff]  ;;  %v1068_v44 = vld [vmem:[#allocation7 + $0x1d8] sm:$0xff] }
  0x9c   : > { %5140 = vmatpush3.msra.mxu1 %v437_v60  ;;  %5079 = vmatprep.subr.mxu0 %v473_v61  ;;  %v6819_v22 = vld [vmem:[#allocation2 + $0x48] sm:$0xff]  ;;  %v6826_v25 = vld [vmem:[#allocation2 + $0x50] sm:$0xff]  ;;  %v1069_v41 = vld [vmem:[#allocation7 + $0x1e0] sm:$0xff] }
  0x9d   : > { %5141 = vmatprep.subr.mxu1 %v436_v62  ;;  %5080 = vmatpush3.msra.mxu0 %v473_v61  ;;  %v847_v23 = vld [vmem:[#allocation7 + $0x168] sm:$0xff]  ;;  %v1071_v31 = vld [vmem:[#allocation7 + $0x1f0] sm:$0xff]  ;;  %v842_v42 = vld [vmem:[#allocation7 + $0x140] sm:$0xff] }
  0x9e   : > { %5142 = vmatpush3.msra.mxu1 %v436_v62  ;;  %5081 = vmatprep.subr.mxu0 %v472_v63  ;;  %v6828_v26 = vld [vmem:[#allocation2 + $0x4f] sm:$0xff]  ;;  %v6833_v29 = vld [vmem:[#allocation2 + $0x67] sm:$0xff]  ;;  %v841_v48 = vld [vmem:[#allocation7 + $0x138] sm:$0xff] }
  0x9f   : > { %5143 = vmatprep.subr.mxu1 %v435_v0  ;;  %5082 = vmatpush3.msra.mxu0 %v472_v63  ;;  %v6831_v28 = vld [vmem:[#allocation2 + $0x68] sm:$0xff]  ;;  %v6841_v33 = vld [vmem:[#allocation2 + $0x70] sm:$0xff]  ;;  %v1065_v56 = vld [vmem:[#allocation7 + $0x1c0] sm:$0xff] }
  0xa0   : > { %5144 = vmatpush3.msra.mxu1 %v435_v0  ;;  %5083 = vmatprep.subr.mxu0 %v471_v1  ;;  %v6838_v32 = vld [vmem:[#allocation2 + $0x6f] sm:$0xff]  ;;  %v6847_v37 = vld [vmem:[#allocation2 + $0x87] sm:$0xff]  ;;  %v1064_v58 = vld [vmem:[#allocation7 + $0x1b8] sm:$0xff] }
  0xa1   : > { %5145 = vmatprep.subr.mxu1 %v434_v2  ;;  %5084 = vmatpush3.msra.mxu0 %v471_v1  ;;  %v844_v34 = vld [vmem:[#allocation7 + $0x150] sm:$0xff]  ;;  %v1070_v35 = vld [vmem:[#allocation7 + $0x1e8] sm:$0xff]  ;;  %v838_v63 = vld [vmem:[#allocation7 + $0x120] sm:$0xff] }
  0xa2   : > { %5146 = vmatpush3.msra.mxu1 %v434_v2  ;;  %5085 = vmatprep.subr.mxu0 %v470_v3  ;;  %v6844_v36 = vld [vmem:[#allocation2 + $0x88] sm:$0xff]  ;;  %v6849_v39 = vld [vmem:[#allocation2 + $0x90] sm:$0xff]  ;;  %v837_v1 = vld [vmem:[#allocation7 + $0x118] sm:$0xff] }
  0xa3   : > { %5147 = vmatprep.subr.mxu1 %v433_v4  ;;  %5086 = vmatpush3.msra.mxu0 %v470_v3  ;;  %v843_v38 = vld [vmem:[#allocation7 + $0x148] sm:$0xff]  ;;  %v6862_v46 = vld [vmem:[#allocation2 + $0xb0] sm:$0xff] }
  0xa4   : > { %5148 = vmatpush3.msra.mxu1 %v433_v4  ;;  %5087 = vmatprep.subr.mxu0 %v469_v5  ;;  %v6852_v40 = vld [vmem:[#allocation2 + $0x8f] sm:$0xff]  ;;  %v6859_v45 = vld [vmem:[#allocation2 + $0xa7] sm:$0xff] }
  0xa5   : > { %5149 = vmatprep.subr.mxu1 %v432_v6  ;;  %5088 = vmatpush3.msra.mxu0 %v469_v5  ;;  %v6856_v43 = vld [vmem:[#allocation2 + $0xa8] sm:$0xff]  ;;  %v1067_v49 = vld [vmem:[#allocation7 + $0x1d0] sm:$0xff] }
  0xa6   : > { %5150 = vmatpush3.msra.mxu1 %v432_v6  ;;  %5089 = vmatprep.subr.mxu0 %v468_v7  ;;  %v6864_v47 = vld [vmem:[#allocation2 + $0xaf] sm:$0xff]  ;;  %v6871_v52 = vld [vmem:[#allocation2 + $0xc7] sm:$0xff] }
  0xa7   : > { %5151 = vmatprep.subr.mxu1 %v431_v8  ;;  %5090 = vmatpush3.msra.mxu0 %v468_v7  ;;  %v1066_v50 = vld [vmem:[#allocation7 + $0x1c8] sm:$0xff]  ;;  %v840_v53 = vld [vmem:[#allocation7 + $0x130] sm:$0xff]  ;;  %v1061_v7 = vld [vmem:[#allocation7 + $0x1a0] sm:$0xff] }
  0xa8   : > { %5152 = vmatpush3.msra.mxu1 %v431_v8  ;;  %5091 = vmatprep.subr.mxu0 %v467_v9  ;;  %v6869_v51 = vld [vmem:[#allocation2 + $0xc8] sm:$0xff]  ;;  %v6873_v54 = vld [vmem:[#allocation2 + $0xd0] sm:$0xff] }
  0xa9   : > { %5153 = vmatprep.subr.mxu1 %v430_v10  ;;  %5092 = vmatpush3.msra.mxu0 %v467_v9  ;;  %v6876_v55 = vld [vmem:[#allocation2 + $0xcf] sm:$0xff]  ;;  %v6883_v60 = vld [vmem:[#allocation2 + $0xe7] sm:$0xff]  ;;  %v1060_v9 = vld [vmem:[#allocation7 + $0x198] sm:$0xff] }
  0xaa   : > { %5093 = vmatprep.mubr.f32.mxu0 %v446_v11  ;;  %5154 = vmatpush3.msra.mxu1 %v430_v10  ;;  %v839_v57 = vld [vmem:[#allocation7 + $0x128] sm:$0xff]  ;;  %v6885_v61 = vld [vmem:[#allocation2 + $0xf0] sm:$0xff] }
  0xab   : > { %5155 = vmatprep.mubr.f32.mxu1 %v410_v12  ;;  %5094 = vmatmul.mubr.f32.vlgmr.msra.gmra.mxu0 %v447_v13  ;;  %v6881_v59 = vld [vmem:[#allocation2 + $0xe8] sm:$0xff]  ;;  %v1063_v0 = vld [vmem:[#allocation7 + $0x1b0] sm:$0xff] }
  0xac   : > { %5156 = vmatmul.mubr.f32.vlgmr.msra.gmra.mxu1 %v411_v14  ;;  %5185 = vmatprep.subr.mxu0 %v849_v15  ;;  %v6887_v62 = vld [vmem:[#allocation2 + $0xef] sm:$0xff]  ;;  %v6895_v4 = vld [vmem:[#allocation2 + $0x107] sm:$0xff] }
  0xad   : > { %5096 = vmatprep.mubr.f32.mxu0 %v6809_v16  ;;  %5186 = vmatpush3.msra.mxu0 %v849_v15  ;;  %v1062_v2 = vld [vmem:[#allocation7 + $0x1a8] sm:$0xff]  ;;  %v6897_v5 = vld [vmem:[#allocation2 + $0x110] sm:$0xff] }
  0xae   : > { %5158 = vmatprep.mubr.f32.mxu1 %v6811_v17  ;;  %5187 = vmatprep.subr.mxu0 %v848_v18  ;;  %v6893_v3 = vld [vmem:[#allocation2 + $0x108] sm:$0xff]  ;;  %v836_v8 = vld [vmem:[#allocation7 + $0x110] sm:$0xff] }
  0xaf   : > { %5247 = vmatprep.subr.mxu1 %v1072_v19  ;;  %5097 = vmatmul.mubr.f32.gmra.mxu0 %v6814_v20  ;;  %v6899_v6 = vld [vmem:[#allocation2 + $0x10f] sm:$0xff]  ;;  %v6907_v11 = vld [vmem:[#allocation2 + $0x127] sm:$0xff] }
  0xb0   : > { %5159 = vmatmul.mubr.f32.gmra.mxu1 %v6816_v21  ;;  %5188 = vmatpush3.msra.mxu0 %v848_v18  ;;  %v6905_v10 = vld [vmem:[#allocation2 + $0x128] sm:$0xff]  ;;  %v6909_v13 = vld [vmem:[#allocation2 + $0x130] sm:$0xff]  ;;  %v834_v18 = vld [vmem:[#allocation7 + $0x100] sm:$0xff] }
  0xb1   : > { %5099 = vmatprep.mubr.f32.mxu0 %v6819_v22  ;;  %5189 = vmatprep.subr.mxu0 %v847_v23  ;;  %v835_v12 = vld [vmem:[#allocation7 + $0x108] sm:$0xff]  ;;  %v1059_v15 = vld [vmem:[#allocation7 + $0x190] sm:$0xff] }
  0xb2   : > { %5161 = vmatprep.mubr.f32.mxu1 %v6821_v24  ;;  %5190 = vmatpush3.msra.mxu0 %v847_v23  ;;  %v6912_v14 = vld [vmem:[#allocation2 + $0x12f] sm:$0xff] }
  0xb3   : > { %5248 = vmatpush3.msra.mxu1 %v1072_v19  ;;  %5100 = vmatmul.mubr.f32.gmra.mxu0 %v6826_v25  ;;  %v1058_v19 = vld [vmem:[#allocation7 + $0x188] sm:$0xff] }
  0xb4   : > { %5162 = vmatmul.mubr.f32.gmra.mxu1 %v6828_v26  ;;  %5191 = vmatprep.subr.mxu0 %v846_v27  ;;  %v813_v23 = vld [vmem:[#allocation2 + $0x9] sm:$0xff] }
  0xb5   : > { %5102 = vmatprep.mubr.f32.mxu0 %v6831_v28  ;;  %5192 = vmatpush3.msra.mxu0 %v846_v27  ;;  %v814_v27 = vld [vmem:[#allocation2 + $0x11] sm:$0xff] }
  0xb6   : > { %5164 = vmatprep.mubr.f32.mxu1 %v6833_v29  ;;  %5193 = vmatprep.subr.mxu0 %v845_v30 }
  0xb7   : > { %5249 = vmatprep.subr.mxu1 %v1071_v31  ;;  %5194 = vmatpush3.msra.mxu0 %v845_v30  ;;  %v1057_v30 = vld [vmem:[#allocation7 + $0x180] sm:$0xff] }
  0xb8   : > { %5165 = vmatmul.mubr.f32.gmra.mxu1 %v6838_v32  ;;  %5103 = vmatmul.mubr.f32.gmra.mxu0 %v6841_v33 }
  0xb9   : > { %5195 = vmatprep.subr.mxu0 %v844_v34  ;;  %5250 = vmatpush3.msra.mxu1 %v1071_v31  ;;  %v1294_v31 = vld [vmem:[#allocation7 + $0x278] sm:$0xff] }
  0xba   : > { %5196 = vmatpush3.msra.mxu0 %v844_v34  ;;  %5251 = vmatprep.subr.mxu1 %v1070_v35  ;;  %v6917_v34 = vld [vmem:[#allocation2 + $0x29] sm:$0xff] }
  0xbb   : > { %5105 = vmatprep.mubr.f32.mxu0 %v6844_v36  ;;  %5167 = vmatprep.mubr.f32.mxu1 %v6847_v37 }
  0xbc   : > { %5197 = vmatprep.subr.mxu0 %v843_v38  ;;  %5252 = vmatpush3.msra.mxu1 %v1070_v35  ;;  %v1293_v35 = vld [vmem:[#allocation7 + $0x270] sm:$0xff] }
  0xbd   : > { %5106 = vmatmul.mubr.f32.gmra.mxu0 %v6849_v39  ;;  %5168 = vmatmul.mubr.f32.gmra.mxu1 %v6852_v40 }
  0xbe   : > { %5198 = vmatpush3.msra.mxu0 %v843_v38  ;;  %5253 = vmatprep.subr.mxu1 %v1069_v41  ;;  %v6920_v38 = vld [vmem:[#allocation2 + $0x31] sm:$0xff] }
  0xbf   : > { %5199 = vmatprep.subr.mxu0 %v842_v42  ;;  %5254 = vmatpush3.msra.mxu1 %v1069_v41  ;;  %v6923_v41 = vld [vmem:[#allocation2 + $0x49] sm:$0xff] }
  0xc0   : > { %5108 = vmatprep.mubr.f32.mxu0 %v6856_v43  ;;  %5255 = vmatprep.subr.mxu1 %v1068_v44 }
  0xc1   : > { %5170 = vmatprep.mubr.f32.mxu1 %v6859_v45  ;;  %5200 = vmatpush3.msra.mxu0 %v842_v42  ;;  %v1292_v42 = vld [vmem:[#allocation7 + $0x268] sm:$0xff] }
  0xc2   : > { %5256 = vmatpush3.msra.mxu1 %v1068_v44  ;;  %5109 = vmatmul.mubr.f32.gmra.mxu0 %v6862_v46  ;;  %v6929_v44 = vld [vmem:[#allocation2 + $0x51] sm:$0xff] }
  0xc3   : > { %5171 = vmatmul.mubr.f32.gmra.mxu1 %v6864_v47  ;;  %5201 = vmatprep.subr.mxu0 %v841_v48 }
  0xc4   : > { %5257 = vmatprep.subr.mxu1 %v1067_v49  ;;  %5202 = vmatpush3.msra.mxu0 %v841_v48  ;;  %v1290_v48 = vld [vmem:[#allocation7 + $0x258] sm:$0xff] }
  0xc5   : > { %5258 = vmatpush3.msra.mxu1 %v1067_v49  ;;  %5111 = vmatprep.mubr.f32.mxu0 %v6869_v51  ;;  %v6934_v49 = vld [vmem:[#allocation2 + $0x69] sm:$0xff] }
  0xc6   : > { %5259 = vmatprep.subr.mxu1 %v1066_v50  ;;  %5173 = vmatprep.mubr.f32.mxu1 %v6871_v52 }
  0xc7   : > { %5203 = vmatprep.subr.mxu0 %v840_v53  ;;  %5260 = vmatpush3.msra.mxu1 %v1066_v50  ;;  %v6936_v50 = vld [vmem:[#allocation2 + $0x71] sm:$0xff] }
  0xc8   : > { %5112 = vmatmul.mubr.f32.gmra.mxu0 %v6873_v54  ;;  %5174 = vmatmul.mubr.f32.gmra.mxu1 %v6876_v55 }
  0xc9   : > { %5204 = vmatpush3.msra.mxu0 %v840_v53  ;;  %5261 = vmatprep.subr.mxu1 %v1065_v56  ;;  %v1515_v53 = vld [vmem:[#allocation7 + $0x2f0] sm:$0xff] }
  0xca   : > { %5205 = vmatprep.subr.mxu0 %v839_v57  ;;  %5262 = vmatpush3.msra.mxu1 %v1065_v56  ;;  %v1289_v56 = vld [vmem:[#allocation7 + $0x250] sm:$0xff] }
  0xcb   : > { %5206 = vmatpush3.msra.mxu0 %v839_v57  ;;  %5263 = vmatprep.subr.mxu1 %v1064_v58  ;;  %v1514_v57 = vld [vmem:[#allocation7 + $0x2e8] sm:$0xff] }
  0xcc   : > { %5114 = vmatprep.mubr.f32.mxu0 %v6881_v59  ;;  %5176 = vmatprep.mubr.f32.mxu1 %v6883_v60 }
  0xcd   : > { %5264 = vmatpush3.msra.mxu1 %v1064_v58  ;;  %5115 = vmatmul.mubr.f32.gmra.mxu0 %v6885_v61  ;;  %v6942_v58 = vld [vmem:[#allocation2 + $0x89] sm:$0xff] }
  0xce   : > { %5177 = vmatmul.mubr.f32.gmra.mxu1 %v6887_v62  ;;  %5207 = vmatprep.subr.mxu0 %v838_v63 }
  0xcf   : > { %5265 = vmatprep.subr.mxu1 %v1063_v0  ;;  %5208 = vmatpush3.msra.mxu0 %v838_v63  ;;  %v1288_v63 = vld [vmem:[#allocation7 + $0x248] sm:$0xff] }
  0xd0   : > { %5266 = vmatpush3.msra.mxu1 %v1063_v0  ;;  %5209 = vmatprep.subr.mxu0 %v837_v1  ;;  %v6945_v0 = vld [vmem:[#allocation2 + $0x91] sm:$0xff] }
  0xd1   : > { %5267 = vmatprep.subr.mxu1 %v1062_v2  ;;  %5117 = vmatprep.mubr.f32.mxu0 %v6893_v3 }
  0xd2   : > { %5179 = vmatprep.mubr.f32.mxu1 %v6895_v4  ;;  %5210 = vmatpush3.msra.mxu0 %v837_v1  ;;  %v1513_v1 = vld [vmem:[#allocation7 + $0x2e0] sm:$0xff] }
  0xd3   : > { %5268 = vmatpush3.msra.mxu1 %v1062_v2  ;;  %5118 = vmatmul.mubr.f32.gmra.mxu0 %v6897_v5  ;;  %v1287_v2 = vld [vmem:[#allocation7 + $0x240] sm:$0xff] }
  0xd4   : > { %5180 = vmatmul.mubr.f32.gmra.mxu1 %v6899_v6  ;;  %5269 = vmatprep.subr.mxu1 %v1061_v7 }
  0xd5   : > { %5211 = vmatprep.subr.mxu0 %v836_v8  ;;  %5270 = vmatpush3.msra.mxu1 %v1061_v7  ;;  %v1512_v7 = vld [vmem:[#allocation7 + $0x2d8] sm:$0xff] }
  0xd6   : > { %5212 = vmatpush3.msra.mxu0 %v836_v8  ;;  %5271 = vmatprep.subr.mxu1 %v1060_v9  ;;  %v6950_v8 = vld [vmem:[#allocation2 + $0xa9] sm:$0xff] }
  0xd7   : > { %5120 = vmatprep.mubr.f32.mxu0 %v6905_v10  ;;  %5182 = vmatprep.mubr.f32.mxu1 %v6907_v11 }
  0xd8   : > { %5213 = vmatprep.subr.mxu0 %v835_v12  ;;  %5272 = vmatpush3.msra.mxu1 %v1060_v9  ;;  %v6952_v9 = vld [vmem:[#allocation2 + $0xb1] sm:$0xff] }
  0xd9   : > { %5121 = vmatmul.mubr.f32.gmra.mxu0 %v6909_v13  ;;  %5183 = vmatmul.mubr.f32.gmra.mxu1 %v6912_v14 }
  0xda   : > { %5214 = vmatpush3.msra.mxu0 %v835_v12  ;;  %5273 = vmatprep.subr.mxu1 %v1059_v15  ;;  %v1286_v12 = vld [vmem:[#allocation7 + $0x238] sm:$0xff] }
  0xdb   : > { %5215 = vmatprep.subr.mxu0 %v834_v18  ;;  %5274 = vmatpush3.msra.mxu1 %v1059_v15  ;;  %v1511_v15 = vld [vmem:[#allocation7 + $0x2d0] sm:$0xff] }
  0xdc   : > { %5216 = vmatpush3.msra.mxu0 %v834_v18  ;;  %5275 = vmatprep.subr.mxu1 %v1058_v19  ;;  %v6957_v18 = vld [vmem:[#allocation2 + $0xc9] sm:$0xff] }
  0xdd   : > { %5217 = vmatprep.mubr.f32.mxu0 %v813_v23  ;;  %5276 = vmatpush3.msra.mxu1 %v1058_v19  ;;  %v1510_v19 = vld [vmem:[#allocation7 + $0x2c8] sm:$0xff]  ;;  %v1285_v23 = vld [vmem:[#allocation7 + $0x230] sm:$0xff] }
  0xde   : > { %5218 = vmatmul.mubr.f32.vlgmr.msra.gmra.mxu0 %v814_v27  ;;  %5277 = vmatprep.subr.mxu1 %v1057_v30  ;;  %v6961_v27 = vld [vmem:[#allocation2 + $0xd1] sm:$0xff] }
  0xdf   : > { %5309 = vmatprep.subr.mxu0 %v1294_v31  ;;  %5278 = vmatpush3.msra.mxu1 %v1057_v30  ;;  %v1509_v30 = vld [vmem:[#allocation7 + $0x2c0] sm:$0xff] }
  0xe0   : > { %5279 = vmatprep.mubr.f32.mxu1 %v6811_v17  ;;  %5310 = vmatpush3.msra.mxu0 %v1294_v31  ;;  %v1291_v17 = vld [vmem:[#allocation7 + $0x260] sm:$0xff]  ;;  %v1284_v31 = vld [vmem:[#allocation7 + $0x228] sm:$0xff] }
  0xe1   : > { %5280 = vmatmul.mubr.f32.vlgmr.msra.gmra.mxu1 %v6816_v21  ;;  %5220 = vmatprep.mubr.f32.mxu0 %v6917_v34  ;;  %v1516_v21 = vld [vmem:[#allocation7 + $0x2f8] sm:$0xff] }
  0xe2   : > { %5311 = vmatprep.subr.mxu0 %v1293_v35  ;;  %5221 = vmatmul.mubr.f32.gmra.mxu0 %v6920_v38 }
  0xe3   : > { %5282 = vmatprep.mubr.f32.mxu1 %v6821_v24  ;;  %5312 = vmatpush3.msra.mxu0 %v1293_v35  ;;  %v1508_v35 = vld [vmem:[#allocation7 + $0x2b8] sm:$0xff] }
  0xe4   : > { %5223 = vmatprep.mubr.f32.mxu0 %v6923_v41  ;;  %5313 = vmatprep.subr.mxu0 %v1292_v42 }
  0xe5   : > { %5283 = vmatmul.mubr.f32.gmra.mxu1 %v6828_v26  ;;  %5314 = vmatpush3.msra.mxu0 %v1292_v42  ;;  %v6966_v42 = vld [vmem:[#allocation2 + $0xe9] sm:$0xff] }
  0xe6   : > { %5285 = vmatprep.mubr.f32.mxu1 %v6833_v29  ;;  %5224 = vmatmul.mubr.f32.gmra.mxu0 %v6929_v44 }
  0xe7   : > { %5315 = vmatprep.subr.mxu0 %v1291_v17  ;;  %5371 = vmatprep.subr.mxu1 %v1516_v21 }
  0xe8   : > { %5316 = vmatpush3.msra.mxu0 %v1291_v17  ;;  %5226 = vmatprep.mubr.f32.mxu0 %v6934_v49  ;;  %v6968_v17 = vld [vmem:[#allocation2 + $0xf1] sm:$0xff] }
  0xe9   : > { %5286 = vmatmul.mubr.f32.gmra.mxu1 %v6838_v32  ;;  %5317 = vmatprep.subr.mxu0 %v1290_v48 }
  0xea   : > { %5318 = vmatpush3.msra.mxu0 %v1290_v48  ;;  %5372 = vmatpush3.msra.mxu1 %v1516_v21  ;;  %v1283_v21 = vld [vmem:[#allocation7 + $0x220] sm:$0xff]  ;;  %v1507_v48 = vld [vmem:[#allocation7 + $0x2b0] sm:$0xff] }
  0xeb   : > { %5227 = vmatmul.mubr.f32.gmra.mxu0 %v6936_v50  ;;  %5373 = vmatprep.subr.mxu1 %v1515_v53 }
  0xec   : > { %5288 = vmatprep.mubr.f32.mxu1 %v6847_v37  ;;  %5319 = vmatprep.subr.mxu0 %v1289_v56 }
  0xed   : > { %5374 = vmatpush3.msra.mxu1 %v1515_v53  ;;  %5320 = vmatpush3.msra.mxu0 %v1289_v56  ;;  %v1282_v53 = vld [vmem:[#allocation7 + $0x218] sm:$0xff]  ;;  %v1506_v56 = vld [vmem:[#allocation7 + $0x2a8] sm:$0xff] }
  0xee   : > { %5289 = vmatmul.mubr.f32.gmra.mxu1 %v6852_v40  ;;  %5375 = vmatprep.subr.mxu1 %v1514_v57 }
  0xef   : > { %5229 = vmatprep.mubr.f32.mxu0 %v6942_v58  ;;  %5321 = vmatprep.subr.mxu0 %v1288_v63 }
  0xf0   : > { %5376 = vmatpush3.msra.mxu1 %v1514_v57  ;;  %5230 = vmatmul.mubr.f32.gmra.mxu0 %v6945_v0  ;;  %v6974_v57 = vld [vmem:[#allocation2 + $0x109] sm:$0xff] }
  0xf1   : > { %5377 = vmatprep.subr.mxu1 %v1513_v1  ;;  %5322 = vmatpush3.msra.mxu0 %v1288_v63  ;;  %v6976_v63 = vld [vmem:[#allocation2 + $0x111] sm:$0xff] }
  0xf2   : > { %5291 = vmatprep.mubr.f32.mxu1 %v6859_v45  ;;  %5378 = vmatpush3.msra.mxu1 %v1513_v1  ;;  %v1505_v1 = vld [vmem:[#allocation7 + $0x2a0] sm:$0xff] }
  0xf3   : > { %5323 = vmatprep.subr.mxu0 %v1287_v2  ;;  %5292 = vmatmul.mubr.f32.gmra.mxu1 %v6864_v47 }
  0xf4   : > { %5379 = vmatprep.subr.mxu1 %v1512_v7  ;;  %5232 = vmatprep.mubr.f32.mxu0 %v6950_v8 }
  0xf5   : > { %5324 = vmatpush3.msra.mxu0 %v1287_v2  ;;  %5380 = vmatpush3.msra.mxu1 %v1512_v7  ;;  %v1281_v2 = vld [vmem:[#allocation7 + $0x210] sm:$0xff]  ;;  %v1504_v7 = vld [vmem:[#allocation7 + $0x298] sm:$0xff] }
  0xf6   : > { %5233 = vmatmul.mubr.f32.gmra.mxu0 %v6952_v9  ;;  %5325 = vmatprep.subr.mxu0 %v1286_v12 }
  0xf7   : > { %5381 = vmatprep.subr.mxu1 %v1511_v15  ;;  %5294 = vmatprep.mubr.f32.mxu1 %v6871_v52 }
  0xf8   : > { %5326 = vmatpush3.msra.mxu0 %v1286_v12  ;;  %5382 = vmatpush3.msra.mxu1 %v1511_v15  ;;  %v6982_v12 = vld [vmem:[#allocation2 + $0x129] sm:$0xff] }
  0xf9   : > { %5235 = vmatprep.mubr.f32.mxu0 %v6957_v18  ;;  %5295 = vmatmul.mubr.f32.gmra.mxu1 %v6876_v55  ;;  %v1280_v15 = vld [vmem:[#allocation7 + $0x208] sm:$0xff] }
  0xfa   : > { %5383 = vmatprep.subr.mxu1 %v1510_v19  ;;  %5327 = vmatprep.subr.mxu0 %v1285_v23 }
  0xfb   : > { %5384 = vmatpush3.msra.mxu1 %v1510_v19  ;;  %5236 = vmatmul.mubr.f32.gmra.mxu0 %v6961_v27  ;;  %v6985_v19 = vld [vmem:[#allocation2 + $0x131] sm:$0xff] }
  0xfc   : > { %5385 = vmatprep.subr.mxu1 %v1509_v30  ;;  %5328 = vmatpush3.msra.mxu0 %v1285_v23  ;;  %v1503_v23 = vld [vmem:[#allocation7 + $0x290] sm:$0xff] }
  0xfd   : > { %5297 = vmatprep.mubr.f32.mxu1 %v6883_v60  ;;  %5329 = vmatprep.subr.mxu0 %v1284_v31 }
  0xfe   : > { %5386 = vmatpush3.msra.mxu1 %v1509_v30  ;;  %5330 = vmatpush3.msra.mxu0 %v1284_v31  ;;  %v6988_v30 = vld [vmem:[#allocation2 + $0x147] sm:$0xff] }
  0xff   : > { %5298 = vmatmul.mubr.f32.gmra.mxu1 %v6887_v62  ;;  %5387 = vmatprep.subr.mxu1 %v1508_v35  ;;  %v1279_v31 = vld [vmem:[#allocation7 + $0x200] sm:$0xff] }
 0x100   : > { %5238 = vmatprep.mubr.f32.mxu0 %v6966_v42  ;;  %5388 = vmatpush3.msra.mxu1 %v1508_v35  ;;  %v6991_v35 = vld [vmem:[#allocation2 + $0x14f] sm:$0xff] }
 0x101   : > { %5239 = vmatmul.mubr.f32.gmra.mxu0 %v6968_v17  ;;  %5331 = vmatprep.subr.mxu0 %v1283_v21 }
 0x102   : > { %5389 = vmatprep.subr.mxu1 %v1507_v48  ;;  %5300 = vmatprep.mubr.f32.mxu1 %v6895_v4 }
 0x103   : > { %5332 = vmatpush3.msra.mxu0 %v1283_v21  ;;  %5390 = vmatpush3.msra.mxu1 %v1507_v48  ;;  %v1502_v21 = vld [vmem:[#allocation7 + $0x288] sm:$0xff]  ;;  %v1501_v48 = vld [vmem:[#allocation7 + $0x280] sm:$0xff] }
 0x104   : > { %5333 = vmatprep.subr.mxu0 %v1282_v53  ;;  %5301 = vmatmul.mubr.f32.gmra.mxu1 %v6899_v6 }
 0x105   : > { %5391 = vmatprep.subr.mxu1 %v1506_v56  ;;  %5241 = vmatprep.mubr.f32.mxu0 %v6974_v57 }
 0x106   : > { %5334 = vmatpush3.msra.mxu0 %v1282_v53  ;;  %5392 = vmatpush3.msra.mxu1 %v1506_v56  ;;  %v1739_v53 = vld [vmem:[#allocation7 + $0x378] sm:$0xff]  ;;  %v1738_v56 = vld [vmem:[#allocation7 + $0x370] sm:$0xff] }
 0x107   : > { %5242 = vmatmul.mubr.f32.gmra.mxu0 %v6976_v63  ;;  %5393 = vmatprep.subr.mxu1 %v1505_v1 }
 0x108   : > { %5303 = vmatprep.mubr.f32.mxu1 %v6907_v11  ;;  %5335 = vmatprep.subr.mxu0 %v1281_v2 }
 0x109   : > { %5394 = vmatpush3.msra.mxu1 %v1505_v1  ;;  %5336 = vmatpush3.msra.mxu0 %v1281_v2  ;;  %v1737_v1 = vld [vmem:[#allocation7 + $0x368] sm:$0xff]  ;;  %v1734_v2 = vld [vmem:[#allocation7 + $0x350] sm:$0xff] }
 0x10a   : > { %5304 = vmatmul.mubr.f32.gmra.mxu1 %v6912_v14  ;;  %5395 = vmatprep.subr.mxu1 %v1504_v7 }
 0x10b   : > { %5244 = vmatprep.mubr.f32.mxu0 %v6982_v12  ;;  %5337 = vmatprep.subr.mxu0 %v1280_v15 }
 0x10c   : > { %5396 = vmatpush3.msra.mxu1 %v1504_v7  ;;  %5245 = vmatmul.mubr.f32.gmra.mxu0 %v6985_v19  ;;  %v1959_v7 = vld [vmem:[#allocation7 + $0x3e8] sm:$0xff] }
 0x10d   : > { %5397 = vmatprep.subr.mxu1 %v1503_v23  ;;  %5338 = vmatpush3.msra.mxu0 %v1280_v15  ;;  %v1733_v15 = vld [vmem:[#allocation7 + $0x348] sm:$0xff] }
 0x10e   : > { %5306 = vmatprep.mubr.f32.mxu1 %v6988_v30  ;;  %5398 = vmatpush3.msra.mxu1 %v1503_v23  ;;  %v1958_v23 = vld [vmem:[#allocation7 + $0x3e0] sm:$0xff] }
 0x10f   : > { %5339 = vmatprep.subr.mxu0 %v1279_v31  ;;  %5307 = vmatmul.mubr.f32.gmra.mxu1 %v6991_v35 }
 0x110   : > { %5399 = vmatprep.subr.mxu1 %v1502_v21  ;;  %5340 = vmatpush3.msra.mxu0 %v1279_v31  ;;  %v1732_v31 = vld [vmem:[#allocation7 + $0x340] sm:$0xff] }
 0x111   : > { %5341 = vmatprep.mubr.f32.mxu0 %v6809_v16  ;;  %5400 = vmatpush3.msra.mxu1 %v1502_v21  ;;  %v1736_v16 = vld [vmem:[#allocation7 + $0x360] sm:$0xff]  ;;  %v1957_v21 = vld [vmem:[#allocation7 + $0x3d8] sm:$0xff] }
 0x112   : > { %5342 = vmatmul.mubr.f32.vlgmr.msra.gmra.mxu0 %v6814_v20  ;;  %5401 = vmatprep.subr.mxu1 %v1501_v48  ;;  %v1961_v20 = vld [vmem:[#allocation7 + $0x3f8] sm:$0xff] }
 0x113   : > { %5433 = vmatprep.subr.mxu0 %v1739_v53  ;;  %5402 = vmatpush3.msra.mxu1 %v1501_v48  ;;  %v1731_v48 = vld [vmem:[#allocation7 + $0x338] sm:$0xff] }
 0x114   : > { %5403 = vmatprep.mubr.f32.mxu1 %v6917_v34  ;;  %5434 = vmatpush3.msra.mxu0 %v1739_v53  ;;  %v1735_v34 = vld [vmem:[#allocation7 + $0x358] sm:$0xff]  ;;  %v1956_v53 = vld [vmem:[#allocation7 + $0x3d0] sm:$0xff] }
 0x115   : > { %5404 = vmatmul.mubr.f32.vlgmr.msra.gmra.mxu1 %v6920_v38  ;;  %5344 = vmatprep.mubr.f32.mxu0 %v6819_v22  ;;  %v1960_v38 = vld [vmem:[#allocation7 + $0x3f0] sm:$0xff] }
 0x116   : > { %5435 = vmatprep.subr.mxu0 %v1738_v56  ;;  %5345 = vmatmul.mubr.f32.gmra.mxu0 %v6826_v25 }
 0x117   : > { %5406 = vmatprep.mubr.f32.mxu1 %v6923_v41  ;;  %5436 = vmatpush3.msra.mxu0 %v1738_v56  ;;  %v1955_v56 = vld [vmem:[#allocation7 + $0x3c8] sm:$0xff] }
 0x118   : > { %5347 = vmatprep.mubr.f32.mxu0 %v6831_v28  ;;  %5437 = vmatprep.subr.mxu0 %v1737_v1 }
 0x119   : > { %5407 = vmatmul.mubr.f32.gmra.mxu1 %v6929_v44  ;;  %5438 = vmatpush3.msra.mxu0 %v1737_v1  ;;  %v1730_v1 = vld [vmem:[#allocation7 + $0x330] sm:$0xff] }
 0x11a   : > { %5409 = vmatprep.mubr.f32.mxu1 %v6934_v49  ;;  %5348 = vmatmul.mubr.f32.gmra.mxu0 %v6841_v33 }
 0x11b   : > { %5439 = vmatprep.subr.mxu0 %v1736_v16  ;;  %5495 = vmatprep.subr.mxu1 %v1961_v20 }
 0x11c   : > { %5440 = vmatpush3.msra.mxu0 %v1736_v16  ;;  %5350 = vmatprep.mubr.f32.mxu0 %v6844_v36  ;;  %v1954_v16 = vld [vmem:[#allocation7 + $0x3c0] sm:$0xff] }
 0x11d   : > { %5410 = vmatmul.mubr.f32.gmra.mxu1 %v6936_v50  ;;  %5441 = vmatprep.subr.mxu0 %v1735_v34 }
 0x11e   : > { %5442 = vmatpush3.msra.mxu0 %v1735_v34  ;;  %5496 = vmatpush3.msra.mxu1 %v1961_v20  ;;  %v1729_v20 = vld [vmem:[#allocation7 + $0x328] sm:$0xff]  ;;  %v1953_v34 = vld [vmem:[#allocation7 + $0x3b8] sm:$0xff] }
 0x11f   : > { %5351 = vmatmul.mubr.f32.gmra.mxu0 %v6849_v39  ;;  %5497 = vmatprep.subr.mxu1 %v1960_v38 }
 0x120   : > { %5412 = vmatprep.mubr.f32.mxu1 %v6942_v58  ;;  %5443 = vmatprep.subr.mxu0 %v1734_v2 }
 0x121   : > { %5498 = vmatpush3.msra.mxu1 %v1960_v38  ;;  %5444 = vmatpush3.msra.mxu0 %v1734_v2  ;;  %v1728_v38 = vld [vmem:[#allocation7 + $0x320] sm:$0xff]  ;;  %v1952_v2 = vld [vmem:[#allocation7 + $0x3b0] sm:$0xff] }
 0x122   : > { %5413 = vmatmul.mubr.f32.gmra.mxu1 %v6945_v0  ;;  %5499 = vmatprep.subr.mxu1 %v1959_v7 }
 0x123   : > { %5353 = vmatprep.mubr.f32.mxu0 %v6856_v43  ;;  %5445 = vmatprep.subr.mxu0 %v1733_v15 }
 0x124   : > { %5500 = vmatpush3.msra.mxu1 %v1959_v7  ;;  %5354 = vmatmul.mubr.f32.gmra.mxu0 %v6862_v46  ;;  %v1727_v7 = vld [vmem:[#allocation7 + $0x318] sm:$0xff] }
 0x125   : > { %5501 = vmatprep.subr.mxu1 %v1958_v23  ;;  %5446 = vmatpush3.msra.mxu0 %v1733_v15  ;;  %v1951_v15 = vld [vmem:[#allocation7 + $0x3a8] sm:$0xff] }
 0x126   : > { %5415 = vmatprep.mubr.f32.mxu1 %v6950_v8  ;;  %5502 = vmatpush3.msra.mxu1 %v1958_v23  ;;  %v1950_v23 = vld [vmem:[#allocation7 + $0x3a0] sm:$0xff] }
 0x127   : > { %5447 = vmatprep.subr.mxu0 %v1732_v31  ;;  %5416 = vmatmul.mubr.f32.gmra.mxu1 %v6952_v9 }
 0x128   : > { %5503 = vmatprep.subr.mxu1 %v1957_v21  ;;  %5356 = vmatprep.mubr.f32.mxu0 %v6869_v51 }
 0x129   : > { %5448 = vmatpush3.msra.mxu0 %v1732_v31  ;;  %5504 = vmatpush3.msra.mxu1 %v1957_v21  ;;  %v1726_v31 = vld [vmem:[#allocation7 + $0x310] sm:$0xff]  ;;  %v1949_v21 = vld [vmem:[#allocation7 + $0x398] sm:$0xff] }
 0x12a   : > { %5357 = vmatmul.mubr.f32.gmra.mxu0 %v6873_v54  ;;  %5449 = vmatprep.subr.mxu0 %v1731_v48 }
 0x12b   : > { %5505 = vmatprep.subr.mxu1 %v1956_v53  ;;  %5418 = vmatprep.mubr.f32.mxu1 %v6957_v18 }
 0x12c   : > { %5450 = vmatpush3.msra.mxu0 %v1731_v48  ;;  %5506 = vmatpush3.msra.mxu1 %v1956_v53  ;;  %v7030_v48 = vld [vmem:[#allocation2 + $0x148] sm:$0xff] }
 0x12d   : > { %5359 = vmatprep.mubr.f32.mxu0 %v6881_v59  ;;  %5419 = vmatmul.mubr.f32.gmra.mxu1 %v6961_v27  ;;  %v1725_v53 = vld [vmem:[#allocation7 + $0x308] sm:$0xff] }
 0x12e   : > { %5507 = vmatprep.subr.mxu1 %v1955_v56  ;;  %5451 = vmatprep.subr.mxu0 %v1730_v1 }
 0x12f   : > { %5508 = vmatpush3.msra.mxu1 %v1955_v56  ;;  %5360 = vmatmul.mubr.f32.gmra.mxu0 %v6885_v61  ;;  %v7033_v56 = vld [vmem:[#allocation2 + $0x150] sm:$0xff] }
 0x130   : > { %5509 = vmatprep.subr.mxu1 %v1954_v16  ;;  %5452 = vmatpush3.msra.mxu0 %v1730_v1  ;;  %v1948_v1 = vld [vmem:[#allocation7 + $0x390] sm:$0xff] }
 0x131   : > { %5421 = vmatprep.mubr.f32.mxu1 %v6966_v42  ;;  %5453 = vmatprep.subr.mxu0 %v1729_v20 }
 0x132   : > { %5510 = vmatpush3.msra.mxu1 %v1954_v16  ;;  %5454 = vmatpush3.msra.mxu0 %v1729_v20  ;;  %v7036_v16 = vld [vmem:[#allocation2 + $0x149] sm:$0xff]  ;;  %v1724_v20 = vld [vmem:[#allocation7 + $0x300] sm:$0xff] }
 0x133   : > { %5422 = vmatmul.mubr.f32.gmra.mxu1 %v6968_v17  ;;  %5511 = vmatprep.subr.mxu1 %v1953_v34 }
 0x134   : > { %5362 = vmatprep.mubr.f32.mxu0 %v6893_v3  ;;  %5512 = vmatpush3.msra.mxu1 %v1953_v34  ;;  %v7039_v34 = vld [vmem:[#allocation2 + $0x151] sm:$0xff] }
 0x135   : > { %5363 = vmatmul.mubr.f32.gmra.mxu0 %v6897_v5  ;;  %5455 = vmatprep.subr.mxu0 %v1728_v38 }
 0x136   : > { %5513 = vmatprep.subr.mxu1 %v1952_v2  ;;  %5424 = vmatprep.mubr.f32.mxu1 %v6974_v57 }
 0x137   : > { %5456 = vmatpush3.msra.mxu0 %v1728_v38  ;;  %5514 = vmatpush3.msra.mxu1 %v1952_v2  ;;  %v1947_v38 = vld [vmem:[#allocation7 + $0x388] sm:$0xff]  ;;  %v1946_v2 = vld [vmem:[#allocation7 + $0x380] sm:$0xff] }
 0x138   : > { %5457 = vmatprep.subr.mxu0 %v1727_v7  ;;  %5425 = vmatmul.mubr.f32.gmra.mxu1 %v6976_v63 }
 0x139   : > { %5515 = vmatprep.subr.mxu1 %v1951_v15  ;;  %5365 = vmatprep.mubr.f32.mxu0 %v6905_v10 }
 0x13a   : > { %5458 = vmatpush3.msra.mxu0 %v1727_v7  ;;  %5516 = vmatpush3.msra.mxu1 %v1951_v15  ;;  %v2183_v7 = vld [vmem:[#allocation7 + $0x478] sm:$0xff]  ;;  %v2182_v15 = vld [vmem:[#allocation7 + $0x470] sm:$0xff] }
 0x13b   : > { %5366 = vmatmul.mubr.f32.gmra.mxu0 %v6909_v13  ;;  %5517 = vmatprep.subr.mxu1 %v1950_v23 }
 0x13c   : > { %5427 = vmatprep.mubr.f32.mxu1 %v6982_v12  ;;  %5459 = vmatprep.subr.mxu0 %v1726_v31 }
 0x13d   : > { %5518 = vmatpush3.msra.mxu1 %v1950_v23  ;;  %5460 = vmatpush3.msra.mxu0 %v1726_v31  ;;  %v2181_v23 = vld [vmem:[#allocation7 + $0x468] sm:$0xff] }
 0x13e   : > { %5428 = vmatmul.mubr.f32.gmra.mxu1 %v6985_v19  ;;  %5519 = vmatprep.subr.mxu1 %v1949_v21 }
 0x13f   : > { %5368 = vmatprep.mubr.f32.mxu0 %v7030_v48  ;;  %5461 = vmatprep.subr.mxu0 %v1725_v53 }
 0x140   : > { %5520 = vmatpush3.msra.mxu1 %v1949_v21  ;;  %5369 = vmatmul.mubr.f32.gmra.mxu0 %v7033_v56 }
 0x141   : > { %5521 = vmatprep.subr.mxu1 %v1948_v1  ;;  %5462 = vmatpush3.msra.mxu0 %v1725_v53 }
 0x142   : > { %5430 = vmatprep.mubr.f32.mxu1 %v7036_v16  ;;  %5522 = vmatpush3.msra.mxu1 %v1948_v1 }
 0x143   : > { %5463 = vmatprep.subr.mxu0 %v1724_v20  ;;  %5431 = vmatmul.mubr.f32.gmra.mxu1 %v7039_v34 }
 0x144   : > { %5523 = vmatprep.subr.mxu1 %v1947_v38  ;;  %5464 = vmatpush3.msra.mxu0 %v1724_v20 }
 0x145   : > { %5465 = vmatprep.mubr.f32.mxu0 %v6821_v24  ;;  %5524 = vmatpush3.msra.mxu1 %v1947_v38  ;;  %v2180_v24 = vld [vmem:[#allocation7 + $0x460] sm:$0xff] }
 0x146   : > { %5466 = vmatmul.mubr.f32.vlgmr.msra.gmra.mxu0 %v6828_v26  ;;  %5525 = vmatprep.subr.mxu1 %v1946_v2  ;;  %v2177_v26 = vld [vmem:[#allocation7 + $0x448] sm:$0xff] }
 0x147   : > { %5557 = vmatprep.subr.mxu0 %v2183_v7  ;;  %5526 = vmatpush3.msra.mxu1 %v1946_v2 }
 0x148   : > { %5527 = vmatprep.mubr.f32.mxu1 %v6819_v22  ;;  %5558 = vmatpush3.msra.mxu0 %v2183_v7  ;;  %v2179_v22 = vld [vmem:[#allocation7 + $0x458] sm:$0xff] }
 0x149   : > { %5528 = vmatmul.mubr.f32.vlgmr.msra.gmra.mxu1 %v6826_v25  ;;  %5468 = vmatprep.mubr.f32.mxu0 %v6833_v29  ;;  %v2178_v25 = vld [vmem:[#allocation7 + $0x450] sm:$0xff]  ;;  %v2175_v29 = vld [vmem:[#allocation7 + $0x438] sm:$0xff] }
 0x14a   : > { %5559 = vmatprep.subr.mxu0 %v2182_v15  ;;  %5469 = vmatmul.mubr.f32.gmra.mxu0 %v6838_v32  ;;  %v2174_v32 = vld [vmem:[#allocation7 + $0x430] sm:$0xff] }
 0x14b   : > { %5530 = vmatprep.mubr.f32.mxu1 %v6831_v28  ;;  %5560 = vmatpush3.msra.mxu0 %v2182_v15  ;;  %v2176_v28 = vld [vmem:[#allocation7 + $0x440] sm:$0xff] }
 0x14c   : > { %5471 = vmatprep.mubr.f32.mxu0 %v6847_v37  ;;  %5561 = vmatprep.subr.mxu0 %v2181_v23  ;;  %v2171_v37 = vld [vmem:[#allocation7 + $0x418] sm:$0xff] }
 0x14d   : > { %5531 = vmatmul.mubr.f32.gmra.mxu1 %v6841_v33  ;;  %5562 = vmatpush3.msra.mxu0 %v2181_v23  ;;  %v2173_v33 = vld [vmem:[#allocation7 + $0x428] sm:$0xff] }
 0x14e   : > { %5533 = vmatprep.mubr.f32.mxu1 %v6844_v36  ;;  %5472 = vmatmul.mubr.f32.gmra.mxu0 %v6852_v40  ;;  %v2172_v36 = vld [vmem:[#allocation7 + $0x420] sm:$0xff]  ;;  %v2169_v40 = vld [vmem:[#allocation7 + $0x408] sm:$0xff] }
 0x14f   : > { %5563 = vmatprep.subr.mxu0 %v2180_v24  ;;  %5474 = vmatprep.mubr.f32.mxu0 %v6859_v45  ;;  %v1721_v45 = vld [vmem:[#allocation2 + $0x167] sm:$0xff] }
 0x150   : > { %5564 = vmatpush3.msra.mxu0 %v2180_v24  ;;  %v2165_v24 = vld [vmem:[#allocation2 + $0x169] sm:$0xff] }
 0x151   : > { %5534 = vmatmul.mubr.f32.gmra.mxu1 %v6849_v39  ;;  %5565 = vmatprep.subr.mxu0 %v2179_v22  ;;  %v2170_v39 = vld [vmem:[#allocation7 + $0x410] sm:$0xff] }
 0x152   : > { %5566 = vmatpush3.msra.mxu0 %v2179_v22  ;;  %5536 = vmatprep.mubr.f32.mxu1 %v6856_v43  ;;  %v2168_v43 = vld [vmem:[#allocation7 + $0x400] sm:$0xff] }
 0x153   : > { %5475 = vmatmul.mubr.f32.gmra.mxu0 %v6864_v47  ;;  %5567 = vmatprep.subr.mxu0 %v2178_v25  ;;  %v1722_v47 = vld [vmem:[#allocation2 + $0x16f] sm:$0xff] }
 0x154   : > { %5568 = vmatpush3.msra.mxu0 %v2178_v25  ;;  %5477 = vmatprep.mubr.f32.mxu0 %v6871_v52 }
 0x155   : > { %5537 = vmatmul.mubr.f32.gmra.mxu1 %v6862_v46  ;;  %5569 = vmatprep.subr.mxu0 %v2177_v26  ;;  %v1943_v46 = vld [vmem:[#allocation2 + $0x168] sm:$0xff] }
 0x156   : > { %5570 = vmatpush3.msra.mxu0 %v2177_v26  ;;  %5539 = vmatprep.mubr.f32.mxu1 %v6869_v51  ;;  %v1944_v51 = vld [vmem:[#allocation2 + $0x170] sm:$0xff] }
 0x157   : > { %5478 = vmatmul.mubr.f32.gmra.mxu0 %v6876_v55  ;;  %5571 = vmatprep.subr.mxu0 %v2176_v28 }
 0x158   : > { %5480 = vmatprep.mubr.f32.mxu0 %v6883_v60  ;;  %5572 = vmatpush3.msra.mxu0 %v2176_v28 }
 0x159   : > { %5540 = vmatmul.mubr.f32.gmra.mxu1 %v6873_v54  ;;  %5573 = vmatprep.subr.mxu0 %v2175_v29 }
 0x15a   : > { %5542 = vmatprep.mubr.f32.mxu1 %v6881_v59  ;;  %5574 = vmatpush3.msra.mxu0 %v2175_v29 }
 0x15b   : > { %5481 = vmatmul.mubr.f32.gmra.mxu0 %v6887_v62  ;;  %5575 = vmatprep.subr.mxu0 %v2174_v32 }
 0x15c   : > { %5483 = vmatprep.mubr.f32.mxu0 %v6895_v4  ;;  %5576 = vmatpush3.msra.mxu0 %v2174_v32 }
 0x15d   : > { %5543 = vmatmul.mubr.f32.gmra.mxu1 %v6885_v61  ;;  %5577 = vmatprep.subr.mxu0 %v2173_v33 }
 0x15e   : > { %5545 = vmatprep.mubr.f32.mxu1 %v6893_v3  ;;  %5578 = vmatpush3.msra.mxu0 %v2173_v33 }
 0x15f   : > { %5484 = vmatmul.mubr.f32.gmra.mxu0 %v6899_v6  ;;  %5579 = vmatprep.subr.mxu0 %v2172_v36 }
 0x160   : > { %5486 = vmatprep.mubr.f32.mxu0 %v6907_v11  ;;  %5580 = vmatpush3.msra.mxu0 %v2172_v36 }
 0x161   : > { %5546 = vmatmul.mubr.f32.gmra.mxu1 %v6897_v5  ;;  %5581 = vmatprep.subr.mxu0 %v2171_v37 }
 0x162   : > { %5548 = vmatprep.mubr.f32.mxu1 %v6905_v10  ;;  %5582 = vmatpush3.msra.mxu0 %v2171_v37 }
 0x163   : > { %5487 = vmatmul.mubr.f32.gmra.mxu0 %v6912_v14  ;;  %5583 = vmatprep.subr.mxu0 %v2170_v39 }
 0x164   : > { %5489 = vmatprep.mubr.f32.mxu0 %v6988_v30  ;;  %5584 = vmatpush3.msra.mxu0 %v2170_v39 }
 0x165   : > { %5549 = vmatmul.mubr.f32.gmra.mxu1 %v6909_v13  ;;  %5585 = vmatprep.subr.mxu0 %v2169_v40 }
 0x166   : > { %5551 = vmatprep.mubr.f32.mxu1 %v7030_v48  ;;  %5586 = vmatpush3.msra.mxu0 %v2169_v40 }
 0x167   : > { %5490 = vmatmul.mubr.f32.gmra.mxu0 %v6991_v35  ;;  %5587 = vmatprep.subr.mxu0 %v2168_v43 }
 0x168   : > { %5492 = vmatprep.mubr.f32.mxu0 %v1721_v45  ;;  %5588 = vmatpush3.msra.mxu0 %v2168_v43 }
 0x169   : > { %5552 = vmatmul.mubr.f32.gmra.mxu1 %v7033_v56 }
 0x16a   : > { %5554 = vmatprep.mubr.f32.mxu1 %v1943_v46 }
 0x16b   : > { %5493 = vmatmul.mubr.f32.gmra.mxu0 %v1722_v47  ;;  %v5095_v52 = vpop.f32.mrf.mxu0 }
 0x16c   : > { %5589 = vmatprep.mubr.f32.mxu0 %v6923_v41  ;;  %v5157_v54 = vpop.f32.mrf.mxu1 }
 0x16d   : > { %5555 = vmatmul.mubr.f32.gmra.mxu1 %v1944_v51  ;;  %v7080_v55 = vadd.f32 %v5157_v54, %v5095_v52  ;;  %v549_v59 = vpop.f32.mrf.mxu0 }
 0x16e   : > { %v714_v60 = vpop.f32.mrf.mxu1 }
 0x16f   : > { %5590 = vmatmul.mubr.f32.vlgmr.msra.gmra.mxu0 %v6929_v44  ;;  %v7083_v61 = vadd.f32 %v714_v60, %v549_v59  ;;  %v5098_v62 = vpop.f32.mrf.mxu0 }
 0x170   : > { %5592 = vmatprep.mubr.f32.mxu0 %v6934_v49  ;;  %v5160_v3 = vpop.f32.mrf.mxu1 }
 0x171   : > { %v7086_v4 = vadd.f32 %v5160_v3, %v5098_v62  ;;  %v559_v5 = vpop.f32.mrf.mxu0 }
 0x172   : > { %v724_v6 = vpop.f32.mrf.mxu1 }
 0x173   : > { %5593 = vmatmul.mubr.f32.gmra.mxu0 %v6936_v50  ;;  %v7089_v10 = vadd.f32 %v724_v6, %v559_v5  ;;  %v5101_v11 = vpop.f32.mrf.mxu0 }
 0x174   : > { %5595 = vmatprep.mubr.f32.mxu0 %v6942_v58  ;;  %v5163_v13 = vpop.f32.mrf.mxu1 }
 0x175   : > { %v7092_v14 = vadd.f32 %v5163_v13, %v5101_v11  ;;  %v569_v41 = vpop.f32.mrf.mxu0 }
 0x176   : > { %v734_v44 = vpop.f32.mrf.mxu1 }
 0x177   : > { %5596 = vmatmul.mubr.f32.gmra.mxu0 %v6945_v0  ;;  %v7095_v49 = vadd.f32 %v734_v44, %v569_v41 }
 0x178   : > { %5598 = vmatprep.mubr.f32.mxu0 %v6950_v8  ;;  %v5166_v30 = vpop.f32.mrf.mxu1  ;;  %v5104_v35 = vpop.f32.mrf.mxu0 }
 0x179   : > { %v7098_v31 = vadd.f32 %v5166_v30, %v5104_v35 }
 0x17a   : > { %v744_v50 = vpop.f32.mrf.mxu1  ;;  %v579_v58 = vpop.f32.mrf.mxu0 }
 0x17b   : > { %5599 = vmatmul.mubr.f32.gmra.mxu0 %v6952_v9  ;;  %v7102_v21 = vadd.f32 %v744_v50, %v579_v58 }
 0x17c   : > { %5601 = vmatprep.mubr.f32.mxu0 %v6957_v18 }
 0x17d   : > { %v5107_v48 = vpop.f32.mrf.mxu0  ;;  %v5169_v53 = vpop.f32.mrf.mxu1 }
 0x17e   : > { %v7105_v0 = vadd.f32 %v5169_v53, %v5107_v48 }
 0x17f   : > { %5602 = vmatmul.mubr.f32.gmra.mxu0 %v6961_v27  ;;  %v589_v56 = vpop.f32.mrf.mxu0  ;;  %v754_v8 = vpop.f32.mrf.mxu1 }
 0x180   : > { %5604 = vmatprep.mubr.f32.mxu0 %v6966_v42  ;;  %v7108_v1 = vadd.f32 %v754_v8, %v589_v56 }
 0x182   : > { %v5110_v9 = vpop.f32.mrf.mxu0 }
 0x183   : > { %5605 = vmatmul.mubr.f32.gmra.mxu0 %v6968_v17  ;;  %v5172_v20 = vpop.f32.mrf.mxu1 }
 0x184   : > { %5607 = vmatprep.mubr.f32.mxu0 %v6974_v57  ;;  %v7112_v18 = vadd.f32 %v5172_v20, %v5110_v9  ;;  %v599_v38 = vpop.f32.mrf.mxu0 }
 0x185   : > { %v764_v2 = vpop.f32.mrf.mxu1 }
 0x186   : > { %v7114_v7 = vadd.f32 %v764_v2, %v599_v38 }
 0x187   : > { %5608 = vmatmul.mubr.f32.gmra.mxu0 %v6976_v63 }
 0x188   : > { %5610 = vmatprep.mubr.f32.mxu0 %v6982_v12  ;;  %v5113_v27 = vpop.f32.mrf.mxu0  ;;  %v5175_v42 = vpop.f32.mrf.mxu1  ;;  %v2166_v12 = vld [vmem:[#allocation2 + $0x171] sm:$0xff] }
 0x189   : > { %v7118_v15 = vadd.f32 %v5175_v42, %v5113_v27 }
 0x18a   : > { %v609_v23 = vpop.f32.mrf.mxu0  ;;  %v774_v17 = vpop.f32.mrf.mxu1 }
 0x18b   : > { %5611 = vmatmul.mubr.f32.gmra.mxu0 %v6985_v19  ;;  %v7122_v57 = vadd.f32 %v774_v17, %v609_v23 }
 0x18c   : > { %5613 = vmatprep.mubr.f32.mxu0 %v7036_v16 }
 0x18d   : > { %v5116_v22 = vpop.f32.mrf.mxu0 }
 0x18e   : > { %v5178_v25 = vpop.f32.mrf.mxu1 }
 0x18f   : > { %5614 = vmatmul.mubr.f32.gmra.mxu0 %v7039_v34  ;;  %v7125_v63 = vadd.f32 %v5178_v25, %v5116_v22  ;;  %v619_v26 = vpop.f32.mrf.mxu0 }
 0x190   : > { %5616 = vmatprep.mubr.f32.mxu0 %v2165_v24  ;;  %v784_v28 = vpop.f32.mrf.mxu1 }
 0x191   : > { %v7127_v29 = vadd.f32 %v784_v28, %v619_v26 }
 0x193   : > { %5617 = vmatmul.mubr.f32.gmra.mxu0 %v2166_v12  ;;  %v5119_v19 = vpop.f32.mrf.mxu0 }
 0x194   : > { %v5181_v32 = vpop.f32.mrf.mxu1 }
 0x195   : > { %v7129_v33 = vadd.f32 %v5181_v32, %v5119_v19  ;;  %v629_v16 = vpop.f32.mrf.mxu0 }
 0x196   : > { %v794_v36 = vpop.f32.mrf.mxu1 }
 0x197   : > { %v7131_v37 = vadd.f32 %v794_v36, %v629_v16 }
 0x199   : > { %v5122_v39 = vpop.f32.mrf.mxu0  ;;  %v5184_v40 = vpop.f32.mrf.mxu1 }
 0x19a   : > { %v7133_v34 = vadd.f32 %v5184_v40, %v5122_v39 }
 0x19b   : > { %v639_v43 = vpop.f32.mrf.mxu0  ;;  %v804_v45 = vpop.f32.mrf.mxu1 }
 0x19c   : > { %v7135_v46 = vadd.f32 %v804_v45, %v639_v43 }
 0x19e   : > { %v5219_v47 = vpop.f32.mrf.mxu0 }
 0x19f   : > { %v1016_v51 = vadd.f32 %v5219_v47, %v7080_v55 }
 0x1a0   : > { %v916_v52 = vpop.f32.mrf.mxu0 }
 0x1a1   : > { %v1015_v54 = vadd.f32 %v916_v52, %v7083_v61  ;;  %v5281_v59 = vpop.f32.mrf.mxu1 }
 0x1a2   : > { %v7139_v60 = vadd.f32 %v5281_v59, %v1016_v51  ;;  %v5222_v62 = vpop.f32.mrf.mxu0 }
 0x1a3   : > { %v1139_v3 = vpop.f32.mrf.mxu1  ;;  %v1018_v5 = vadd.f32 %v5222_v62, %v7086_v4 }
 0x1a4   : > { %v7142_v6 = vadd.f32 %v1139_v3, %v1015_v54  ;;  %v926_v11 = vpop.f32.mrf.mxu0 }
 0x1a5   : > { %v5284_v13 = vpop.f32.mrf.mxu1  ;;  %v1017_v41 = vadd.f32 %v926_v11, %v7089_v10 }
 0x1a6   : > { %v7145_v44 = vadd.f32 %v5284_v13, %v1018_v5  ;;  %v5225_v30 = vpop.f32.mrf.mxu0 }
 0x1a7   : > { %v1149_v55 = vpop.f32.mrf.mxu1  ;;  %v1020_v35 = vadd.f32 %v5225_v30, %v7092_v14 }
 0x1a8   : > { %v7148_v61 = vadd.f32 %v1149_v55, %v1017_v41  ;;  %v936_v50 = vpop.f32.mrf.mxu0 }
 0x1a9   : > { %v5287_v58 = vpop.f32.mrf.mxu1  ;;  %v1019_v48 = vadd.f32 %v936_v50, %v7095_v49 }
 0x1aa   : > { %v7151_v53 = vadd.f32 %v5287_v58, %v1020_v35 }
 0x1ab   : > { %v5228_v4 = vpop.f32.mrf.mxu0  ;;  %v1159_v56 = vpop.f32.mrf.mxu1 }
 0x1ac   : > { %v1022_v8 = vadd.f32 %v5228_v4, %v7098_v31  ;;  %v7154_v9 = vadd.f32 %v1159_v56, %v1019_v48 }
 0x1ad   : > { %v946_v10 = vpop.f32.mrf.mxu0 }
 0x1ae   : > { %v1021_v20 = vadd.f32 %v946_v10, %v7102_v21  ;;  %v5290_v38 = vpop.f32.mrf.mxu1 }
 0x1af   : > { %v7157_v2 = vadd.f32 %v5290_v38, %v1022_v8 }
 0x1b0   : > { %v1169_v14 = vpop.f32.mrf.mxu1  ;;  %v5231_v27 = vpop.f32.mrf.mxu0 }
 0x1b1   : > { %v7159_v42 = vadd.f32 %v1169_v14, %v1021_v20  ;;  %v1024_v49 = vadd.f32 %v5231_v27, %v7105_v0 }
 0x1b2   : > { %v956_v23 = vpop.f32.mrf.mxu0 }
 0x1b3   : > { %v1023_v17 = vadd.f32 %v956_v23, %v7108_v1  ;;  %v5293_v24 = vpop.f32.mrf.mxu1 }
 0x1b4   : > { %v7163_v22 = vadd.f32 %v5293_v24, %v1024_v49 }
 0x1b5   : > { %v1179_v25 = vpop.f32.mrf.mxu1 }
 0x1b6   : > { %v5234_v31 = vpop.f32.mrf.mxu0  ;;  %v7166_v21 = vadd.f32 %v1179_v25, %v1023_v17 }
 0x1b7   : > { %v1026_v12 = vadd.f32 %v5234_v31, %v7112_v18 }
 0x1b8   : > { %v966_v26 = vpop.f32.mrf.mxu0 }
 0x1b9   : > { %v1025_v28 = vadd.f32 %v966_v26, %v7114_v7  ;;  %v5296_v19 = vpop.f32.mrf.mxu1 }
 0x1ba   : > { %v7169_v32 = vadd.f32 %v5296_v19, %v1026_v12 }
 0x1bb   : > { %v5237_v16 = vpop.f32.mrf.mxu0  ;;  %v1189_v0 = vpop.f32.mrf.mxu1 }
 0x1bc   : > { %v1028_v36 = vadd.f32 %v5237_v16, %v7118_v15  ;;  %v7172_v1 = vadd.f32 %v1189_v0, %v1025_v28 }
 0x1bd   : > { %v976_v39 = vpop.f32.mrf.mxu0 }
 0x1be   : > { %v1027_v40 = vadd.f32 %v976_v39, %v7122_v57 }
 0x1bf   : > { %v5299_v43 = vpop.f32.mrf.mxu1 }
 0x1c0   : > { %v7175_v45 = vadd.f32 %v5299_v43, %v1028_v36 }
 0x1c1   : > { %v5240_v18 = vpop.f32.mrf.mxu0  ;;  %v1199_v47 = vpop.f32.mrf.mxu1 }
 0x1c2   : > { %v1030_v51 = vadd.f32 %v5240_v18, %v7125_v63  ;;  %v1250_v7 = vadd.f32 %v1199_v47, %v1027_v40 }
 0x1c3   : > { %v986_v52 = vpop.f32.mrf.mxu0 }
 0x1c4   : > { %v1029_v54 = vadd.f32 %v986_v52, %v7127_v29  ;;  %v5302_v59 = vpop.f32.mrf.mxu1 }
 0x1c5   : > { %v1253_v62 = vadd.f32 %v5302_v59, %v1030_v51 }
 0x1c6   : > { %v1209_v15 = vpop.f32.mrf.mxu1 }
 0x1c7   : > { %v5243_v3 = vpop.f32.mrf.mxu0  ;;  %v1252_v11 = vadd.f32 %v1209_v15, %v1029_v54 }
 0x1c8   : > { %v1032_v5 = vadd.f32 %v5243_v3, %v7129_v33 }
 0x1c9   : > { %v996_v13 = vpop.f32.mrf.mxu0 }
 0x1ca   : > { %v1031_v57 = vadd.f32 %v996_v13, %v7131_v37  ;;  %v5305_v41 = vpop.f32.mrf.mxu1 }
 0x1cb   : > { %v1255_v30 = vadd.f32 %v5305_v41, %v1032_v5 }
 0x1cc   : > { %v1219_v55 = vpop.f32.mrf.mxu1  ;;  %v5246_v35 = vpop.f32.mrf.mxu0 }
 0x1cd   : > { %v1254_v50 = vadd.f32 %v1219_v55, %v1031_v57  ;;  %v1034_v63 = vadd.f32 %v5246_v35, %v7133_v34 }
 0x1ce   : > { %v1006_v58 = vpop.f32.mrf.mxu0 }
 0x1cf   : > { %v1033_v29 = vadd.f32 %v1006_v58, %v7135_v46  ;;  %v5308_v48 = vpop.f32.mrf.mxu1 }
 0x1d0   : > { %v1257_v4 = vadd.f32 %v5308_v48, %v1034_v63 }
 0x1d1   : > { %v1229_v56 = vpop.f32.mrf.mxu1 }
 0x1d2   : > { %v5343_v8 = vpop.f32.mrf.mxu0  ;;  %v1256_v10 = vadd.f32 %v1229_v56, %v1033_v29 }
 0x1d3   : > { %v7184_v33 = vadd.f32 %v5343_v8, %v7139_v60 }
 0x1d4   : > { %v1361_v20 = vpop.f32.mrf.mxu0 }
 0x1d5   : > { %v7187_v37 = vadd.f32 %v1361_v20, %v7142_v6  ;;  %v7189_v38 = vpop.f32.mrf.mxu1 }
 0x1d6   : > { %v5346_v14 = vpop.f32.mrf.mxu0 }
 0x1d7   : > { %v7191_v27 = vpop.f32.mrf.mxu1  ;;  %v7194_v34 = vadd.f32 %v5346_v14, %v7145_v44 }
 0x1d8   : > { %v1371_v46 = vpop.f32.mrf.mxu0 }
 0x1d9   : > { %v7196_v49 = vpop.f32.mrf.mxu1  ;;  %v7199_v23 = vadd.f32 %v1371_v46, %v7148_v61 }
 0x1da   : > { %v5349_v60 = vpop.f32.mrf.mxu0 }
 0x1db   : > { %v7201_v17 = vpop.f32.mrf.mxu1  ;;  %v7204_v6 = vadd.f32 %v5349_v60, %v7151_v53 }
 0x1dc   : > { %v1381_v24 = vpop.f32.mrf.mxu0 }
 0x1dd   : > { %v7206_v31 = vpop.f32.mrf.mxu1  ;;  %v7209_v25 = vadd.f32 %v1381_v24, %v7154_v9 }
 0x1df   : > { %v5352_v44 = vpop.f32.mrf.mxu0  ;;  %v7211_v12 = vpop.f32.mrf.mxu1 }
 0x1e0   : > { %v7214_v26 = vadd.f32 %v5352_v44, %v7157_v2 }
 0x1e1   : > { %v1391_v61 = vpop.f32.mrf.mxu0 }
 0x1e2   : > { %v7217_v28 = vadd.f32 %v1391_v61, %v7159_v42  ;;  %v7219_v19 = vpop.f32.mrf.mxu1 }
 0x1e4   : > { %v7221_v53 = vpop.f32.mrf.mxu1  ;;  %v5355_v16 = vpop.f32.mrf.mxu0 }
 0x1e5   : > { %v7224_v0 = vadd.f32 %v5355_v16, %v7163_v22 }
 0x1e6   : > { %v1401_v9 = vpop.f32.mrf.mxu0 }
 0x1e7   : > { %v7227_v36 = vadd.f32 %v1401_v9, %v7166_v21  ;;  %v7229_v39 = vpop.f32.mrf.mxu1 }
 0x1e9   : > { %v7231_v40 = vpop.f32.mrf.mxu1 }
 0x1ea   : > { %v5358_v2 = vpop.f32.mrf.mxu0 }
 0x1eb   : > { %v7234_v42 = vadd.f32 %v5358_v2, %v7169_v32 }
 0x1ec   : > { %v1411_v43 = vpop.f32.mrf.mxu0 }
 0x1ed   : > { %v7237_v18 = vadd.f32 %v1411_v43, %v7172_v1  ;;  %v7239_v47 = vpop.f32.mrf.mxu1 }
 0x1ef   : > { %v5361_v22 = vpop.f32.mrf.mxu0  ;;  %v7241_v51 = vpop.f32.mrf.mxu1 }
 0x1f0   : > { %v7244_v21 = vadd.f32 %v5361_v22, %v7175_v45 }
 0x1f1   : > { %v1421_v52 = vpop.f32.mrf.mxu0 }
 0x1f2   : > { %v7246_v54 = vadd.f32 %v1421_v52, %v1250_v7 }
 0x1f3   : > { %v7248_v59 = vpop.f32.mrf.mxu1 }
 0x1f5   : > { %v5364_v3 = vpop.f32.mrf.mxu0  ;;  %v7250_v32 = vpop.f32.mrf.mxu1 }
 0x1f6   : > { %v7252_v15 = vadd.f32 %v5364_v3, %v1253_v62 }
 0x1f7   : > { %v1431_v1 = vpop.f32.mrf.mxu0 }
 0x1f8   : > { %v7254_v5 = vadd.f32 %v1431_v1, %v1252_v11  ;;  %v7256_v13 = vpop.f32.mrf.mxu1 }
 0x1fa   : > { %8072 = vst [vmem:[#allocation20_spill] sm:$0xff] %v7254_v5  ;;  %v7258_v41 = vpop.f32.mrf.mxu1 }
 0x1fb   : > { %v5367_v57 = vpop.f32.mrf.mxu0  ;;  %8073 = vst [vmem:[#allocation21_spill] sm:$0xff] %v7258_v41 }
 0x1fc   : > { %v7260_v45 = vadd.f32 %v5367_v57, %v1255_v30 }
 0x1fd   : > { %v1441_v55 = vpop.f32.mrf.mxu0 }
 0x1fe   : > { %8074 = vst [vmem:[#allocation22_spill] sm:$0xff] %v7260_v45  ;;  %v7262_v7 = vadd.f32 %v1441_v55, %v1254_v50  ;;  %v7264_v35 = vpop.f32.mrf.mxu1 }
 0x1ff   : > { %8076 = vst [vmem:[#allocation24_spill] sm:$0xff] %v7264_v35 }
 0x200   : > { %8075 = vst [vmem:[#allocation23_spill] sm:$0xff] %v7262_v7  ;;  %v7266_v63 = vpop.f32.mrf.mxu1  ;;  %v5370_v58 = vpop.f32.mrf.mxu0  ;;  %v1682_v7 = vadd.f32 %v7191_v27, %v7187_v37  ;;  %v7323_v27 = vld [vmem:[%s8037_s2] ss:$0 sm:$0xff] }
 0x201   : > { %8077 = vst [vmem:[#allocation25_spill] sm:$0xff] %v7266_v63  ;;  %v7268_v62 = vadd.f32 %v5370_v58, %v1257_v4 }
 0x202   : > { %v1451_v29 = vpop.f32.mrf.mxu0 }
 0x203   : > { %8078 = vst [vmem:[#allocation26_spill] sm:$0xff] %v7268_v62  ;;  %v7270_v11 = vadd.f32 %v1451_v29, %v1256_v10  ;;  %v7272_v48 = vpop.f32.mrf.mxu1 }
 0x204   : > { %8080 = vst [vmem:[#allocation28_spill] sm:$0xff] %v7272_v48  ;;  %v1683_v48 = vadd.f32 %v7189_v38, %v7184_v33  ;;  %v1684_v33 = vadd.f32 %v7201_v17, %v7199_v23 }
 0x205   : > { %8079 = vst [vmem:[#allocation27_spill] sm:$0xff] %v7270_v11  ;;  %v7274_v56 = vpop.f32.mrf.mxu1 }
 0x206   : > { %8081 = vst [vmem:[#allocation29_spill] sm:$0xff] %v7274_v56  ;;  %v5467_v8 = vpop.f32.mrf.mxu0 }
 0x207   : > { %v1906_v35 = vadd.f32 %v5467_v8, %v1683_v48  ;;  %v1686_v48 = vadd.f32 %v7211_v12, %v7209_v25  ;;  %v1688_v25 = vadd.f32 %v7221_v53, %v7217_v28 }
 0x208   : > { %v1806_v30 = vpop.f32.mrf.mxu0 }
 0x209   : > { %v5529_v20 = vpop.f32.mrf.mxu1  ;;  %v1905_v41 = vadd.f32 %v1806_v30, %v1682_v7 }
 0x20a   : > { %v5470_v14 = vpop.f32.mrf.mxu0  ;;  %v2128_v38 = vadd.f32 %v5529_v20, %v1906_v35 }
 0x20b   : > { %v2028_v50 = vpop.f32.mrf.mxu1 }
 0x20c   : > { %v1816_v46 = vpop.f32.mrf.mxu0 }
 0x20d   : > { %v5532_v60 = vpop.f32.mrf.mxu1 }
 0x20e   : > { %v5473_v24 = vpop.f32.mrf.mxu0 }
 0x20f   : > { %v2038_v44 = vpop.f32.mrf.mxu1 }
 0x210   : > { %v1826_v61 = vpop.f32.mrf.mxu0 }
 0x211   : > { %v5535_v4 = vpop.f32.mrf.mxu1  ;;  %v1909_v20 = vadd.f32 %v1826_v61, %v1686_v48 }
 0x213   : > { %v5476_v16 = vpop.f32.mrf.mxu0  ;;  %v2048_v10 = vpop.f32.mrf.mxu1 }
 0x215   : > { %v1836_v9 = vpop.f32.mrf.mxu0  ;;  %v7282_v52 = vpop.f32.mrf.mxu1 }
 0x217   : > { %v7276_v2 = vpop.f32.mrf.mxu0  ;;  %v7288_v57 = vpop.f32.mrf.mxu1 }
 0x219   : > { %v7278_v43 = vpop.f32.mrf.mxu0  ;;  %v7294_v29 = vpop.f32.mrf.mxu1 }
 0x21b   : > { %v7280_v22 = vpop.f32.mrf.mxu0  ;;  %v7302_v62 = vpop.f32.mrf.mxu1 }
 0x21d   : > { %v7284_v3 = vpop.f32.mrf.mxu0 }
 0x21f   : > { %v7286_v1 = vpop.f32.mrf.mxu0 }
 0x221   : > { %v7290_v55 = vpop.f32.mrf.mxu0 }
 0x223   : > { %v7292_v58 = vpop.f32.mrf.mxu0 }
 0x224   : > { %8082 = vst [vmem:[#allocation30_spill] sm:$0xff] %v7292_v58  ;;  %v1685_v58 = vadd.f32 %v7196_v49, %v7194_v34  ;;  %v2127_v34 = vadd.f32 %v2028_v50, %v1905_v41  ;;  %v1907_v49 = vadd.f32 %v1816_v46, %v1684_v33 }
 0x225   : > { %v7296_v56 = vpop.f32.mrf.mxu0 }
 0x226   : > { %8083 = vst [vmem:[#allocation31_spill] sm:$0xff] %v7296_v56  ;;  %v7312_v56 = vpop.f32.mrf.mxu1  ;;  %v1908_v5 = vadd.f32 %v5470_v14, %v1685_v58  ;;  %v2129_v58 = vadd.f32 %v2038_v44, %v1907_v49  ;;  %v2131_v44 = vadd.f32 %v2048_v10, %v1909_v20 }
 0x227   : > { %v7298_v11 = vpop.f32.mrf.mxu0 }
 0x228   : > { %8084 = vst [vmem:[#allocation32_spill] sm:$0xff] %v7298_v11  ;;  %v7327_v30 = vpop.f32.mrf.mxu1  ;;  %v2130_v17 = vadd.f32 %v5532_v60, %v1908_v5 }
 0x229   : > { %v7304_v63 = vpop.f32.mrf.mxu0 }
 0x22a   : > { %8085 = vst [vmem:[#allocation33_spill] sm:$0xff] %v7304_v63  ;;  %v1687_v63 = vadd.f32 %v7206_v31, %v7204_v6  ;;  %v1689_v31 = vadd.f32 %v7219_v19, %v7214_v26  ;;  %v1691_v19 = vadd.f32 %v7229_v39, %v7224_v0 }
 0x22b   : > { %v7308_v45 = vpop.f32.mrf.mxu0 }
 0x22c   : > { %v1910_v8 = vadd.f32 %v5473_v24, %v1687_v63  ;;  %v7335_v63 = vpop.f32.mrf.mxu1  ;;  %v1912_v60 = vadd.f32 %v5476_v16, %v1689_v31  ;;  %v1914_v16 = vadd.f32 %v7276_v2, %v1691_v19 }
 0x22d   : > { %v7314_v11 = vpop.f32.mrf.mxu0 }
 0x22e   : > { %v2132_v12 = vadd.f32 %v5535_v4, %v1910_v8  ;;  %v1690_v4 = vadd.f32 %v7231_v40, %v7227_v36 }
 0x22f   : > { %v5591_v37 = vpop.f32.mrf.mxu0 }
 0x230   : > { %v2350_v7 = vadd.f32 %v5591_v37, %v2128_v38  ;;  %v1911_v38 = vadd.f32 %v1836_v9, %v1688_v25  ;;  %v1693_v9 = vadd.f32 %v7239_v47, %v7234_v42  ;;  %v1913_v10 = vadd.f32 %v7278_v43, %v1690_v4 }
 0x231   : > { %v2250_v23 = vpop.f32.mrf.mxu0 }
 0x232   : > { %v2377_v35 = vadd.f32 %v7323_v27, %v2350_v7  ;;  %v2349_v6 = vadd.f32 %v2250_v23, %v2127_v34  ;;  %v2088_v34 = vpop.f32.mrf.mxu1  ;;  %v2134_v7 = vadd.f32 %v7282_v52, %v1912_v60  ;;  %v2133_v23 = vadd.f32 %v7288_v57, %v1911_v38 }
 0x233   : > { %v5594_v14 = vpop.f32.mrf.mxu0  ;;  %v1692_v52 = vadd.f32 %v7241_v51, %v7237_v18  ;;  %v1916_v31 = vadd.f32 %v7280_v22, %v1693_v9  ;;  %v1695_v57 = vadd.f32 %v7248_v59, %v7244_v21  ;;  %v2135_v20 = vadd.f32 %v7302_v62, %v1913_v10  ;;  %v8094_v10 = vld [vmem:[#allocation32_spill] sm:$0xff] }
 0x234   : > { %v2397_v41 = vmax.f32 %v2377_v35, 0.0  ;;  %v2376_v50 = vadd.f32 %v7323_v27, %v2349_v6  ;;  %v2352_v46 = vadd.f32 %v5594_v14, %v2130_v17  ;;  %v2136_v17 = vadd.f32 %v7294_v29, %v1914_v16  ;;  %v5550_v35 = vpop.f32.mrf.mxu1  ;;  %v8091_v16 = vld [vmem:[#allocation31_spill] sm:$0xff] }
 0x235   : > { %v2260_v5 = vpop.f32.mrf.mxu0  ;;  %v1694_v22 = vadd.f32 %v7250_v32, %v7246_v54  ;;  %v2138_v25 = vadd.f32 %v7312_v56, %v1916_v31  ;;  %v8087_v56 = vld [vmem:[#allocation21_spill] sm:$0xff] }
 0x236   : > { %2437 = vst [vmem:[#allocation3 + $0x10] sm:$0xff] %v2397_v41  ;;  %v2396_v24 = vmax.f32 %v2376_v50, 0.0  ;;  %v2379_v33 = vadd.f32 %v7323_v27, %v2352_v46  ;;  %v2351_v26 = vadd.f32 %v2260_v5, %v2129_v58  ;;  %v1915_v58 = vadd.f32 %v7284_v3, %v1692_v52  ;;  %v2098_v50 = vpop.f32.mrf.mxu1 }
 0x237   : > { %v5597_v61 = vpop.f32.mrf.mxu0  ;;  %v1918_v41 = vadd.f32 %v7286_v1, %v1695_v57  ;;  %v1697_v3 = vadd.f32 %v7256_v13, %v7252_v15 }
 0x238   : > { %2436 = vst [vmem:[#allocation3 + $0x8] sm:$0xff] %v2396_v24  ;;  %v2399_v37 = vmax.f32 %v2379_v33, 0.0  ;;  %v2378_v28 = vadd.f32 %v7323_v27, %v2351_v26  ;;  %v2354_v53 = vadd.f32 %v5597_v61, %v2132_v12  ;;  %v1917_v12 = vadd.f32 %v7290_v55, %v1694_v22  ;;  %v8086_v24 = vld [vmem:[#allocation20_spill] sm:$0xff]  ;;  %v5553_v19 = vpop.f32.mrf.mxu1  ;;  %v8088_v61 = vld [vmem:[#allocation30_spill] sm:$0xff] }
 0x239   : > { %v2270_v49 = vpop.f32.mrf.mxu0  ;;  %v2137_v60 = vadd.f32 %v7327_v30, %v1915_v58  ;;  %v1696_v33 = vadd.f32 %v8087_v56, %v8086_v24  ;;  %v2140_v26 = vadd.f32 %v7335_v63, %v1918_v41  ;;  %v1920_v38 = vadd.f32 %v8088_v61, %v1697_v3  ;;  %v8089_v30 = vld [vmem:[#allocation22_spill] sm:$0xff] }
 0x23a   : > { %2439 = vst [vmem:[#allocation3 + $0x30] sm:$0xff] %v2399_v37  ;;  %v2398_v48 = vmax.f32 %v2378_v28, 0.0  ;;  %v2381_v0 = vadd.f32 %v7323_v27, %v2354_v53  ;;  %v2353_v39 = vadd.f32 %v2270_v49, %v2131_v44  ;;  %v8090_v37 = vld [vmem:[#allocation24_spill] sm:$0xff]  ;;  %v2139_v53 = vadd.f32 %v2088_v34, %v1917_v12 }
 0x23b   : > { %v5600_v8 = vpop.f32.mrf.mxu0  ;;  %v1699_v28 = vadd.f32 %v8090_v37, %v8089_v30  ;;  %v1919_v49 = vadd.f32 %v8091_v16, %v1696_v33 }
 0x23c   : > { %2438 = vst [vmem:[#allocation3 + $0x28] sm:$0xff] %v2398_v48  ;;  %v2401_v36 = vmax.f32 %v2381_v0, 0.0  ;;  %v2380_v40 = vadd.f32 %v7323_v27, %v2353_v39  ;;  %v2356_v2 = vadd.f32 %v5600_v8, %v2134_v7  ;;  %v8092_v0 = vld [vmem:[#allocation23_spill] sm:$0xff]  ;;  %v8093_v39 = vld [vmem:[#allocation25_spill] sm:$0xff] }
 0x23d   : > { %v2280_v6 = vpop.f32.mrf.mxu0  ;;  %v1698_v9 = vadd.f32 %v8093_v39, %v8092_v0  ;;  %v1922_v8 = vadd.f32 %v8094_v10, %v1699_v28  ;;  %v2141_v57 = vadd.f32 %v2098_v50, %v1919_v49 }
 0x23e   : > { %2441 = vst [vmem:[#allocation3 + $0x50] sm:$0xff] %v2401_v36  ;;  %v2400_v42 = vmax.f32 %v2380_v40, 0.0  ;;  %v2383_v47 = vadd.f32 %v7323_v27, %v2356_v2  ;;  %v2355_v43 = vadd.f32 %v2280_v6, %v2133_v23  ;;  %v2108_v23 = vpop.f32.mrf.mxu1  ;;  %v2142_v40 = vadd.f32 %v5550_v35, %v1920_v38  ;;  %v8096_v6 = vld [vmem:[#allocation28_spill] sm:$0xff] }
 0x23f   : > { %v5603_v14 = vpop.f32.mrf.mxu0 }
 0x240   : > { %2440 = vst [vmem:[#allocation3 + $0x48] sm:$0xff] %v2400_v42  ;;  %v2403_v18 = vmax.f32 %v2383_v47, 0.0  ;;  %v2382_v51 = vadd.f32 %v7323_v27, %v2355_v43  ;;  %v2358_v29 = vadd.f32 %v5603_v14, %v2136_v17  ;;  %v8095_v17 = vld [vmem:[#allocation26_spill] sm:$0xff]  ;;  %v8097_v42 = vld [vmem:[#allocation33_spill] sm:$0xff]  ;;  %v5556_v22 = vpop.f32.mrf.mxu1 }
 0x241   : > { %v2290_v46 = vpop.f32.mrf.mxu0  ;;  %v1701_v31 = vadd.f32 %v8096_v6, %v8095_v17  ;;  %v1921_v47 = vadd.f32 %v8097_v42, %v1698_v9 }
 0x242   : > { %2443 = vst [vmem:[#allocation3 + $0x70] sm:$0xff] %v2403_v18  ;;  %v2402_v21 = vmax.f32 %v2382_v51, 0.0  ;;  %v2385_v59 = vadd.f32 %v7323_v27, %v2358_v29  ;;  %v2357_v62 = vadd.f32 %v2290_v46, %v2135_v20  ;;  %v8098_v18 = vld [vmem:[#allocation27_spill] sm:$0xff]  ;;  %v8099_v51 = vld [vmem:[#allocation29_spill] sm:$0xff]  ;;  %v2144_v29 = vadd.f32 %v5553_v19, %v1922_v8 }
 0x243   : > { %v5606_v5 = vpop.f32.mrf.mxu0  ;;  %v1700_v35 = vadd.f32 %v8099_v51, %v8098_v18  ;;  %v1924_v46 = vadd.f32 %v7308_v45, %v1701_v31 }
 0x244   : > { %2442 = vst [vmem:[#allocation3 + $0x68] sm:$0xff] %v2402_v21  ;;  %v2405_v54 = vmax.f32 %v2385_v59, 0.0  ;;  %v2384_v32 = vadd.f32 %v7323_v27, %v2357_v62  ;;  %v2360_v1 = vadd.f32 %v5606_v5, %v2138_v25  ;;  %v2143_v62 = vadd.f32 %v2108_v23, %v1921_v47 }
 0x245   : > { %v2300_v44 = vpop.f32.mrf.mxu0  ;;  %v1923_v3 = vadd.f32 %v7314_v11, %v1700_v35 }
 0x246   : > { %2445 = vst [vmem:[#allocation3 + $0x90] sm:$0xff] %v2405_v54  ;;  %v2404_v15 = vmax.f32 %v2384_v32, 0.0  ;;  %v2387_v13 = vadd.f32 %v7323_v27, %v2360_v1  ;;  %v2359_v55 = vadd.f32 %v2300_v44, %v2137_v60  ;;  %v2118_v54 = vpop.f32.mrf.mxu1  ;;  %v2146_v1 = vadd.f32 %v5556_v22, %v1924_v46 }
 0x247   : > { %v5609_v4 = vpop.f32.mrf.mxu0 }
 0x248   : > { %2444 = vst [vmem:[#allocation3 + $0x88] sm:$0xff] %v2404_v15  ;;  %v2407_v7 = vmax.f32 %v2387_v13, 0.0  ;;  %v2386_v63 = vadd.f32 %v7323_v27, %v2359_v55  ;;  %v2362_v48 = vadd.f32 %v5609_v4, %v2140_v26  ;;  %v2145_v26 = vadd.f32 %v2118_v54, %v1923_v3 }
 0x249   : > { %v2310_v36 = vpop.f32.mrf.mxu0 }
 0x24a   : > { %2447 = vst [vmem:[#allocation3 + $0xb0] sm:$0xff] %v2407_v7  ;;  %v2406_v2 = vmax.f32 %v2386_v63, 0.0  ;;  %v2389_v34 = vadd.f32 %v7323_v27, %v2362_v48  ;;  %v2361_v52 = vadd.f32 %v2310_v36, %v2139_v53 }
 0x24b   : > { %v5612_v43 = vpop.f32.mrf.mxu0 }
 0x24c   : > { %2446 = vst [vmem:[#allocation3 + $0xa8] sm:$0xff] %v2406_v2  ;;  %v2409_v20 = vmax.f32 %v2389_v34, 0.0  ;;  %v2388_v14 = vadd.f32 %v7323_v27, %v2361_v52  ;;  %v2364_v58 = vadd.f32 %v5612_v43, %v2142_v40 }
 0x24d   : > { %v2320_v41 = vpop.f32.mrf.mxu0 }
 0x24e   : > { %2449 = vst [vmem:[#allocation3 + $0xd0] sm:$0xff] %v2409_v20  ;;  %v2408_v25 = vmax.f32 %v2388_v14, 0.0  ;;  %v2391_v21 = vadd.f32 %v7323_v27, %v2364_v58  ;;  %v2363_v59 = vadd.f32 %v2320_v41, %v2141_v57 }
 0x24f   : > { %v5615_v50 = vpop.f32.mrf.mxu0 }
 0x250   : > { %2448 = vst [vmem:[#allocation3 + $0xc8] sm:$0xff] %v2408_v25  ;;  %v2411_v12 = vmax.f32 %v2391_v21, 0.0  ;;  %v2390_v5 = vadd.f32 %v7323_v27, %v2363_v59  ;;  %v2366_v60 = vadd.f32 %v5615_v50, %v2144_v29 }
 0x251   : > { %v2330_v32 = vpop.f32.mrf.mxu0 }
 0x252   : > { %2451 = vst [vmem:[#allocation3 + $0xf0] sm:$0xff] %v2411_v12  ;;  %v2410_v24 = vmax.f32 %v2390_v5, 0.0  ;;  %v2393_v45 = vadd.f32 %v7323_v27, %v2366_v60  ;;  %v2365_v56 = vadd.f32 %v2330_v32, %v2143_v62 }
 0x253   : > { %v5618_v33 = vpop.f32.mrf.mxu0 }
 0x254   : > { %2450 = vst [vmem:[#allocation3 + $0xe8] sm:$0xff] %v2410_v24  ;;  %v2413_v19 = vmax.f32 %v2393_v45, 0.0  ;;  %v2392_v44 = vadd.f32 %v7323_v27, %v2365_v56  ;;  %v2368_v11 = vadd.f32 %v5618_v33, %v2146_v1 }
 0x255   : > { %v2340_v61 = vpop.f32.mrf.mxu0 }
 0x256   : > { %2453 = vst [vmem:[#allocation3 + $0x110] sm:$0xff] %v2413_v19  ;;  %v2412_v38 = vmax.f32 %v2392_v44, 0.0  ;;  %v2395_v15 = vadd.f32 %v7323_v27, %v2368_v11  ;;  %v2367_v13 = vadd.f32 %v2340_v61, %v2145_v26 }
 0x258   : > { %2452 = vst [vmem:[#allocation3 + $0x108] sm:$0xff] %v2412_v38  ;;  %v2415_v55 = vmax.f32 %v2395_v15, 0.0  ;;  %v2394_v30 = vadd.f32 %v7323_v27, %v2367_v13  ;;  %2458 = sbr.rel (%p4411_p1) target bundleno = 607 (0x25f), region = 64 }
 0x25a   : > { %2455 = vst [vmem:[#allocation3 + $0x130] sm:$0xff] %v2415_v55  ;;  %v2414_v37 = vmax.f32 %v2394_v30, 0.0 }
 0x25c   : > { %2454 = vst [vmem:[#allocation3 + $0x128] sm:$0xff] %v2414_v37 }
 0x25d   : > { %v6501_v28 = vmov 0.0  }
 0x25e   : > { %2459 = vst [vmem:[#allocation3 + $0x8] sm:$0xff] %v6501_v28  ;;  %2460 = vst [vmem:[#allocation3 + $0x10] sm:$0xff] %v6501_v28 }
 0x25f PF: > { %2463 = sbr.rel (%p4412_p3) target bundleno = 614 (0x266), region = 68 }
 0x264   : > { %v6502_v53 = vmov 0.0  }
 0x265   : > { %2465 = vst [vmem:[#allocation3 + $0x128] sm:$0xff] %v6502_v53  ;;  %2466 = vst [vmem:[#allocation3 + $0x130] sm:$0xff] %v6502_v53 }
 0x266 PF: > { %v2531_v4 = vld [vmem:[#allocation9 + $0xf8] sm:$0xff]  ;;  %v2530_v16 = vld [vmem:[#allocation9 + $0xf0] sm:$0xff]  ;;  %v2529_v27 = vld [vmem:[#allocation9 + $0xe8] sm:$0xff]  ;;  %s4447_s11 = sshll.u32 %s6475_s24, 7  ;;  %s8142_s3 = sld [smem:[#allocation15_spill]] }
 0x267   : > { %5619 = vmatprep.subr.mxu1 %v2531_v4  ;;  %v2528_v49 = vld [vmem:[#allocation9 + $0xe0] sm:$0xff]  ;;  %v2499_v7 = vld [vmem:[#allocation3 + $0x8] sm:$0xff]  ;;  %v2527_v63 = vld [vmem:[#allocation9 + $0xd8] sm:$0xff]  ;;  %s7859_s17 = scalar_lea.vmem %s6704_s15, %s4447_s11 [#allocation4]  ;;  %s4448_s29 = sshll.u32 %s6475_s24, 4 }
 0x268   : > { %5620 = vmatpush3.msra.mxu1 %v2531_v4  ;;  %5651 = vmatprep.mubr.f32.mxu1 %v2499_v7  ;;  %v2854_v48 = vld [vmem:[#allocation9 + $0x178] sm:$0xff]  ;;  %v2526_v0 = vld [vmem:[#allocation9 + $0xd0] sm:$0xff]  ;;  %v2852_v9 = vld [vmem:[#allocation9 + $0x168] sm:$0xff]  ;;  %s4289_s7 = sshll.u32 %s6741_s6, 4  ;;  %s8144_s15 = sld [smem:[#allocation43_spill]]  ;;  %s7969_s7 = int_to_ptr.vmem [resolvable:$true] %s4289_s7 }
 0x269   : > { %5621 = vmatprep.subr.mxu1 %v2530_v16  ;;  %5731 = vmatprep.subr.mxu0 %v2854_v48  ;;  %v2853_v39 = vld [vmem:[#allocation9 + $0x170] sm:$0xff]  ;;  %v2525_v10 = vld [vmem:[#allocation9 + $0xc8] sm:$0xff]  ;;  %v2851_v8 = vld [vmem:[#allocation9 + $0x160] sm:$0xff]  ;;  %s7975_s8 = scalar_lea.sflag [#allocation6], %s283_s25  ;;  %s6367_s10 = scalar_lea.vmem %s7969_s7, 2048 }
 0x26a   : > { %5622 = vmatpush3.msra.mxu1 %v2530_v16  ;;  %5732 = vmatpush3.msra.mxu0 %v2854_v48  ;;  %v2524_v23 = vld [vmem:[#allocation9 + $0xc0] sm:$0xff]  ;;  %v2850_v36 = vld [vmem:[#allocation9 + $0x158] sm:$0xff]  ;;  %v2849_v2 = vld [vmem:[#allocation9 + $0x150] sm:$0xff]  ;;  %p6368_p9 = scmp.ne.s32.totalorder %s7969_s7, %s6367_s10  ;;  %s6503_s11 = smov [#allocation10]  }
 0x26b   : > { %5623 = vmatprep.subr.mxu1 %v2529_v27  ;;  %5733 = vmatprep.subr.mxu0 %v2853_v39  ;;  %v2523_v40 = vld [vmem:[#allocation9 + $0xb8] sm:$0xff]  ;;  %v2522_v34 = vld [vmem:[#allocation9 + $0xb0] sm:$0xff]  ;;  %v2848_v52 = vld [vmem:[#allocation9 + $0x148] sm:$0xff] }
 0x26c   : > { %5624 = vmatpush3.msra.mxu1 %v2529_v27  ;;  %5734 = vmatpush3.msra.mxu0 %v2853_v39  ;;  %v2521_v17 = vld [vmem:[#allocation9 + $0xa8] sm:$0xff]  ;;  %v2847_v6 = vld [vmem:[#allocation9 + $0x140] sm:$0xff]  ;;  %v2846_v42 = vld [vmem:[#allocation9 + $0x138] sm:$0xff]  ;;  %s4442_s13 = sshll.u32 %s8142_s3, 5  ;;  %p6369_p11 = pnand %p6368_p9, %p6607_p7 }
 0x26d   : > { %5625 = vmatprep.subr.mxu1 %v2528_v49  ;;  %5735 = vmatprep.subr.mxu0 %v2852_v9  ;;  %v2520_v31 = vld [vmem:[#allocation9 + $0xa0] sm:$0xff]  ;;  %v2519_v47 = vld [vmem:[#allocation9 + $0x98] sm:$0xff]  ;;  %v2845_v43 = vld [vmem:[#allocation9 + $0x130] sm:$0xff]  ;;  %s4286_s5 = sadd.s32 %s4448_s29, %s4442_s13 }
 0x26e   : > { %5626 = vmatpush3.msra.mxu1 %v2528_v49  ;;  %5736 = vmatpush3.msra.mxu0 %v2852_v9  ;;  %v2518_v57 = vld [vmem:[#allocation9 + $0x90] sm:$0xff]  ;;  %v2844_v20 = vld [vmem:[#allocation9 + $0x128] sm:$0xff]  ;;  %v2843_v58 = vld [vmem:[#allocation9 + $0x120] sm:$0xff]  ;;  %s4443_s30 = sshll.u32 %s4286_s5, 7  ;;  %p6370_p5 = pneg %p6369_p11 }
 0x26f   : > { %5627 = vmatprep.subr.mxu1 %v2527_v63  ;;  %5737 = vmatprep.subr.mxu0 %v2851_v8  ;;  %v2517_v14 = vld [vmem:[#allocation9 + $0x88] sm:$0xff]  ;;  %v2516_v18 = vld [vmem:[#allocation9 + $0x80] sm:$0xff]  ;;  %v2842_v51 = vld [vmem:[#allocation9 + $0x118] sm:$0xff]  ;;  %s7967_s9 = scalar_lea.hbm %s8144_s15, %s4443_s30 }
 0x270   : > { %5628 = vmatpush3.msra.mxu1 %v2527_v63  ;;  %5738 = vmatpush3.msra.mxu0 %v2851_v8  ;;  %v2500_v35 = vld [vmem:[#allocation3 + $0x10] sm:$0xff]  ;;  %v2498_v29 = vld [vmem:[#allocation9 + $0x78] sm:$0xff]  ;;  %v7402_v22 = vld [vmem:[#allocation3 + $0x28] sm:$0xff] }
 0x271   : > { %5629 = vmatprep.subr.mxu1 %v2526_v0  ;;  %5739 = vmatprep.subr.mxu0 %v2850_v36  ;;  %v2497_v41 = vld [vmem:[#allocation9 + $0x70] sm:$0xff]  ;;  %v2496_v21 = vld [vmem:[#allocation9 + $0x68] sm:$0xff]  ;;  %v2495_v62 = vld [vmem:[#allocation9 + $0x60] sm:$0xff] }
 0x272   : > { %5630 = vmatpush3.msra.mxu1 %v2526_v0  ;;  %5740 = vmatpush3.msra.mxu0 %v2850_v36  ;;  %v2841_v46 = vld [vmem:[#allocation9 + $0x110] sm:$0xff]  ;;  %v7407_v59 = vld [vmem:[#allocation3 + $0x48] sm:$0xff]  ;;  %v2494_v12 = vld [vmem:[#allocation9 + $0x58] sm:$0xff] }
 0x273   : > { %5631 = vmatprep.subr.mxu1 %v2525_v10  ;;  %5741 = vmatprep.subr.mxu0 %v2849_v2  ;;  %v7405_v25 = vld [vmem:[#allocation3 + $0x30] sm:$0xff]  ;;  %v2840_v50 = vld [vmem:[#allocation9 + $0x108] sm:$0xff]  ;;  %v2839_v54 = vld [vmem:[#allocation9 + $0x100] sm:$0xff] }
 0x274   : > { %5632 = vmatpush3.msra.mxu1 %v2525_v10  ;;  %5742 = vmatpush3.msra.mxu0 %v2849_v2  ;;  %v7411_v3 = vld [vmem:[#allocation3 + $0x50] sm:$0xff]  ;;  %v7413_v5 = vld [vmem:[#allocation3 + $0x68] sm:$0xff]  ;;  %v2491_v45 = vld [vmem:[#allocation9 + $0x40] sm:$0xff] }
 0x275   : > { %5633 = vmatprep.subr.mxu1 %v2524_v23  ;;  %5743 = vmatprep.subr.mxu0 %v2848_v52  ;;  %v2493_v60 = vld [vmem:[#allocation9 + $0x50] sm:$0xff]  ;;  %v2492_v1 = vld [vmem:[#allocation9 + $0x48] sm:$0xff]  ;;  %v2490_v19 = vld [vmem:[#allocation9 + $0x38] sm:$0xff] }
 0x276   : > { %5634 = vmatpush3.msra.mxu1 %v2524_v23  ;;  %5744 = vmatpush3.msra.mxu0 %v2848_v52  ;;  %v7417_v32 = vld [vmem:[#allocation3 + $0x70] sm:$0xff]  ;;  %v7419_v24 = vld [vmem:[#allocation3 + $0x88] sm:$0xff]  ;;  %v3243_v61 = vld [vmem:[#allocation9 + $0x278] sm:$0xff] }
 0x277   : > { %5635 = vmatprep.subr.mxu1 %v2523_v40  ;;  %5745 = vmatprep.subr.mxu0 %v2847_v6  ;;  %v2822_v56 = vld [vmem:[#allocation3 + $0x9] sm:$0xff]  ;;  %v2823_v33 = vld [vmem:[#allocation3 + $0x11] sm:$0xff]  ;;  %v2487_v55 = vld [vmem:[#allocation9 + $0x20] sm:$0xff] }
 0x278   : > { %5636 = vmatpush3.msra.mxu1 %v2523_v40  ;;  %5746 = vmatpush3.msra.mxu0 %v2847_v6  ;;  %v7423_v26 = vld [vmem:[#allocation3 + $0x90] sm:$0xff]  ;;  %v7425_v44 = vld [vmem:[#allocation3 + $0xa8] sm:$0xff]  ;;  %v2486_v53 = vld [vmem:[#allocation9 + $0x18] sm:$0xff] }
 0x279   : > { %5637 = vmatprep.subr.mxu1 %v2522_v34  ;;  %5747 = vmatprep.subr.mxu0 %v2846_v42  ;;  %v2489_v11 = vld [vmem:[#allocation9 + $0x30] sm:$0xff]  ;;  %v2488_v15 = vld [vmem:[#allocation9 + $0x28] sm:$0xff]  ;;  %v2483_v48 = vld [vmem:[#allocation9] sm:$0xff] }
 0x27a   : > { %5638 = vmatpush3.msra.mxu1 %v2522_v34  ;;  %5748 = vmatpush3.msra.mxu0 %v2846_v42  ;;  %v7429_v38 = vld [vmem:[#allocation3 + $0xb0] sm:$0xff]  ;;  %v7431_v13 = vld [vmem:[#allocation3 + $0xc8] sm:$0xff]  ;;  %v3049_v9 = vld [vmem:[#allocation9 + $0x1f8] sm:$0xff] }
 0x27b   : > { %5639 = vmatprep.subr.mxu1 %v2521_v17  ;;  %5749 = vmatprep.subr.mxu0 %v2845_v43  ;;  %v3242_v30 = vld [vmem:[#allocation9 + $0x270] sm:$0xff]  ;;  %v7439_v4 = vld [vmem:[#allocation3 + $0xe8] sm:$0xff]  ;;  %v3240_v23 = vld [vmem:[#allocation9 + $0x260] sm:$0xff] }
 0x27c   : > { %5640 = vmatpush3.msra.mxu1 %v2521_v17  ;;  %5750 = vmatpush3.msra.mxu0 %v2845_v43  ;;  %v7434_v37 = vld [vmem:[#allocation3 + $0x29] sm:$0xff]  ;;  %v7443_v27 = vld [vmem:[#allocation3 + $0x31] sm:$0xff]  ;;  %v3046_v52 = vld [vmem:[#allocation9 + $0x1e0] sm:$0xff] }
 0x27d   : > { %5641 = vmatprep.subr.mxu1 %v2520_v31  ;;  %5751 = vmatprep.subr.mxu0 %v2844_v20  ;;  %v7437_v28 = vld [vmem:[#allocation3 + $0xd0] sm:$0xff]  ;;  %v2484_v7 = vld [vmem:[#allocation9 + $0x8] sm:$0xff]  ;;  %v3239_v42 = vld [vmem:[#allocation9 + $0x258] sm:$0xff] }
 0x27e   : > { %5642 = vmatpush3.msra.mxu1 %v2520_v31  ;;  %5752 = vmatpush3.msra.mxu0 %v2844_v20  ;;  %v2485_v16 = vld [vmem:[#allocation9 + $0x10] sm:$0xff]  ;;  %v2467_v63 = vld [vmem:[#allocation3 + $0x7] sm:$0xff]  ;;  %v3045_v31 = vld [vmem:[#allocation9 + $0x1d8] sm:$0xff] }
 0x27f   : > { %5643 = vmatprep.subr.mxu1 %v2519_v47  ;;  %5753 = vmatprep.subr.mxu0 %v2843_v58  ;;  %v7446_v49 = vld [vmem:[#allocation3 + $0xf0] sm:$0xff]  ;;  %v3241_v0 = vld [vmem:[#allocation9 + $0x268] sm:$0xff] }
 0x280   : > { %5644 = vmatpush3.msra.mxu1 %v2519_v47  ;;  %5754 = vmatpush3.msra.mxu0 %v2843_v58  ;;  %v2468_v39 = vld [vmem:[#allocation3 + $0xf] sm:$0xff]  ;;  %v7450_v10 = vld [vmem:[#allocation3 + $0x27] sm:$0xff] }
 0x281   : > { %5645 = vmatprep.subr.mxu1 %v2518_v57  ;;  %5755 = vmatprep.subr.mxu0 %v2842_v51  ;;  %v3048_v8 = vld [vmem:[#allocation9 + $0x1f0] sm:$0xff]  ;;  %v3047_v2 = vld [vmem:[#allocation9 + $0x1e8] sm:$0xff] }
 0x282   : > { %5646 = vmatpush3.msra.mxu1 %v2518_v57  ;;  %5756 = vmatpush3.msra.mxu0 %v2842_v51  ;;  %v7452_v36 = vld [vmem:[#allocation3 + $0x49] sm:$0xff]  ;;  %v7461_v17 = vld [vmem:[#allocation3 + $0x51] sm:$0xff]  ;;  %v3042_v51 = vld [vmem:[#allocation9 + $0x1c0] sm:$0xff] }
 0x283   : > { %5647 = vmatprep.subr.mxu1 %v2517_v14  ;;  %5757 = vmatprep.subr.mxu0 %v2841_v46  ;;  %v7455_v40 = vld [vmem:[#allocation3 + $0x2f] sm:$0xff]  ;;  %v7457_v34 = vld [vmem:[#allocation3 + $0x47] sm:$0xff] }
 0x284   : > { %5648 = vmatpush3.msra.mxu1 %v2517_v14  ;;  %5758 = vmatpush3.msra.mxu0 %v2841_v46  ;;  %v7464_v6 = vld [vmem:[#allocation3 + $0x4f] sm:$0xff]  ;;  %v7467_v43 = vld [vmem:[#allocation3 + $0x67] sm:$0xff]  ;;  %v3041_v46 = vld [vmem:[#allocation9 + $0x1b8] sm:$0xff] }
 0x285   : > { %5649 = vmatprep.subr.mxu1 %v2516_v18  ;;  %5759 = vmatprep.subr.mxu0 %v2840_v50  ;;  %v3044_v47 = vld [vmem:[#allocation9 + $0x1d0] sm:$0xff]  ;;  %v3043_v20 = vld [vmem:[#allocation9 + $0x1c8] sm:$0xff] }
 0x286   : > { %5650 = vmatpush3.msra.mxu1 %v2516_v18  ;;  %5760 = vmatpush3.msra.mxu0 %v2840_v50  ;;  %v7470_v57 = vld [vmem:[#allocation3 + $0x6f] sm:$0xff] }
 0x287   : > { %5652 = vmatmul.mubr.f32.vlgmr.msra.gmra.mxu1 %v2500_v35  ;;  %5675 = vmatprep.subr.mxu1 %v2498_v29  ;;  %v3238_v14 = vld [vmem:[#allocation9 + $0x250] sm:$0xff]  ;;  %v3237_v35 = vld [vmem:[#allocation9 + $0x248] sm:$0xff] }
 0x288   : > { %5676 = vmatpush3.msra.mxu1 %v2498_v29  ;;  %5654 = vmatprep.mubr.f32.mxu1 %v7402_v22  ;;  %v7473_v58 = vld [vmem:[#allocation3 + $0x69] sm:$0xff]  ;;  %v7476_v18 = vld [vmem:[#allocation3 + $0x71] sm:$0xff] }
 0x289   : > { %5677 = vmatprep.subr.mxu1 %v2497_v41  ;;  %5761 = vmatprep.subr.mxu0 %v2839_v54  ;;  %v7479_v29 = vld [vmem:[#allocation3 + $0x87] sm:$0xff]  ;;  %v7488_v50 = vld [vmem:[#allocation3 + $0x91] sm:$0xff] }
 0x28a   : > { %5678 = vmatpush3.msra.mxu1 %v2497_v41  ;;  %5762 = vmatpush3.msra.mxu0 %v2839_v54  ;;  %v7482_v41 = vld [vmem:[#allocation3 + $0x8f] sm:$0xff]  ;;  %v7491_v54 = vld [vmem:[#allocation3 + $0xa7] sm:$0xff] }
 0x28b   : > { %5655 = vmatmul.mubr.f32.gmra.mxu1 %v7405_v25  ;;  %5679 = vmatprep.subr.mxu1 %v2496_v21 }
 0x28c   : > { %5680 = vmatpush3.msra.mxu1 %v2496_v21  ;;  %5657 = vmatprep.mubr.f32.mxu1 %v7407_v59  ;;  %v3236_v21 = vld [vmem:[#allocation9 + $0x240] sm:$0xff] }
 0x28d   : > { %5681 = vmatprep.subr.mxu1 %v2495_v62  ;;  %5763 = vmatprep.mubr.f32.mxu0 %v2822_v56  ;;  %v3234_v56 = vld [vmem:[#allocation9 + $0x230] sm:$0xff] }
 0x28e   : > { %5682 = vmatpush3.msra.mxu1 %v2495_v62  ;;  %5764 = vmatmul.mubr.f32.vlgmr.msra.gmra.mxu0 %v2823_v33  ;;  %v7485_v62 = vld [vmem:[#allocation3 + $0x89] sm:$0xff] }
 0x28f   : > { %5658 = vmatmul.mubr.f32.gmra.mxu1 %v7411_v3  ;;  %5683 = vmatprep.subr.mxu1 %v2494_v12  ;;  %v7497_v33 = vld [vmem:[#allocation3 + $0xa9] sm:$0xff] }
 0x290   : > { %5684 = vmatpush3.msra.mxu1 %v2494_v12  ;;  %5660 = vmatprep.mubr.f32.mxu1 %v7413_v5  ;;  %v3040_v12 = vld [vmem:[#allocation9 + $0x1b0] sm:$0xff] }
 0x291   : > { %5685 = vmatprep.subr.mxu1 %v2493_v60  ;;  %5843 = vmatprep.subr.mxu0 %v3243_v61 }
 0x292   : > { %5686 = vmatpush3.msra.mxu1 %v2493_v60  ;;  %5844 = vmatpush3.msra.mxu0 %v3243_v61  ;;  %v3235_v60 = vld [vmem:[#allocation9 + $0x238] sm:$0xff]  ;;  %v3233_v61 = vld [vmem:[#allocation9 + $0x228] sm:$0xff] }
 0x293   : > { %5661 = vmatmul.mubr.f32.gmra.mxu1 %v7417_v32  ;;  %5687 = vmatprep.subr.mxu1 %v2492_v1 }
 0x294   : > { %5688 = vmatpush3.msra.mxu1 %v2492_v1  ;;  %5663 = vmatprep.mubr.f32.mxu1 %v7419_v24  ;;  %v7494_v1 = vld [vmem:[#allocation3 + $0xaf] sm:$0xff] }
 0x295   : > { %5689 = vmatprep.subr.mxu1 %v2491_v45  ;;  %5845 = vmatprep.subr.mxu0 %v3242_v30 }
 0x296   : > { %5690 = vmatpush3.msra.mxu1 %v2491_v45  ;;  %5766 = vmatprep.mubr.f32.mxu0 %v7434_v37  ;;  %v3039_v45 = vld [vmem:[#allocation9 + $0x1a8] sm:$0xff] }
 0x297   : > { %5664 = vmatmul.mubr.f32.gmra.mxu1 %v7423_v26  ;;  %5691 = vmatprep.subr.mxu1 %v2490_v19 }
 0x298   : > { %5692 = vmatpush3.msra.mxu1 %v2490_v19  ;;  %5666 = vmatprep.mubr.f32.mxu1 %v7425_v44  ;;  %v7500_v19 = vld [vmem:[#allocation3 + $0xb1] sm:$0xff] }
 0x299   : > { %5693 = vmatprep.subr.mxu1 %v2489_v11  ;;  %5846 = vmatpush3.msra.mxu0 %v3242_v30  ;;  %v3037_v30 = vld [vmem:[#allocation9 + $0x198] sm:$0xff] }
 0x29a   : > { %5694 = vmatpush3.msra.mxu1 %v2489_v11  ;;  %5767 = vmatmul.mubr.f32.gmra.mxu0 %v7443_v27  ;;  %v3038_v11 = vld [vmem:[#allocation9 + $0x1a0] sm:$0xff] }
 0x29b   : > { %5667 = vmatmul.mubr.f32.gmra.mxu1 %v7429_v38  ;;  %5695 = vmatprep.subr.mxu1 %v2488_v15 }
 0x29c   : > { %5696 = vmatpush3.msra.mxu1 %v2488_v15  ;;  %5669 = vmatprep.mubr.f32.mxu1 %v7431_v13  ;;  %v7503_v15 = vld [vmem:[#allocation3 + $0xc7] sm:$0xff] }
 0x29d   : > { %5697 = vmatprep.subr.mxu1 %v2487_v55  ;;  %5847 = vmatprep.subr.mxu0 %v3241_v0 }
 0x29e   : > { %5698 = vmatpush3.msra.mxu1 %v2487_v55  ;;  %5848 = vmatpush3.msra.mxu0 %v3241_v0  ;;  %v7506_v55 = vld [vmem:[#allocation3 + $0xcf] sm:$0xff]  ;;  %v7515_v0 = vld [vmem:[#allocation3 + $0xe7] sm:$0xff] }
 0x29f   : > { %5670 = vmatmul.mubr.f32.gmra.mxu1 %v7437_v28  ;;  %5699 = vmatprep.subr.mxu1 %v2486_v53 }
 0x2a0   : > { %5700 = vmatpush3.msra.mxu1 %v2486_v53  ;;  %5672 = vmatprep.mubr.f32.mxu1 %v7439_v4  ;;  %v3232_v53 = vld [vmem:[#allocation9 + $0x220] sm:$0xff] }
 0x2a1   : > { %5701 = vmatprep.subr.mxu1 %v2485_v16  ;;  %5849 = vmatprep.subr.mxu0 %v3240_v23 }
 0x2a2   : > { %5702 = vmatpush3.msra.mxu1 %v2485_v16  ;;  %5769 = vmatprep.mubr.f32.mxu0 %v7452_v36  ;;  %v7509_v16 = vld [vmem:[#allocation3 + $0xc9] sm:$0xff] }
 0x2a3   : > { %5673 = vmatmul.mubr.f32.gmra.mxu1 %v7446_v49  ;;  %5703 = vmatprep.subr.mxu1 %v2484_v7 }
 0x2a4   : > { %5704 = vmatpush3.msra.mxu1 %v2484_v7  ;;  %5707 = vmatprep.mubr.f32.mxu1 %v2467_v63  ;;  %v7512_v7 = vld [vmem:[#allocation3 + $0xd1] sm:$0xff] }
 0x2a5   : > { %5705 = vmatprep.subr.mxu1 %v2483_v48  ;;  %5850 = vmatpush3.msra.mxu0 %v3240_v23  ;;  %v3036_v63 = vld [vmem:[#allocation9 + $0x190] sm:$0xff] }
 0x2a6   : > { %5706 = vmatpush3.msra.mxu1 %v2483_v48  ;;  %5770 = vmatmul.mubr.f32.gmra.mxu0 %v7461_v17  ;;  %v3231_v48 = vld [vmem:[#allocation9 + $0x218] sm:$0xff]  ;;  %v7521_v23 = vld [vmem:[#allocation3 + $0xe9] sm:$0xff] }
 0x2a7   : > { %5708 = vmatmul.mubr.f32.vlgmr.msra.gmra.mxu1 %v2468_v39  ;;  %5787 = vmatprep.subr.mxu1 %v3049_v9  ;;  %v7518_v39 = vld [vmem:[#allocation3 + $0xef] sm:$0xff] }
 0x2a8   : > { %5788 = vmatpush3.msra.mxu1 %v3049_v9  ;;  %5710 = vmatprep.mubr.f32.mxu1 %v7450_v10  ;;  %v3035_v9 = vld [vmem:[#allocation9 + $0x188] sm:$0xff] }
 0x2a9   : > { %5789 = vmatprep.subr.mxu1 %v3048_v8  ;;  %5851 = vmatprep.subr.mxu0 %v3239_v42 }
 0x2aa   : > { %5790 = vmatpush3.msra.mxu1 %v3048_v8  ;;  %5852 = vmatpush3.msra.mxu0 %v3239_v42  ;;  %v3230_v8 = vld [vmem:[#allocation9 + $0x210] sm:$0xff]  ;;  %v3228_v42 = vld [vmem:[#allocation9 + $0x200] sm:$0xff] }
 0x2ab   : > { %5711 = vmatmul.mubr.f32.gmra.mxu1 %v7455_v40  ;;  %5791 = vmatprep.subr.mxu1 %v3047_v2 }
 0x2ac   : > { %5792 = vmatpush3.msra.mxu1 %v3047_v2  ;;  %5713 = vmatprep.mubr.f32.mxu1 %v7457_v34  ;;  %v7524_v2 = vld [vmem:[#allocation3 + $0xf1] sm:$0xff] }
 0x2ad   : > { %5793 = vmatprep.subr.mxu1 %v3046_v52  ;;  %5853 = vmatprep.subr.mxu0 %v3238_v14 }
 0x2ae   : > { %5794 = vmatpush3.msra.mxu1 %v3046_v52  ;;  %5772 = vmatprep.mubr.f32.mxu0 %v7473_v58  ;;  %v3034_v52 = vld [vmem:[#allocation9 + $0x180] sm:$0xff] }
 0x2af   : > { %5714 = vmatmul.mubr.f32.gmra.mxu1 %v7464_v6  ;;  %5795 = vmatprep.subr.mxu1 %v3045_v31 }
 0x2b0   : > { %5796 = vmatpush3.msra.mxu1 %v3045_v31  ;;  %5716 = vmatprep.mubr.f32.mxu1 %v7467_v43  ;;  %v3229_v31 = vld [vmem:[#allocation9 + $0x208] sm:$0xff] }
 0x2b1   : > { %5797 = vmatprep.subr.mxu1 %v3044_v47  ;;  %5854 = vmatpush3.msra.mxu0 %v3238_v14  ;;  %v3632_v14 = vld [vmem:[#allocation9 + $0x378] sm:$0xff] }
 0x2b2   : > { %5798 = vmatpush3.msra.mxu1 %v3044_v47  ;;  %5773 = vmatmul.mubr.f32.gmra.mxu0 %v7476_v18  ;;  %v3437_v47 = vld [vmem:[#allocation9 + $0x2f8] sm:$0xff] }
 0x2b3   : > { %5717 = vmatmul.mubr.f32.gmra.mxu1 %v7470_v57  ;;  %5799 = vmatprep.subr.mxu1 %v3043_v20 }
 0x2b4   : > { %5800 = vmatpush3.msra.mxu1 %v3043_v20  ;;  %5855 = vmatprep.subr.mxu0 %v3237_v35  ;;  %v3436_v20 = vld [vmem:[#allocation9 + $0x2f0] sm:$0xff] }
 0x2b5   : > { %5801 = vmatprep.subr.mxu1 %v3042_v51  ;;  %5719 = vmatprep.mubr.f32.mxu1 %v7479_v29 }
 0x2b6   : > { %5802 = vmatpush3.msra.mxu1 %v3042_v51  ;;  %5856 = vmatpush3.msra.mxu0 %v3237_v35  ;;  %v3435_v51 = vld [vmem:[#allocation9 + $0x2e8] sm:$0xff]  ;;  %v3631_v35 = vld [vmem:[#allocation9 + $0x370] sm:$0xff] }
 0x2b7   : > { %5720 = vmatmul.mubr.f32.gmra.mxu1 %v7482_v41  ;;  %5803 = vmatprep.subr.mxu1 %v3041_v46 }
 0x2b8   : > { %5857 = vmatprep.subr.mxu0 %v3236_v21  ;;  %5775 = vmatprep.mubr.f32.mxu0 %v7485_v62 }
 0x2b9   : > { %5804 = vmatpush3.msra.mxu1 %v3041_v46  ;;  %5858 = vmatpush3.msra.mxu0 %v3236_v21  ;;  %v3432_v46 = vld [vmem:[#allocation9 + $0x2d0] sm:$0xff] }
 0x2ba   : > { %5776 = vmatmul.mubr.f32.gmra.mxu0 %v7488_v50  ;;  %5805 = vmatprep.subr.mxu1 %v3040_v12  ;;  %v3627_v21 = vld [vmem:[#allocation9 + $0x350] sm:$0xff] }
 0x2bb   : > { %5859 = vmatprep.subr.mxu0 %v3235_v60  ;;  %5722 = vmatprep.mubr.f32.mxu1 %v7491_v54 }
 0x2bc   : > { %5806 = vmatpush3.msra.mxu1 %v3040_v12  ;;  %5860 = vmatpush3.msra.mxu0 %v3235_v60  ;;  %v3430_v12 = vld [vmem:[#allocation9 + $0x2c0] sm:$0xff] }
 0x2bd   : > { %5723 = vmatmul.mubr.f32.gmra.mxu1 %v7494_v1  ;;  %5807 = vmatprep.subr.mxu1 %v3039_v45  ;;  %v3625_v60 = vld [vmem:[#allocation9 + $0x340] sm:$0xff] }
 0x2be   : > { %5861 = vmatprep.subr.mxu0 %v3234_v56  ;;  %5778 = vmatprep.mubr.f32.mxu0 %v7497_v33 }
 0x2bf   : > { %5808 = vmatpush3.msra.mxu1 %v3039_v45  ;;  %5862 = vmatpush3.msra.mxu0 %v3234_v56  ;;  %v3428_v45 = vld [vmem:[#allocation9 + $0x2b0] sm:$0xff] }
 0x2c0   : > { %5779 = vmatmul.mubr.f32.gmra.mxu0 %v7500_v19  ;;  %5809 = vmatprep.subr.mxu1 %v3038_v11  ;;  %v3623_v56 = vld [vmem:[#allocation9 + $0x330] sm:$0xff] }
 0x2c1   : > { %5863 = vmatprep.subr.mxu0 %v3233_v61  ;;  %5725 = vmatprep.mubr.f32.mxu1 %v7503_v15 }
 0x2c2   : > { %5810 = vmatpush3.msra.mxu1 %v3038_v11  ;;  %5864 = vmatpush3.msra.mxu0 %v3233_v61  ;;  %v3426_v11 = vld [vmem:[#allocation9 + $0x2a0] sm:$0xff] }
 0x2c3   : > { %5726 = vmatmul.mubr.f32.gmra.mxu1 %v7506_v55  ;;  %5811 = vmatprep.subr.mxu1 %v3037_v30  ;;  %v3621_v61 = vld [vmem:[#allocation9 + $0x320] sm:$0xff] }
 0x2c4   : > { %5865 = vmatprep.subr.mxu0 %v3232_v53  ;;  %5781 = vmatprep.mubr.f32.mxu0 %v7509_v16 }
 0x2c5   : > { %5812 = vmatpush3.msra.mxu1 %v3037_v30  ;;  %5866 = vmatpush3.msra.mxu0 %v3232_v53  ;;  %v3424_v30 = vld [vmem:[#allocation9 + $0x290] sm:$0xff]  ;;  %v7555_v53 = vld [vmem:[#allocation3 + $0x107] sm:$0xff] }
 0x2c6   : > { %5782 = vmatmul.mubr.f32.gmra.mxu0 %v7512_v7  ;;  %5813 = vmatprep.subr.mxu1 %v3036_v63 }
 0x2c7   : > { %5867 = vmatprep.subr.mxu0 %v3231_v48  ;;  %5728 = vmatprep.mubr.f32.mxu1 %v7515_v0 }
 0x2c8   : > { %5814 = vmatpush3.msra.mxu1 %v3036_v63  ;;  %5868 = vmatpush3.msra.mxu0 %v3231_v48  ;;  %v3423_v63 = vld [vmem:[#allocation9 + $0x288] sm:$0xff]  ;;  %v3619_v48 = vld [vmem:[#allocation9 + $0x310] sm:$0xff] }
 0x2c9   : > { %5729 = vmatmul.mubr.f32.gmra.mxu1 %v7518_v39  ;;  %5815 = vmatprep.subr.mxu1 %v3035_v9 }
 0x2ca   : > { %5869 = vmatprep.subr.mxu0 %v3230_v8  ;;  %5784 = vmatprep.mubr.f32.mxu0 %v7521_v23 }
 0x2cb   : > { %5816 = vmatpush3.msra.mxu1 %v3035_v9  ;;  %5870 = vmatpush3.msra.mxu0 %v3230_v8  ;;  %v7561_v9 = vld [vmem:[#allocation3 + $0x108] sm:$0xff]  ;;  %v3422_v8 = vld [vmem:[#allocation9 + $0x280] sm:$0xff] }
 0x2cc   : > { %5785 = vmatmul.mubr.f32.gmra.mxu0 %v7524_v2  ;;  %5817 = vmatprep.subr.mxu1 %v3034_v52 }
 0x2cd   : > { %5871 = vmatprep.subr.mxu0 %v3229_v31  ;;  %5818 = vmatpush3.msra.mxu1 %v3034_v52  ;;  %v3617_v52 = vld [vmem:[#allocation9 + $0x300] sm:$0xff] }
 0x2ce   : > { %5819 = vmatprep.mubr.f32.mxu1 %v7450_v10  ;;  %5872 = vmatpush3.msra.mxu0 %v3229_v31  ;;  %v3434_v10 = vld [vmem:[#allocation9 + $0x2e0] sm:$0xff]  ;;  %v3826_v31 = vld [vmem:[#allocation9 + $0x3f8] sm:$0xff] }
 0x2cf   : > { %5820 = vmatmul.mubr.f32.vlgmr.msra.gmra.mxu1 %v7455_v40  ;;  %5873 = vmatprep.subr.mxu0 %v3228_v42  ;;  %v3630_v40 = vld [vmem:[#allocation9 + $0x368] sm:$0xff] }
 0x2d0   : > { %5899 = vmatprep.subr.mxu1 %v3437_v47  ;;  %5874 = vmatpush3.msra.mxu0 %v3228_v42  ;;  %v3825_v42 = vld [vmem:[#allocation9 + $0x3f0] sm:$0xff] }
 0x2d1   : > { %5875 = vmatprep.mubr.f32.mxu0 %v7402_v22  ;;  %5900 = vmatpush3.msra.mxu1 %v3437_v47  ;;  %v3433_v22 = vld [vmem:[#allocation9 + $0x2d8] sm:$0xff] }
 0x2d2   : > { %5876 = vmatmul.mubr.f32.vlgmr.msra.gmra.mxu0 %v7405_v25  ;;  %5901 = vmatprep.subr.mxu1 %v3436_v20  ;;  %v3629_v25 = vld [vmem:[#allocation9 + $0x360] sm:$0xff]  ;;  %v7570_v47 = vld [vmem:[#allocation9 + $0x478] sm:$0xff] }
 0x2d3   : > { %5955 = vmatprep.subr.mxu0 %v3632_v14  ;;  %5822 = vmatprep.mubr.f32.mxu1 %v7457_v34 }
 0x2d4   : > { %5902 = vmatpush3.msra.mxu1 %v3436_v20  ;;  %5956 = vmatpush3.msra.mxu0 %v3632_v14  ;;  %v3824_v20 = vld [vmem:[#allocation9 + $0x3e8] sm:$0xff]  ;;  %v7588_v14 = vld [vmem:[#allocation9 + $0x460] sm:$0xff] }
 0x2d5   : > { %5823 = vmatmul.mubr.f32.gmra.mxu1 %v7464_v6  ;;  %5903 = vmatprep.subr.mxu1 %v3435_v51 }
 0x2d6   : > { %5957 = vmatprep.subr.mxu0 %v3631_v35  ;;  %5878 = vmatprep.mubr.f32.mxu0 %v7407_v59  ;;  %v3628_v59 = vld [vmem:[#allocation9 + $0x358] sm:$0xff] }
 0x2d7   : > { %5904 = vmatpush3.msra.mxu1 %v3435_v51  ;;  %5958 = vmatpush3.msra.mxu0 %v3631_v35  ;;  %v3820_v51 = vld [vmem:[#allocation9 + $0x3c8] sm:$0xff]  ;;  %v7600_v35 = vld [vmem:[#allocation9 + $0x450] sm:$0xff] }
 0x2d8   : > { %5879 = vmatmul.mubr.f32.gmra.mxu0 %v7411_v3  ;;  %5905 = vmatprep.subr.mxu1 %v3434_v10  ;;  %v3431_v3 = vld [vmem:[#allocation9 + $0x2c8] sm:$0xff] }
 0x2d9   : > { %5959 = vmatprep.subr.mxu0 %v3630_v40  ;;  %5825 = vmatprep.mubr.f32.mxu1 %v7467_v43 }
 0x2da   : > { %5906 = vmatpush3.msra.mxu1 %v3434_v10  ;;  %5960 = vmatpush3.msra.mxu0 %v3630_v40  ;;  %v3818_v10 = vld [vmem:[#allocation9 + $0x3b8] sm:$0xff]  ;;  %v7612_v40 = vld [vmem:[#allocation9 + $0x440] sm:$0xff] }
 0x2db   : > { %5826 = vmatmul.mubr.f32.gmra.mxu1 %v7470_v57  ;;  %5907 = vmatprep.subr.mxu1 %v3433_v22 }
 0x2dc   : > { %5961 = vmatprep.subr.mxu0 %v3629_v25  ;;  %5881 = vmatprep.mubr.f32.mxu0 %v7413_v5  ;;  %v3626_v5 = vld [vmem:[#allocation9 + $0x348] sm:$0xff] }
 0x2dd   : > { %5908 = vmatpush3.msra.mxu1 %v3433_v22  ;;  %5962 = vmatpush3.msra.mxu0 %v3629_v25  ;;  %v3816_v22 = vld [vmem:[#allocation9 + $0x3a8] sm:$0xff]  ;;  %v7624_v25 = vld [vmem:[#allocation9 + $0x430] sm:$0xff] }
 0x2de   : > { %5882 = vmatmul.mubr.f32.gmra.mxu0 %v7417_v32  ;;  %5909 = vmatprep.subr.mxu1 %v3432_v46  ;;  %v3429_v32 = vld [vmem:[#allocation9 + $0x2b8] sm:$0xff] }
 0x2df   : > { %5963 = vmatprep.subr.mxu0 %v3628_v59  ;;  %5828 = vmatprep.mubr.f32.mxu1 %v7479_v29 }
 0x2e0   : > { %5910 = vmatpush3.msra.mxu1 %v3432_v46  ;;  %5964 = vmatpush3.msra.mxu0 %v3628_v59  ;;  %v3814_v46 = vld [vmem:[#allocation9 + $0x398] sm:$0xff]  ;;  %v7636_v59 = vld [vmem:[#allocation9 + $0x420] sm:$0xff] }
 0x2e1   : > { %5829 = vmatmul.mubr.f32.gmra.mxu1 %v7482_v41  ;;  %5911 = vmatprep.subr.mxu1 %v3431_v3 }
 0x2e2   : > { %5965 = vmatprep.subr.mxu0 %v3627_v21  ;;  %5884 = vmatprep.mubr.f32.mxu0 %v7419_v24  ;;  %v3624_v24 = vld [vmem:[#allocation9 + $0x338] sm:$0xff] }
 0x2e3   : > { %5912 = vmatpush3.msra.mxu1 %v3431_v3  ;;  %5966 = vmatpush3.msra.mxu0 %v3627_v21  ;;  %v7644_v3 = vld [vmem:[#allocation3 + $0x109] sm:$0xff]  ;;  %v7648_v21 = vld [vmem:[#allocation3 + $0x111] sm:$0xff] }
 0x2e4   : > { %5885 = vmatmul.mubr.f32.gmra.mxu0 %v7423_v26  ;;  %5913 = vmatprep.subr.mxu1 %v3430_v12  ;;  %v3427_v26 = vld [vmem:[#allocation9 + $0x2a8] sm:$0xff] }
 0x2e5   : > { %5967 = vmatprep.subr.mxu0 %v3626_v5  ;;  %5831 = vmatprep.mubr.f32.mxu1 %v7491_v54 }
 0x2e6   : > { %5914 = vmatpush3.msra.mxu1 %v3430_v12  ;;  %5968 = vmatpush3.msra.mxu0 %v3626_v5  ;;  %v3812_v12 = vld [vmem:[#allocation9 + $0x388] sm:$0xff]  ;;  %v7652_v5 = vld [vmem:[#allocation9 + $0x410] sm:$0xff] }
 0x2e7   : > { %5832 = vmatmul.mubr.f32.gmra.mxu1 %v7494_v1  ;;  %5915 = vmatprep.subr.mxu1 %v3429_v32 }
 0x2e8   : > { %5969 = vmatprep.subr.mxu0 %v3625_v60  ;;  %5887 = vmatprep.mubr.f32.mxu0 %v7425_v44  ;;  %v3622_v44 = vld [vmem:[#allocation9 + $0x328] sm:$0xff] }
 0x2e9   : > { %5916 = vmatpush3.msra.mxu1 %v3429_v32  ;;  %5970 = vmatpush3.msra.mxu0 %v3625_v60  ;;  %v3614_v32 = vld [vmem:[#allocation3 + $0x127] sm:$0xff]  ;;  %v3615_v60 = vld [vmem:[#allocation3 + $0x12f] sm:$0xff] }
 0x2ea   : > { %5888 = vmatmul.mubr.f32.gmra.mxu0 %v7429_v38  ;;  %5917 = vmatprep.subr.mxu1 %v3428_v45  ;;  %v3425_v38 = vld [vmem:[#allocation9 + $0x298] sm:$0xff] }
 0x2eb   : > { %5971 = vmatprep.subr.mxu0 %v3624_v24  ;;  %5834 = vmatprep.mubr.f32.mxu1 %v7503_v15 }
 0x2ec   : > { %5918 = vmatpush3.msra.mxu1 %v3428_v45  ;;  %5972 = vmatpush3.msra.mxu0 %v3624_v24  ;;  %v3811_v45 = vld [vmem:[#allocation9 + $0x380] sm:$0xff]  ;;  %v7657_v24 = vld [vmem:[#allocation9 + $0x408] sm:$0xff] }
 0x2ed   : > { %5835 = vmatmul.mubr.f32.gmra.mxu1 %v7506_v55  ;;  %5919 = vmatprep.subr.mxu1 %v3427_v26 }
 0x2ee   : > { %5973 = vmatprep.subr.mxu0 %v3623_v56  ;;  %5890 = vmatprep.mubr.f32.mxu0 %v7431_v13  ;;  %v3620_v13 = vld [vmem:[#allocation9 + $0x318] sm:$0xff] }
 0x2ef   : > { %5920 = vmatpush3.msra.mxu1 %v3427_v26  ;;  %5974 = vmatpush3.msra.mxu0 %v3623_v56  ;;  %v3794_v26 = vld [vmem:[#allocation3 + $0x48] sm:$0xff]  ;;  %v3795_v56 = vld [vmem:[#allocation3 + $0x50] sm:$0xff] }
 0x2f0   : > { %5891 = vmatmul.mubr.f32.gmra.mxu0 %v7437_v28  ;;  %5921 = vmatprep.subr.mxu1 %v3426_v11  ;;  %v7558_v28 = vld [vmem:[#allocation3 + $0x10f] sm:$0xff] }
 0x2f1   : > { %5975 = vmatprep.subr.mxu0 %v3622_v44  ;;  %5837 = vmatprep.mubr.f32.mxu1 %v7515_v0 }
 0x2f2   : > { %5922 = vmatpush3.msra.mxu1 %v3426_v11  ;;  %5976 = vmatpush3.msra.mxu0 %v3622_v44  ;;  %v7661_v11 = vld [vmem:[#allocation9 + $0x400] sm:$0xff]  ;;  %v3796_v44 = vld [vmem:[#allocation3 + $0x68] sm:$0xff] }
 0x2f3   : > { %5838 = vmatmul.mubr.f32.gmra.mxu1 %v7518_v39  ;;  %5923 = vmatprep.subr.mxu1 %v3425_v38 }
 0x2f4   : > { %5977 = vmatprep.subr.mxu0 %v3621_v61  ;;  %5893 = vmatprep.mubr.f32.mxu0 %v7439_v4  ;;  %v7564_v4 = vld [vmem:[#allocation3 + $0x110] sm:$0xff] }
 0x2f5   : > { %5924 = vmatpush3.msra.mxu1 %v3425_v38  ;;  %5978 = vmatpush3.msra.mxu0 %v3621_v61  ;;  %v3797_v38 = vld [vmem:[#allocation3 + $0x70] sm:$0xff]  ;;  %v3798_v61 = vld [vmem:[#allocation3 + $0x88] sm:$0xff] }
 0x2f6   : > { %5894 = vmatmul.mubr.f32.gmra.mxu0 %v7446_v49  ;;  %5925 = vmatprep.subr.mxu1 %v3424_v30  ;;  %v3618_v49 = vld [vmem:[#allocation9 + $0x308] sm:$0xff] }
 0x2f7   : > { %5979 = vmatprep.subr.mxu0 %v3620_v13  ;;  %5840 = vmatprep.mubr.f32.mxu1 %v7555_v53 }
 0x2f8   : > { %5926 = vmatpush3.msra.mxu1 %v3424_v30  ;;  %5980 = vmatpush3.msra.mxu0 %v3620_v13  ;;  %v3799_v30 = vld [vmem:[#allocation3 + $0x90] sm:$0xff] }
 0x2f9   : > { %5841 = vmatmul.mubr.f32.gmra.mxu1 %v7558_v28  ;;  %5927 = vmatprep.subr.mxu1 %v3423_v63 }
 0x2fa   : > { %5981 = vmatprep.subr.mxu0 %v3619_v48  ;;  %5896 = vmatprep.mubr.f32.mxu0 %v7561_v9 }
 0x2fb   : > { %5928 = vmatpush3.msra.mxu1 %v3423_v63  ;;  %5982 = vmatpush3.msra.mxu0 %v3619_v48 }
 0x2fc   : > { %5897 = vmatmul.mubr.f32.gmra.mxu0 %v7564_v4  ;;  %5929 = vmatprep.subr.mxu1 %v3422_v8 }
 0x2fd   : > { %5983 = vmatprep.subr.mxu0 %v3618_v49  ;;  %5930 = vmatpush3.msra.mxu1 %v3422_v8 }
 0x2fe   : > { %5931 = vmatprep.mubr.f32.mxu1 %v7434_v37  ;;  %5984 = vmatpush3.msra.mxu0 %v3618_v49  ;;  %v7576_v37 = vld [vmem:[#allocation9 + $0x470] sm:$0xff] }
 0x2ff   : > { %5932 = vmatmul.mubr.f32.vlgmr.msra.gmra.mxu1 %v7443_v27  ;;  %5985 = vmatprep.subr.mxu0 %v3617_v52  ;;  %v3823_v27 = vld [vmem:[#allocation9 + $0x3e0] sm:$0xff] }
 0x300   : > { %6011 = vmatprep.subr.mxu1 %v3826_v31  ;;  %5986 = vmatpush3.msra.mxu0 %v3617_v52 }
 0x301   : > { %5987 = vmatprep.mubr.f32.mxu0 %v7457_v34  ;;  %6012 = vmatpush3.msra.mxu1 %v3826_v31  ;;  %v7582_v34 = vld [vmem:[#allocation9 + $0x468] sm:$0xff] }
 0x302   : > { %5988 = vmatmul.mubr.f32.vlgmr.msra.gmra.mxu0 %v7464_v6  ;;  %6013 = vmatprep.subr.mxu1 %v3825_v42  ;;  %v3822_v6 = vld [vmem:[#allocation9 + $0x3d8] sm:$0xff] }
 0x303   : > { %6067 = vmatprep.subr.mxu0 %v7570_v47  ;;  %5934 = vmatprep.mubr.f32.mxu1 %v7452_v36 }
 0x304   : > { %6014 = vmatpush3.msra.mxu1 %v3825_v42  ;;  %6068 = vmatpush3.msra.mxu0 %v7570_v47 }
 0x305   : > { %5935 = vmatmul.mubr.f32.gmra.mxu1 %v7461_v17  ;;  %6015 = vmatprep.subr.mxu1 %v3824_v20 }
 0x306   : > { %6069 = vmatprep.subr.mxu0 %v7576_v37  ;;  %5990 = vmatprep.mubr.f32.mxu0 %v7467_v43  ;;  %v3821_v43 = vld [vmem:[#allocation9 + $0x3d0] sm:$0xff] }
 0x307   : > { %6016 = vmatpush3.msra.mxu1 %v3824_v20  ;;  %6070 = vmatpush3.msra.mxu0 %v7576_v37 }
 0x308   : > { %5991 = vmatmul.mubr.f32.gmra.mxu0 %v7470_v57  ;;  %6017 = vmatprep.subr.mxu1 %v3823_v27  ;;  %v7594_v57 = vld [vmem:[#allocation9 + $0x458] sm:$0xff] }
 0x309   : > { %6071 = vmatprep.subr.mxu0 %v7582_v34  ;;  %5937 = vmatprep.mubr.f32.mxu1 %v7473_v58 }
 0x30a   : > { %6018 = vmatpush3.msra.mxu1 %v3823_v27  ;;  %6072 = vmatpush3.msra.mxu0 %v7582_v34 }
 0x30b   : > { %5938 = vmatmul.mubr.f32.gmra.mxu1 %v7476_v18  ;;  %6019 = vmatprep.subr.mxu1 %v3822_v6 }
 0x30c   : > { %6073 = vmatprep.subr.mxu0 %v7588_v14  ;;  %5993 = vmatprep.mubr.f32.mxu0 %v7479_v29  ;;  %v3819_v29 = vld [vmem:[#allocation9 + $0x3c0] sm:$0xff] }
 0x30d   : > { %6020 = vmatpush3.msra.mxu1 %v3822_v6  ;;  %6074 = vmatpush3.msra.mxu0 %v7588_v14 }
 0x30e   : > { %5994 = vmatmul.mubr.f32.gmra.mxu0 %v7482_v41  ;;  %6021 = vmatprep.subr.mxu1 %v3821_v43  ;;  %v7606_v41 = vld [vmem:[#allocation9 + $0x448] sm:$0xff] }
 0x30f   : > { %6075 = vmatprep.subr.mxu0 %v7594_v57  ;;  %5940 = vmatprep.mubr.f32.mxu1 %v7485_v62 }
 0x310   : > { %6022 = vmatpush3.msra.mxu1 %v3821_v43  ;;  %6076 = vmatpush3.msra.mxu0 %v7594_v57 }
 0x311   : > { %5941 = vmatmul.mubr.f32.gmra.mxu1 %v7488_v50  ;;  %6023 = vmatprep.subr.mxu1 %v3820_v51 }
 0x312   : > { %6077 = vmatprep.subr.mxu0 %v7600_v35  ;;  %5996 = vmatprep.mubr.f32.mxu0 %v7491_v54  ;;  %v3817_v54 = vld [vmem:[#allocation9 + $0x3b0] sm:$0xff] }
 0x313   : > { %6024 = vmatpush3.msra.mxu1 %v3820_v51  ;;  %6078 = vmatpush3.msra.mxu0 %v7600_v35 }
 0x314   : > { %5997 = vmatmul.mubr.f32.gmra.mxu0 %v7494_v1  ;;  %6025 = vmatprep.subr.mxu1 %v3819_v29  ;;  %v7618_v1 = vld [vmem:[#allocation9 + $0x438] sm:$0xff] }
 0x315   : > { %6079 = vmatprep.subr.mxu0 %v7606_v41  ;;  %5943 = vmatprep.mubr.f32.mxu1 %v7497_v33 }
 0x316   : > { %6026 = vmatpush3.msra.mxu1 %v3819_v29  ;;  %6080 = vmatpush3.msra.mxu0 %v7606_v41 }
 0x317   : > { %5944 = vmatmul.mubr.f32.gmra.mxu1 %v7500_v19  ;;  %6027 = vmatprep.subr.mxu1 %v3818_v10 }
 0x318   : > { %6081 = vmatprep.subr.mxu0 %v7612_v40  ;;  %5999 = vmatprep.mubr.f32.mxu0 %v7503_v15  ;;  %v3815_v15 = vld [vmem:[#allocation9 + $0x3a0] sm:$0xff] }
 0x319   : > { %6028 = vmatpush3.msra.mxu1 %v3818_v10  ;;  %6082 = vmatpush3.msra.mxu0 %v7612_v40 }
 0x31a   : > { %6000 = vmatmul.mubr.f32.gmra.mxu0 %v7506_v55  ;;  %6029 = vmatprep.subr.mxu1 %v3817_v54  ;;  %v7630_v55 = vld [vmem:[#allocation9 + $0x428] sm:$0xff] }
 0x31b   : > { %6083 = vmatprep.subr.mxu0 %v7618_v1  ;;  %5946 = vmatprep.mubr.f32.mxu1 %v7509_v16 }
 0x31c   : > { %6030 = vmatpush3.msra.mxu1 %v3817_v54  ;;  %6084 = vmatpush3.msra.mxu0 %v7618_v1 }
 0x31d   : > { %5947 = vmatmul.mubr.f32.gmra.mxu1 %v7512_v7  ;;  %6031 = vmatprep.subr.mxu1 %v3816_v22 }
 0x31e   : > { %6085 = vmatprep.subr.mxu0 %v7624_v25  ;;  %6002 = vmatprep.mubr.f32.mxu0 %v7515_v0  ;;  %v3813_v0 = vld [vmem:[#allocation9 + $0x390] sm:$0xff] }
 0x31f   : > { %6032 = vmatpush3.msra.mxu1 %v3816_v22  ;;  %6086 = vmatpush3.msra.mxu0 %v7624_v25 }
 0x320   : > { %6003 = vmatmul.mubr.f32.gmra.mxu0 %v7518_v39  ;;  %6033 = vmatprep.subr.mxu1 %v3815_v15  ;;  %v7642_v39 = vld [vmem:[#allocation9 + $0x418] sm:$0xff] }
 0x321   : > { %6087 = vmatprep.subr.mxu0 %v7630_v55  ;;  %5949 = vmatprep.mubr.f32.mxu1 %v7521_v23 }
 0x322   : > { %6034 = vmatpush3.msra.mxu1 %v3815_v15  ;;  %6088 = vmatpush3.msra.mxu0 %v7630_v55 }
 0x323   : > { %5950 = vmatmul.mubr.f32.gmra.mxu1 %v7524_v2  ;;  %6035 = vmatprep.subr.mxu1 %v3814_v46 }
 0x324   : > { %6089 = vmatprep.subr.mxu0 %v7636_v59  ;;  %6005 = vmatprep.mubr.f32.mxu0 %v7555_v53  ;;  %v4003_v53 = vld [vmem:[#allocation3 + $0x131] sm:$0xff] }
 0x325   : > { %6036 = vmatpush3.msra.mxu1 %v3814_v46  ;;  %6090 = vmatpush3.msra.mxu0 %v7636_v59 }
 0x326   : > { %6006 = vmatmul.mubr.f32.gmra.mxu0 %v7558_v28  ;;  %6037 = vmatprep.subr.mxu1 %v3813_v0 }
 0x327   : > { %6091 = vmatprep.subr.mxu0 %v7642_v39  ;;  %5952 = vmatprep.mubr.f32.mxu1 %v7644_v3 }
 0x328   : > { %6038 = vmatpush3.msra.mxu1 %v3813_v0  ;;  %6092 = vmatpush3.msra.mxu0 %v7642_v39 }
 0x329   : > { %5953 = vmatmul.mubr.f32.gmra.mxu1 %v7648_v21  ;;  %6039 = vmatprep.subr.mxu1 %v3812_v12 }
 0x32a   : > { %6093 = vmatprep.subr.mxu0 %v7652_v5  ;;  %6008 = vmatprep.mubr.f32.mxu0 %v3614_v32 }
 0x32b   : > { %6040 = vmatpush3.msra.mxu1 %v3812_v12  ;;  %6094 = vmatpush3.msra.mxu0 %v7652_v5 }
 0x32c   : > { %6009 = vmatmul.mubr.f32.gmra.mxu0 %v3615_v60  ;;  %6041 = vmatprep.subr.mxu1 %v3811_v45 }
 0x32d   : > { %6095 = vmatprep.subr.mxu0 %v7657_v24  ;;  %6042 = vmatpush3.msra.mxu1 %v3811_v45 }
 0x32e   : > { %6043 = vmatprep.mubr.f32.mxu1 %v3794_v26  ;;  %6096 = vmatpush3.msra.mxu0 %v7657_v24 }
 0x32f   : > { %6044 = vmatmul.mubr.f32.vlgmr.msra.gmra.mxu1 %v3795_v56  ;;  %6123 = vmatprep.subr.mxu1 %v7570_v47 }
 0x330   : > { %6097 = vmatprep.subr.mxu0 %v7661_v11  ;;  %6139 = vmatpush3.msra.mxu1 %v7570_v47 }
 0x331   : > { %6098 = vmatpush3.msra.mxu0 %v7661_v11  ;;  %6099 = vmatprep.mubr.f32.mxu0 %v7452_v36  ;;  %v3800_v36 = vld [vmem:[#allocation3 + $0xa8] sm:$0xff] }
 0x332   : > { %6124 = vmatprep.subr.mxu1 %v7576_v37  ;;  %6100 = vmatmul.mubr.f32.vlgmr.msra.gmra.mxu0 %v7461_v17  ;;  %v3801_v17 = vld [vmem:[#allocation3 + $0xb0] sm:$0xff] }
 0x333   : > { %6046 = vmatprep.mubr.f32.mxu1 %v3796_v44  ;;  %6140 = vmatpush3.msra.mxu1 %v7576_v37 }
 0x334   : > { %6047 = vmatmul.mubr.f32.gmra.mxu1 %v3797_v38  ;;  %6125 = vmatprep.subr.mxu1 %v7582_v34 }
 0x335   : > { %6141 = vmatpush3.msra.mxu1 %v7582_v34  ;;  %6102 = vmatprep.mubr.f32.mxu0 %v7473_v58  ;;  %v3802_v58 = vld [vmem:[#allocation3 + $0xc8] sm:$0xff] }
 0x336   : > { %6126 = vmatprep.subr.mxu1 %v7588_v14  ;;  %6103 = vmatmul.mubr.f32.gmra.mxu0 %v7476_v18  ;;  %v3803_v18 = vld [vmem:[#allocation3 + $0xd0] sm:$0xff] }
 0x337   : > { %6049 = vmatprep.mubr.f32.mxu1 %v3798_v61  ;;  %6142 = vmatpush3.msra.mxu1 %v7588_v14 }
 0x338   : > { %6050 = vmatmul.mubr.f32.gmra.mxu1 %v3799_v30  ;;  %6127 = vmatprep.subr.mxu1 %v7594_v57 }
 0x339   : > { %6143 = vmatpush3.msra.mxu1 %v7594_v57  ;;  %6105 = vmatprep.mubr.f32.mxu0 %v7485_v62  ;;  %v3804_v62 = vld [vmem:[#allocation3 + $0xe8] sm:$0xff] }
 0x33a   : > { %6128 = vmatprep.subr.mxu1 %v7600_v35  ;;  %6106 = vmatmul.mubr.f32.gmra.mxu0 %v7488_v50  ;;  %v3805_v50 = vld [vmem:[#allocation3 + $0xf0] sm:$0xff] }
 0x33b   : > { %6052 = vmatprep.mubr.f32.mxu1 %v3800_v36  ;;  %6144 = vmatpush3.msra.mxu1 %v7600_v35 }
 0x33c   : > { %6053 = vmatmul.mubr.f32.gmra.mxu1 %v3801_v17  ;;  %6129 = vmatprep.subr.mxu1 %v7606_v41 }
 0x33d   : > { %6145 = vmatpush3.msra.mxu1 %v7606_v41  ;;  %6108 = vmatprep.mubr.f32.mxu0 %v7497_v33 }
 0x33e   : > { %6130 = vmatprep.subr.mxu1 %v7612_v40  ;;  %6109 = vmatmul.mubr.f32.gmra.mxu0 %v7500_v19 }
 0x33f   : > { %6055 = vmatprep.mubr.f32.mxu1 %v3802_v58  ;;  %6146 = vmatpush3.msra.mxu1 %v7612_v40 }
 0x340   : > { %6056 = vmatmul.mubr.f32.gmra.mxu1 %v3803_v18  ;;  %6131 = vmatprep.subr.mxu1 %v7618_v1 }
 0x341   : > { %6147 = vmatpush3.msra.mxu1 %v7618_v1  ;;  %6111 = vmatprep.mubr.f32.mxu0 %v7509_v16  ;;  %v3808_v16 = vld [vmem:[#allocation3 + $0x128] sm:$0xff] }
 0x342   : > { %6132 = vmatprep.subr.mxu1 %v7624_v25  ;;  %6112 = vmatmul.mubr.f32.gmra.mxu0 %v7512_v7  ;;  %v3809_v7 = vld [vmem:[#allocation3 + $0x130] sm:$0xff] }
 0x343   : > { %6058 = vmatprep.mubr.f32.mxu1 %v3804_v62  ;;  %6148 = vmatpush3.msra.mxu1 %v7624_v25 }
 0x344   : > { %6059 = vmatmul.mubr.f32.gmra.mxu1 %v3805_v50  ;;  %6133 = vmatprep.subr.mxu1 %v7630_v55 }
 0x345   : > { %6149 = vmatpush3.msra.mxu1 %v7630_v55  ;;  %6114 = vmatprep.mubr.f32.mxu0 %v7521_v23 }
 0x346   : > { %6134 = vmatprep.subr.mxu1 %v7636_v59  ;;  %6115 = vmatmul.mubr.f32.gmra.mxu0 %v7524_v2  ;;  %v4002_v2 = vld [vmem:[#allocation3 + $0x129] sm:$0xff] }
 0x347   : > { %v5653_v33 = vpop.f32.mrf.mxu1  ;;  %6061 = vmatprep.mubr.f32.mxu1 %v7561_v9  ;;  %6150 = vmatpush3.msra.mxu1 %v7636_v59 }
 0x348   : > { %6062 = vmatmul.mubr.f32.gmra.mxu1 %v7564_v4  ;;  %6135 = vmatprep.subr.mxu1 %v7642_v39 }
 0x349   : > { %v2598_v19 = vpop.f32.mrf.mxu1  ;;  %6151 = vmatpush3.msra.mxu1 %v7642_v39  ;;  %6117 = vmatprep.mubr.f32.mxu0 %v7644_v3 }
 0x34a   : > { %6136 = vmatprep.subr.mxu1 %v7652_v5  ;;  %6118 = vmatmul.mubr.f32.gmra.mxu0 %v7648_v21 }
 0x34b   : > { %v5656_v23 = vpop.f32.mrf.mxu1  ;;  %6064 = vmatprep.mubr.f32.mxu1 %v3808_v16  ;;  %6152 = vmatpush3.msra.mxu1 %v7652_v5 }
 0x34c   : > { %6065 = vmatmul.mubr.f32.gmra.mxu1 %v3809_v7  ;;  %6137 = vmatprep.subr.mxu1 %v7657_v24 }
 0x34d   : > { %v2608_v13 = vpop.f32.mrf.mxu1  ;;  %6153 = vmatpush3.msra.mxu1 %v7657_v24  ;;  %6120 = vmatprep.mubr.f32.mxu1 %v4002_v2 }
 0x34e   : > { %6138 = vmatprep.subr.mxu1 %v7661_v11  ;;  %v5765_v31 = vpop.f32.mrf.mxu0 }
 0x34f   : > { %v5659_v28 = vpop.f32.mrf.mxu1  ;;  %6154 = vmatpush3.msra.mxu1 %v7661_v11 }
 0x350   : > { %6121 = vmatmul.mubr.f32.vlgmr.msra.gmra.mxu1 %v4003_v53  ;;  %v2921_v20 = vpop.f32.mrf.mxu0 }
 0x351   : > { %v2618_v63 = vpop.f32.mrf.mxu1 }
 0x353   : > { %v5662_v48 = vpop.f32.mrf.mxu1 }
 0x355   : > { %v2628_v9 = vpop.f32.mrf.mxu1 }
 0x357   : > { %v5665_v4 = vpop.f32.mrf.mxu1 }
 0x359   : > { %v2638_v8 = vpop.f32.mrf.mxu1 }
 0x35a   : > { %v5768_v34 = vpop.f32.mrf.mxu0 }
 0x35b   : > { %v5668_v49 = vpop.f32.mrf.mxu1 }
 0x35c   : > { %v2931_v35 = vpop.f32.mrf.mxu0 }
 0x35d   : > { %v2648_v52 = vpop.f32.mrf.mxu1 }
 0x35f   : > { %v5671_v42 = vpop.f32.mrf.mxu1 }
 0x361   : > { %v2658_v47 = vpop.f32.mrf.mxu1 }
 0x363   : > { %v5674_v37 = vpop.f32.mrf.mxu1 }
 0x365   : > { %v2668_v27 = vpop.f32.mrf.mxu1 }
 0x366   : > { %v5771_v22 = vpop.f32.mrf.mxu0 }
 0x367   : > { %v5709_v6 = vpop.f32.mrf.mxu1 }
 0x368   : > { %v2749_v14 = vadd.f32 %v5709_v6, %v5653_v33  ;;  %v2941_v59 = vpop.f32.mrf.mxu0 }
 0x369   : > { %v2743_v43 = vpop.f32.mrf.mxu1 }
 0x36a   : > { %v2744_v57 = vadd.f32 %v2743_v43, %v2598_v19  ;;  %v7714_v51 = vadd.f32 %v5765_v31, %v2749_v14 }
 0x36b   : > { %v5712_v29 = vpop.f32.mrf.mxu1 }
 0x36c   : > { %v2759_v41 = vadd.f32 %v5712_v29, %v5656_v23  ;;  %v7716_v10 = vadd.f32 %v2921_v20, %v2744_v57 }
 0x36d   : > { %v2753_v40 = vpop.f32.mrf.mxu1 }
 0x36e   : > { %v2754_v54 = vadd.f32 %v2753_v40, %v2608_v13  ;;  %v7718_v1 = vadd.f32 %v5768_v34, %v2759_v41 }
 0x36f   : > { %v5715_v25 = vpop.f32.mrf.mxu1 }
 0x370   : > { %v2769_v15 = vadd.f32 %v5715_v25, %v5659_v28  ;;  %v7720_v55 = vadd.f32 %v2931_v35, %v2754_v54 }
 0x371   : > { %v2763_v46 = vpop.f32.mrf.mxu1 }
 0x372   : > { %v2764_v0 = vadd.f32 %v2763_v46, %v2618_v63  ;;  %v7722_v39 = vadd.f32 %v5771_v22, %v2769_v15  ;;  %v5774_v60 = vpop.f32.mrf.mxu0 }
 0x373   : > { %v5718_v3 = vpop.f32.mrf.mxu1 }
 0x374   : > { %v2779_v21 = vadd.f32 %v5718_v3, %v5662_v48  ;;  %v7724_v12 = vadd.f32 %v2941_v59, %v2764_v0  ;;  %v2951_v24 = vpop.f32.mrf.mxu0 }
 0x375   : > { %v2773_v5 = vpop.f32.mrf.mxu1 }
 0x376   : > { %v2774_v32 = vadd.f32 %v2773_v5, %v2628_v9  ;;  %v7726_v45 = vadd.f32 %v5774_v60, %v2779_v21 }
 0x377   : > { %v5721_v26 = vpop.f32.mrf.mxu1 }
 0x378   : > { %v7728_v56 = vadd.f32 %v2951_v24, %v2774_v32  ;;  %v2789_v11 = vadd.f32 %v5721_v26, %v5665_v4 }
 0x379   : > { %v2783_v44 = vpop.f32.mrf.mxu1 }
 0x37a   : > { %v2784_v38 = vadd.f32 %v2783_v44, %v2638_v8  ;;  %v5777_v61 = vpop.f32.mrf.mxu0 }
 0x37b   : > { %v7730_v30 = vadd.f32 %v5777_v61, %v2789_v11 }
 0x37c   : > { %v2961_v36 = vpop.f32.mrf.mxu0 }
 0x37d   : > { %v5724_v17 = vpop.f32.mrf.mxu1  ;;  %v7732_v58 = vadd.f32 %v2961_v36, %v2784_v38 }
 0x37e   : > { %v2799_v18 = vadd.f32 %v5724_v17, %v5668_v49 }
 0x37f   : > { %v2793_v62 = vpop.f32.mrf.mxu1 }
 0x380   : > { %v2794_v50 = vadd.f32 %v2793_v62, %v2648_v52  ;;  %v5780_v33 = vpop.f32.mrf.mxu0 }
 0x381   : > { %v7734_v19 = vadd.f32 %v5780_v33, %v2799_v18 }
 0x382   : > { %v2971_v16 = vpop.f32.mrf.mxu0 }
 0x383   : > { %v5727_v7 = vpop.f32.mrf.mxu1  ;;  %v7736_v23 = vadd.f32 %v2971_v16, %v2794_v50 }
 0x384   : > { %v2809_v2 = vadd.f32 %v5727_v7, %v5671_v42 }
 0x385   : > { %v2803_v13 = vpop.f32.mrf.mxu1 }
 0x386   : > { %v2804_v53 = vadd.f32 %v2803_v13, %v2658_v47  ;;  %v5783_v28 = vpop.f32.mrf.mxu0 }
 0x387   : > { %v7738_v63 = vadd.f32 %v5783_v28, %v2809_v2 }
 0x388   : > { %v2981_v48 = vpop.f32.mrf.mxu0 }
 0x389   : > { %v5730_v9 = vpop.f32.mrf.mxu1  ;;  %v7740_v4 = vadd.f32 %v2981_v48, %v2804_v53 }
 0x38a   : > { %v2819_v8 = vadd.f32 %v5730_v9, %v5674_v37 }
 0x38b   : > { %8100 = vst [vmem:[#allocation20_spill] sm:$0xff] %v7740_v4  ;;  %v2813_v49 = vpop.f32.mrf.mxu1 }
 0x38c   : > { %v2814_v52 = vadd.f32 %v2813_v49, %v2668_v27  ;;  %v5786_v31 = vpop.f32.mrf.mxu0 }
 0x38d   : > { %v7742_v20 = vadd.f32 %v5786_v31, %v2819_v8 }
 0x38e   : > { %v2991_v34 = vpop.f32.mrf.mxu0 }
 0x38f   : > { %8101 = vst [vmem:[#allocation21_spill] sm:$0xff] %v7742_v20  ;;  %v7744_v6 = vadd.f32 %v2991_v34, %v2814_v52  ;;  %v5821_v14 = vpop.f32.mrf.mxu1 }
 0x391   : > { %8102 = vst [vmem:[#allocation30_spill] sm:$0xff] %v7744_v6  ;;  %v3116_v42 = vpop.f32.mrf.mxu1 }
 0x392   : > { %v5877_v43 = vpop.f32.mrf.mxu0 }
 0x394   : > { %v3310_v47 = vpop.f32.mrf.mxu0 }
 0x395   : > { %v5824_v57 = vpop.f32.mrf.mxu1 }
 0x397   : > { %v3126_v35 = vpop.f32.mrf.mxu1 }
 0x398   : > { %v7746_v29 = vpop.f32.mrf.mxu0 }
 0x39a   : > { %v7748_v41 = vpop.f32.mrf.mxu0 }
 0x39b   : > { %v5827_v40 = vpop.f32.mrf.mxu1 }
 0x39d   : > { %v7750_v37 = vpop.f32.mrf.mxu1 }
 0x39e   : > { %v7752_v27 = vpop.f32.mrf.mxu0 }
 0x3a0   : > { %v7754_v54 = vpop.f32.mrf.mxu0 }
 0x3a1   : > { %v7756_v22 = vpop.f32.mrf.mxu1 }
 0x3a3   : > { %v7758_v25 = vpop.f32.mrf.mxu1 }
 0x3a4   : > { %v7760_v15 = vpop.f32.mrf.mxu0 }
 0x3a6   : > { %v7762_v46 = vpop.f32.mrf.mxu0 }
 0x3a7   : > { %v7764_v59 = vpop.f32.mrf.mxu1 }
 0x3a9   : > { %v7766_v0 = vpop.f32.mrf.mxu1 }
 0x3aa   : > { %v7768_v3 = vpop.f32.mrf.mxu0 }
 0x3ac   : > { %v7770_v21 = vpop.f32.mrf.mxu0 }
 0x3ad   : > { %v7772_v5 = vpop.f32.mrf.mxu1 }
 0x3af   : > { %v7774_v32 = vpop.f32.mrf.mxu1 }
 0x3b0   : > { %v7776_v60 = vpop.f32.mrf.mxu0 }
 0x3b2   : > { %v7778_v24 = vpop.f32.mrf.mxu0 }
 0x3b3   : > { %v7780_v26 = vpop.f32.mrf.mxu1 }
 0x3b5   : > { %v7782_v11 = vpop.f32.mrf.mxu1 }
 0x3b6   : > { %8103 = vst [vmem:[#allocation22_spill] sm:$0xff] %v7782_v11  ;;  %v7784_v44 = vpop.f32.mrf.mxu0 }
 0x3b7   : > { %8104 = vst [vmem:[#allocation24_spill] sm:$0xff] %v7784_v44 }
 0x3b8   : > { %v7786_v38 = vpop.f32.mrf.mxu0 }
 0x3b9   : > { %8105 = vst [vmem:[#allocation31_spill] sm:$0xff] %v7786_v38  ;;  %v7788_v61 = vpop.f32.mrf.mxu1 }
 0x3ba   : > { %8106 = vst [vmem:[#allocation23_spill] sm:$0xff] %v7788_v61 }
 0x3bb   : > { %v7790_v36 = vpop.f32.mrf.mxu1 }
 0x3bc   : > { %8107 = vst [vmem:[#allocation25_spill] sm:$0xff] %v7790_v36  ;;  %v7792_v17 = vpop.f32.mrf.mxu0 }
 0x3bd   : > { %8108 = vst [vmem:[#allocation32_spill] sm:$0xff] %v7792_v17 }
 0x3be   : > { %v7794_v18 = vpop.f32.mrf.mxu0 }
 0x3bf   : > { %8109 = vst [vmem:[#allocation26_spill] sm:$0xff] %v7794_v18  ;;  %v5933_v62 = vpop.f32.mrf.mxu1 }
 0x3c1   : > { %v3504_v50 = vpop.f32.mrf.mxu1 }
 0x3c2   : > { %v5989_v33 = vpop.f32.mrf.mxu0 }
 0x3c4   : > { %v3699_v16 = vpop.f32.mrf.mxu0 }
 0x3c5   : > { %v5936_v7 = vpop.f32.mrf.mxu1 }
 0x3c7   : > { %v3514_v2 = vpop.f32.mrf.mxu1 }
 0x3c8   : > { %v5992_v13 = vpop.f32.mrf.mxu0 }
 0x3ca   : > { %v7796_v53 = vpop.f32.mrf.mxu0 }
 0x3cb   : > { %v5939_v28 = vpop.f32.mrf.mxu1 }
 0x3cd   : > { %v3524_v48 = vpop.f32.mrf.mxu1 }
 0x3ce   : > { %v7798_v9 = vpop.f32.mrf.mxu0 }
 0x3d0   : > { %v7800_v8 = vpop.f32.mrf.mxu0 }
 0x3d1   : > { %v7802_v49 = vpop.f32.mrf.mxu1 }
 0x3d3   : > { %v7804_v52 = vpop.f32.mrf.mxu1 }
 0x3d4   : > { %v7806_v31 = vpop.f32.mrf.mxu0 }
 0x3d5   : > { %8110 = vst [vmem:[#allocation28_spill] sm:$0xff] %v7806_v31 }
 0x3d6   : > { %v7808_v34 = vpop.f32.mrf.mxu0 }
 0x3d7   : > { %8111 = vst [vmem:[#allocation33_spill] sm:$0xff] %v7808_v34  ;;  %v7810_v18 = vpop.f32.mrf.mxu1  ;;  %v3196_v34 = vadd.f32 %v5821_v14, %v7714_v51  ;;  %v3200_v51 = vadd.f32 %v5827_v40, %v7722_v39 }
 0x3d8   : > { %8112 = vst [vmem:[#allocation27_spill] sm:$0xff] %v7810_v18 }
 0x3d9   : > { %v7812_v17 = vpop.f32.mrf.mxu1 }
 0x3da   : > { %8113 = vst [vmem:[#allocation29_spill] sm:$0xff] %v7812_v17  ;;  %v7814_v36 = vpop.f32.mrf.mxu0  ;;  %v3195_v17 = vadd.f32 %v3116_v42, %v7716_v10 }
 0x3db   : > { %8114 = vst [vmem:[#allocation34_spill] sm:$0xff] %v7814_v36 }
 0x3dc   : > { %v7816_v6 = vpop.f32.mrf.mxu0 }
 0x3dd   : > { %8115 = vst [vmem:[#allocation35_spill] sm:$0xff] %v7816_v6  ;;  %v7818_v61 = vpop.f32.mrf.mxu1  ;;  %v3390_v6 = vadd.f32 %v5877_v43, %v3196_v34  ;;  %v3199_v43 = vadd.f32 %v7750_v37, %v7724_v12 }
 0x3de   : > { %8116 = vst [vmem:[#allocation36_spill] sm:$0xff] %v7818_v61 }
 0x3df   : > { %v7820_v20 = vpop.f32.mrf.mxu1  ;;  %v3393_v12 = vadd.f32 %v7754_v54, %v3199_v43 }
 0x3e0   : > { %8117 = vst [vmem:[#allocation37_spill] sm:$0xff] %v7820_v20  ;;  %v7822_v38 = vpop.f32.mrf.mxu0  ;;  %v3198_v20 = vadd.f32 %v5824_v57, %v7718_v1 }
 0x3e1   : > { %8118 = vst [vmem:[#allocation38_spill] sm:$0xff] %v7822_v38  ;;  %v3389_v38 = vadd.f32 %v3310_v47, %v3195_v17 }
 0x3e2   : > { %v7824_v44 = vpop.f32.mrf.mxu0  ;;  %v3392_v42 = vadd.f32 %v7746_v29, %v3198_v20  ;;  %v3201_v20 = vadd.f32 %v7758_v25, %v7728_v56  ;;  %v7868_v56 = vld [vmem:[%s8039_s4] ss:$0 sm:$0xff] }
 0x3e3   : > { %8119 = vst [vmem:[#allocation39_spill] sm:$0xff] %v7824_v44  ;;  %v7826_v11 = vpop.f32.mrf.mxu1  ;;  %v3584_v44 = vadd.f32 %v5933_v62, %v3390_v6  ;;  %v3583_v14 = vadd.f32 %v3504_v50, %v3389_v38 }
 0x3e4   : > { %8120 = vst [vmem:[#allocation40_spill] sm:$0xff] %v7826_v11  ;;  %v3197_v11 = vadd.f32 %v3126_v35, %v7720_v55  ;;  %v3202_v55 = vadd.f32 %v7756_v22, %v7726_v45  ;;  %v3586_v47 = vadd.f32 %v5936_v7, %v3392_v42  ;;  %v3394_v35 = vadd.f32 %v7752_v27, %v3200_v51 }
 0x3e5   : > { %v7829_v4 = vpop.f32.mrf.mxu1  ;;  %v3779_v1 = vadd.f32 %v5989_v33, %v3584_v44  ;;  %v3778_v29 = vadd.f32 %v3699_v16, %v3583_v14  ;;  %v3203_v45 = vadd.f32 %v7766_v0, %v7732_v58  ;;  %v3395_v17 = vadd.f32 %v7762_v46, %v3201_v20  ;;  %v4186_v0 = vld [vmem:[%s7859_s17 + $0x8] sm:$0xff] }
 0x3e6   : > { %v7832_v18 = vpop.f32.mrf.mxu0  ;;  %v3391_v6 = vadd.f32 %v7748_v41, %v3197_v11  ;;  %v3204_v41 = vadd.f32 %v7764_v59, %v7730_v30  ;;  %v3588_v22 = vadd.f32 %v5939_v28, %v3394_v35  ;;  %v3396_v54 = vadd.f32 %v7760_v15, %v3202_v55 }
 0x3e7   : > { %v3781_v25 = vadd.f32 %v5992_v13, %v3586_v47  ;;  %v3206_v30 = vadd.f32 %v7772_v5, %v7734_v19  ;;  %v3205_v58 = vadd.f32 %v7774_v32, %v7736_v23  ;;  %v3587_v59 = vadd.f32 %v3524_v48, %v3393_v12  ;;  %v4185_v23 = vld [vmem:[%s7859_s17] sm:$0xff]  ;;  %v4187_v12 = vld [vmem:[%s7859_s17 + $0x10] sm:$0xff] }
 0x3e8   : > { %v7834_v36 = vpop.f32.mrf.mxu0  ;;  %v3585_v37 = vadd.f32 %v3514_v2, %v3391_v6  ;;  %v3398_v2 = vadd.f32 %v7768_v3, %v3204_v41  ;;  %v3397_v46 = vadd.f32 %v7770_v21, %v3203_v45  ;;  %v3783_v19 = vadd.f32 %v7798_v9, %v3588_v22  ;;  %v4188_v9 = vld [vmem:[%s7859_s17 + $0x18] sm:$0xff]  ;;  %v8123_v41 = vld [vmem:[#allocation20_spill] sm:$0xff]  ;;  %v8124_v45 = vld [vmem:[#allocation22_spill] sm:$0xff] }
 0x3e9   : > { %v7837_v61 = vpop.f32.mrf.mxu1  ;;  %v3590_v5 = vadd.f32 %v7802_v49, %v3396_v54  ;;  %v3400_v51 = vadd.f32 %v7776_v60, %v3206_v30  ;;  %v3399_v14 = vadd.f32 %v7778_v24, %v3205_v58  ;;  %v3782_v3 = vadd.f32 %v7800_v8, %v3587_v59  ;;  %v8121_v60 = vld [vmem:[#allocation28_spill] sm:$0xff] }
 0x3ea   : > { %v3780_v33 = vadd.f32 %v7796_v53, %v3585_v37  ;;  %v3589_v21 = vadd.f32 %v7804_v52, %v3395_v17  ;;  %v3208_v47 = vadd.f32 %v7780_v26, %v7738_v63  ;;  %v3207_v22 = vadd.f32 %v8124_v45, %v8123_v41  ;;  %v8126_v26 = vld [vmem:[#allocation29_spill] sm:$0xff] }
 0x3eb   : > { %v7840_v31 = vpop.f32.mrf.mxu1  ;;  %v3785_v24 = vadd.f32 %v8121_v60, %v3590_v5  ;;  %v8133_v60 = vld [vmem:[#allocation21_spill] sm:$0xff] }
 0x3ec   : > { %v7843_v10 = vpop.f32.mrf.mxu0 }
 0x3ee   : > { %v7848_v57 = vpop.f32.mrf.mxu0 }
 0x3ef   : > { %v6045_v39 = vpop.f32.mrf.mxu1 }
 0x3f0   : > { %v3973_v40 = vadd.f32 %v6045_v39, %v3779_v1  ;;  %v8122_v39 = vld [vmem:[#allocation27_spill] sm:$0xff] }
 0x3f1   : > { %v3893_v44 = vpop.f32.mrf.mxu1  ;;  %v3592_v35 = vadd.f32 %v8122_v39, %v3398_v2 }
 0x3f2   : > { %v3972_v27 = vadd.f32 %v3893_v44, %v3778_v29  ;;  %v6101_v11 = vpop.f32.mrf.mxu0 }
 0x3f3   : > { %v4167_v38 = vadd.f32 %v6101_v11, %v3973_v40  ;;  %v3591_v11 = vadd.f32 %v8126_v26, %v3397_v46  ;;  %v4189_v46 = vld [vmem:[%s7859_s17 + $0x20] sm:$0xff]  ;;  %v8139_v26 = vld [vmem:[#allocation39_spill] sm:$0xff] }
 0x3f4   : > { %v6048_v62 = vpop.f32.mrf.mxu1  ;;  %v4087_v50 = vpop.f32.mrf.mxu0 }
 0x3f5   : > { %v4209_v16 = vadd.f32 %v7868_v56, %v4167_v38  ;;  %v3975_v15 = vadd.f32 %v6048_v62, %v3781_v25  ;;  %v4166_v7 = vadd.f32 %v4087_v50, %v3972_v27  ;;  %v8125_v27 = vld [vmem:[#allocation33_spill] sm:$0xff]  ;;  %v8127_v62 = vld [vmem:[#allocation24_spill] sm:$0xff] }
 0x3f6   : > { %v3903_v32 = vpop.f32.mrf.mxu1  ;;  %v6104_v13 = vpop.f32.mrf.mxu0  ;;  %v3784_v63 = vadd.f32 %v8125_v27, %v3589_v21  ;;  %v4190_v25 = vld [vmem:[%s7859_s17 + $0x28] sm:$0xff]  ;;  %v3402_v50 = vadd.f32 %v8127_v62, %v3208_v47 }
 0x3f7   : > { %v4225_v28 = vadd.f32 %v4209_v16, %v4186_v0  ;;  %v4208_v48 = vadd.f32 %v7868_v56, %v4166_v7  ;;  %v3974_v53 = vadd.f32 %v3903_v32, %v3780_v33  ;;  %v4169_v34 = vadd.f32 %v6104_v13, %v3975_v15  ;;  %v8128_v33 = vld [vmem:[#allocation34_spill] sm:$0xff]  ;;  %v8129_v15 = vld [vmem:[#allocation36_spill] sm:$0xff]  ;;  %v8132_v21 = vld [vmem:[#allocation37_spill] sm:$0xff] }
 0x3f8   : > { %v6051_v49 = vpop.f32.mrf.mxu1  ;;  %v4097_v42 = vpop.f32.mrf.mxu0  ;;  %v3787_v16 = vadd.f32 %v8128_v33, %v3592_v35  ;;  %v3594_v7 = vadd.f32 %v8129_v15, %v3400_v51  ;;  %v4192_v51 = vld [vmem:[%s7859_s17 + $0x38] sm:$0xff]  ;;  %v8135_v35 = vld [vmem:[#allocation38_spill] sm:$0xff]  ;;  %v8138_v27 = vld [vmem:[#allocation25_spill] sm:$0xff] }
 0x3f9   : > { %v4241_v43 = vmax.f32 %v4225_v28, 0.0  ;;  %v4224_v1 = vadd.f32 %v4208_v48, %v4185_v23  ;;  %v4211_v6 = vadd.f32 %v7868_v56, %v4169_v34  ;;  %v3977_v55 = vadd.f32 %v6051_v49, %v3783_v19  ;;  %v8130_v48 = vld [vmem:[#allocation31_spill] sm:$0xff] }
 0x3fa   : > { %v4168_v8 = vadd.f32 %v4097_v42, %v3974_v53  ;;  %v3913_v52 = vpop.f32.mrf.mxu1  ;;  %v6107_v20 = vpop.f32.mrf.mxu0  ;;  %v3401_v53 = vadd.f32 %v8130_v48, %v3207_v22  ;;  %v8131_v34 = vld [vmem:[#allocation35_spill] sm:$0xff]  ;;  %v8137_v22 = vld [vmem:[#allocation30_spill] sm:$0xff] }
 0x3fb   : > { %4257 = vst [vmem:[%s6741_s6 + $0x8] sm:$0xff] %v4241_v43  ;;  %v4240_v29 = vmax.f32 %v4224_v1, 0.0  ;;  %v4227_v40 = vadd.f32 %v4211_v6, %v4188_v9  ;;  %v3976_v37 = vadd.f32 %v3913_v52, %v3782_v3  ;;  %v4171_v44 = vadd.f32 %v6107_v20, %v3977_v55  ;;  %v8136_v52 = vld [vmem:[#allocation40_spill] sm:$0xff] }
 0x3fc   : > { %v4210_v54 = vadd.f32 %v7868_v56, %v4168_v8  ;;  %v6054_v38 = vpop.f32.mrf.mxu1  ;;  %v4107_v17 = vpop.f32.mrf.mxu0  ;;  %v3786_v3 = vadd.f32 %v8131_v34, %v3591_v11  ;;  %v3593_v9 = vadd.f32 %v8132_v21, %v3399_v14  ;;  %v3789_v8 = vadd.f32 %v8135_v35, %v3594_v7  ;;  %v4193_v7 = vld [vmem:[%s7859_s17 + $0x40] sm:$0xff] }
 0x3fd   : > { %4256 = vst [vmem:[%s6741_s6] sm:$0xff] %v4240_v29  ;;  %v4243_v30 = vmax.f32 %v4227_v40, 0.0  ;;  %v4213_v58 = vadd.f32 %v7868_v56, %v4171_v44  ;;  %v3979_v59 = vadd.f32 %v6054_v38, %v3785_v24  ;;  %v4170_v0 = vadd.f32 %v4107_v17, %v3976_v37  ;;  %v8134_v24 = vld [vmem:[#allocation23_spill] sm:$0xff]  ;;  %v4191_v44 = vld [vmem:[%s7859_s17 + $0x30] sm:$0xff]  ;;  %v4194_v38 = vld [vmem:[%s7859_s17 + $0x48] sm:$0xff] }
 0x3fe   : > { %v4226_v2 = vadd.f32 %v4210_v54, %v4187_v12  ;;  %v3923_v19 = vpop.f32.mrf.mxu1  ;;  %v6110_v5 = vpop.f32.mrf.mxu0  ;;  %v3210_v39 = vadd.f32 %v8134_v24, %v8133_v60  ;;  %v3596_v20 = vadd.f32 %v8136_v52, %v3402_v50  ;;  %v3788_v11 = vadd.f32 %v8139_v26, %v3593_v9  ;;  %v8140_v50 = vld [vmem:[#allocation32_spill] sm:$0xff] }
 0x3ff   : > { %4259 = vst [vmem:[%s6741_s6 + $0x18] sm:$0xff] %v4243_v30  ;;  %v4229_v23 = vadd.f32 %v4213_v58, %v4190_v25  ;;  %v4212_v32 = vadd.f32 %v7868_v56, %v4170_v0  ;;  %v3978_v13 = vadd.f32 %v3923_v19, %v3784_v63  ;;  %v4173_v28 = vadd.f32 %v6110_v5, %v3979_v59 }
 0x400   : > { %v4242_v49 = vmax.f32 %v4226_v2, 0.0  ;;  %v6057_v42 = vpop.f32.mrf.mxu1  ;;  %v4117_v43 = vpop.f32.mrf.mxu0  ;;  %v3209_v63 = vadd.f32 %v8138_v27, %v8137_v22  ;;  %v3595_v54 = vadd.f32 %v7829_v4, %v3401_v53  ;;  %v3404_v33 = vadd.f32 %v8140_v50, %v3210_v39  ;;  %v4198_v39 = vld [vmem:[%s7859_s17 + $0x68] sm:$0xff] }
 0x401   : > { %v4245_v1 = vmax.f32 %v4229_v23, 0.0  ;;  %v4228_v6 = vadd.f32 %v4212_v32, %v4189_v46  ;;  %v4215_v55 = vadd.f32 %v7868_v56, %v4173_v28  ;;  %v3981_v47 = vadd.f32 %v6057_v42, %v3787_v16  ;;  %v8141_v32 = vld [vmem:[#allocation26_spill] sm:$0xff] }
 0x402   : > { %4258 = vst [vmem:[%s6741_s6 + $0x10] sm:$0xff] %v4242_v49  ;;  %v4172_v14 = vadd.f32 %v4117_v43, %v3978_v13  ;;  %v3933_v29 = vpop.f32.mrf.mxu1  ;;  %v6113_v40 = vpop.f32.mrf.mxu0  ;;  %v3791_v16 = vadd.f32 %v7832_v18, %v3596_v20  ;;  %v3403_v13 = vadd.f32 %v8141_v32, %v3209_v63  ;;  %v3598_v28 = vadd.f32 %v7837_v61, %v3404_v33  ;;  %v4196_v18 = vld [vmem:[%s7859_s17 + $0x58] sm:$0xff] }
 0x403   : > { %4261 = vst [vmem:[%s6741_s6 + $0x28] sm:$0xff] %v4245_v1  ;;  %v4244_v12 = vmax.f32 %v4228_v6, 0.0  ;;  %v4231_v37 = vadd.f32 %v4215_v55, %v4192_v51  ;;  %v3980_v41 = vadd.f32 %v3933_v29, %v3786_v3  ;;  %v4175_v45 = vadd.f32 %v6113_v40, %v3981_v47  ;;  %v4195_v55 = vld [vmem:[%s7859_s17 + $0x50] sm:$0xff]  ;;  %v4197_v40 = vld [vmem:[%s7859_s17 + $0x60] sm:$0xff] }
 0x404   : > { %v4214_v25 = vadd.f32 %v7868_v56, %v4172_v14  ;;  %v6060_v17 = vpop.f32.mrf.mxu1  ;;  %v4127_v30 = vpop.f32.mrf.mxu0  ;;  %v3790_v48 = vadd.f32 %v7834_v36, %v3595_v54  ;;  %v3597_v42 = vadd.f32 %v7840_v31, %v3403_v13  ;;  %v4200_v54 = vld [vmem:[%s7859_s17 + $0x78] sm:$0xff] }
 0x405   : > { %4260 = vst [vmem:[%s6741_s6 + $0x20] sm:$0xff] %v4244_v12  ;;  %v4247_v58 = vmax.f32 %v4231_v37, 0.0  ;;  %v4217_v59 = vadd.f32 %v7868_v56, %v4175_v45  ;;  %v3983_v0 = vadd.f32 %v6060_v17, %v3789_v8  ;;  %v4174_v62 = vadd.f32 %v4127_v30, %v3980_v41  ;;  %v4199_v30 = vld [vmem:[%s7859_s17 + $0x70] sm:$0xff]  ;;  %s6371_s17 = sshll.u32 %s6503_s11, 4  ;;  %s6372_s17 = int_to_ptr.vmem [resolvable:$false] %s6371_s17 }
 0x406   : > { %v4230_v15 = vadd.f32 %v4214_v25, %v4191_v44  ;;  %v3943_v4 = vpop.f32.mrf.mxu1  ;;  %v6116_v2 = vpop.f32.mrf.mxu0  ;;  %v3793_v8 = vadd.f32 %v7843_v10, %v3598_v28  ;;  %v3792_v37 = vadd.f32 %v7848_v57, %v3597_v42  ;;  %s6373_s21 = scalar_lea.vmem %s6372_s17, 4096  ;;  %p6374_p12 = scmp.lt.s32.totalorder %s7969_s7, %s6372_s17 }
 0x407   : > { %4263 = vst [vmem:[%s6741_s6 + $0x38] sm:$0xff] %v4247_v58  ;;  %v4233_v46 = vadd.f32 %v4217_v59, %v4194_v38  ;;  %v4216_v19 = vadd.f32 %v7868_v56, %v4174_v62  ;;  %v3982_v5 = vadd.f32 %v3943_v4, %v3788_v11  ;;  %v4177_v23 = vadd.f32 %v6116_v2, %v3983_v0  ;;  %p6375_p0 = scmp.lt.s32.totalorder %s6373_s21, %s6367_s10 }
 0x408   : > { %v4246_v53 = vmax.f32 %v4230_v15, 0.0  ;;  %v6063_v34 = vpop.f32.mrf.mxu1  ;;  %v4137_v3 = vpop.f32.mrf.mxu0 }
 0x409   : > { %v4249_v21 = vmax.f32 %v4233_v46, 0.0  ;;  %v4232_v9 = vadd.f32 %v4216_v19, %v4193_v7  ;;  %v4219_v49 = vadd.f32 %v7868_v56, %v4177_v23  ;;  %v3985_v51 = vadd.f32 %v6063_v34, %v3791_v16  ;;  %p6376_p2 = por %p6375_p0, %p6374_p12 }
 0x40a   : > { %4262 = vst [vmem:[%s6741_s6 + $0x30] sm:$0xff] %v4246_v53  ;;  %v4176_v43 = vadd.f32 %v4137_v3, %v3982_v5  ;;  %v3953_v1 = vpop.f32.mrf.mxu1  ;;  %v6119_v61 = vpop.f32.mrf.mxu0 }
 0x40b   : > { %4265 = vst [vmem:[%s6741_s6 + $0x48] sm:$0xff] %v4249_v21  ;;  %v4248_v36 = vmax.f32 %v4232_v9, 0.0  ;;  %v4235_v6 = vadd.f32 %v4219_v49, %v4196_v18  ;;  %v3984_v47 = vadd.f32 %v3953_v1, %v3790_v48  ;;  %v4179_v60 = vadd.f32 %v6119_v61, %v3985_v51  ;;  %p6377_p4 = pnand %p6376_p2, %p6370_p5 }
 0x40c   : > { %v4218_v24 = vadd.f32 %v7868_v56, %v4176_v43  ;;  %v6066_v35 = vpop.f32.mrf.mxu1  ;;  %v4147_v31 = vpop.f32.mrf.mxu0 }
 0x40d   : > { %4264 = vst [vmem:[%s6741_s6 + $0x40] sm:$0xff] %v4248_v36  ;;  %v4251_v52 = vmax.f32 %v4235_v6, 0.0  ;;  %v4221_v20 = vadd.f32 %v7868_v56, %v4179_v60  ;;  %v4178_v14 = vadd.f32 %v4147_v31, %v3984_v47  ;;  %v3987_v41 = vadd.f32 %v6066_v35, %v3793_v8 }
 0x40e   : > { %v4234_v29 = vadd.f32 %v4218_v24, %v4195_v55  ;;  %v3963_v12 = vpop.f32.mrf.mxu1 }
 0x40f   : > { %4267 = vst [vmem:[%s6741_s6 + $0x58] sm:$0xff] %v4251_v52  ;;  %v4237_v44 = vadd.f32 %v4221_v20, %v4198_v39  ;;  %v4220_v45 = vadd.f32 %v7868_v56, %v4178_v14  ;;  %v3986_v26 = vadd.f32 %v3963_v12, %v3792_v37 }
 0x410   : > { %v4250_v10 = vmax.f32 %v4234_v29, 0.0  ;;  %v6122_v22 = vpop.f32.mrf.mxu1 }
 0x411   : > { %v4253_v27 = vmax.f32 %v4237_v44, 0.0  ;;  %v4236_v63 = vadd.f32 %v4220_v45, %v4197_v40  ;;  %v4181_v11 = vadd.f32 %v6122_v22, %v3987_v41 }
 0x412   : > { %4266 = vst [vmem:[%s6741_s6 + $0x50] sm:$0xff] %v4250_v10  ;;  %v4157_v57 = vpop.f32.mrf.mxu1 }
 0x413   : > { %4269 = vst [vmem:[%s6741_s6 + $0x68] sm:$0xff] %v4253_v27  ;;  %v4252_v25 = vmax.f32 %v4236_v63, 0.0  ;;  %v4223_v38 = vadd.f32 %v7868_v56, %v4181_v11  ;;  %v4180_v17 = vadd.f32 %v4157_v57, %v3986_v26 }
 0x415   : > { %4268 = vst [vmem:[%s6741_s6 + $0x60] sm:$0xff] %v4252_v25  ;;  %v4239_v58 = vadd.f32 %v4223_v38, %v4200_v54  ;;  %v4222_v59 = vadd.f32 %v7868_v56, %v4180_v17 }
 0x417   : > { %v4255_v0 = vmax.f32 %v4239_v58, 0.0  ;;  %v4238_v62 = vadd.f32 %v4222_v59, %v4199_v30 }
 0x419   : > { %4271 = vst [vmem:[%s6741_s6 + $0x78] sm:$0xff] %v4255_v0  ;;  %v4254_v50 = vmax.f32 %v4238_v62, 0.0 }
 0x41b   : > { %4270 = vst [vmem:[%s6741_s6 + $0x70] sm:$0xff] %v4254_v50 }
 0x41c   : > { %6380 = shalt.err (!%p6377_p4)
}
 0x41d   : > { %s6381_s25 = scalar_lea.hbm %s7967_s9, 2048  ;;  %s6385_s3 = scalar_lea.hbm %s8144_s15, 8192 }
 0x41e   : > { %p6382_p13 = scmp.ne.s32.totalorder %s7967_s9, %s6381_s25  ;;  %p6386_p6 = scmp.lt.s32.totalorder %s7967_s9, %s8144_s15 }
 0x41f   : > { %p6387_p1 = scmp.lt.s32.totalorder %s6385_s3, %s6381_s25 }
 0x420   : > { %p6383_p8 = pnand %p6382_p13, %p6607_p7 }
 0x421   : > { %p6388_p3 = por %p6387_p1, %p6386_p6 }
 0x422   : > { %p6384_p10 = pneg %p6383_p8 }
 0x424   : > { %p6389_p9 = pnand %p6388_p3, %p6384_p10 }
 0x426   : > { %6392 = shalt.err (!%p6389_p9)
}
 0x427   : > { %s6504_s5 = smov 128   ;;  %s6505_s30 = smov 8  }
 0x428   : > { %6165 = dma.vmem_to_hbm [thread:$0]  (%p6607_p7), %s7969_s7, 2048, %s7967_s9, %s7975_s8, %s6504_s5, %s6504_s5, %s6505_s30  }
 0x429 PF: > { %s8145_s12 = sld [smem:[#allocation14_spill]]  ;;  %p6187_p11 = scmp.ge.s32.totalorder %s6491_s28, 2 }
 0x42a   : > { %s8146_s16 = sld [smem:[#allocation18_spill]] }
 0x42f   : > { %s4304_s10 = sand.u32 1, %s8145_s12  }
 0x430   : > { %p8147_p5 = scmp.ne.s32.totalorder %s8146_s16, 0  ;;  %s4305_s11 = scalar_lea.sflag [#allocation6], %s4304_s10 }
 0x432   : > { %p6179_p12 = pnand %p6187_p11, %p8147_p5 }
 0x434   : > { %p6180_p0 = pneg %p6179_p12 }
 0x436   : > { %6446 = dma.done.wait (%p6180_p0), %s4305_s11, 2048  }
 0x437   : > { %6448 = vsyncadd (%p6180_p0), %s4305_s11, 4294965248  ;;  %s22_s28 = sadd.s32 1, %s6491_s28   ;;  %s8148_s24 = smov %s6679_s18 }
 0x438   : > { %p19_p2 = scmp.ge.s32.totalorder %s22_s28, 6   ;;  %s8149_s7 = sld [smem:[#allocation16_spill]] }
 0x439   : > { %s8150_s9 = sld [smem:[#allocation19_spill]]  ;;  %s8151_s18 = smov %s6455_s19 }
 0x43a   : > { %s8152_s19 = smov %s6459_s20  ;;  %s8153_s20 = smov %s6684_s26 }
 0x43b   : > { %s8154_s21 = smov %s6467_s22  ;;  %s8155_s22 = smov %s6471_s23 }
 0x43c   : > { %s8156_s23 = smov %s8148_s24  ;;  %s8158_s25 = smov %s6487_s27 }
 0x43d   : > { %s8160_s27 = smov %s8166_s14  ;;  %21 = sbr.rel (!%p19_p2) target bundleno = 14 (0xe), region = 134 }
 0x43e   : > { %s8157_s24 = smov %s8149_s7 }
 0x43f   : > { %s8159_s26 = smov %s8150_s9 }
 0x442   :  { %4310 = vsyncpa [#allocation5], 1 }
 0x443   :  { %4312 = vsyncpa [#allocation5 + $0x1], 1 }
 0x444   :  { %4313 = vsyncpa [#allocation8], 1 }
 0x445   :  { %4314 = vsyncpa [#allocation6], 1 }
 0x446   :  { %4316 = vsyncpa [#allocation6 + $0x1], 1 }

</bundles_post_ra>
